<compile_context>
chip_gen: v7x
topology: tpu7x:2x2x1
jax: 0.10.0
libtpu: 0.0.40
codegen_flags: <defaults>
</compile_context>

<pallas_src>
import math
from dataclasses import dataclass

import jax
import jax.numpy as jnp
from jax.experimental import pallas as pl
from jax.experimental.pallas import tpu as pltpu


# --------------------------------------------------------------------------
# Config
# --------------------------------------------------------------------------
@dataclass
class VPTransformerParams:
    src_size: int
    tgt_size: int
    vp_bases: int
    vp_penalty: int
    d_model: int
    num_heads: int
    num_layers: int
    d_ff: int
    max_seq_length: int
    dropout: float


_MXU = jnp.bfloat16          # MXU operand dtype (f32 accumulation everywhere)
_LN_EPS = 1e-5
_NEG_INF = -1e9


# --------------------------------------------------------------------------
# Small helpers
# --------------------------------------------------------------------------
def _vmem_limit_bytes():
    """Generation-aware scoped VMEM limit: use the chip's real capacity
    (128 MiB on v5e/v6e, 64 MiB on v7x) instead of a one-size-fits-all cap."""
    try:
        cap = pltpu.get_tpu_info().vmem_capacity_bytes
    except Exception:
        cap = 64 * 1024 * 1024
    return min(int(cap * 3 // 4), 100 * 1024 * 1024)


def _cparams():
    return pltpu.CompilerParams(
        dimension_semantics=("parallel",),          # batch axis -> megacore
        vmem_limit_bytes=_vmem_limit_bytes(),
    )


def _full_spec(a):
    """Whole-array block, re-used at every grid step (grid-invariant operand)."""
    zeros = (0,) * a.ndim
    return pl.BlockSpec(a.shape, lambda *_: zeros)


def _ln_f32(x, g, b):
    """LayerNorm in f32 (matches torch eps=1e-5)."""
    mu = jnp.mean(x, axis=-1, keepdims=True)
    xc = x - mu
    var = jnp.mean(xc * xc, axis=-1, keepdims=True)
    return xc * jax.lax.rsqrt(var + _LN_EPS) * g + b


def _sdpa(q, k, v, mask, num_heads, dk):
    """Per-head scaled-dot-product attention.

    q: [Sq, d], k/v: [Sk, d], all f32.  The 1/sqrt(dk) scale is already folded
    into the Q projection weights.  Returns concatenated context [Sq, d] f32.
    """
    outs = []
    for h in range(num_heads):
        sl = slice(h * dk, (h + 1) * dk)
        s = jax.lax.dot_general(
            q[:, sl].astype(_MXU), k[:, sl].astype(_MXU),
            (((1,), (1,)), ((), ())),
            preferred_element_type=jnp.float32)              # [Sq, Sk] f32
        if mask is not None:
            s = jnp.where(mask, s, _NEG_INF)
        s = s - jnp.max(s, axis=-1, keepdims=True)           # f32 softmax stats
        p = jnp.exp(s)
        p = p * pl.reciprocal(jnp.sum(p, axis=-1, keepdims=True), approx=True)
        outs.append(jnp.dot(p.astype(_MXU), v[:, sl].astype(_MXU),
                            preferred_element_type=jnp.float32))   # [Sq, dk]
    return jnp.concatenate(outs, axis=-1)                    # [Sq, d]


# --------------------------------------------------------------------------
# Pallas kernels
# --------------------------------------------------------------------------
def _make_encoder_kernel(num_layers, num_heads, d_model):
    """VP projection + PE + the full encoder layer stack, one batch element."""
    dk = d_model // num_heads

    def kernel(src_ref, wvp_ref, bvp_ref, pe_ref,
               wqkv_ref, bqkv_ref, wo_ref, bo_ref, ln1g_ref, ln1b_ref,
               w1_ref, b1_ref, w2_ref, b2_ref, ln2g_ref, ln2b_ref,
               o_ref):
        # --- VP layer (pinv(Phi)^T and vp_W folded into one matrix) + PE add ---
        x = jnp.dot(src_ref[...].astype(_MXU), wvp_ref[...],
                    preferred_element_type=jnp.float32)
        x = x + bvp_ref[...] + pe_ref[...]                   # [S_src, d] f32

        for l in range(num_layers):                          # weights resident in VMEM
            # --- self-attention: one fused [d,3d] QKV matmul, heads sliced ---
            qkv = jnp.dot(x.astype(_MXU), wqkv_ref[l],
                          preferred_element_type=jnp.float32) + bqkv_ref[l]
            q = qkv[:, :d_model]
            k = qkv[:, d_model:2 * d_model]
            v = qkv[:, 2 * d_model:]
            ctx = _sdpa(q, k, v, None, num_heads, dk)        # no mask in encoder
            attn = jnp.dot(ctx.astype(_MXU), wo_ref[l],
                           preferred_element_type=jnp.float32) + bo_ref[l]
            x = _ln_f32(x + attn, ln1g_ref[l], ln1b_ref[l])

            # --- FFN: W1 + ReLU + W2 (intermediate never leaves VMEM) ---
            hid = jnp.dot(x.astype(_MXU), w1_ref[l],
                          preferred_element_type=jnp.float32) + b1_ref[l]
            hid = jnp.maximum(hid, 0.0)
            y = jnp.dot(hid.astype(_MXU), w2_ref[l],
                        preferred_element_type=jnp.float32) + b2_ref[l]
            x = _ln_f32(x + y, ln2g_ref[l], ln2b_ref[l])

        o_ref[...] = x.astype(o_ref.dtype)                   # bf16 inter-kernel

    return kernel


def _make_decoder_kernel(num_layers, num_heads, d_model, s_tgt):
    """Full decoder layer stack + output head, one batch element."""
    dk = d_model // num_heads

    def kernel(y_ref, enc_ref,
               wqkv_s_ref, bqkv_s_ref, wo_s_ref, bo_s_ref, ln1g_ref, ln1b_ref,
               wq_c_ref, bq_c_ref, wkv_c_ref, bkv_c_ref, wo_c_ref, bo_c_ref,
               ln2g_ref, ln2b_ref,
               w1_ref, b1_ref, w2_ref, b2_ref, ln3g_ref, ln3b_ref,
               wout_ref, bout_ref, o_ref):
        x = y_ref[...].astype(jnp.float32)                   # [S_tgt, d]
        enc_m = enc_ref[...].astype(_MXU)                    # [S_src, d] bf16 (hoisted)

        # Causal mask built in-kernel: no [S,S] mask DMA / HBM buffer.
        row = jax.lax.broadcasted_iota(jnp.int32, (s_tgt, s_tgt), 0)
        col = jax.lax.broadcasted_iota(jnp.int32, (s_tgt, s_tgt), 1)
        causal = col <= row

        for l in range(num_layers):
            # --- masked self-attention ---
            qkv = jnp.dot(x.astype(_MXU), wqkv_s_ref[l],
                          preferred_element_type=jnp.float32) + bqkv_s_ref[l]
            q = qkv[:, :d_model]
            k = qkv[:, d_model:2 * d_model]
            v = qkv[:, 2 * d_model:]
            ctx = _sdpa(q, k, v, causal, num_heads, dk)
            attn = jnp.dot(ctx.astype(_MXU), wo_s_ref[l],
                           preferred_element_type=jnp.float32) + bo_s_ref[l]
            x = _ln_f32(x + attn, ln1g_ref[l], ln1b_ref[l])

            # --- cross-attention (K/V from encoder output) ---
            q = jnp.dot(x.astype(_MXU), wq_c_ref[l],
                        preferred_element_type=jnp.float32) + bq_c_ref[l]
            kv = jnp.dot(enc_m, wkv_c_ref[l],
                         preferred_element_type=jnp.float32) + bkv_c_ref[l]
            k = kv[:, :d_model]
            v = kv[:, d_model:]
            ctx = _sdpa(q, k, v, None, num_heads, dk)        # no mask for cross-attn
            attn = jnp.dot(ctx.astype(_MXU), wo_c_ref[l],
                           preferred_element_type=jnp.float32) + bo_c_ref[l]
            x = _ln_f32(x + attn, ln2g_ref[l], ln2b_ref[l])

            # --- FFN ---
            hid = jnp.dot(x.astype(_MXU), w1_ref[l],
                          preferred_element_type=jnp.float32) + b1_ref[l]
            hid = jnp.maximum(hid, 0.0)
            y = jnp.dot(hid.astype(_MXU), w2_ref[l],
                        preferred_element_type=jnp.float32) + b2_ref[l]
            x = _ln_f32(x + y, ln3g_ref[l], ln3b_ref[l])

        # --- output head, padded to a 128-lane multiple (unmasked stores) ---
        logits = jnp.dot(x.astype(_MXU), wout_ref[...],
                         preferred_element_type=jnp.float32) + bout_ref[...]
        o_ref[...] = logits.astype(o_ref.dtype)

    return kernel


# --------------------------------------------------------------------------
# Kernel wrappers
# --------------------------------------------------------------------------
def encoder_forward(src, w_vp, vp_b, pe_src, ew, cfg):
    b, s_src, n = src.shape
    d = cfg.d_model
    kernel = _make_encoder_kernel(cfg.num_layers, cfg.num_heads, d)
    args = (src, w_vp, vp_b, pe_src,
            ew["wqkv"], ew["bqkv"], ew["wo"], ew["bo"], ew["ln1_g"], ew["ln1_b"],
            ew["w1"], ew["b1"], ew["w2"], ew["b2"], ew["ln2_g"], ew["ln2_b"])
    in_specs = [pl.BlockSpec((None, s_src, n), lambda i: (i, 0, 0))]
    in_specs += [_full_spec(a) for a in args[1:]]
    return pl.pallas_call(
        kernel,
        out_shape=jax.ShapeDtypeStruct((b, s_src, d), jnp.bfloat16),
        grid=(b,),
        in_specs=in_specs,
        out_specs=pl.BlockSpec((None, s_src, d), lambda i: (i, 0, 0)),
        compiler_params=_cparams(),
    )(*args)


def decoder_forward(y0, enc_out, dw, w_out, b_out, cfg):
    b, s_tgt, d = y0.shape
    s_src = enc_out.shape[1]
    tgt_pad = w_out.shape[1]
    kernel = _make_decoder_kernel(cfg.num_layers, cfg.num_heads, d, s_tgt)
    args = (y0, enc_out,
            dw["sa_wqkv"], dw["sa_bqkv"], dw["sa_wo"], dw["sa_bo"],
            dw["ln1_g"], dw["ln1_b"],
            dw["ca_wq"], dw["ca_bq"], dw["ca_wkv"], dw["ca_bkv"],
            dw["ca_wo"], dw["ca_bo"], dw["ln2_g"], dw["ln2_b"],
            dw["w1"], dw["b1"], dw["w2"], dw["b2"], dw["ln3_g"], dw["ln3_b"],
            w_out, b_out)
    in_specs = [pl.BlockSpec((None, s_tgt, d), lambda i: (i, 0, 0)),
                pl.BlockSpec((None, s_src, d), lambda i: (i, 0, 0))]
    in_specs += [_full_spec(a) for a in args[2:]]
    return pl.pallas_call(
        kernel,
        out_shape=jax.ShapeDtypeStruct((b, s_tgt, tgt_pad), jnp.float32),
        grid=(b,),
        in_specs=in_specs,
        out_specs=pl.BlockSpec((None, s_tgt, tgt_pad), lambda i: (i, 0, 0)),
        compiler_params=_cparams(),
    )(*args)


# --------------------------------------------------------------------------
# VP layer setup glue (adaptive Hermite function system) + PE table
# --------------------------------------------------------------------------
def ada_hermite(dilation, translation, n, m):
    """Adaptive Hermite functions Phi[n, m] sampled on t = 0..n-1."""
    t = jnp.arange(n, dtype=jnp.float32)
    x = dilation * (t - translation)
    h_prev = (math.pi ** -0.25) * jnp.exp(-0.5 * x * x)      # psi_0
    cols = [h_prev]
    if m > 1:
        h_cur = math.sqrt(2.0) * x * h_prev                  # psi_1
        cols.append(h_cur)
        for k in range(2, m):
            h_next = math.sqrt(2.0 / k) * x * h_cur - math.sqrt((k - 1) / k) * h_prev
            h_prev, h_cur = h_cur, h_next
            cols.append(h_cur)
    return jnp.stack(cols, axis=1) * jnp.sqrt(dilation)      # [n, m]


def sinusoidal_pe(max_len, d_model):
    pos = jnp.arange(max_len, dtype=jnp.float32)[:, None]
    i = jnp.arange(0, d_model, 2, dtype=jnp.float32)[None, :]
    div = jnp.exp(-math.log(10000.0) * i / d_model)
    pe = jnp.zeros((max_len, d_model), jnp.float32)
    pe = pe.at[:, 0::2].set(jnp.sin(pos * div))
    pe = pe.at[:, 1::2].set(jnp.cos(pos * div))
    return pe


# --------------------------------------------------------------------------
# Parameter initialisation (deterministic, synthetic; weights in fused layouts)
# --------------------------------------------------------------------------
def init_params(key, cfg: VPTransformerParams):
    d, f, heads, L = cfg.d_model, cfg.d_ff, cfg.num_heads, cfg.num_layers
    dk = d // heads
    q_scale = 1.0 / math.sqrt(dk)                            # folded into Wq
    tgt_pad = ((cfg.tgt_size + 127) // 128) * 128            # lane-dense head
    keys = iter(jax.random.split(key, 1024))

    def dense(shape, scale=0.02):
        return (scale * jax.random.normal(next(keys), shape)).astype(jnp.float32)

    def ln_pair():
        return jnp.ones((1, d), jnp.float32), jnp.zeros((1, d), jnp.float32)

    def self_attn():
        wq = dense((d, d)) * q_scale
        wk = dense((d, d))
        wv = dense((d, d))
        return (jnp.concatenate([wq, wk, wv], axis=1).astype(_MXU),   # [d, 3d]
                jnp.zeros((1, 3 * d), jnp.float32),
                dense((d, d)).astype(_MXU),                           # Wo [d, d]
                jnp.zeros((1, d), jnp.float32))

    def cross_attn():
        return ((dense((d, d)) * q_scale).astype(_MXU),               # Wq [d, d]
                jnp.zeros((1, d), jnp.float32),
                jnp.concatenate([dense((d, d)), dense((d, d))],
                                axis=1).astype(_MXU),                 # Wkv [d, 2d]
                jnp.zeros((1, 2 * d), jnp.float32),
                dense((d, d)).astype(_MXU),
                jnp.zeros((1, d), jnp.float32))

    def ffn():
        return (dense((d, f)).astype(_MXU), jnp.zeros((1, f), jnp.float32),
                dense((f, d)).astype(_MXU), jnp.zeros((1, d), jnp.float32))

    def stack_layers(layer_list):
        return {k: jnp.stack([lay[k] for lay in layer_list], axis=0)
                for k in layer_list[0]}

    enc_layers = []
    for _ in range(L):
        wqkv, bqkv, wo, bo = self_attn()
        w1, b1, w2, b2 = ffn()
        g1, be1 = ln_pair()
        g2, be2 = ln_pair()
        enc_layers.append(dict(wqkv=wqkv, bqkv=bqkv, wo=wo, bo=bo,
                               ln1_g=g1, ln1_b=be1,
                               w1=w1, b1=b1, w2=w2, b2=b2,
                               ln2_g=g2, ln2_b=be2))

    dec_layers = []
    for _ in range(L):
        s_wqkv, s_bqkv, s_wo, s_bo = self_attn()
        c_wq, c_bq, c_wkv, c_bkv, c_wo, c_bo = cross_attn()
        w1, b1, w2, b2 = ffn()
        g1, be1 = ln_pair()
        g2, be2 = ln_pair()
        g3, be3 = ln_pair()
        dec_layers.append(dict(sa_wqkv=s_wqkv, sa_bqkv=s_bqkv, sa_wo=s_wo, sa_bo=s_bo,
                               ln1_g=g1, ln1_b=be1,
                               ca_wq=c_wq, ca_bq=c_bq, ca_wkv=c_wkv, ca_bkv=c_bkv,
                               ca_wo=c_wo, ca_bo=c_bo, ln2_g=g2, ln2_b=be2,
                               w1=w1, b1=b1, w2=w2, b2=b2,
                               ln3_g=g3, ln3_b=be3))

    w_out = jnp.zeros((d, tgt_pad), jnp.float32)
    w_out = w_out.at[:, :cfg.tgt_size].set(dense((d, cfg.tgt_size)))

    return {
        "vp_dilation": jnp.float32(0.3),
        "vp_translation": jnp.float32(cfg.src_size / 2.0),
        "vp_W": dense((cfg.vp_bases, d)),                    # folded with pinv at fwd
        "vp_b": jnp.zeros((1, d), jnp.float32),
        "tgt_emb": dense((cfg.tgt_size, d), scale=1.0 / math.sqrt(d)),
        "pe": sinusoidal_pe(cfg.max_seq_length, d),
        "W_out": w_out.astype(_MXU),                         # [d, tgt_pad] bf16
        "b_out": jnp.zeros((1, tgt_pad), jnp.float32),
        "encoder": stack_layers(enc_layers),                 # weights stacked [L, ...]
        "decoder": stack_layers(dec_layers),
    }


# --------------------------------------------------------------------------
# Model forward (thin glue around the two fused Pallas kernels)
# --------------------------------------------------------------------------
def vp_transformer_forward(params, src, tgt, cfg: VPTransformerParams):
    b, s_src, n = src.shape
    s_tgt = tgt.shape[1]

    # VP system: fold pinv(Phi)^T and vp_W into one [src_size, d] matrix (setup glue).
    phi = ada_hermite(params["vp_dilation"], params["vp_translation"], n, cfg.vp_bases)
    w_vp = (jnp.linalg.pinv(phi).T @ params["vp_W"]).astype(_MXU)     # [n, d]

    # Kernel 1: VP projection + PE + full encoder stack.
    enc_out = encoder_forward(src, w_vp, params["vp_b"],
                              params["pe"][:s_src], params["encoder"], cfg)

    # Target embedding gather + PE in JAX (cheap); bf16 inter-kernel activation.
    y0 = (jnp.take(params["tgt_emb"], tgt, axis=0)
          + params["pe"][:s_tgt][None]).astype(_MXU)

    # Kernel 2: full decoder stack + lane-padded output head.
    logits_pad = decoder_forward(y0, enc_out, params["decoder"],
                                 params["W_out"], params["b_out"], cfg)
    return logits_pad[..., :cfg.tgt_size]


# --------------------------------------------------------------------------
# Demo
# --------------------------------------------------------------------------
if __name__ == "__main__":
    cfg = VPTransformerParams(
        src_size=16,
        tgt_size=10,
        vp_bases=4,
        vp_penalty=2,
        d_model=32,
        num_heads=4,
        num_layers=2,
        d_ff=64,
        max_seq_length=16,
        dropout=0.0,          # eval-mode: dropout is a no-op in forward
    )

    key = jax.random.PRNGKey(0)
    k_src, k_tgt, k_par = jax.random.split(key, 3)

    batch, s_src, s_tgt = 2, 8, 8
    src = jax.random.normal(k_src, (batch, s_src, cfg.src_size), dtype=jnp.float32)
    tgt = jax.random.randint(k_tgt, (batch, s_tgt), 0, cfg.tgt_size, dtype=jnp.int32)

    params = init_params(k_par, cfg)

    fwd = jax.jit(lambda p, s, t: vp_transformer_forward(p, s, t, cfg))
    out = jax.block_until_ready(fwd(params, src, tgt))

    assert out.shape == (batch, s_tgt, cfg.tgt_size)
    assert bool(jnp.all(jnp.isfinite(out)))
    print("KERNEL_OK")
</pallas_src>

<mosaic_0001>
module attributes {stable_mosaic.version = 11 : i64} {
  func.func @kernel(%arg0: i32, %arg1: memref<1x8x16xf32, #tpu.memory_space<vmem>>, %arg2: memref<16x32xbf16, #tpu.memory_space<vmem>>, %arg3: memref<1x32xf32, #tpu.memory_space<vmem>>, %arg4: memref<8x32xf32, #tpu.memory_space<vmem>>, %arg5: memref<2x32x96xbf16, #tpu.memory_space<vmem>>, %arg6: memref<2x1x96xf32, #tpu.memory_space<vmem>>, %arg7: memref<2x32x32xbf16, #tpu.memory_space<vmem>>, %arg8: memref<2x1x32xf32, #tpu.memory_space<vmem>>, %arg9: memref<2x1x32xf32, #tpu.memory_space<vmem>>, %arg10: memref<2x1x32xf32, #tpu.memory_space<vmem>>, %arg11: memref<2x32x64xbf16, #tpu.memory_space<vmem>>, %arg12: memref<2x1x64xf32, #tpu.memory_space<vmem>>, %arg13: memref<2x64x32xbf16, #tpu.memory_space<vmem>>, %arg14: memref<2x1x32xf32, #tpu.memory_space<vmem>>, %arg15: memref<2x1x32xf32, #tpu.memory_space<vmem>>, %arg16: memref<2x1x32xf32, #tpu.memory_space<vmem>>, %arg17: memref<1x8x32xbf16, #tpu.memory_space<vmem>>) attributes {dimension_semantics = [#tpu.dimension_semantics<parallel>], iteration_bounds = array<i64: 2>, scalar_prefetch = 0 : i64, scratch_operands = 0 : i64, tpu.core_type = #tpu.core_type<tc>, window_params = [{transform_indices = @transform_0, window_bounds = array<i64: 1, 8, 16>}, {pipeline_mode = #tpu.pipeline_mode<synchronous>, transform_indices = @transform_1, window_bounds = array<i64: 16, 32>}, {pipeline_mode = #tpu.pipeline_mode<synchronous>, transform_indices = @transform_2, window_bounds = array<i64: 1, 32>}, {pipeline_mode = #tpu.pipeline_mode<synchronous>, transform_indices = @transform_3, window_bounds = array<i64: 8, 32>}, {pipeline_mode = #tpu.pipeline_mode<synchronous>, transform_indices = @transform_4, window_bounds = array<i64: 2, 32, 96>}, {pipeline_mode = #tpu.pipeline_mode<synchronous>, transform_indices = @transform_5, window_bounds = array<i64: 2, 1, 96>}, {pipeline_mode = #tpu.pipeline_mode<synchronous>, transform_indices = @transform_6, window_bounds = array<i64: 2, 32, 32>}, {pipeline_mode = #tpu.pipeline_mode<synchronous>, transform_indices = @transform_7, window_bounds = array<i64: 2, 1, 32>}, {pipeline_mode = #tpu.pipeline_mode<synchronous>, transform_indices = @transform_8, window_bounds = array<i64: 2, 1, 32>}, {pipeline_mode = #tpu.pipeline_mode<synchronous>, transform_indices = @transform_9, window_bounds = array<i64: 2, 1, 32>}, {pipeline_mode = #tpu.pipeline_mode<synchronous>, transform_indices = @transform_10, window_bounds = array<i64: 2, 32, 64>}, {pipeline_mode = #tpu.pipeline_mode<synchronous>, transform_indices = @transform_11, window_bounds = array<i64: 2, 1, 64>}, {pipeline_mode = #tpu.pipeline_mode<synchronous>, transform_indices = @transform_12, window_bounds = array<i64: 2, 64, 32>}, {pipeline_mode = #tpu.pipeline_mode<synchronous>, transform_indices = @transform_13, window_bounds = array<i64: 2, 1, 32>}, {pipeline_mode = #tpu.pipeline_mode<synchronous>, transform_indices = @transform_14, window_bounds = array<i64: 2, 1, 32>}, {pipeline_mode = #tpu.pipeline_mode<synchronous>, transform_indices = @transform_15, window_bounds = array<i64: 2, 1, 32>}, {transform_indices = @transform_16, window_bounds = array<i64: 1, 8, 32>}]} {
    %c0 = arith.constant 0 : index
    %c0_0 = arith.constant 0 : index
    %c0_1 = arith.constant 0 : index
    %0 = vector.load %arg1[%c0, %c0_0, %c0_1] : memref<1x8x16xf32, #tpu.memory_space<vmem>>, vector<1x8x16xf32>
    %1 = vector.shape_cast %0 : vector<1x8x16xf32> to vector<8x16xf32>
    %2 = arith.truncf %1 : vector<8x16xf32> to vector<8x16xbf16>
    %c0_2 = arith.constant 0 : index
    %c0_3 = arith.constant 0 : index
    %3 = vector.load %arg2[%c0_2, %c0_3] : memref<16x32xbf16, #tpu.memory_space<vmem>>, vector<16x32xbf16>
    %cst = arith.constant dense<0.000000e+00> : vector<8x32xf32>
    %4 = tpu.matmul %2, %3, %cst {dimension_numbers = #tpu.dot_dimension_numbers<[1], [0], [0], [1], [0, 0, 1, 1], [], []>} : vector<8x16xbf16>, vector<16x32xbf16>, vector<8x32xf32> -> vector<8x32xf32>
    %c0_4 = arith.constant 0 : index
    %c0_5 = arith.constant 0 : index
    %5 = vector.load %arg3[%c0_4, %c0_5] : memref<1x32xf32, #tpu.memory_space<vmem>>, vector<1x32xf32>
    %6 = vector.broadcast %5 : vector<1x32xf32> to vector<8x32xf32>
    %7 = arith.addf %4, %6 : vector<8x32xf32>
    %c0_6 = arith.constant 0 : index
    %c0_7 = arith.constant 0 : index
    %8 = vector.load %arg4[%c0_6, %c0_7] : memref<8x32xf32, #tpu.memory_space<vmem>>, vector<8x32xf32>
    %9 = arith.addf %7, %8 : vector<8x32xf32>
    %10 = arith.truncf %9 : vector<8x32xf32> to vector<8x32xbf16>
    %c0_8 = arith.constant 0 : index
    %c0_9 = arith.constant 0 : index
    %c0_10 = arith.constant 0 : index
    %11 = vector.load %arg5[%c0_8, %c0_9, %c0_10] : memref<2x32x96xbf16, #tpu.memory_space<vmem>>, vector<1x32x96xbf16>
    %12 = vector.shape_cast %11 : vector<1x32x96xbf16> to vector<32x96xbf16>
    %cst_11 = arith.constant dense<0.000000e+00> : vector<8x96xf32>
    %13 = tpu.matmul %10, %12, %cst_11 {dimension_numbers = #tpu.dot_dimension_numbers<[1], [0], [0], [1], [0, 0, 1, 1], [], []>} : vector<8x32xbf16>, vector<32x96xbf16>, vector<8x96xf32> -> vector<8x96xf32>
    %c0_12 = arith.constant 0 : index
    %c0_13 = arith.constant 0 : index
    %c0_14 = arith.constant 0 : index
    %14 = vector.load %arg6[%c0_12, %c0_13, %c0_14] : memref<2x1x96xf32, #tpu.memory_space<vmem>>, vector<1x1x96xf32>
    %15 = vector.shape_cast %14 : vector<1x1x96xf32> to vector<1x96xf32>
    %16 = vector.broadcast %15 : vector<1x96xf32> to vector<8x96xf32>
    %17 = arith.addf %13, %16 : vector<8x96xf32>
    %18 = vector.extract_strided_slice %17 {offsets = [0, 0], sizes = [8, 32], strides = [1, 1]} : vector<8x96xf32> to vector<8x32xf32>
    %19 = vector.extract_strided_slice %17 {offsets = [0, 32], sizes = [8, 32], strides = [1, 1]} : vector<8x96xf32> to vector<8x32xf32>
    %20 = vector.extract_strided_slice %17 {offsets = [0, 64], sizes = [8, 32], strides = [1, 1]} : vector<8x96xf32> to vector<8x32xf32>
    %21 = vector.extract_strided_slice %18 {offsets = [0, 0], sizes = [8, 8], strides = [1, 1]} : vector<8x32xf32> to vector<8x8xf32>
    %22 = arith.truncf %21 : vector<8x8xf32> to vector<8x8xbf16>
    %23 = vector.extract_strided_slice %19 {offsets = [0, 0], sizes = [8, 8], strides = [1, 1]} : vector<8x32xf32> to vector<8x8xf32>
    %24 = arith.truncf %23 : vector<8x8xf32> to vector<8x8xbf16>
    %cst_15 = arith.constant dense<0.000000e+00> : vector<8x8xf32>
    %25 = tpu.matmul %22, %24, %cst_15 {dimension_numbers = #tpu.dot_dimension_numbers<[1], [1], [0], [0], [0, 0, 1, 0], [], []>} : vector<8x8xbf16>, vector<8x8xbf16>, vector<8x8xf32> -> vector<8x8xf32>
    %cst_16 = arith.constant dense<0xFF800000> : vector<8xf32>
    %26 = vector.multi_reduction <maximumf>, %25, %cst_16 [1] : vector<8x8xf32> to vector<8xf32>
    %27 = vector.shape_cast %26 : vector<8xf32> to vector<8x1xf32>
    %28 = vector.broadcast %27 : vector<8x1xf32> to vector<8x8xf32>
    %29 = arith.subf %25, %28 : vector<8x8xf32>
    %30 = math.exp %29 : vector<8x8xf32>
    %cst_17 = arith.constant dense<0.000000e+00> : vector<8xf32>
    %31 = vector.multi_reduction <add>, %30, %cst_17 [1] : vector<8x8xf32> to vector<8xf32>
    %32 = vector.shape_cast %31 : vector<8xf32> to vector<8x1xf32>
    %33 = tpu.reciprocal %32 {approx = true} : vector<8x1xf32> -> vector<8x1xf32>
    %34 = vector.broadcast %33 : vector<8x1xf32> to vector<8x8xf32>
    %35 = arith.mulf %30, %34 : vector<8x8xf32>
    %36 = arith.truncf %35 : vector<8x8xf32> to vector<8x8xbf16>
    %37 = vector.extract_strided_slice %20 {offsets = [0, 0], sizes = [8, 8], strides = [1, 1]} : vector<8x32xf32> to vector<8x8xf32>
    %38 = arith.truncf %37 : vector<8x8xf32> to vector<8x8xbf16>
    %cst_18 = arith.constant dense<0.000000e+00> : vector<8x8xf32>
    %39 = tpu.matmul %36, %38, %cst_18 {dimension_numbers = #tpu.dot_dimension_numbers<[1], [0], [0], [1], [0, 0, 1, 1], [], []>} : vector<8x8xbf16>, vector<8x8xbf16>, vector<8x8xf32> -> vector<8x8xf32>
    %40 = vector.extract_strided_slice %18 {offsets = [0, 8], sizes = [8, 8], strides = [1, 1]} : vector<8x32xf32> to vector<8x8xf32>
    %41 = arith.truncf %40 : vector<8x8xf32> to vector<8x8xbf16>
    %42 = vector.extract_strided_slice %19 {offsets = [0, 8], sizes = [8, 8], strides = [1, 1]} : vector<8x32xf32> to vector<8x8xf32>
    %43 = arith.truncf %42 : vector<8x8xf32> to vector<8x8xbf16>
    %cst_19 = arith.constant dense<0.000000e+00> : vector<8x8xf32>
    %44 = tpu.matmul %41, %43, %cst_19 {dimension_numbers = #tpu.dot_dimension_numbers<[1], [1], [0], [0], [0, 0, 1, 0], [], []>} : vector<8x8xbf16>, vector<8x8xbf16>, vector<8x8xf32> -> vector<8x8xf32>
    %cst_20 = arith.constant dense<0xFF800000> : vector<8xf32>
    %45 = vector.multi_reduction <maximumf>, %44, %cst_20 [1] : vector<8x8xf32> to vector<8xf32>
    %46 = vector.shape_cast %45 : vector<8xf32> to vector<8x1xf32>
    %47 = vector.broadcast %46 : vector<8x1xf32> to vector<8x8xf32>
    %48 = arith.subf %44, %47 : vector<8x8xf32>
    %49 = math.exp %48 : vector<8x8xf32>
    %cst_21 = arith.constant dense<0.000000e+00> : vector<8xf32>
    %50 = vector.multi_reduction <add>, %49, %cst_21 [1] : vector<8x8xf32> to vector<8xf32>
    %51 = vector.shape_cast %50 : vector<8xf32> to vector<8x1xf32>
    %52 = tpu.reciprocal %51 {approx = true} : vector<8x1xf32> -> vector<8x1xf32>
    %53 = vector.broadcast %52 : vector<8x1xf32> to vector<8x8xf32>
    %54 = arith.mulf %49, %53 : vector<8x8xf32>
    %55 = arith.truncf %54 : vector<8x8xf32> to vector<8x8xbf16>
    %56 = vector.extract_strided_slice %20 {offsets = [0, 8], sizes = [8, 8], strides = [1, 1]} : vector<8x32xf32> to vector<8x8xf32>
    %57 = arith.truncf %56 : vector<8x8xf32> to vector<8x8xbf16>
    %cst_22 = arith.constant dense<0.000000e+00> : vector<8x8xf32>
    %58 = tpu.matmul %55, %57, %cst_22 {dimension_numbers = #tpu.dot_dimension_numbers<[1], [0], [0], [1], [0, 0, 1, 1], [], []>} : vector<8x8xbf16>, vector<8x8xbf16>, vector<8x8xf32> -> vector<8x8xf32>
    %59 = vector.extract_strided_slice %18 {offsets = [0, 16], sizes = [8, 8], strides = [1, 1]} : vector<8x32xf32> to vector<8x8xf32>
    %60 = arith.truncf %59 : vector<8x8xf32> to vector<8x8xbf16>
    %61 = vector.extract_strided_slice %19 {offsets = [0, 16], sizes = [8, 8], strides = [1, 1]} : vector<8x32xf32> to vector<8x8xf32>
    %62 = arith.truncf %61 : vector<8x8xf32> to vector<8x8xbf16>
    %cst_23 = arith.constant dense<0.000000e+00> : vector<8x8xf32>
    %63 = tpu.matmul %60, %62, %cst_23 {dimension_numbers = #tpu.dot_dimension_numbers<[1], [1], [0], [0], [0, 0, 1, 0], [], []>} : vector<8x8xbf16>, vector<8x8xbf16>, vector<8x8xf32> -> vector<8x8xf32>
    %cst_24 = arith.constant dense<0xFF800000> : vector<8xf32>
    %64 = vector.multi_reduction <maximumf>, %63, %cst_24 [1] : vector<8x8xf32> to vector<8xf32>
    %65 = vector.shape_cast %64 : vector<8xf32> to vector<8x1xf32>
    %66 = vector.broadcast %65 : vector<8x1xf32> to vector<8x8xf32>
    %67 = arith.subf %63, %66 : vector<8x8xf32>
    %68 = math.exp %67 : vector<8x8xf32>
    %cst_25 = arith.constant dense<0.000000e+00> : vector<8xf32>
    %69 = vector.multi_reduction <add>, %68, %cst_25 [1] : vector<8x8xf32> to vector<8xf32>
    %70 = vector.shape_cast %69 : vector<8xf32> to vector<8x1xf32>
    %71 = tpu.reciprocal %70 {approx = true} : vector<8x1xf32> -> vector<8x1xf32>
    %72 = vector.broadcast %71 : vector<8x1xf32> to vector<8x8xf32>
    %73 = arith.mulf %68, %72 : vector<8x8xf32>
    %74 = arith.truncf %73 : vector<8x8xf32> to vector<8x8xbf16>
    %75 = vector.extract_strided_slice %20 {offsets = [0, 16], sizes = [8, 8], strides = [1, 1]} : vector<8x32xf32> to vector<8x8xf32>
    %76 = arith.truncf %75 : vector<8x8xf32> to vector<8x8xbf16>
    %cst_26 = arith.constant dense<0.000000e+00> : vector<8x8xf32>
    %77 = tpu.matmul %74, %76, %cst_26 {dimension_numbers = #tpu.dot_dimension_numbers<[1], [0], [0], [1], [0, 0, 1, 1], [], []>} : vector<8x8xbf16>, vector<8x8xbf16>, vector<8x8xf32> -> vector<8x8xf32>
    %78 = vector.extract_strided_slice %18 {offsets = [0, 24], sizes = [8, 8], strides = [1, 1]} : vector<8x32xf32> to vector<8x8xf32>
    %79 = arith.truncf %78 : vector<8x8xf32> to vector<8x8xbf16>
    %80 = vector.extract_strided_slice %19 {offsets = [0, 24], sizes = [8, 8], strides = [1, 1]} : vector<8x32xf32> to vector<8x8xf32>
    %81 = arith.truncf %80 : vector<8x8xf32> to vector<8x8xbf16>
    %cst_27 = arith.constant dense<0.000000e+00> : vector<8x8xf32>
    %82 = tpu.matmul %79, %81, %cst_27 {dimension_numbers = #tpu.dot_dimension_numbers<[1], [1], [0], [0], [0, 0, 1, 0], [], []>} : vector<8x8xbf16>, vector<8x8xbf16>, vector<8x8xf32> -> vector<8x8xf32>
    %cst_28 = arith.constant dense<0xFF800000> : vector<8xf32>
    %83 = vector.multi_reduction <maximumf>, %82, %cst_28 [1] : vector<8x8xf32> to vector<8xf32>
    %84 = vector.shape_cast %83 : vector<8xf32> to vector<8x1xf32>
    %85 = vector.broadcast %84 : vector<8x1xf32> to vector<8x8xf32>
    %86 = arith.subf %82, %85 : vector<8x8xf32>
    %87 = math.exp %86 : vector<8x8xf32>
    %cst_29 = arith.constant dense<0.000000e+00> : vector<8xf32>
    %88 = vector.multi_reduction <add>, %87, %cst_29 [1] : vector<8x8xf32> to vector<8xf32>
    %89 = vector.shape_cast %88 : vector<8xf32> to vector<8x1xf32>
    %90 = tpu.reciprocal %89 {approx = true} : vector<8x1xf32> -> vector<8x1xf32>
    %91 = vector.broadcast %90 : vector<8x1xf32> to vector<8x8xf32>
    %92 = arith.mulf %87, %91 : vector<8x8xf32>
    %93 = arith.truncf %92 : vector<8x8xf32> to vector<8x8xbf16>
    %94 = vector.extract_strided_slice %20 {offsets = [0, 24], sizes = [8, 8], strides = [1, 1]} : vector<8x32xf32> to vector<8x8xf32>
    %95 = arith.truncf %94 : vector<8x8xf32> to vector<8x8xbf16>
    %cst_30 = arith.constant dense<0.000000e+00> : vector<8x8xf32>
    %96 = tpu.matmul %93, %95, %cst_30 {dimension_numbers = #tpu.dot_dimension_numbers<[1], [0], [0], [1], [0, 0, 1, 1], [], []>} : vector<8x8xbf16>, vector<8x8xbf16>, vector<8x8xf32> -> vector<8x8xf32>
    %97 = tpu.concatenate %39, %58, %77, %96 in 1 : vector<8x8xf32>, vector<8x8xf32>, vector<8x8xf32>, vector<8x8xf32> -> vector<8x32xf32>
    %98 = arith.truncf %97 : vector<8x32xf32> to vector<8x32xbf16>
    %c0_31 = arith.constant 0 : index
    %c0_32 = arith.constant 0 : index
    %c0_33 = arith.constant 0 : index
    %99 = vector.load %arg7[%c0_31, %c0_32, %c0_33] : memref<2x32x32xbf16, #tpu.memory_space<vmem>>, vector<1x32x32xbf16>
    %100 = vector.shape_cast %99 : vector<1x32x32xbf16> to vector<32x32xbf16>
    %cst_34 = arith.constant dense<0.000000e+00> : vector<8x32xf32>
    %101 = tpu.matmul %98, %100, %cst_34 {dimension_numbers = #tpu.dot_dimension_numbers<[1], [0], [0], [1], [0, 0, 1, 1], [], []>} : vector<8x32xbf16>, vector<32x32xbf16>, vector<8x32xf32> -> vector<8x32xf32>
    %c0_35 = arith.constant 0 : index
    %c0_36 = arith.constant 0 : index
    %c0_37 = arith.constant 0 : index
    %102 = vector.load %arg8[%c0_35, %c0_36, %c0_37] : memref<2x1x32xf32, #tpu.memory_space<vmem>>, vector<1x1x32xf32>
    %103 = vector.shape_cast %102 : vector<1x1x32xf32> to vector<1x32xf32>
    %104 = vector.broadcast %103 : vector<1x32xf32> to vector<8x32xf32>
    %105 = arith.addf %101, %104 : vector<8x32xf32>
    %106 = arith.addf %9, %105 : vector<8x32xf32>
    %c0_38 = arith.constant 0 : index
    %c0_39 = arith.constant 0 : index
    %c0_40 = arith.constant 0 : index
    %107 = vector.load %arg9[%c0_38, %c0_39, %c0_40] : memref<2x1x32xf32, #tpu.memory_space<vmem>>, vector<1x1x32xf32>
    %108 = vector.shape_cast %107 : vector<1x1x32xf32> to vector<1x32xf32>
    %c0_41 = arith.constant 0 : index
    %c0_42 = arith.constant 0 : index
    %c0_43 = arith.constant 0 : index
    %109 = vector.load %arg10[%c0_41, %c0_42, %c0_43] : memref<2x1x32xf32, #tpu.memory_space<vmem>>, vector<1x1x32xf32>
    %110 = vector.shape_cast %109 : vector<1x1x32xf32> to vector<1x32xf32>
    %cst_44 = arith.constant dense<0.000000e+00> : vector<8xf32>
    %111 = vector.multi_reduction <add>, %106, %cst_44 [1] : vector<8x32xf32> to vector<8xf32>
    %112 = vector.shape_cast %111 : vector<8xf32> to vector<8x1xf32>
    %cst_45 = arith.constant 3.200000e+01 : f32
    %113 = vector.broadcast %cst_45 : f32 to vector<8x1xf32>
    %114 = arith.divf %112, %113 : vector<8x1xf32>
    %115 = vector.broadcast %114 : vector<8x1xf32> to vector<8x32xf32>
    %116 = arith.subf %106, %115 : vector<8x32xf32>
    %117 = arith.mulf %116, %116 : vector<8x32xf32>
    %cst_46 = arith.constant dense<0.000000e+00> : vector<8xf32>
    %118 = vector.multi_reduction <add>, %117, %cst_46 [1] : vector<8x32xf32> to vector<8xf32>
    %119 = vector.shape_cast %118 : vector<8xf32> to vector<8x1xf32>
    %cst_47 = arith.constant 3.200000e+01 : f32
    %120 = vector.broadcast %cst_47 : f32 to vector<8x1xf32>
    %121 = arith.divf %119, %120 : vector<8x1xf32>
    %cst_48 = arith.constant 9.99999974E-6 : f32
    %122 = vector.broadcast %cst_48 : f32 to vector<8x1xf32>
    %123 = arith.addf %121, %122 : vector<8x1xf32>
    %124 = math.rsqrt %123 : vector<8x1xf32>
    %125 = vector.broadcast %124 : vector<8x1xf32> to vector<8x32xf32>
    %126 = arith.mulf %116, %125 : vector<8x32xf32>
    %127 = vector.broadcast %108 : vector<1x32xf32> to vector<8x32xf32>
    %128 = arith.mulf %126, %127 : vector<8x32xf32>
    %129 = vector.broadcast %110 : vector<1x32xf32> to vector<8x32xf32>
    %130 = arith.addf %128, %129 : vector<8x32xf32>
    %131 = arith.truncf %130 : vector<8x32xf32> to vector<8x32xbf16>
    %c0_49 = arith.constant 0 : index
    %c0_50 = arith.constant 0 : index
    %c0_51 = arith.constant 0 : index
    %132 = vector.load %arg11[%c0_49, %c0_50, %c0_51] : memref<2x32x64xbf16, #tpu.memory_space<vmem>>, vector<1x32x64xbf16>
    %133 = vector.shape_cast %132 : vector<1x32x64xbf16> to vector<32x64xbf16>
    %cst_52 = arith.constant dense<0.000000e+00> : vector<8x64xf32>
    %134 = tpu.matmul %131, %133, %cst_52 {dimension_numbers = #tpu.dot_dimension_numbers<[1], [0], [0], [1], [0, 0, 1, 1], [], []>} : vector<8x32xbf16>, vector<32x64xbf16>, vector<8x64xf32> -> vector<8x64xf32>
    %c0_53 = arith.constant 0 : index
    %c0_54 = arith.constant 0 : index
    %c0_55 = arith.constant 0 : index
    %135 = vector.load %arg12[%c0_53, %c0_54, %c0_55] : memref<2x1x64xf32, #tpu.memory_space<vmem>>, vector<1x1x64xf32>
    %136 = vector.shape_cast %135 : vector<1x1x64xf32> to vector<1x64xf32>
    %137 = vector.broadcast %136 : vector<1x64xf32> to vector<8x64xf32>
    %138 = arith.addf %134, %137 : vector<8x64xf32>
    %cst_56 = arith.constant 0.000000e+00 : f32
    %139 = vector.broadcast %cst_56 : f32 to vector<8x64xf32>
    %140 = arith.maximumf %138, %139 : vector<8x64xf32>
    %141 = arith.truncf %140 : vector<8x64xf32> to vector<8x64xbf16>
    %c0_57 = arith.constant 0 : index
    %c0_58 = arith.constant 0 : index
    %c0_59 = arith.constant 0 : index
    %142 = vector.load %arg13[%c0_57, %c0_58, %c0_59] : memref<2x64x32xbf16, #tpu.memory_space<vmem>>, vector<1x64x32xbf16>
    %143 = vector.shape_cast %142 : vector<1x64x32xbf16> to vector<64x32xbf16>
    %cst_60 = arith.constant dense<0.000000e+00> : vector<8x32xf32>
    %144 = tpu.matmul %141, %143, %cst_60 {dimension_numbers = #tpu.dot_dimension_numbers<[1], [0], [0], [1], [0, 0, 1, 1], [], []>} : vector<8x64xbf16>, vector<64x32xbf16>, vector<8x32xf32> -> vector<8x32xf32>
    %c0_61 = arith.constant 0 : index
    %c0_62 = arith.constant 0 : index
    %c0_63 = arith.constant 0 : index
    %145 = vector.load %arg14[%c0_61, %c0_62, %c0_63] : memref<2x1x32xf32, #tpu.memory_space<vmem>>, vector<1x1x32xf32>
    %146 = vector.shape_cast %145 : vector<1x1x32xf32> to vector<1x32xf32>
    %147 = vector.broadcast %146 : vector<1x32xf32> to vector<8x32xf32>
    %148 = arith.addf %144, %147 : vector<8x32xf32>
    %149 = arith.addf %130, %148 : vector<8x32xf32>
    %c0_64 = arith.constant 0 : index
    %c0_65 = arith.constant 0 : index
    %c0_66 = arith.constant 0 : index
    %150 = vector.load %arg15[%c0_64, %c0_65, %c0_66] : memref<2x1x32xf32, #tpu.memory_space<vmem>>, vector<1x1x32xf32>
    %151 = vector.shape_cast %150 : vector<1x1x32xf32> to vector<1x32xf32>
    %c0_67 = arith.constant 0 : index
    %c0_68 = arith.constant 0 : index
    %c0_69 = arith.constant 0 : index
    %152 = vector.load %arg16[%c0_67, %c0_68, %c0_69] : memref<2x1x32xf32, #tpu.memory_space<vmem>>, vector<1x1x32xf32>
    %153 = vector.shape_cast %152 : vector<1x1x32xf32> to vector<1x32xf32>
    %cst_70 = arith.constant dense<0.000000e+00> : vector<8xf32>
    %154 = vector.multi_reduction <add>, %149, %cst_70 [1] : vector<8x32xf32> to vector<8xf32>
    %155 = vector.shape_cast %154 : vector<8xf32> to vector<8x1xf32>
    %cst_71 = arith.constant 3.200000e+01 : f32
    %156 = vector.broadcast %cst_71 : f32 to vector<8x1xf32>
    %157 = arith.divf %155, %156 : vector<8x1xf32>
    %158 = vector.broadcast %157 : vector<8x1xf32> to vector<8x32xf32>
    %159 = arith.subf %149, %158 : vector<8x32xf32>
    %160 = arith.mulf %159, %159 : vector<8x32xf32>
    %cst_72 = arith.constant dense<0.000000e+00> : vector<8xf32>
    %161 = vector.multi_reduction <add>, %160, %cst_72 [1] : vector<8x32xf32> to vector<8xf32>
    %162 = vector.shape_cast %161 : vector<8xf32> to vector<8x1xf32>
    %cst_73 = arith.constant 3.200000e+01 : f32
    %163 = vector.broadcast %cst_73 : f32 to vector<8x1xf32>
    %164 = arith.divf %162, %163 : vector<8x1xf32>
    %cst_74 = arith.constant 9.99999974E-6 : f32
    %165 = vector.broadcast %cst_74 : f32 to vector<8x1xf32>
    %166 = arith.addf %164, %165 : vector<8x1xf32>
    %167 = math.rsqrt %166 : vector<8x1xf32>
    %168 = vector.broadcast %167 : vector<8x1xf32> to vector<8x32xf32>
    %169 = arith.mulf %159, %168 : vector<8x32xf32>
    %170 = vector.broadcast %151 : vector<1x32xf32> to vector<8x32xf32>
    %171 = arith.mulf %169, %170 : vector<8x32xf32>
    %172 = vector.broadcast %153 : vector<1x32xf32> to vector<8x32xf32>
    %173 = arith.addf %171, %172 : vector<8x32xf32>
    %174 = arith.truncf %173 : vector<8x32xf32> to vector<8x32xbf16>
    %c1 = arith.constant 1 : index
    %c0_75 = arith.constant 0 : index
    %c0_76 = arith.constant 0 : index
    %175 = vector.load %arg5[%c1, %c0_75, %c0_76] : memref<2x32x96xbf16, #tpu.memory_space<vmem>>, vector<1x32x96xbf16>
    %176 = vector.shape_cast %175 : vector<1x32x96xbf16> to vector<32x96xbf16>
    %cst_77 = arith.constant dense<0.000000e+00> : vector<8x96xf32>
    %177 = tpu.matmul %174, %176, %cst_77 {dimension_numbers = #tpu.dot_dimension_numbers<[1], [0], [0], [1], [0, 0, 1, 1], [], []>} : vector<8x32xbf16>, vector<32x96xbf16>, vector<8x96xf32> -> vector<8x96xf32>
    %c1_78 = arith.constant 1 : index
    %c0_79 = arith.constant 0 : index
    %c0_80 = arith.constant 0 : index
    %178 = vector.load %arg6[%c1_78, %c0_79, %c0_80] : memref<2x1x96xf32, #tpu.memory_space<vmem>>, vector<1x1x96xf32>
    %179 = vector.shape_cast %178 : vector<1x1x96xf32> to vector<1x96xf32>
    %180 = vector.broadcast %179 : vector<1x96xf32> to vector<8x96xf32>
    %181 = arith.addf %177, %180 : vector<8x96xf32>
    %182 = vector.extract_strided_slice %181 {offsets = [0, 0], sizes = [8, 32], strides = [1, 1]} : vector<8x96xf32> to vector<8x32xf32>
    %183 = vector.extract_strided_slice %181 {offsets = [0, 32], sizes = [8, 32], strides = [1, 1]} : vector<8x96xf32> to vector<8x32xf32>
    %184 = vector.extract_strided_slice %181 {offsets = [0, 64], sizes = [8, 32], strides = [1, 1]} : vector<8x96xf32> to vector<8x32xf32>
    %185 = vector.extract_strided_slice %182 {offsets = [0, 0], sizes = [8, 8], strides = [1, 1]} : vector<8x32xf32> to vector<8x8xf32>
    %186 = arith.truncf %185 : vector<8x8xf32> to vector<8x8xbf16>
    %187 = vector.extract_strided_slice %183 {offsets = [0, 0], sizes = [8, 8], strides = [1, 1]} : vector<8x32xf32> to vector<8x8xf32>
    %188 = arith.truncf %187 : vector<8x8xf32> to vector<8x8xbf16>
    %cst_81 = arith.constant dense<0.000000e+00> : vector<8x8xf32>
    %189 = tpu.matmul %186, %188, %cst_81 {dimension_numbers = #tpu.dot_dimension_numbers<[1], [1], [0], [0], [0, 0, 1, 0], [], []>} : vector<8x8xbf16>, vector<8x8xbf16>, vector<8x8xf32> -> vector<8x8xf32>
    %cst_82 = arith.constant dense<0xFF800000> : vector<8xf32>
    %190 = vector.multi_reduction <maximumf>, %189, %cst_82 [1] : vector<8x8xf32> to vector<8xf32>
    %191 = vector.shape_cast %190 : vector<8xf32> to vector<8x1xf32>
    %192 = vector.broadcast %191 : vector<8x1xf32> to vector<8x8xf32>
    %193 = arith.subf %189, %192 : vector<8x8xf32>
    %194 = math.exp %193 : vector<8x8xf32>
    %cst_83 = arith.constant dense<0.000000e+00> : vector<8xf32>
    %195 = vector.multi_reduction <add>, %194, %cst_83 [1] : vector<8x8xf32> to vector<8xf32>
    %196 = vector.shape_cast %195 : vector<8xf32> to vector<8x1xf32>
    %197 = tpu.reciprocal %196 {approx = true} : vector<8x1xf32> -> vector<8x1xf32>
    %198 = vector.broadcast %197 : vector<8x1xf32> to vector<8x8xf32>
    %199 = arith.mulf %194, %198 : vector<8x8xf32>
    %200 = arith.truncf %199 : vector<8x8xf32> to vector<8x8xbf16>
    %201 = vector.extract_strided_slice %184 {offsets = [0, 0], sizes = [8, 8], strides = [1, 1]} : vector<8x32xf32> to vector<8x8xf32>
    %202 = arith.truncf %201 : vector<8x8xf32> to vector<8x8xbf16>
    %cst_84 = arith.constant dense<0.000000e+00> : vector<8x8xf32>
    %203 = tpu.matmul %200, %202, %cst_84 {dimension_numbers = #tpu.dot_dimension_numbers<[1], [0], [0], [1], [0, 0, 1, 1], [], []>} : vector<8x8xbf16>, vector<8x8xbf16>, vector<8x8xf32> -> vector<8x8xf32>
    %204 = vector.extract_strided_slice %182 {offsets = [0, 8], sizes = [8, 8], strides = [1, 1]} : vector<8x32xf32> to vector<8x8xf32>
    %205 = arith.truncf %204 : vector<8x8xf32> to vector<8x8xbf16>
    %206 = vector.extract_strided_slice %183 {offsets = [0, 8], sizes = [8, 8], strides = [1, 1]} : vector<8x32xf32> to vector<8x8xf32>
    %207 = arith.truncf %206 : vector<8x8xf32> to vector<8x8xbf16>
    %cst_85 = arith.constant dense<0.000000e+00> : vector<8x8xf32>
    %208 = tpu.matmul %205, %207, %cst_85 {dimension_numbers = #tpu.dot_dimension_numbers<[1], [1], [0], [0], [0, 0, 1, 0], [], []>} : vector<8x8xbf16>, vector<8x8xbf16>, vector<8x8xf32> -> vector<8x8xf32>
    %cst_86 = arith.constant dense<0xFF800000> : vector<8xf32>
    %209 = vector.multi_reduction <maximumf>, %208, %cst_86 [1] : vector<8x8xf32> to vector<8xf32>
    %210 = vector.shape_cast %209 : vector<8xf32> to vector<8x1xf32>
    %211 = vector.broadcast %210 : vector<8x1xf32> to vector<8x8xf32>
    %212 = arith.subf %208, %211 : vector<8x8xf32>
    %213 = math.exp %212 : vector<8x8xf32>
    %cst_87 = arith.constant dense<0.000000e+00> : vector<8xf32>
    %214 = vector.multi_reduction <add>, %213, %cst_87 [1] : vector<8x8xf32> to vector<8xf32>
    %215 = vector.shape_cast %214 : vector<8xf32> to vector<8x1xf32>
    %216 = tpu.reciprocal %215 {approx = true} : vector<8x1xf32> -> vector<8x1xf32>
    %217 = vector.broadcast %216 : vector<8x1xf32> to vector<8x8xf32>
    %218 = arith.mulf %213, %217 : vector<8x8xf32>
    %219 = arith.truncf %218 : vector<8x8xf32> to vector<8x8xbf16>
    %220 = vector.extract_strided_slice %184 {offsets = [0, 8], sizes = [8, 8], strides = [1, 1]} : vector<8x32xf32> to vector<8x8xf32>
    %221 = arith.truncf %220 : vector<8x8xf32> to vector<8x8xbf16>
    %cst_88 = arith.constant dense<0.000000e+00> : vector<8x8xf32>
    %222 = tpu.matmul %219, %221, %cst_88 {dimension_numbers = #tpu.dot_dimension_numbers<[1], [0], [0], [1], [0, 0, 1, 1], [], []>} : vector<8x8xbf16>, vector<8x8xbf16>, vector<8x8xf32> -> vector<8x8xf32>
    %223 = vector.extract_strided_slice %182 {offsets = [0, 16], sizes = [8, 8], strides = [1, 1]} : vector<8x32xf32> to vector<8x8xf32>
    %224 = arith.truncf %223 : vector<8x8xf32> to vector<8x8xbf16>
    %225 = vector.extract_strided_slice %183 {offsets = [0, 16], sizes = [8, 8], strides = [1, 1]} : vector<8x32xf32> to vector<8x8xf32>
    %226 = arith.truncf %225 : vector<8x8xf32> to vector<8x8xbf16>
    %cst_89 = arith.constant dense<0.000000e+00> : vector<8x8xf32>
    %227 = tpu.matmul %224, %226, %cst_89 {dimension_numbers = #tpu.dot_dimension_numbers<[1], [1], [0], [0], [0, 0, 1, 0], [], []>} : vector<8x8xbf16>, vector<8x8xbf16>, vector<8x8xf32> -> vector<8x8xf32>
    %cst_90 = arith.constant dense<0xFF800000> : vector<8xf32>
    %228 = vector.multi_reduction <maximumf>, %227, %cst_90 [1] : vector<8x8xf32> to vector<8xf32>
    %229 = vector.shape_cast %228 : vector<8xf32> to vector<8x1xf32>
    %230 = vector.broadcast %229 : vector<8x1xf32> to vector<8x8xf32>
    %231 = arith.subf %227, %230 : vector<8x8xf32>
    %232 = math.exp %231 : vector<8x8xf32>
    %cst_91 = arith.constant dense<0.000000e+00> : vector<8xf32>
    %233 = vector.multi_reduction <add>, %232, %cst_91 [1] : vector<8x8xf32> to vector<8xf32>
    %234 = vector.shape_cast %233 : vector<8xf32> to vector<8x1xf32>
    %235 = tpu.reciprocal %234 {approx = true} : vector<8x1xf32> -> vector<8x1xf32>
    %236 = vector.broadcast %235 : vector<8x1xf32> to vector<8x8xf32>
    %237 = arith.mulf %232, %236 : vector<8x8xf32>
    %238 = arith.truncf %237 : vector<8x8xf32> to vector<8x8xbf16>
    %239 = vector.extract_strided_slice %184 {offsets = [0, 16], sizes = [8, 8], strides = [1, 1]} : vector<8x32xf32> to vector<8x8xf32>
    %240 = arith.truncf %239 : vector<8x8xf32> to vector<8x8xbf16>
    %cst_92 = arith.constant dense<0.000000e+00> : vector<8x8xf32>
    %241 = tpu.matmul %238, %240, %cst_92 {dimension_numbers = #tpu.dot_dimension_numbers<[1], [0], [0], [1], [0, 0, 1, 1], [], []>} : vector<8x8xbf16>, vector<8x8xbf16>, vector<8x8xf32> -> vector<8x8xf32>
    %242 = vector.extract_strided_slice %182 {offsets = [0, 24], sizes = [8, 8], strides = [1, 1]} : vector<8x32xf32> to vector<8x8xf32>
    %243 = arith.truncf %242 : vector<8x8xf32> to vector<8x8xbf16>
    %244 = vector.extract_strided_slice %183 {offsets = [0, 24], sizes = [8, 8], strides = [1, 1]} : vector<8x32xf32> to vector<8x8xf32>
    %245 = arith.truncf %244 : vector<8x8xf32> to vector<8x8xbf16>
    %cst_93 = arith.constant dense<0.000000e+00> : vector<8x8xf32>
    %246 = tpu.matmul %243, %245, %cst_93 {dimension_numbers = #tpu.dot_dimension_numbers<[1], [1], [0], [0], [0, 0, 1, 0], [], []>} : vector<8x8xbf16>, vector<8x8xbf16>, vector<8x8xf32> -> vector<8x8xf32>
    %cst_94 = arith.constant dense<0xFF800000> : vector<8xf32>
    %247 = vector.multi_reduction <maximumf>, %246, %cst_94 [1] : vector<8x8xf32> to vector<8xf32>
    %248 = vector.shape_cast %247 : vector<8xf32> to vector<8x1xf32>
    %249 = vector.broadcast %248 : vector<8x1xf32> to vector<8x8xf32>
    %250 = arith.subf %246, %249 : vector<8x8xf32>
    %251 = math.exp %250 : vector<8x8xf32>
    %cst_95 = arith.constant dense<0.000000e+00> : vector<8xf32>
    %252 = vector.multi_reduction <add>, %251, %cst_95 [1] : vector<8x8xf32> to vector<8xf32>
    %253 = vector.shape_cast %252 : vector<8xf32> to vector<8x1xf32>
    %254 = tpu.reciprocal %253 {approx = true} : vector<8x1xf32> -> vector<8x1xf32>
    %255 = vector.broadcast %254 : vector<8x1xf32> to vector<8x8xf32>
    %256 = arith.mulf %251, %255 : vector<8x8xf32>
    %257 = arith.truncf %256 : vector<8x8xf32> to vector<8x8xbf16>
    %258 = vector.extract_strided_slice %184 {offsets = [0, 24], sizes = [8, 8], strides = [1, 1]} : vector<8x32xf32> to vector<8x8xf32>
    %259 = arith.truncf %258 : vector<8x8xf32> to vector<8x8xbf16>
    %cst_96 = arith.constant dense<0.000000e+00> : vector<8x8xf32>
    %260 = tpu.matmul %257, %259, %cst_96 {dimension_numbers = #tpu.dot_dimension_numbers<[1], [0], [0], [1], [0, 0, 1, 1], [], []>} : vector<8x8xbf16>, vector<8x8xbf16>, vector<8x8xf32> -> vector<8x8xf32>
    %261 = tpu.concatenate %203, %222, %241, %260 in 1 : vector<8x8xf32>, vector<8x8xf32>, vector<8x8xf32>, vector<8x8xf32> -> vector<8x32xf32>
    %262 = arith.truncf %261 : vector<8x32xf32> to vector<8x32xbf16>
    %c1_97 = arith.constant 1 : index
    %c0_98 = arith.constant 0 : index
    %c0_99 = arith.constant 0 : index
    %263 = vector.load %arg7[%c1_97, %c0_98, %c0_99] : memref<2x32x32xbf16, #tpu.memory_space<vmem>>, vector<1x32x32xbf16>
    %264 = vector.shape_cast %263 : vector<1x32x32xbf16> to vector<32x32xbf16>
    %cst_100 = arith.constant dense<0.000000e+00> : vector<8x32xf32>
    %265 = tpu.matmul %262, %264, %cst_100 {dimension_numbers = #tpu.dot_dimension_numbers<[1], [0], [0], [1], [0, 0, 1, 1], [], []>} : vector<8x32xbf16>, vector<32x32xbf16>, vector<8x32xf32> -> vector<8x32xf32>
    %c1_101 = arith.constant 1 : index
    %c0_102 = arith.constant 0 : index
    %c0_103 = arith.constant 0 : index
    %266 = vector.load %arg8[%c1_101, %c0_102, %c0_103] : memref<2x1x32xf32, #tpu.memory_space<vmem>>, vector<1x1x32xf32>
    %267 = vector.shape_cast %266 : vector<1x1x32xf32> to vector<1x32xf32>
    %268 = vector.broadcast %267 : vector<1x32xf32> to vector<8x32xf32>
    %269 = arith.addf %265, %268 : vector<8x32xf32>
    %270 = arith.addf %173, %269 : vector<8x32xf32>
    %c1_104 = arith.constant 1 : index
    %c0_105 = arith.constant 0 : index
    %c0_106 = arith.constant 0 : index
    %271 = vector.load %arg9[%c1_104, %c0_105, %c0_106] : memref<2x1x32xf32, #tpu.memory_space<vmem>>, vector<1x1x32xf32>
    %272 = vector.shape_cast %271 : vector<1x1x32xf32> to vector<1x32xf32>
    %c1_107 = arith.constant 1 : index
    %c0_108 = arith.constant 0 : index
    %c0_109 = arith.constant 0 : index
    %273 = vector.load %arg10[%c1_107, %c0_108, %c0_109] : memref<2x1x32xf32, #tpu.memory_space<vmem>>, vector<1x1x32xf32>
    %274 = vector.shape_cast %273 : vector<1x1x32xf32> to vector<1x32xf32>
    %cst_110 = arith.constant dense<0.000000e+00> : vector<8xf32>
    %275 = vector.multi_reduction <add>, %270, %cst_110 [1] : vector<8x32xf32> to vector<8xf32>
    %276 = vector.shape_cast %275 : vector<8xf32> to vector<8x1xf32>
    %cst_111 = arith.constant 3.200000e+01 : f32
    %277 = vector.broadcast %cst_111 : f32 to vector<8x1xf32>
    %278 = arith.divf %276, %277 : vector<8x1xf32>
    %279 = vector.broadcast %278 : vector<8x1xf32> to vector<8x32xf32>
    %280 = arith.subf %270, %279 : vector<8x32xf32>
    %281 = arith.mulf %280, %280 : vector<8x32xf32>
    %cst_112 = arith.constant dense<0.000000e+00> : vector<8xf32>
    %282 = vector.multi_reduction <add>, %281, %cst_112 [1] : vector<8x32xf32> to vector<8xf32>
    %283 = vector.shape_cast %282 : vector<8xf32> to vector<8x1xf32>
    %cst_113 = arith.constant 3.200000e+01 : f32
    %284 = vector.broadcast %cst_113 : f32 to vector<8x1xf32>
    %285 = arith.divf %283, %284 : vector<8x1xf32>
    %cst_114 = arith.constant 9.99999974E-6 : f32
    %286 = vector.broadcast %cst_114 : f32 to vector<8x1xf32>
    %287 = arith.addf %285, %286 : vector<8x1xf32>
    %288 = math.rsqrt %287 : vector<8x1xf32>
    %289 = vector.broadcast %288 : vector<8x1xf32> to vector<8x32xf32>
    %290 = arith.mulf %280, %289 : vector<8x32xf32>
    %291 = vector.broadcast %272 : vector<1x32xf32> to vector<8x32xf32>
    %292 = arith.mulf %290, %291 : vector<8x32xf32>
    %293 = vector.broadcast %274 : vector<1x32xf32> to vector<8x32xf32>
    %294 = arith.addf %292, %293 : vector<8x32xf32>
    %295 = arith.truncf %294 : vector<8x32xf32> to vector<8x32xbf16>
    %c1_115 = arith.constant 1 : index
    %c0_116 = arith.constant 0 : index
    %c0_117 = arith.constant 0 : index
    %296 = vector.load %arg11[%c1_115, %c0_116, %c0_117] : memref<2x32x64xbf16, #tpu.memory_space<vmem>>, vector<1x32x64xbf16>
    %297 = vector.shape_cast %296 : vector<1x32x64xbf16> to vector<32x64xbf16>
    %cst_118 = arith.constant dense<0.000000e+00> : vector<8x64xf32>
    %298 = tpu.matmul %295, %297, %cst_118 {dimension_numbers = #tpu.dot_dimension_numbers<[1], [0], [0], [1], [0, 0, 1, 1], [], []>} : vector<8x32xbf16>, vector<32x64xbf16>, vector<8x64xf32> -> vector<8x64xf32>
    %c1_119 = arith.constant 1 : index
    %c0_120 = arith.constant 0 : index
    %c0_121 = arith.constant 0 : index
    %299 = vector.load %arg12[%c1_119, %c0_120, %c0_121] : memref<2x1x64xf32, #tpu.memory_space<vmem>>, vector<1x1x64xf32>
    %300 = vector.shape_cast %299 : vector<1x1x64xf32> to vector<1x64xf32>
    %301 = vector.broadcast %300 : vector<1x64xf32> to vector<8x64xf32>
    %302 = arith.addf %298, %301 : vector<8x64xf32>
    %cst_122 = arith.constant 0.000000e+00 : f32
    %303 = vector.broadcast %cst_122 : f32 to vector<8x64xf32>
    %304 = arith.maximumf %302, %303 : vector<8x64xf32>
    %305 = arith.truncf %304 : vector<8x64xf32> to vector<8x64xbf16>
    %c1_123 = arith.constant 1 : index
    %c0_124 = arith.constant 0 : index
    %c0_125 = arith.constant 0 : index
    %306 = vector.load %arg13[%c1_123, %c0_124, %c0_125] : memref<2x64x32xbf16, #tpu.memory_space<vmem>>, vector<1x64x32xbf16>
    %307 = vector.shape_cast %306 : vector<1x64x32xbf16> to vector<64x32xbf16>
    %cst_126 = arith.constant dense<0.000000e+00> : vector<8x32xf32>
    %308 = tpu.matmul %305, %307, %cst_126 {dimension_numbers = #tpu.dot_dimension_numbers<[1], [0], [0], [1], [0, 0, 1, 1], [], []>} : vector<8x64xbf16>, vector<64x32xbf16>, vector<8x32xf32> -> vector<8x32xf32>
    %c1_127 = arith.constant 1 : index
    %c0_128 = arith.constant 0 : index
    %c0_129 = arith.constant 0 : index
    %309 = vector.load %arg14[%c1_127, %c0_128, %c0_129] : memref<2x1x32xf32, #tpu.memory_space<vmem>>, vector<1x1x32xf32>
    %310 = vector.shape_cast %309 : vector<1x1x32xf32> to vector<1x32xf32>
    %311 = vector.broadcast %310 : vector<1x32xf32> to vector<8x32xf32>
    %312 = arith.addf %308, %311 : vector<8x32xf32>
    %313 = arith.addf %294, %312 : vector<8x32xf32>
    %c1_130 = arith.constant 1 : index
    %c0_131 = arith.constant 0 : index
    %c0_132 = arith.constant 0 : index
    %314 = vector.load %arg15[%c1_130, %c0_131, %c0_132] : memref<2x1x32xf32, #tpu.memory_space<vmem>>, vector<1x1x32xf32>
    %315 = vector.shape_cast %314 : vector<1x1x32xf32> to vector<1x32xf32>
    %c1_133 = arith.constant 1 : index
    %c0_134 = arith.constant 0 : index
    %c0_135 = arith.constant 0 : index
    %316 = vector.load %arg16[%c1_133, %c0_134, %c0_135] : memref<2x1x32xf32, #tpu.memory_space<vmem>>, vector<1x1x32xf32>
    %317 = vector.shape_cast %316 : vector<1x1x32xf32> to vector<1x32xf32>
    %cst_136 = arith.constant dense<0.000000e+00> : vector<8xf32>
    %318 = vector.multi_reduction <add>, %313, %cst_136 [1] : vector<8x32xf32> to vector<8xf32>
    %319 = vector.shape_cast %318 : vector<8xf32> to vector<8x1xf32>
    %cst_137 = arith.constant 3.200000e+01 : f32
    %320 = vector.broadcast %cst_137 : f32 to vector<8x1xf32>
    %321 = arith.divf %319, %320 : vector<8x1xf32>
    %322 = vector.broadcast %321 : vector<8x1xf32> to vector<8x32xf32>
    %323 = arith.subf %313, %322 : vector<8x32xf32>
    %324 = arith.mulf %323, %323 : vector<8x32xf32>
    %cst_138 = arith.constant dense<0.000000e+00> : vector<8xf32>
    %325 = vector.multi_reduction <add>, %324, %cst_138 [1] : vector<8x32xf32> to vector<8xf32>
    %326 = vector.shape_cast %325 : vector<8xf32> to vector<8x1xf32>
    %cst_139 = arith.constant 3.200000e+01 : f32
    %327 = vector.broadcast %cst_139 : f32 to vector<8x1xf32>
    %328 = arith.divf %326, %327 : vector<8x1xf32>
    %cst_140 = arith.constant 9.99999974E-6 : f32
    %329 = vector.broadcast %cst_140 : f32 to vector<8x1xf32>
    %330 = arith.addf %328, %329 : vector<8x1xf32>
    %331 = math.rsqrt %330 : vector<8x1xf32>
    %332 = vector.broadcast %331 : vector<8x1xf32> to vector<8x32xf32>
    %333 = arith.mulf %323, %332 : vector<8x32xf32>
    %334 = vector.broadcast %315 : vector<1x32xf32> to vector<8x32xf32>
    %335 = arith.mulf %333, %334 : vector<8x32xf32>
    %336 = vector.broadcast %317 : vector<1x32xf32> to vector<8x32xf32>
    %337 = arith.addf %335, %336 : vector<8x32xf32>
    %338 = arith.truncf %337 : vector<8x32xf32> to vector<8x32xbf16>
    %c0_141 = arith.constant 0 : index
    %c0_142 = arith.constant 0 : index
    %c0_143 = arith.constant 0 : index
    %339 = vector.load %arg17[%c0_141, %c0_142, %c0_143] : memref<1x8x32xbf16, #tpu.memory_space<vmem>>, vector<1x8x32xbf16>
    %340 = vector.shape_cast %339 : vector<1x8x32xbf16> to vector<8x32xbf16>
    %341 = vector.shape_cast %338 : vector<8x32xbf16> to vector<1x8x32xbf16>
    tpu.vector_store %arg17[%c0_141, %c0_142, %c0_143], %341 {strides = array<i32>} : memref<1x8x32xbf16, #tpu.memory_space<vmem>>, vector<1x8x32xbf16>,
    return
  }
  func.func @transform_0(%arg0: i32) -> (i32, i32, i32) {
    %c0_i32 = arith.constant 0 : i32
    %c0_i32_0 = arith.constant 0 : i32
    %c0_i32_1 = arith.constant 0 : i32
    return %arg0, %c0_i32, %c0_i32_0 : i32, i32, i32
  }
  func.func @transform_1(%arg0: i32) -> (i32, i32) {
    %c0_i32 = arith.constant 0 : i32
    %c0_i32_0 = arith.constant 0 : i32
    %c0_i32_1 = arith.constant 0 : i32
    return %c0_i32, %c0_i32_0 : i32, i32
  }
  func.func @transform_2(%arg0: i32) -> (i32, i32) {
    %c0_i32 = arith.constant 0 : i32
    %c0_i32_0 = arith.constant 0 : i32
    %c0_i32_1 = arith.constant 0 : i32
    return %c0_i32, %c0_i32_0 : i32, i32
  }
  func.func @transform_3(%arg0: i32) -> (i32, i32) {
    %c0_i32 = arith.constant 0 : i32
    %c0_i32_0 = arith.constant 0 : i32
    %c0_i32_1 = arith.constant 0 : i32
    return %c0_i32, %c0_i32_0 : i32, i32
  }
  func.func @transform_4(%arg0: i32) -> (i32, i32, i32) {
    %c0_i32 = arith.constant 0 : i32
    %c0_i32_0 = arith.constant 0 : i32
    %c0_i32_1 = arith.constant 0 : i32
    %c0_i32_2 = arith.constant 0 : i32
    return %c0_i32, %c0_i32_0, %c0_i32_1 : i32, i32, i32
  }
  func.func @transform_5(%arg0: i32) -> (i32, i32, i32) {
    %c0_i32 = arith.constant 0 : i32
    %c0_i32_0 = arith.constant 0 : i32
    %c0_i32_1 = arith.constant 0 : i32
    %c0_i32_2 = arith.constant 0 : i32
    return %c0_i32, %c0_i32_0, %c0_i32_1 : i32, i32, i32
  }
  func.func @transform_6(%arg0: i32) -> (i32, i32, i32) {
    %c0_i32 = arith.constant 0 : i32
    %c0_i32_0 = arith.constant 0 : i32
    %c0_i32_1 = arith.constant 0 : i32
    %c0_i32_2 = arith.constant 0 : i32
    return %c0_i32, %c0_i32_0, %c0_i32_1 : i32, i32, i32
  }
  func.func @transform_7(%arg0: i32) -> (i32, i32, i32) {
    %c0_i32 = arith.constant 0 : i32
    %c0_i32_0 = arith.constant 0 : i32
    %c0_i32_1 = arith.constant 0 : i32
    %c0_i32_2 = arith.constant 0 : i32
    return %c0_i32, %c0_i32_0, %c0_i32_1 : i32, i32, i32
  }
  func.func @transform_8(%arg0: i32) -> (i32, i32, i32) {
    %c0_i32 = arith.constant 0 : i32
    %c0_i32_0 = arith.constant 0 : i32
    %c0_i32_1 = arith.constant 0 : i32
    %c0_i32_2 = arith.constant 0 : i32
    return %c0_i32, %c0_i32_0, %c0_i32_1 : i32, i32, i32
  }
  func.func @transform_9(%arg0: i32) -> (i32, i32, i32) {
    %c0_i32 = arith.constant 0 : i32
    %c0_i32_0 = arith.constant 0 : i32
    %c0_i32_1 = arith.constant 0 : i32
    %c0_i32_2 = arith.constant 0 : i32
    return %c0_i32, %c0_i32_0, %c0_i32_1 : i32, i32, i32
  }
  func.func @transform_10(%arg0: i32) -> (i32, i32, i32) {
    %c0_i32 = arith.constant 0 : i32
    %c0_i32_0 = arith.constant 0 : i32
    %c0_i32_1 = arith.constant 0 : i32
    %c0_i32_2 = arith.constant 0 : i32
    return %c0_i32, %c0_i32_0, %c0_i32_1 : i32, i32, i32
  }
  func.func @transform_11(%arg0: i32) -> (i32, i32, i32) {
    %c0_i32 = arith.constant 0 : i32
    %c0_i32_0 = arith.constant 0 : i32
    %c0_i32_1 = arith.constant 0 : i32
    %c0_i32_2 = arith.constant 0 : i32
    return %c0_i32, %c0_i32_0, %c0_i32_1 : i32, i32, i32
  }
  func.func @transform_12(%arg0: i32) -> (i32, i32, i32) {
    %c0_i32 = arith.constant 0 : i32
    %c0_i32_0 = arith.constant 0 : i32
    %c0_i32_1 = arith.constant 0 : i32
    %c0_i32_2 = arith.constant 0 : i32
    return %c0_i32, %c0_i32_0, %c0_i32_1 : i32, i32, i32
  }
  func.func @transform_13(%arg0: i32) -> (i32, i32, i32) {
    %c0_i32 = arith.constant 0 : i32
    %c0_i32_0 = arith.constant 0 : i32
    %c0_i32_1 = arith.constant 0 : i32
    %c0_i32_2 = arith.constant 0 : i32
    return %c0_i32, %c0_i32_0, %c0_i32_1 : i32, i32, i32
  }
  func.func @transform_14(%arg0: i32) -> (i32, i32, i32) {
    %c0_i32 = arith.constant 0 : i32
    %c0_i32_0 = arith.constant 0 : i32
    %c0_i32_1 = arith.constant 0 : i32
    %c0_i32_2 = arith.constant 0 : i32
    return %c0_i32, %c0_i32_0, %c0_i32_1 : i32, i32, i32
  }
  func.func @transform_15(%arg0: i32) -> (i32, i32, i32) {
    %c0_i32 = arith.constant 0 : i32
    %c0_i32_0 = arith.constant 0 : i32
    %c0_i32_1 = arith.constant 0 : i32
    %c0_i32_2 = arith.constant 0 : i32
    return %c0_i32, %c0_i32_0, %c0_i32_1 : i32, i32, i32
  }
  func.func @transform_16(%arg0: i32) -> (i32, i32, i32) {
    %c0_i32 = arith.constant 0 : i32
    %c0_i32_0 = arith.constant 0 : i32
    %c0_i32_1 = arith.constant 0 : i32
    return %arg0, %c0_i32, %c0_i32_0 : i32, i32, i32
  }
}

module attributes {stable_mosaic.version = 11 : i64} {
  func.func @kernel(%arg0: i32, %arg1: memref<1x8x32xbf16, #tpu.memory_space<vmem>>, %arg2: memref<1x8x32xbf16, #tpu.memory_space<vmem>>, %arg3: memref<2x32x96xbf16, #tpu.memory_space<vmem>>, %arg4: memref<2x1x96xf32, #tpu.memory_space<vmem>>, %arg5: memref<2x32x32xbf16, #tpu.memory_space<vmem>>, %arg6: memref<2x1x32xf32, #tpu.memory_space<vmem>>, %arg7: memref<2x1x32xf32, #tpu.memory_space<vmem>>, %arg8: memref<2x1x32xf32, #tpu.memory_space<vmem>>, %arg9: memref<2x32x32xbf16, #tpu.memory_space<vmem>>, %arg10: memref<2x1x32xf32, #tpu.memory_space<vmem>>, %arg11: memref<2x32x64xbf16, #tpu.memory_space<vmem>>, %arg12: memref<2x1x64xf32, #tpu.memory_space<vmem>>, %arg13: memref<2x32x32xbf16, #tpu.memory_space<vmem>>, %arg14: memref<2x1x32xf32, #tpu.memory_space<vmem>>, %arg15: memref<2x1x32xf32, #tpu.memory_space<vmem>>, %arg16: memref<2x1x32xf32, #tpu.memory_space<vmem>>, %arg17: memref<2x32x64xbf16, #tpu.memory_space<vmem>>, %arg18: memref<2x1x64xf32, #tpu.memory_space<vmem>>, %arg19: memref<2x64x32xbf16, #tpu.memory_space<vmem>>, %arg20: memref<2x1x32xf32, #tpu.memory_space<vmem>>, %arg21: memref<2x1x32xf32, #tpu.memory_space<vmem>>, %arg22: memref<2x1x32xf32, #tpu.memory_space<vmem>>, %arg23: memref<32x128xbf16, #tpu.memory_space<vmem>>, %arg24: memref<1x128xf32, #tpu.memory_space<vmem>>, %arg25: memref<1x8x128xf32, #tpu.memory_space<vmem>>) attributes {dimension_semantics = [#tpu.dimension_semantics<parallel>], iteration_bounds = array<i64: 2>, scalar_prefetch = 0 : i64, scratch_operands = 0 : i64, tpu.core_type = #tpu.core_type<tc>, window_params = [{transform_indices = @transform_0, window_bounds = array<i64: 1, 8, 32>}, {transform_indices = @transform_1, window_bounds = array<i64: 1, 8, 32>}, {pipeline_mode = #tpu.pipeline_mode<synchronous>, transform_indices = @transform_2, window_bounds = array<i64: 2, 32, 96>}, {pipeline_mode = #tpu.pipeline_mode<synchronous>, transform_indices = @transform_3, window_bounds = array<i64: 2, 1, 96>}, {pipeline_mode = #tpu.pipeline_mode<synchronous>, transform_indices = @transform_4, window_bounds = array<i64: 2, 32, 32>}, {pipeline_mode = #tpu.pipeline_mode<synchronous>, transform_indices = @transform_5, window_bounds = array<i64: 2, 1, 32>}, {pipeline_mode = #tpu.pipeline_mode<synchronous>, transform_indices = @transform_6, window_bounds = array<i64: 2, 1, 32>}, {pipeline_mode = #tpu.pipeline_mode<synchronous>, transform_indices = @transform_7, window_bounds = array<i64: 2, 1, 32>}, {pipeline_mode = #tpu.pipeline_mode<synchronous>, transform_indices = @transform_8, window_bounds = array<i64: 2, 32, 32>}, {pipeline_mode = #tpu.pipeline_mode<synchronous>, transform_indices = @transform_9, window_bounds = array<i64: 2, 1, 32>}, {pipeline_mode = #tpu.pipeline_mode<synchronous>, transform_indices = @transform_10, window_bounds = array<i64: 2, 32, 64>}, {pipeline_mode = #tpu.pipeline_mode<synchronous>, transform_indices = @transform_11, window_bounds = array<i64: 2, 1, 64>}, {pipeline_mode = #tpu.pipeline_mode<synchronous>, transform_indices = @transform_12, window_bounds = array<i64: 2, 32, 32>}, {pipeline_mode = #tpu.pipeline_mode<synchronous>, transform_indices = @transform_13, window_bounds = array<i64: 2, 1, 32>}, {pipeline_mode = #tpu.pipeline_mode<synchronous>, transform_indices = @transform_14, window_bounds = array<i64: 2, 1, 32>}, {pipeline_mode = #tpu.pipeline_mode<synchronous>, transform_indices = @transform_15, window_bounds = array<i64: 2, 1, 32>}, {pipeline_mode = #tpu.pipeline_mode<synchronous>, transform_indices = @transform_16, window_bounds = array<i64: 2, 32, 64>}, {pipeline_mode = #tpu.pipeline_mode<synchronous>, transform_indices = @transform_17, window_bounds = array<i64: 2, 1, 64>}, {pipeline_mode = #tpu.pipeline_mode<synchronous>, transform_indices = @transform_18, window_bounds = array<i64: 2, 64, 32>}, {pipeline_mode = #tpu.pipeline_mode<synchronous>, transform_indices = @transform_19, window_bounds = array<i64: 2, 1, 32>}, {pipeline_mode = #tpu.pipeline_mode<synchronous>, transform_indices = @transform_20, window_bounds = array<i64: 2, 1, 32>}, {pipeline_mode = #tpu.pipeline_mode<synchronous>, transform_indices = @transform_21, window_bounds = array<i64: 2, 1, 32>}, {pipeline_mode = #tpu.pipeline_mode<synchronous>, transform_indices = @transform_22, window_bounds = array<i64: 32, 128>}, {pipeline_mode = #tpu.pipeline_mode<synchronous>, transform_indices = @transform_23, window_bounds = array<i64: 1, 128>}, {transform_indices = @transform_24, window_bounds = array<i64: 1, 8, 128>}]} {
    %c0 = arith.constant 0 : index
    %c0_0 = arith.constant 0 : index
    %c0_1 = arith.constant 0 : index
    %0 = vector.load %arg1[%c0, %c0_0, %c0_1] : memref<1x8x32xbf16, #tpu.memory_space<vmem>>, vector<1x8x32xbf16>
    %1 = vector.shape_cast %0 : vector<1x8x32xbf16> to vector<8x32xbf16>
    %2 = arith.extf %1 : vector<8x32xbf16> to vector<8x32xf32>
    %c0_2 = arith.constant 0 : index
    %c0_3 = arith.constant 0 : index
    %c0_4 = arith.constant 0 : index
    %3 = vector.load %arg2[%c0_2, %c0_3, %c0_4] : memref<1x8x32xbf16, #tpu.memory_space<vmem>>, vector<1x8x32xbf16>
    %4 = vector.shape_cast %3 : vector<1x8x32xbf16> to vector<8x32xbf16>
    %5 = tpu.iota {dimensions = array<i32: 0>} : vector<8x8xi32>
    %6 = tpu.iota {dimensions = array<i32: 1>} : vector<8x8xi32>
    %7 = arith.cmpi sle, %6, %5 : vector<8x8xi32>
    %8 = arith.truncf %2 : vector<8x32xf32> to vector<8x32xbf16>
    %c0_5 = arith.constant 0 : index
    %c0_6 = arith.constant 0 : index
    %c0_7 = arith.constant 0 : index
    %9 = vector.load %arg3[%c0_5, %c0_6, %c0_7] : memref<2x32x96xbf16, #tpu.memory_space<vmem>>, vector<1x32x96xbf16>
    %10 = vector.shape_cast %9 : vector<1x32x96xbf16> to vector<32x96xbf16>
    %cst = arith.constant dense<0.000000e+00> : vector<8x96xf32>
    %11 = tpu.matmul %8, %10, %cst {dimension_numbers = #tpu.dot_dimension_numbers<[1], [0], [0], [1], [0, 0, 1, 1], [], []>} : vector<8x32xbf16>, vector<32x96xbf16>, vector<8x96xf32> -> vector<8x96xf32>
    %c0_8 = arith.constant 0 : index
    %c0_9 = arith.constant 0 : index
    %c0_10 = arith.constant 0 : index
    %12 = vector.load %arg4[%c0_8, %c0_9, %c0_10] : memref<2x1x96xf32, #tpu.memory_space<vmem>>, vector<1x1x96xf32>
    %13 = vector.shape_cast %12 : vector<1x1x96xf32> to vector<1x96xf32>
    %14 = vector.broadcast %13 : vector<1x96xf32> to vector<8x96xf32>
    %15 = arith.addf %11, %14 : vector<8x96xf32>
    %16 = vector.extract_strided_slice %15 {offsets = [0, 0], sizes = [8, 32], strides = [1, 1]} : vector<8x96xf32> to vector<8x32xf32>
    %17 = vector.extract_strided_slice %15 {offsets = [0, 32], sizes = [8, 32], strides = [1, 1]} : vector<8x96xf32> to vector<8x32xf32>
    %18 = vector.extract_strided_slice %15 {offsets = [0, 64], sizes = [8, 32], strides = [1, 1]} : vector<8x96xf32> to vector<8x32xf32>
    %19 = vector.extract_strided_slice %16 {offsets = [0, 0], sizes = [8, 8], strides = [1, 1]} : vector<8x32xf32> to vector<8x8xf32>
    %20 = arith.truncf %19 : vector<8x8xf32> to vector<8x8xbf16>
    %21 = vector.extract_strided_slice %17 {offsets = [0, 0], sizes = [8, 8], strides = [1, 1]} : vector<8x32xf32> to vector<8x8xf32>
    %22 = arith.truncf %21 : vector<8x8xf32> to vector<8x8xbf16>
    %cst_11 = arith.constant dense<0.000000e+00> : vector<8x8xf32>
    %23 = tpu.matmul %20, %22, %cst_11 {dimension_numbers = #tpu.dot_dimension_numbers<[1], [1], [0], [0], [0, 0, 1, 0], [], []>} : vector<8x8xbf16>, vector<8x8xbf16>, vector<8x8xf32> -> vector<8x8xf32>
    %cst_12 = arith.constant -1.000000e+09 : f32
    %24 = vector.broadcast %cst_12 : f32 to vector<8x8xf32>
    %25 = arith.select %7, %23, %24 : vector<8x8xi1>, vector<8x8xf32>
    %cst_13 = arith.constant dense<0xFF800000> : vector<8xf32>
    %26 = vector.multi_reduction <maximumf>, %25, %cst_13 [1] : vector<8x8xf32> to vector<8xf32>
    %27 = vector.shape_cast %26 : vector<8xf32> to vector<8x1xf32>
    %28 = vector.broadcast %27 : vector<8x1xf32> to vector<8x8xf32>
    %29 = arith.subf %25, %28 : vector<8x8xf32>
    %30 = math.exp %29 : vector<8x8xf32>
    %cst_14 = arith.constant dense<0.000000e+00> : vector<8xf32>
    %31 = vector.multi_reduction <add>, %30, %cst_14 [1] : vector<8x8xf32> to vector<8xf32>
    %32 = vector.shape_cast %31 : vector<8xf32> to vector<8x1xf32>
    %33 = tpu.reciprocal %32 {approx = true} : vector<8x1xf32> -> vector<8x1xf32>
    %34 = vector.broadcast %33 : vector<8x1xf32> to vector<8x8xf32>
    %35 = arith.mulf %30, %34 : vector<8x8xf32>
    %36 = arith.truncf %35 : vector<8x8xf32> to vector<8x8xbf16>
    %37 = vector.extract_strided_slice %18 {offsets = [0, 0], sizes = [8, 8], strides = [1, 1]} : vector<8x32xf32> to vector<8x8xf32>
    %38 = arith.truncf %37 : vector<8x8xf32> to vector<8x8xbf16>
    %cst_15 = arith.constant dense<0.000000e+00> : vector<8x8xf32>
    %39 = tpu.matmul %36, %38, %cst_15 {dimension_numbers = #tpu.dot_dimension_numbers<[1], [0], [0], [1], [0, 0, 1, 1], [], []>} : vector<8x8xbf16>, vector<8x8xbf16>, vector<8x8xf32> -> vector<8x8xf32>
    %40 = vector.extract_strided_slice %16 {offsets = [0, 8], sizes = [8, 8], strides = [1, 1]} : vector<8x32xf32> to vector<8x8xf32>
    %41 = arith.truncf %40 : vector<8x8xf32> to vector<8x8xbf16>
    %42 = vector.extract_strided_slice %17 {offsets = [0, 8], sizes = [8, 8], strides = [1, 1]} : vector<8x32xf32> to vector<8x8xf32>
    %43 = arith.truncf %42 : vector<8x8xf32> to vector<8x8xbf16>
    %cst_16 = arith.constant dense<0.000000e+00> : vector<8x8xf32>
    %44 = tpu.matmul %41, %43, %cst_16 {dimension_numbers = #tpu.dot_dimension_numbers<[1], [1], [0], [0], [0, 0, 1, 0], [], []>} : vector<8x8xbf16>, vector<8x8xbf16>, vector<8x8xf32> -> vector<8x8xf32>
    %cst_17 = arith.constant -1.000000e+09 : f32
    %45 = vector.broadcast %cst_17 : f32 to vector<8x8xf32>
    %46 = arith.select %7, %44, %45 : vector<8x8xi1>, vector<8x8xf32>
    %cst_18 = arith.constant dense<0xFF800000> : vector<8xf32>
    %47 = vector.multi_reduction <maximumf>, %46, %cst_18 [1] : vector<8x8xf32> to vector<8xf32>
    %48 = vector.shape_cast %47 : vector<8xf32> to vector<8x1xf32>
    %49 = vector.broadcast %48 : vector<8x1xf32> to vector<8x8xf32>
    %50 = arith.subf %46, %49 : vector<8x8xf32>
    %51 = math.exp %50 : vector<8x8xf32>
    %cst_19 = arith.constant dense<0.000000e+00> : vector<8xf32>
    %52 = vector.multi_reduction <add>, %51, %cst_19 [1] : vector<8x8xf32> to vector<8xf32>
    %53 = vector.shape_cast %52 : vector<8xf32> to vector<8x1xf32>
    %54 = tpu.reciprocal %53 {approx = true} : vector<8x1xf32> -> vector<8x1xf32>
    %55 = vector.broadcast %54 : vector<8x1xf32> to vector<8x8xf32>
    %56 = arith.mulf %51, %55 : vector<8x8xf32>
    %57 = arith.truncf %56 : vector<8x8xf32> to vector<8x8xbf16>
    %58 = vector.extract_strided_slice %18 {offsets = [0, 8], sizes = [8, 8], strides = [1, 1]} : vector<8x32xf32> to vector<8x8xf32>
    %59 = arith.truncf %58 : vector<8x8xf32> to vector<8x8xbf16>
    %cst_20 = arith.constant dense<0.000000e+00> : vector<8x8xf32>
    %60 = tpu.matmul %57, %59, %cst_20 {dimension_numbers = #tpu.dot_dimension_numbers<[1], [0], [0], [1], [0, 0, 1, 1], [], []>} : vector<8x8xbf16>, vector<8x8xbf16>, vector<8x8xf32> -> vector<8x8xf32>
    %61 = vector.extract_strided_slice %16 {offsets = [0, 16], sizes = [8, 8], strides = [1, 1]} : vector<8x32xf32> to vector<8x8xf32>
    %62 = arith.truncf %61 : vector<8x8xf32> to vector<8x8xbf16>
    %63 = vector.extract_strided_slice %17 {offsets = [0, 16], sizes = [8, 8], strides = [1, 1]} : vector<8x32xf32> to vector<8x8xf32>
    %64 = arith.truncf %63 : vector<8x8xf32> to vector<8x8xbf16>
    %cst_21 = arith.constant dense<0.000000e+00> : vector<8x8xf32>
    %65 = tpu.matmul %62, %64, %cst_21 {dimension_numbers = #tpu.dot_dimension_numbers<[1], [1], [0], [0], [0, 0, 1, 0], [], []>} : vector<8x8xbf16>, vector<8x8xbf16>, vector<8x8xf32> -> vector<8x8xf32>
    %cst_22 = arith.constant -1.000000e+09 : f32
    %66 = vector.broadcast %cst_22 : f32 to vector<8x8xf32>
    %67 = arith.select %7, %65, %66 : vector<8x8xi1>, vector<8x8xf32>
    %cst_23 = arith.constant dense<0xFF800000> : vector<8xf32>
    %68 = vector.multi_reduction <maximumf>, %67, %cst_23 [1] : vector<8x8xf32> to vector<8xf32>
    %69 = vector.shape_cast %68 : vector<8xf32> to vector<8x1xf32>
    %70 = vector.broadcast %69 : vector<8x1xf32> to vector<8x8xf32>
    %71 = arith.subf %67, %70 : vector<8x8xf32>
    %72 = math.exp %71 : vector<8x8xf32>
    %cst_24 = arith.constant dense<0.000000e+00> : vector<8xf32>
    %73 = vector.multi_reduction <add>, %72, %cst_24 [1] : vector<8x8xf32> to vector<8xf32>
    %74 = vector.shape_cast %73 : vector<8xf32> to vector<8x1xf32>
    %75 = tpu.reciprocal %74 {approx = true} : vector<8x1xf32> -> vector<8x1xf32>
    %76 = vector.broadcast %75 : vector<8x1xf32> to vector<8x8xf32>
    %77 = arith.mulf %72, %76 : vector<8x8xf32>
    %78 = arith.truncf %77 : vector<8x8xf32> to vector<8x8xbf16>
    %79 = vector.extract_strided_slice %18 {offsets = [0, 16], sizes = [8, 8], strides = [1, 1]} : vector<8x32xf32> to vector<8x8xf32>
    %80 = arith.truncf %79 : vector<8x8xf32> to vector<8x8xbf16>
    %cst_25 = arith.constant dense<0.000000e+00> : vector<8x8xf32>
    %81 = tpu.matmul %78, %80, %cst_25 {dimension_numbers = #tpu.dot_dimension_numbers<[1], [0], [0], [1], [0, 0, 1, 1], [], []>} : vector<8x8xbf16>, vector<8x8xbf16>, vector<8x8xf32> -> vector<8x8xf32>
    %82 = vector.extract_strided_slice %16 {offsets = [0, 24], sizes = [8, 8], strides = [1, 1]} : vector<8x32xf32> to vector<8x8xf32>
    %83 = arith.truncf %82 : vector<8x8xf32> to vector<8x8xbf16>
    %84 = vector.extract_strided_slice %17 {offsets = [0, 24], sizes = [8, 8], strides = [1, 1]} : vector<8x32xf32> to vector<8x8xf32>
    %85 = arith.truncf %84 : vector<8x8xf32> to vector<8x8xbf16>
    %cst_26 = arith.constant dense<0.000000e+00> : vector<8x8xf32>
    %86 = tpu.matmul %83, %85, %cst_26 {dimension_numbers = #tpu.dot_dimension_numbers<[1], [1], [0], [0], [0, 0, 1, 0], [], []>} : vector<8x8xbf16>, vector<8x8xbf16>, vector<8x8xf32> -> vector<8x8xf32>
    %cst_27 = arith.constant -1.000000e+09 : f32
    %87 = vector.broadcast %cst_27 : f32 to vector<8x8xf32>
    %88 = arith.select %7, %86, %87 : vector<8x8xi1>, vector<8x8xf32>
    %cst_28 = arith.constant dense<0xFF800000> : vector<8xf32>
    %89 = vector.multi_reduction <maximumf>, %88, %cst_28 [1] : vector<8x8xf32> to vector<8xf32>
    %90 = vector.shape_cast %89 : vector<8xf32> to vector<8x1xf32>
    %91 = vector.broadcast %90 : vector<8x1xf32> to vector<8x8xf32>
    %92 = arith.subf %88, %91 : vector<8x8xf32>
    %93 = math.exp %92 : vector<8x8xf32>
    %cst_29 = arith.constant dense<0.000000e+00> : vector<8xf32>
    %94 = vector.multi_reduction <add>, %93, %cst_29 [1] : vector<8x8xf32> to vector<8xf32>
    %95 = vector.shape_cast %94 : vector<8xf32> to vector<8x1xf32>
    %96 = tpu.reciprocal %95 {approx = true} : vector<8x1xf32> -> vector<8x1xf32>
    %97 = vector.broadcast %96 : vector<8x1xf32> to vector<8x8xf32>
    %98 = arith.mulf %93, %97 : vector<8x8xf32>
    %99 = arith.truncf %98 : vector<8x8xf32> to vector<8x8xbf16>
    %100 = vector.extract_strided_slice %18 {offsets = [0, 24], sizes = [8, 8], strides = [1, 1]} : vector<8x32xf32> to vector<8x8xf32>
    %101 = arith.truncf %100 : vector<8x8xf32> to vector<8x8xbf16>
    %cst_30 = arith.constant dense<0.000000e+00> : vector<8x8xf32>
    %102 = tpu.matmul %99, %101, %cst_30 {dimension_numbers = #tpu.dot_dimension_numbers<[1], [0], [0], [1], [0, 0, 1, 1], [], []>} : vector<8x8xbf16>, vector<8x8xbf16>, vector<8x8xf32> -> vector<8x8xf32>
    %103 = tpu.concatenate %39, %60, %81, %102 in 1 : vector<8x8xf32>, vector<8x8xf32>, vector<8x8xf32>, vector<8x8xf32> -> vector<8x32xf32>
    %104 = arith.truncf %103 : vector<8x32xf32> to vector<8x32xbf16>
    %c0_31 = arith.constant 0 : index
    %c0_32 = arith.constant 0 : index
    %c0_33 = arith.constant 0 : index
    %105 = vector.load %arg5[%c0_31, %c0_32, %c0_33] : memref<2x32x32xbf16, #tpu.memory_space<vmem>>, vector<1x32x32xbf16>
    %106 = vector.shape_cast %105 : vector<1x32x32xbf16> to vector<32x32xbf16>
    %cst_34 = arith.constant dense<0.000000e+00> : vector<8x32xf32>
    %107 = tpu.matmul %104, %106, %cst_34 {dimension_numbers = #tpu.dot_dimension_numbers<[1], [0], [0], [1], [0, 0, 1, 1], [], []>} : vector<8x32xbf16>, vector<32x32xbf16>, vector<8x32xf32> -> vector<8x32xf32>
    %c0_35 = arith.constant 0 : index
    %c0_36 = arith.constant 0 : index
    %c0_37 = arith.constant 0 : index
    %108 = vector.load %arg6[%c0_35, %c0_36, %c0_37] : memref<2x1x32xf32, #tpu.memory_space<vmem>>, vector<1x1x32xf32>
    %109 = vector.shape_cast %108 : vector<1x1x32xf32> to vector<1x32xf32>
    %110 = vector.broadcast %109 : vector<1x32xf32> to vector<8x32xf32>
    %111 = arith.addf %107, %110 : vector<8x32xf32>
    %112 = arith.addf %2, %111 : vector<8x32xf32>
    %c0_38 = arith.constant 0 : index
    %c0_39 = arith.constant 0 : index
    %c0_40 = arith.constant 0 : index
    %113 = vector.load %arg7[%c0_38, %c0_39, %c0_40] : memref<2x1x32xf32, #tpu.memory_space<vmem>>, vector<1x1x32xf32>
    %114 = vector.shape_cast %113 : vector<1x1x32xf32> to vector<1x32xf32>
    %c0_41 = arith.constant 0 : index
    %c0_42 = arith.constant 0 : index
    %c0_43 = arith.constant 0 : index
    %115 = vector.load %arg8[%c0_41, %c0_42, %c0_43] : memref<2x1x32xf32, #tpu.memory_space<vmem>>, vector<1x1x32xf32>
    %116 = vector.shape_cast %115 : vector<1x1x32xf32> to vector<1x32xf32>
    %cst_44 = arith.constant dense<0.000000e+00> : vector<8xf32>
    %117 = vector.multi_reduction <add>, %112, %cst_44 [1] : vector<8x32xf32> to vector<8xf32>
    %118 = vector.shape_cast %117 : vector<8xf32> to vector<8x1xf32>
    %cst_45 = arith.constant 3.200000e+01 : f32
    %119 = vector.broadcast %cst_45 : f32 to vector<8x1xf32>
    %120 = arith.divf %118, %119 : vector<8x1xf32>
    %121 = vector.broadcast %120 : vector<8x1xf32> to vector<8x32xf32>
    %122 = arith.subf %112, %121 : vector<8x32xf32>
    %123 = arith.mulf %122, %122 : vector<8x32xf32>
    %cst_46 = arith.constant dense<0.000000e+00> : vector<8xf32>
    %124 = vector.multi_reduction <add>, %123, %cst_46 [1] : vector<8x32xf32> to vector<8xf32>
    %125 = vector.shape_cast %124 : vector<8xf32> to vector<8x1xf32>
    %cst_47 = arith.constant 3.200000e+01 : f32
    %126 = vector.broadcast %cst_47 : f32 to vector<8x1xf32>
    %127 = arith.divf %125, %126 : vector<8x1xf32>
    %cst_48 = arith.constant 9.99999974E-6 : f32
    %128 = vector.broadcast %cst_48 : f32 to vector<8x1xf32>
    %129 = arith.addf %127, %128 : vector<8x1xf32>
    %130 = math.rsqrt %129 : vector<8x1xf32>
    %131 = vector.broadcast %130 : vector<8x1xf32> to vector<8x32xf32>
    %132 = arith.mulf %122, %131 : vector<8x32xf32>
    %133 = vector.broadcast %114 : vector<1x32xf32> to vector<8x32xf32>
    %134 = arith.mulf %132, %133 : vector<8x32xf32>
    %135 = vector.broadcast %116 : vector<1x32xf32> to vector<8x32xf32>
    %136 = arith.addf %134, %135 : vector<8x32xf32>
    %137 = arith.truncf %136 : vector<8x32xf32> to vector<8x32xbf16>
    %c0_49 = arith.constant 0 : index
    %c0_50 = arith.constant 0 : index
    %c0_51 = arith.constant 0 : index
    %138 = vector.load %arg9[%c0_49, %c0_50, %c0_51] : memref<2x32x32xbf16, #tpu.memory_space<vmem>>, vector<1x32x32xbf16>
    %139 = vector.shape_cast %138 : vector<1x32x32xbf16> to vector<32x32xbf16>
    %cst_52 = arith.constant dense<0.000000e+00> : vector<8x32xf32>
    %140 = tpu.matmul %137, %139, %cst_52 {dimension_numbers = #tpu.dot_dimension_numbers<[1], [0], [0], [1], [0, 0, 1, 1], [], []>} : vector<8x32xbf16>, vector<32x32xbf16>, vector<8x32xf32> -> vector<8x32xf32>
    %c0_53 = arith.constant 0 : index
    %c0_54 = arith.constant 0 : index
    %c0_55 = arith.constant 0 : index
    %141 = vector.load %arg10[%c0_53, %c0_54, %c0_55] : memref<2x1x32xf32, #tpu.memory_space<vmem>>, vector<1x1x32xf32>
    %142 = vector.shape_cast %141 : vector<1x1x32xf32> to vector<1x32xf32>
    %143 = vector.broadcast %142 : vector<1x32xf32> to vector<8x32xf32>
    %144 = arith.addf %140, %143 : vector<8x32xf32>
    %c0_56 = arith.constant 0 : index
    %c0_57 = arith.constant 0 : index
    %c0_58 = arith.constant 0 : index
    %145 = vector.load %arg11[%c0_56, %c0_57, %c0_58] : memref<2x32x64xbf16, #tpu.memory_space<vmem>>, vector<1x32x64xbf16>
    %146 = vector.shape_cast %145 : vector<1x32x64xbf16> to vector<32x64xbf16>
    %cst_59 = arith.constant dense<0.000000e+00> : vector<8x64xf32>
    %147 = tpu.matmul %4, %146, %cst_59 {dimension_numbers = #tpu.dot_dimension_numbers<[1], [0], [0], [1], [0, 0, 1, 1], [], []>} : vector<8x32xbf16>, vector<32x64xbf16>, vector<8x64xf32> -> vector<8x64xf32>
    %c0_60 = arith.constant 0 : index
    %c0_61 = arith.constant 0 : index
    %c0_62 = arith.constant 0 : index
    %148 = vector.load %arg12[%c0_60, %c0_61, %c0_62] : memref<2x1x64xf32, #tpu.memory_space<vmem>>, vector<1x1x64xf32>
    %149 = vector.shape_cast %148 : vector<1x1x64xf32> to vector<1x64xf32>
    %150 = vector.broadcast %149 : vector<1x64xf32> to vector<8x64xf32>
    %151 = arith.addf %147, %150 : vector<8x64xf32>
    %152 = vector.extract_strided_slice %151 {offsets = [0, 0], sizes = [8, 32], strides = [1, 1]} : vector<8x64xf32> to vector<8x32xf32>
    %153 = vector.extract_strided_slice %151 {offsets = [0, 32], sizes = [8, 32], strides = [1, 1]} : vector<8x64xf32> to vector<8x32xf32>
    %154 = vector.extract_strided_slice %144 {offsets = [0, 0], sizes = [8, 8], strides = [1, 1]} : vector<8x32xf32> to vector<8x8xf32>
    %155 = arith.truncf %154 : vector<8x8xf32> to vector<8x8xbf16>
    %156 = vector.extract_strided_slice %152 {offsets = [0, 0], sizes = [8, 8], strides = [1, 1]} : vector<8x32xf32> to vector<8x8xf32>
    %157 = arith.truncf %156 : vector<8x8xf32> to vector<8x8xbf16>
    %cst_63 = arith.constant dense<0.000000e+00> : vector<8x8xf32>
    %158 = tpu.matmul %155, %157, %cst_63 {dimension_numbers = #tpu.dot_dimension_numbers<[1], [1], [0], [0], [0, 0, 1, 0], [], []>} : vector<8x8xbf16>, vector<8x8xbf16>, vector<8x8xf32> -> vector<8x8xf32>
    %cst_64 = arith.constant dense<0xFF800000> : vector<8xf32>
    %159 = vector.multi_reduction <maximumf>, %158, %cst_64 [1] : vector<8x8xf32> to vector<8xf32>
    %160 = vector.shape_cast %159 : vector<8xf32> to vector<8x1xf32>
    %161 = vector.broadcast %160 : vector<8x1xf32> to vector<8x8xf32>
    %162 = arith.subf %158, %161 : vector<8x8xf32>
    %163 = math.exp %162 : vector<8x8xf32>
    %cst_65 = arith.constant dense<0.000000e+00> : vector<8xf32>
    %164 = vector.multi_reduction <add>, %163, %cst_65 [1] : vector<8x8xf32> to vector<8xf32>
    %165 = vector.shape_cast %164 : vector<8xf32> to vector<8x1xf32>
    %166 = tpu.reciprocal %165 {approx = true} : vector<8x1xf32> -> vector<8x1xf32>
    %167 = vector.broadcast %166 : vector<8x1xf32> to vector<8x8xf32>
    %168 = arith.mulf %163, %167 : vector<8x8xf32>
    %169 = arith.truncf %168 : vector<8x8xf32> to vector<8x8xbf16>
    %170 = vector.extract_strided_slice %153 {offsets = [0, 0], sizes = [8, 8], strides = [1, 1]} : vector<8x32xf32> to vector<8x8xf32>
    %171 = arith.truncf %170 : vector<8x8xf32> to vector<8x8xbf16>
    %cst_66 = arith.constant dense<0.000000e+00> : vector<8x8xf32>
    %172 = tpu.matmul %169, %171, %cst_66 {dimension_numbers = #tpu.dot_dimension_numbers<[1], [0], [0], [1], [0, 0, 1, 1], [], []>} : vector<8x8xbf16>, vector<8x8xbf16>, vector<8x8xf32> -> vector<8x8xf32>
    %173 = vector.extract_strided_slice %144 {offsets = [0, 8], sizes = [8, 8], strides = [1, 1]} : vector<8x32xf32> to vector<8x8xf32>
    %174 = arith.truncf %173 : vector<8x8xf32> to vector<8x8xbf16>
    %175 = vector.extract_strided_slice %152 {offsets = [0, 8], sizes = [8, 8], strides = [1, 1]} : vector<8x32xf32> to vector<8x8xf32>
    %176 = arith.truncf %175 : vector<8x8xf32> to vector<8x8xbf16>
    %cst_67 = arith.constant dense<0.000000e+00> : vector<8x8xf32>
    %177 = tpu.matmul %174, %176, %cst_67 {dimension_numbers = #tpu.dot_dimension_numbers<[1], [1], [0], [0], [0, 0, 1, 0], [], []>} : vector<8x8xbf16>, vector<8x8xbf16>, vector<8x8xf32> -> vector<8x8xf32>
    %cst_68 = arith.constant dense<0xFF800000> : vector<8xf32>
    %178 = vector.multi_reduction <maximumf>, %177, %cst_68 [1] : vector<8x8xf32> to vector<8xf32>
    %179 = vector.shape_cast %178 : vector<8xf32> to vector<8x1xf32>
    %180 = vector.broadcast %179 : vector<8x1xf32> to vector<8x8xf32>
    %181 = arith.subf %177, %180 : vector<8x8xf32>
    %182 = math.exp %181 : vector<8x8xf32>
    %cst_69 = arith.constant dense<0.000000e+00> : vector<8xf32>
    %183 = vector.multi_reduction <add>, %182, %cst_69 [1] : vector<8x8xf32> to vector<8xf32>
    %184 = vector.shape_cast %183 : vector<8xf32> to vector<8x1xf32>
    %185 = tpu.reciprocal %184 {approx = true} : vector<8x1xf32> -> vector<8x1xf32>
    %186 = vector.broadcast %185 : vector<8x1xf32> to vector<8x8xf32>
    %187 = arith.mulf %182, %186 : vector<8x8xf32>
    %188 = arith.truncf %187 : vector<8x8xf32> to vector<8x8xbf16>
    %189 = vector.extract_strided_slice %153 {offsets = [0, 8], sizes = [8, 8], strides = [1, 1]} : vector<8x32xf32> to vector<8x8xf32>
    %190 = arith.truncf %189 : vector<8x8xf32> to vector<8x8xbf16>
    %cst_70 = arith.constant dense<0.000000e+00> : vector<8x8xf32>
    %191 = tpu.matmul %188, %190, %cst_70 {dimension_numbers = #tpu.dot_dimension_numbers<[1], [0], [0], [1], [0, 0, 1, 1], [], []>} : vector<8x8xbf16>, vector<8x8xbf16>, vector<8x8xf32> -> vector<8x8xf32>
    %192 = vector.extract_strided_slice %144 {offsets = [0, 16], sizes = [8, 8], strides = [1, 1]} : vector<8x32xf32> to vector<8x8xf32>
    %193 = arith.truncf %192 : vector<8x8xf32> to vector<8x8xbf16>
    %194 = vector.extract_strided_slice %152 {offsets = [0, 16], sizes = [8, 8], strides = [1, 1]} : vector<8x32xf32> to vector<8x8xf32>
    %195 = arith.truncf %194 : vector<8x8xf32> to vector<8x8xbf16>
    %cst_71 = arith.constant dense<0.000000e+00> : vector<8x8xf32>
    %196 = tpu.matmul %193, %195, %cst_71 {dimension_numbers = #tpu.dot_dimension_numbers<[1], [1], [0], [0], [0, 0, 1, 0], [], []>} : vector<8x8xbf16>, vector<8x8xbf16>, vector<8x8xf32> -> vector<8x8xf32>
    %cst_72 = arith.constant dense<0xFF800000> : vector<8xf32>
    %197 = vector.multi_reduction <maximumf>, %196, %cst_72 [1] : vector<8x8xf32> to vector<8xf32>
    %198 = vector.shape_cast %197 : vector<8xf32> to vector<8x1xf32>
    %199 = vector.broadcast %198 : vector<8x1xf32> to vector<8x8xf32>
    %200 = arith.subf %196, %199 : vector<8x8xf32>
    %201 = math.exp %200 : vector<8x8xf32>
    %cst_73 = arith.constant dense<0.000000e+00> : vector<8xf32>
    %202 = vector.multi_reduction <add>, %201, %cst_73 [1] : vector<8x8xf32> to vector<8xf32>
    %203 = vector.shape_cast %202 : vector<8xf32> to vector<8x1xf32>
    %204 = tpu.reciprocal %203 {approx = true} : vector<8x1xf32> -> vector<8x1xf32>
    %205 = vector.broadcast %204 : vector<8x1xf32> to vector<8x8xf32>
    %206 = arith.mulf %201, %205 : vector<8x8xf32>
    %207 = arith.truncf %206 : vector<8x8xf32> to vector<8x8xbf16>
    %208 = vector.extract_strided_slice %153 {offsets = [0, 16], sizes = [8, 8], strides = [1, 1]} : vector<8x32xf32> to vector<8x8xf32>
    %209 = arith.truncf %208 : vector<8x8xf32> to vector<8x8xbf16>
    %cst_74 = arith.constant dense<0.000000e+00> : vector<8x8xf32>
    %210 = tpu.matmul %207, %209, %cst_74 {dimension_numbers = #tpu.dot_dimension_numbers<[1], [0], [0], [1], [0, 0, 1, 1], [], []>} : vector<8x8xbf16>, vector<8x8xbf16>, vector<8x8xf32> -> vector<8x8xf32>
    %211 = vector.extract_strided_slice %144 {offsets = [0, 24], sizes = [8, 8], strides = [1, 1]} : vector<8x32xf32> to vector<8x8xf32>
    %212 = arith.truncf %211 : vector<8x8xf32> to vector<8x8xbf16>
    %213 = vector.extract_strided_slice %152 {offsets = [0, 24], sizes = [8, 8], strides = [1, 1]} : vector<8x32xf32> to vector<8x8xf32>
    %214 = arith.truncf %213 : vector<8x8xf32> to vector<8x8xbf16>
    %cst_75 = arith.constant dense<0.000000e+00> : vector<8x8xf32>
    %215 = tpu.matmul %212, %214, %cst_75 {dimension_numbers = #tpu.dot_dimension_numbers<[1], [1], [0], [0], [0, 0, 1, 0], [], []>} : vector<8x8xbf16>, vector<8x8xbf16>, vector<8x8xf32> -> vector<8x8xf32>
    %cst_76 = arith.constant dense<0xFF800000> : vector<8xf32>
    %216 = vector.multi_reduction <maximumf>, %215, %cst_76 [1] : vector<8x8xf32> to vector<8xf32>
    %217 = vector.shape_cast %216 : vector<8xf32> to vector<8x1xf32>
    %218 = vector.broadcast %217 : vector<8x1xf32> to vector<8x8xf32>
    %219 = arith.subf %215, %218 : vector<8x8xf32>
    %220 = math.exp %219 : vector<8x8xf32>
    %cst_77 = arith.constant dense<0.000000e+00> : vector<8xf32>
    %221 = vector.multi_reduction <add>, %220, %cst_77 [1] : vector<8x8xf32> to vector<8xf32>
    %222 = vector.shape_cast %221 : vector<8xf32> to vector<8x1xf32>
    %223 = tpu.reciprocal %222 {approx = true} : vector<8x1xf32> -> vector<8x1xf32>
    %224 = vector.broadcast %223 : vector<8x1xf32> to vector<8x8xf32>
    %225 = arith.mulf %220, %224 : vector<8x8xf32>
    %226 = arith.truncf %225 : vector<8x8xf32> to vector<8x8xbf16>
    %227 = vector.extract_strided_slice %153 {offsets = [0, 24], sizes = [8, 8], strides = [1, 1]} : vector<8x32xf32> to vector<8x8xf32>
    %228 = arith.truncf %227 : vector<8x8xf32> to vector<8x8xbf16>
    %cst_78 = arith.constant dense<0.000000e+00> : vector<8x8xf32>
    %229 = tpu.matmul %226, %228, %cst_78 {dimension_numbers = #tpu.dot_dimension_numbers<[1], [0], [0], [1], [0, 0, 1, 1], [], []>} : vector<8x8xbf16>, vector<8x8xbf16>, vector<8x8xf32> -> vector<8x8xf32>
    %230 = tpu.concatenate %172, %191, %210, %229 in 1 : vector<8x8xf32>, vector<8x8xf32>, vector<8x8xf32>, vector<8x8xf32> -> vector<8x32xf32>
    %231 = arith.truncf %230 : vector<8x32xf32> to vector<8x32xbf16>
    %c0_79 = arith.constant 0 : index
    %c0_80 = arith.constant 0 : index
    %c0_81 = arith.constant 0 : index
    %232 = vector.load %arg13[%c0_79, %c0_80, %c0_81] : memref<2x32x32xbf16, #tpu.memory_space<vmem>>, vector<1x32x32xbf16>
    %233 = vector.shape_cast %232 : vector<1x32x32xbf16> to vector<32x32xbf16>
    %cst_82 = arith.constant dense<0.000000e+00> : vector<8x32xf32>
    %234 = tpu.matmul %231, %233, %cst_82 {dimension_numbers = #tpu.dot_dimension_numbers<[1], [0], [0], [1], [0, 0, 1, 1], [], []>} : vector<8x32xbf16>, vector<32x32xbf16>, vector<8x32xf32> -> vector<8x32xf32>
    %c0_83 = arith.constant 0 : index
    %c0_84 = arith.constant 0 : index
    %c0_85 = arith.constant 0 : index
    %235 = vector.load %arg14[%c0_83, %c0_84, %c0_85] : memref<2x1x32xf32, #tpu.memory_space<vmem>>, vector<1x1x32xf32>
    %236 = vector.shape_cast %235 : vector<1x1x32xf32> to vector<1x32xf32>
    %237 = vector.broadcast %236 : vector<1x32xf32> to vector<8x32xf32>
    %238 = arith.addf %234, %237 : vector<8x32xf32>
    %239 = arith.addf %136, %238 : vector<8x32xf32>
    %c0_86 = arith.constant 0 : index
    %c0_87 = arith.constant 0 : index
    %c0_88 = arith.constant 0 : index
    %240 = vector.load %arg15[%c0_86, %c0_87, %c0_88] : memref<2x1x32xf32, #tpu.memory_space<vmem>>, vector<1x1x32xf32>
    %241 = vector.shape_cast %240 : vector<1x1x32xf32> to vector<1x32xf32>
    %c0_89 = arith.constant 0 : index
    %c0_90 = arith.constant 0 : index
    %c0_91 = arith.constant 0 : index
    %242 = vector.load %arg16[%c0_89, %c0_90, %c0_91] : memref<2x1x32xf32, #tpu.memory_space<vmem>>, vector<1x1x32xf32>
    %243 = vector.shape_cast %242 : vector<1x1x32xf32> to vector<1x32xf32>
    %cst_92 = arith.constant dense<0.000000e+00> : vector<8xf32>
    %244 = vector.multi_reduction <add>, %239, %cst_92 [1] : vector<8x32xf32> to vector<8xf32>
    %245 = vector.shape_cast %244 : vector<8xf32> to vector<8x1xf32>
    %cst_93 = arith.constant 3.200000e+01 : f32
    %246 = vector.broadcast %cst_93 : f32 to vector<8x1xf32>
    %247 = arith.divf %245, %246 : vector<8x1xf32>
    %248 = vector.broadcast %247 : vector<8x1xf32> to vector<8x32xf32>
    %249 = arith.subf %239, %248 : vector<8x32xf32>
    %250 = arith.mulf %249, %249 : vector<8x32xf32>
    %cst_94 = arith.constant dense<0.000000e+00> : vector<8xf32>
    %251 = vector.multi_reduction <add>, %250, %cst_94 [1] : vector<8x32xf32> to vector<8xf32>
    %252 = vector.shape_cast %251 : vector<8xf32> to vector<8x1xf32>
    %cst_95 = arith.constant 3.200000e+01 : f32
    %253 = vector.broadcast %cst_95 : f32 to vector<8x1xf32>
    %254 = arith.divf %252, %253 : vector<8x1xf32>
    %cst_96 = arith.constant 9.99999974E-6 : f32
    %255 = vector.broadcast %cst_96 : f32 to vector<8x1xf32>
    %256 = arith.addf %254, %255 : vector<8x1xf32>
    %257 = math.rsqrt %256 : vector<8x1xf32>
    %258 = vector.broadcast %257 : vector<8x1xf32> to vector<8x32xf32>
    %259 = arith.mulf %249, %258 : vector<8x32xf32>
    %260 = vector.broadcast %241 : vector<1x32xf32> to vector<8x32xf32>
    %261 = arith.mulf %259, %260 : vector<8x32xf32>
    %262 = vector.broadcast %243 : vector<1x32xf32> to vector<8x32xf32>
    %263 = arith.addf %261, %262 : vector<8x32xf32>
    %264 = arith.truncf %263 : vector<8x32xf32> to vector<8x32xbf16>
    %c0_97 = arith.constant 0 : index
    %c0_98 = arith.constant 0 : index
    %c0_99 = arith.constant 0 : index
    %265 = vector.load %arg17[%c0_97, %c0_98, %c0_99] : memref<2x32x64xbf16, #tpu.memory_space<vmem>>, vector<1x32x64xbf16>
    %266 = vector.shape_cast %265 : vector<1x32x64xbf16> to vector<32x64xbf16>
    %cst_100 = arith.constant dense<0.000000e+00> : vector<8x64xf32>
    %267 = tpu.matmul %264, %266, %cst_100 {dimension_numbers = #tpu.dot_dimension_numbers<[1], [0], [0], [1], [0, 0, 1, 1], [], []>} : vector<8x32xbf16>, vector<32x64xbf16>, vector<8x64xf32> -> vector<8x64xf32>
    %c0_101 = arith.constant 0 : index
    %c0_102 = arith.constant 0 : index
    %c0_103 = arith.constant 0 : index
    %268 = vector.load %arg18[%c0_101, %c0_102, %c0_103] : memref<2x1x64xf32, #tpu.memory_space<vmem>>, vector<1x1x64xf32>
    %269 = vector.shape_cast %268 : vector<1x1x64xf32> to vector<1x64xf32>
    %270 = vector.broadcast %269 : vector<1x64xf32> to vector<8x64xf32>
    %271 = arith.addf %267, %270 : vector<8x64xf32>
    %cst_104 = arith.constant 0.000000e+00 : f32
    %272 = vector.broadcast %cst_104 : f32 to vector<8x64xf32>
    %273 = arith.maximumf %271, %272 : vector<8x64xf32>
    %274 = arith.truncf %273 : vector<8x64xf32> to vector<8x64xbf16>
    %c0_105 = arith.constant 0 : index
    %c0_106 = arith.constant 0 : index
    %c0_107 = arith.constant 0 : index
    %275 = vector.load %arg19[%c0_105, %c0_106, %c0_107] : memref<2x64x32xbf16, #tpu.memory_space<vmem>>, vector<1x64x32xbf16>
    %276 = vector.shape_cast %275 : vector<1x64x32xbf16> to vector<64x32xbf16>
    %cst_108 = arith.constant dense<0.000000e+00> : vector<8x32xf32>
    %277 = tpu.matmul %274, %276, %cst_108 {dimension_numbers = #tpu.dot_dimension_numbers<[1], [0], [0], [1], [0, 0, 1, 1], [], []>} : vector<8x64xbf16>, vector<64x32xbf16>, vector<8x32xf32> -> vector<8x32xf32>
    %c0_109 = arith.constant 0 : index
    %c0_110 = arith.constant 0 : index
    %c0_111 = arith.constant 0 : index
    %278 = vector.load %arg20[%c0_109, %c0_110, %c0_111] : memref<2x1x32xf32, #tpu.memory_space<vmem>>, vector<1x1x32xf32>
    %279 = vector.shape_cast %278 : vector<1x1x32xf32> to vector<1x32xf32>
    %280 = vector.broadcast %279 : vector<1x32xf32> to vector<8x32xf32>
    %281 = arith.addf %277, %280 : vector<8x32xf32>
    %282 = arith.addf %263, %281 : vector<8x32xf32>
    %c0_112 = arith.constant 0 : index
    %c0_113 = arith.constant 0 : index
    %c0_114 = arith.constant 0 : index
    %283 = vector.load %arg21[%c0_112, %c0_113, %c0_114] : memref<2x1x32xf32, #tpu.memory_space<vmem>>, vector<1x1x32xf32>
    %284 = vector.shape_cast %283 : vector<1x1x32xf32> to vector<1x32xf32>
    %c0_115 = arith.constant 0 : index
    %c0_116 = arith.constant 0 : index
    %c0_117 = arith.constant 0 : index
    %285 = vector.load %arg22[%c0_115, %c0_116, %c0_117] : memref<2x1x32xf32, #tpu.memory_space<vmem>>, vector<1x1x32xf32>
    %286 = vector.shape_cast %285 : vector<1x1x32xf32> to vector<1x32xf32>
    %cst_118 = arith.constant dense<0.000000e+00> : vector<8xf32>
    %287 = vector.multi_reduction <add>, %282, %cst_118 [1] : vector<8x32xf32> to vector<8xf32>
    %288 = vector.shape_cast %287 : vector<8xf32> to vector<8x1xf32>
    %cst_119 = arith.constant 3.200000e+01 : f32
    %289 = vector.broadcast %cst_119 : f32 to vector<8x1xf32>
    %290 = arith.divf %288, %289 : vector<8x1xf32>
    %291 = vector.broadcast %290 : vector<8x1xf32> to vector<8x32xf32>
    %292 = arith.subf %282, %291 : vector<8x32xf32>
    %293 = arith.mulf %292, %292 : vector<8x32xf32>
    %cst_120 = arith.constant dense<0.000000e+00> : vector<8xf32>
    %294 = vector.multi_reduction <add>, %293, %cst_120 [1] : vector<8x32xf32> to vector<8xf32>
    %295 = vector.shape_cast %294 : vector<8xf32> to vector<8x1xf32>
    %cst_121 = arith.constant 3.200000e+01 : f32
    %296 = vector.broadcast %cst_121 : f32 to vector<8x1xf32>
    %297 = arith.divf %295, %296 : vector<8x1xf32>
    %cst_122 = arith.constant 9.99999974E-6 : f32
    %298 = vector.broadcast %cst_122 : f32 to vector<8x1xf32>
    %299 = arith.addf %297, %298 : vector<8x1xf32>
    %300 = math.rsqrt %299 : vector<8x1xf32>
    %301 = vector.broadcast %300 : vector<8x1xf32> to vector<8x32xf32>
    %302 = arith.mulf %292, %301 : vector<8x32xf32>
    %303 = vector.broadcast %284 : vector<1x32xf32> to vector<8x32xf32>
    %304 = arith.mulf %302, %303 : vector<8x32xf32>
    %305 = vector.broadcast %286 : vector<1x32xf32> to vector<8x32xf32>
    %306 = arith.addf %304, %305 : vector<8x32xf32>
    %307 = arith.truncf %306 : vector<8x32xf32> to vector<8x32xbf16>
    %c1 = arith.constant 1 : index
    %c0_123 = arith.constant 0 : index
    %c0_124 = arith.constant 0 : index
    %308 = vector.load %arg3[%c1, %c0_123, %c0_124] : memref<2x32x96xbf16, #tpu.memory_space<vmem>>, vector<1x32x96xbf16>
    %309 = vector.shape_cast %308 : vector<1x32x96xbf16> to vector<32x96xbf16>
    %cst_125 = arith.constant dense<0.000000e+00> : vector<8x96xf32>
    %310 = tpu.matmul %307, %309, %cst_125 {dimension_numbers = #tpu.dot_dimension_numbers<[1], [0], [0], [1], [0, 0, 1, 1], [], []>} : vector<8x32xbf16>, vector<32x96xbf16>, vector<8x96xf32> -> vector<8x96xf32>
    %c1_126 = arith.constant 1 : index
    %c0_127 = arith.constant 0 : index
    %c0_128 = arith.constant 0 : index
    %311 = vector.load %arg4[%c1_126, %c0_127, %c0_128] : memref<2x1x96xf32, #tpu.memory_space<vmem>>, vector<1x1x96xf32>
    %312 = vector.shape_cast %311 : vector<1x1x96xf32> to vector<1x96xf32>
    %313 = vector.broadcast %312 : vector<1x96xf32> to vector<8x96xf32>
    %314 = arith.addf %310, %313 : vector<8x96xf32>
    %315 = vector.extract_strided_slice %314 {offsets = [0, 0], sizes = [8, 32], strides = [1, 1]} : vector<8x96xf32> to vector<8x32xf32>
    %316 = vector.extract_strided_slice %314 {offsets = [0, 32], sizes = [8, 32], strides = [1, 1]} : vector<8x96xf32> to vector<8x32xf32>
    %317 = vector.extract_strided_slice %314 {offsets = [0, 64], sizes = [8, 32], strides = [1, 1]} : vector<8x96xf32> to vector<8x32xf32>
    %318 = vector.extract_strided_slice %315 {offsets = [0, 0], sizes = [8, 8], strides = [1, 1]} : vector<8x32xf32> to vector<8x8xf32>
    %319 = arith.truncf %318 : vector<8x8xf32> to vector<8x8xbf16>
    %320 = vector.extract_strided_slice %316 {offsets = [0, 0], sizes = [8, 8], strides = [1, 1]} : vector<8x32xf32> to vector<8x8xf32>
    %321 = arith.truncf %320 : vector<8x8xf32> to vector<8x8xbf16>
    %cst_129 = arith.constant dense<0.000000e+00> : vector<8x8xf32>
    %322 = tpu.matmul %319, %321, %cst_129 {dimension_numbers = #tpu.dot_dimension_numbers<[1], [1], [0], [0], [0, 0, 1, 0], [], []>} : vector<8x8xbf16>, vector<8x8xbf16>, vector<8x8xf32> -> vector<8x8xf32>
    %cst_130 = arith.constant -1.000000e+09 : f32
    %323 = vector.broadcast %cst_130 : f32 to vector<8x8xf32>
    %324 = arith.select %7, %322, %323 : vector<8x8xi1>, vector<8x8xf32>
    %cst_131 = arith.constant dense<0xFF800000> : vector<8xf32>
    %325 = vector.multi_reduction <maximumf>, %324, %cst_131 [1] : vector<8x8xf32> to vector<8xf32>
    %326 = vector.shape_cast %325 : vector<8xf32> to vector<8x1xf32>
    %327 = vector.broadcast %326 : vector<8x1xf32> to vector<8x8xf32>
    %328 = arith.subf %324, %327 : vector<8x8xf32>
    %329 = math.exp %328 : vector<8x8xf32>
    %cst_132 = arith.constant dense<0.000000e+00> : vector<8xf32>
    %330 = vector.multi_reduction <add>, %329, %cst_132 [1] : vector<8x8xf32> to vector<8xf32>
    %331 = vector.shape_cast %330 : vector<8xf32> to vector<8x1xf32>
    %332 = tpu.reciprocal %331 {approx = true} : vector<8x1xf32> -> vector<8x1xf32>
    %333 = vector.broadcast %332 : vector<8x1xf32> to vector<8x8xf32>
    %334 = arith.mulf %329, %333 : vector<8x8xf32>
    %335 = arith.truncf %334 : vector<8x8xf32> to vector<8x8xbf16>
    %336 = vector.extract_strided_slice %317 {offsets = [0, 0], sizes = [8, 8], strides = [1, 1]} : vector<8x32xf32> to vector<8x8xf32>
    %337 = arith.truncf %336 : vector<8x8xf32> to vector<8x8xbf16>
    %cst_133 = arith.constant dense<0.000000e+00> : vector<8x8xf32>
    %338 = tpu.matmul %335, %337, %cst_133 {dimension_numbers = #tpu.dot_dimension_numbers<[1], [0], [0], [1], [0, 0, 1, 1], [], []>} : vector<8x8xbf16>, vector<8x8xbf16>, vector<8x8xf32> -> vector<8x8xf32>
    %339 = vector.extract_strided_slice %315 {offsets = [0, 8], sizes = [8, 8], strides = [1, 1]} : vector<8x32xf32> to vector<8x8xf32>
    %340 = arith.truncf %339 : vector<8x8xf32> to vector<8x8xbf16>
    %341 = vector.extract_strided_slice %316 {offsets = [0, 8], sizes = [8, 8], strides = [1, 1]} : vector<8x32xf32> to vector<8x8xf32>
    %342 = arith.truncf %341 : vector<8x8xf32> to vector<8x8xbf16>
    %cst_134 = arith.constant dense<0.000000e+00> : vector<8x8xf32>
    %343 = tpu.matmul %340, %342, %cst_134 {dimension_numbers = #tpu.dot_dimension_numbers<[1], [1], [0], [0], [0, 0, 1, 0], [], []>} : vector<8x8xbf16>, vector<8x8xbf16>, vector<8x8xf32> -> vector<8x8xf32>
    %cst_135 = arith.constant -1.000000e+09 : f32
    %344 = vector.broadcast %cst_135 : f32 to vector<8x8xf32>
    %345 = arith.select %7, %343, %344 : vector<8x8xi1>, vector<8x8xf32>
    %cst_136 = arith.constant dense<0xFF800000> : vector<8xf32>
    %346 = vector.multi_reduction <maximumf>, %345, %cst_136 [1] : vector<8x8xf32> to vector<8xf32>
    %347 = vector.shape_cast %346 : vector<8xf32> to vector<8x1xf32>
    %348 = vector.broadcast %347 : vector<8x1xf32> to vector<8x8xf32>
    %349 = arith.subf %345, %348 : vector<8x8xf32>
    %350 = math.exp %349 : vector<8x8xf32>
    %cst_137 = arith.constant dense<0.000000e+00> : vector<8xf32>
    %351 = vector.multi_reduction <add>, %350, %cst_137 [1] : vector<8x8xf32> to vector<8xf32>
    %352 = vector.shape_cast %351 : vector<8xf32> to vector<8x1xf32>
    %353 = tpu.reciprocal %352 {approx = true} : vector<8x1xf32> -> vector<8x1xf32>
    %354 = vector.broadcast %353 : vector<8x1xf32> to vector<8x8xf32>
    %355 = arith.mulf %350, %354 : vector<8x8xf32>
    %356 = arith.truncf %355 : vector<8x8xf32> to vector<8x8xbf16>
    %357 = vector.extract_strided_slice %317 {offsets = [0, 8], sizes = [8, 8], strides = [1, 1]} : vector<8x32xf32> to vector<8x8xf32>
    %358 = arith.truncf %357 : vector<8x8xf32> to vector<8x8xbf16>
    %cst_138 = arith.constant dense<0.000000e+00> : vector<8x8xf32>
    %359 = tpu.matmul %356, %358, %cst_138 {dimension_numbers = #tpu.dot_dimension_numbers<[1], [0], [0], [1], [0, 0, 1, 1], [], []>} : vector<8x8xbf16>, vector<8x8xbf16>, vector<8x8xf32> -> vector<8x8xf32>
    %360 = vector.extract_strided_slice %315 {offsets = [0, 16], sizes = [8, 8], strides = [1, 1]} : vector<8x32xf32> to vector<8x8xf32>
    %361 = arith.truncf %360 : vector<8x8xf32> to vector<8x8xbf16>
    %362 = vector.extract_strided_slice %316 {offsets = [0, 16], sizes = [8, 8], strides = [1, 1]} : vector<8x32xf32> to vector<8x8xf32>
    %363 = arith.truncf %362 : vector<8x8xf32> to vector<8x8xbf16>
    %cst_139 = arith.constant dense<0.000000e+00> : vector<8x8xf32>
    %364 = tpu.matmul %361, %363, %cst_139 {dimension_numbers = #tpu.dot_dimension_numbers<[1], [1], [0], [0], [0, 0, 1, 0], [], []>} : vector<8x8xbf16>, vector<8x8xbf16>, vector<8x8xf32> -> vector<8x8xf32>
    %cst_140 = arith.constant -1.000000e+09 : f32
    %365 = vector.broadcast %cst_140 : f32 to vector<8x8xf32>
    %366 = arith.select %7, %364, %365 : vector<8x8xi1>, vector<8x8xf32>
    %cst_141 = arith.constant dense<0xFF800000> : vector<8xf32>
    %367 = vector.multi_reduction <maximumf>, %366, %cst_141 [1] : vector<8x8xf32> to vector<8xf32>
    %368 = vector.shape_cast %367 : vector<8xf32> to vector<8x1xf32>
    %369 = vector.broadcast %368 : vector<8x1xf32> to vector<8x8xf32>
    %370 = arith.subf %366, %369 : vector<8x8xf32>
    %371 = math.exp %370 : vector<8x8xf32>
    %cst_142 = arith.constant dense<0.000000e+00> : vector<8xf32>
    %372 = vector.multi_reduction <add>, %371, %cst_142 [1] : vector<8x8xf32> to vector<8xf32>
    %373 = vector.shape_cast %372 : vector<8xf32> to vector<8x1xf32>
    %374 = tpu.reciprocal %373 {approx = true} : vector<8x1xf32> -> vector<8x1xf32>
    %375 = vector.broadcast %374 : vector<8x1xf32> to vector<8x8xf32>
    %376 = arith.mulf %371, %375 : vector<8x8xf32>
    %377 = arith.truncf %376 : vector<8x8xf32> to vector<8x8xbf16>
    %378 = vector.extract_strided_slice %317 {offsets = [0, 16], sizes = [8, 8], strides = [1, 1]} : vector<8x32xf32> to vector<8x8xf32>
    %379 = arith.truncf %378 : vector<8x8xf32> to vector<8x8xbf16>
    %cst_143 = arith.constant dense<0.000000e+00> : vector<8x8xf32>
    %380 = tpu.matmul %377, %379, %cst_143 {dimension_numbers = #tpu.dot_dimension_numbers<[1], [0], [0], [1], [0, 0, 1, 1], [], []>} : vector<8x8xbf16>, vector<8x8xbf16>, vector<8x8xf32> -> vector<8x8xf32>
    %381 = vector.extract_strided_slice %315 {offsets = [0, 24], sizes = [8, 8], strides = [1, 1]} : vector<8x32xf32> to vector<8x8xf32>
    %382 = arith.truncf %381 : vector<8x8xf32> to vector<8x8xbf16>
    %383 = vector.extract_strided_slice %316 {offsets = [0, 24], sizes = [8, 8], strides = [1, 1]} : vector<8x32xf32> to vector<8x8xf32>
    %384 = arith.truncf %383 : vector<8x8xf32> to vector<8x8xbf16>
    %cst_144 = arith.constant dense<0.000000e+00> : vector<8x8xf32>
    %385 = tpu.matmul %382, %384, %cst_144 {dimension_numbers = #tpu.dot_dimension_numbers<[1], [1], [0], [0], [0, 0, 1, 0], [], []>} : vector<8x8xbf16>, vector<8x8xbf16>, vector<8x8xf32> -> vector<8x8xf32>
    %cst_145 = arith.constant -1.000000e+09 : f32
    %386 = vector.broadcast %cst_145 : f32 to vector<8x8xf32>
    %387 = arith.select %7, %385, %386 : vector<8x8xi1>, vector<8x8xf32>
    %cst_146 = arith.constant dense<0xFF800000> : vector<8xf32>
    %388 = vector.multi_reduction <maximumf>, %387, %cst_146 [1] : vector<8x8xf32> to vector<8xf32>
    %389 = vector.shape_cast %388 : vector<8xf32> to vector<8x1xf32>
    %390 = vector.broadcast %389 : vector<8x1xf32> to vector<8x8xf32>
    %391 = arith.subf %387, %390 : vector<8x8xf32>
    %392 = math.exp %391 : vector<8x8xf32>
    %cst_147 = arith.constant dense<0.000000e+00> : vector<8xf32>
    %393 = vector.multi_reduction <add>, %392, %cst_147 [1] : vector<8x8xf32> to vector<8xf32>
    %394 = vector.shape_cast %393 : vector<8xf32> to vector<8x1xf32>
    %395 = tpu.reciprocal %394 {approx = true} : vector<8x1xf32> -> vector<8x1xf32>
    %396 = vector.broadcast %395 : vector<8x1xf32> to vector<8x8xf32>
    %397 = arith.mulf %392, %396 : vector<8x8xf32>
    %398 = arith.truncf %397 : vector<8x8xf32> to vector<8x8xbf16>
    %399 = vector.extract_strided_slice %317 {offsets = [0, 24], sizes = [8, 8], strides = [1, 1]} : vector<8x32xf32> to vector<8x8xf32>
    %400 = arith.truncf %399 : vector<8x8xf32> to vector<8x8xbf16>
    %cst_148 = arith.constant dense<0.000000e+00> : vector<8x8xf32>
    %401 = tpu.matmul %398, %400, %cst_148 {dimension_numbers = #tpu.dot_dimension_numbers<[1], [0], [0], [1], [0, 0, 1, 1], [], []>} : vector<8x8xbf16>, vector<8x8xbf16>, vector<8x8xf32> -> vector<8x8xf32>
    %402 = tpu.concatenate %338, %359, %380, %401 in 1 : vector<8x8xf32>, vector<8x8xf32>, vector<8x8xf32>, vector<8x8xf32> -> vector<8x32xf32>
    %403 = arith.truncf %402 : vector<8x32xf32> to vector<8x32xbf16>
    %c1_149 = arith.constant 1 : index
    %c0_150 = arith.constant 0 : index
    %c0_151 = arith.constant 0 : index
    %404 = vector.load %arg5[%c1_149, %c0_150, %c0_151] : memref<2x32x32xbf16, #tpu.memory_space<vmem>>, vector<1x32x32xbf16>
    %405 = vector.shape_cast %404 : vector<1x32x32xbf16> to vector<32x32xbf16>
    %cst_152 = arith.constant dense<0.000000e+00> : vector<8x32xf32>
    %406 = tpu.matmul %403, %405, %cst_152 {dimension_numbers = #tpu.dot_dimension_numbers<[1], [0], [0], [1], [0, 0, 1, 1], [], []>} : vector<8x32xbf16>, vector<32x32xbf16>, vector<8x32xf32> -> vector<8x32xf32>
    %c1_153 = arith.constant 1 : index
    %c0_154 = arith.constant 0 : index
    %c0_155 = arith.constant 0 : index
    %407 = vector.load %arg6[%c1_153, %c0_154, %c0_155] : memref<2x1x32xf32, #tpu.memory_space<vmem>>, vector<1x1x32xf32>
    %408 = vector.shape_cast %407 : vector<1x1x32xf32> to vector<1x32xf32>
    %409 = vector.broadcast %408 : vector<1x32xf32> to vector<8x32xf32>
    %410 = arith.addf %406, %409 : vector<8x32xf32>
    %411 = arith.addf %306, %410 : vector<8x32xf32>
    %c1_156 = arith.constant 1 : index
    %c0_157 = arith.constant 0 : index
    %c0_158 = arith.constant 0 : index
    %412 = vector.load %arg7[%c1_156, %c0_157, %c0_158] : memref<2x1x32xf32, #tpu.memory_space<vmem>>, vector<1x1x32xf32>
    %413 = vector.shape_cast %412 : vector<1x1x32xf32> to vector<1x32xf32>
    %c1_159 = arith.constant 1 : index
    %c0_160 = arith.constant 0 : index
    %c0_161 = arith.constant 0 : index
    %414 = vector.load %arg8[%c1_159, %c0_160, %c0_161] : memref<2x1x32xf32, #tpu.memory_space<vmem>>, vector<1x1x32xf32>
    %415 = vector.shape_cast %414 : vector<1x1x32xf32> to vector<1x32xf32>
    %cst_162 = arith.constant dense<0.000000e+00> : vector<8xf32>
    %416 = vector.multi_reduction <add>, %411, %cst_162 [1] : vector<8x32xf32> to vector<8xf32>
    %417 = vector.shape_cast %416 : vector<8xf32> to vector<8x1xf32>
    %cst_163 = arith.constant 3.200000e+01 : f32
    %418 = vector.broadcast %cst_163 : f32 to vector<8x1xf32>
    %419 = arith.divf %417, %418 : vector<8x1xf32>
    %420 = vector.broadcast %419 : vector<8x1xf32> to vector<8x32xf32>
    %421 = arith.subf %411, %420 : vector<8x32xf32>
    %422 = arith.mulf %421, %421 : vector<8x32xf32>
    %cst_164 = arith.constant dense<0.000000e+00> : vector<8xf32>
    %423 = vector.multi_reduction <add>, %422, %cst_164 [1] : vector<8x32xf32> to vector<8xf32>
    %424 = vector.shape_cast %423 : vector<8xf32> to vector<8x1xf32>
    %cst_165 = arith.constant 3.200000e+01 : f32
    %425 = vector.broadcast %cst_165 : f32 to vector<8x1xf32>
    %426 = arith.divf %424, %425 : vector<8x1xf32>
    %cst_166 = arith.constant 9.99999974E-6 : f32
    %427 = vector.broadcast %cst_166 : f32 to vector<8x1xf32>
    %428 = arith.addf %426, %427 : vector<8x1xf32>
    %429 = math.rsqrt %428 : vector<8x1xf32>
    %430 = vector.broadcast %429 : vector<8x1xf32> to vector<8x32xf32>
    %431 = arith.mulf %421, %430 : vector<8x32xf32>
    %432 = vector.broadcast %413 : vector<1x32xf32> to vector<8x32xf32>
    %433 = arith.mulf %431, %432 : vector<8x32xf32>
    %434 = vector.broadcast %415 : vector<1x32xf32> to vector<8x32xf32>
    %435 = arith.addf %433, %434 : vector<8x32xf32>
    %436 = arith.truncf %435 : vector<8x32xf32> to vector<8x32xbf16>
    %c1_167 = arith.constant 1 : index
    %c0_168 = arith.constant 0 : index
    %c0_169 = arith.constant 0 : index
    %437 = vector.load %arg9[%c1_167, %c0_168, %c0_169] : memref<2x32x32xbf16, #tpu.memory_space<vmem>>, vector<1x32x32xbf16>
    %438 = vector.shape_cast %437 : vector<1x32x32xbf16> to vector<32x32xbf16>
    %cst_170 = arith.constant dense<0.000000e+00> : vector<8x32xf32>
    %439 = tpu.matmul %436, %438, %cst_170 {dimension_numbers = #tpu.dot_dimension_numbers<[1], [0], [0], [1], [0, 0, 1, 1], [], []>} : vector<8x32xbf16>, vector<32x32xbf16>, vector<8x32xf32> -> vector<8x32xf32>
    %c1_171 = arith.constant 1 : index
    %c0_172 = arith.constant 0 : index
    %c0_173 = arith.constant 0 : index
    %440 = vector.load %arg10[%c1_171, %c0_172, %c0_173] : memref<2x1x32xf32, #tpu.memory_space<vmem>>, vector<1x1x32xf32>
    %441 = vector.shape_cast %440 : vector<1x1x32xf32> to vector<1x32xf32>
    %442 = vector.broadcast %441 : vector<1x32xf32> to vector<8x32xf32>
    %443 = arith.addf %439, %442 : vector<8x32xf32>
    %c1_174 = arith.constant 1 : index
    %c0_175 = arith.constant 0 : index
    %c0_176 = arith.constant 0 : index
    %444 = vector.load %arg11[%c1_174, %c0_175, %c0_176] : memref<2x32x64xbf16, #tpu.memory_space<vmem>>, vector<1x32x64xbf16>
    %445 = vector.shape_cast %444 : vector<1x32x64xbf16> to vector<32x64xbf16>
    %cst_177 = arith.constant dense<0.000000e+00> : vector<8x64xf32>
    %446 = tpu.matmul %4, %445, %cst_177 {dimension_numbers = #tpu.dot_dimension_numbers<[1], [0], [0], [1], [0, 0, 1, 1], [], []>} : vector<8x32xbf16>, vector<32x64xbf16>, vector<8x64xf32> -> vector<8x64xf32>
    %c1_178 = arith.constant 1 : index
    %c0_179 = arith.constant 0 : index
    %c0_180 = arith.constant 0 : index
    %447 = vector.load %arg12[%c1_178, %c0_179, %c0_180] : memref<2x1x64xf32, #tpu.memory_space<vmem>>, vector<1x1x64xf32>
    %448 = vector.shape_cast %447 : vector<1x1x64xf32> to vector<1x64xf32>
    %449 = vector.broadcast %448 : vector<1x64xf32> to vector<8x64xf32>
    %450 = arith.addf %446, %449 : vector<8x64xf32>
    %451 = vector.extract_strided_slice %450 {offsets = [0, 0], sizes = [8, 32], strides = [1, 1]} : vector<8x64xf32> to vector<8x32xf32>
    %452 = vector.extract_strided_slice %450 {offsets = [0, 32], sizes = [8, 32], strides = [1, 1]} : vector<8x64xf32> to vector<8x32xf32>
    %453 = vector.extract_strided_slice %443 {offsets = [0, 0], sizes = [8, 8], strides = [1, 1]} : vector<8x32xf32> to vector<8x8xf32>
    %454 = arith.truncf %453 : vector<8x8xf32> to vector<8x8xbf16>
    %455 = vector.extract_strided_slice %451 {offsets = [0, 0], sizes = [8, 8], strides = [1, 1]} : vector<8x32xf32> to vector<8x8xf32>
    %456 = arith.truncf %455 : vector<8x8xf32> to vector<8x8xbf16>
    %cst_181 = arith.constant dense<0.000000e+00> : vector<8x8xf32>
    %457 = tpu.matmul %454, %456, %cst_181 {dimension_numbers = #tpu.dot_dimension_numbers<[1], [1], [0], [0], [0, 0, 1, 0], [], []>} : vector<8x8xbf16>, vector<8x8xbf16>, vector<8x8xf32> -> vector<8x8xf32>
    %cst_182 = arith.constant dense<0xFF800000> : vector<8xf32>
    %458 = vector.multi_reduction <maximumf>, %457, %cst_182 [1] : vector<8x8xf32> to vector<8xf32>
    %459 = vector.shape_cast %458 : vector<8xf32> to vector<8x1xf32>
    %460 = vector.broadcast %459 : vector<8x1xf32> to vector<8x8xf32>
    %461 = arith.subf %457, %460 : vector<8x8xf32>
    %462 = math.exp %461 : vector<8x8xf32>
    %cst_183 = arith.constant dense<0.000000e+00> : vector<8xf32>
    %463 = vector.multi_reduction <add>, %462, %cst_183 [1] : vector<8x8xf32> to vector<8xf32>
    %464 = vector.shape_cast %463 : vector<8xf32> to vector<8x1xf32>
    %465 = tpu.reciprocal %464 {approx = true} : vector<8x1xf32> -> vector<8x1xf32>
    %466 = vector.broadcast %465 : vector<8x1xf32> to vector<8x8xf32>
    %467 = arith.mulf %462, %466 : vector<8x8xf32>
    %468 = arith.truncf %467 : vector<8x8xf32> to vector<8x8xbf16>
    %469 = vector.extract_strided_slice %452 {offsets = [0, 0], sizes = [8, 8], strides = [1, 1]} : vector<8x32xf32> to vector<8x8xf32>
    %470 = arith.truncf %469 : vector<8x8xf32> to vector<8x8xbf16>
    %cst_184 = arith.constant dense<0.000000e+00> : vector<8x8xf32>
    %471 = tpu.matmul %468, %470, %cst_184 {dimension_numbers = #tpu.dot_dimension_numbers<[1], [0], [0], [1], [0, 0, 1, 1], [], []>} : vector<8x8xbf16>, vector<8x8xbf16>, vector<8x8xf32> -> vector<8x8xf32>
    %472 = vector.extract_strided_slice %443 {offsets = [0, 8], sizes = [8, 8], strides = [1, 1]} : vector<8x32xf32> to vector<8x8xf32>
    %473 = arith.truncf %472 : vector<8x8xf32> to vector<8x8xbf16>
    %474 = vector.extract_strided_slice %451 {offsets = [0, 8], sizes = [8, 8], strides = [1, 1]} : vector<8x32xf32> to vector<8x8xf32>
    %475 = arith.truncf %474 : vector<8x8xf32> to vector<8x8xbf16>
    %cst_185 = arith.constant dense<0.000000e+00> : vector<8x8xf32>
    %476 = tpu.matmul %473, %475, %cst_185 {dimension_numbers = #tpu.dot_dimension_numbers<[1], [1], [0], [0], [0, 0, 1, 0], [], []>} : vector<8x8xbf16>, vector<8x8xbf16>, vector<8x8xf32> -> vector<8x8xf32>
    %cst_186 = arith.constant dense<0xFF800000> : vector<8xf32>
    %477 = vector.multi_reduction <maximumf>, %476, %cst_186 [1] : vector<8x8xf32> to vector<8xf32>
    %478 = vector.shape_cast %477 : vector<8xf32> to vector<8x1xf32>
    %479 = vector.broadcast %478 : vector<8x1xf32> to vector<8x8xf32>
    %480 = arith.subf %476, %479 : vector<8x8xf32>
    %481 = math.exp %480 : vector<8x8xf32>
    %cst_187 = arith.constant dense<0.000000e+00> : vector<8xf32>
    %482 = vector.multi_reduction <add>, %481, %cst_187 [1] : vector<8x8xf32> to vector<8xf32>
    %483 = vector.shape_cast %482 : vector<8xf32> to vector<8x1xf32>
    %484 = tpu.reciprocal %483 {approx = true} : vector<8x1xf32> -> vector<8x1xf32>
    %485 = vector.broadcast %484 : vector<8x1xf32> to vector<8x8xf32>
    %486 = arith.mulf %481, %485 : vector<8x8xf32>
    %487 = arith.truncf %486 : vector<8x8xf32> to vector<8x8xbf16>
    %488 = vector.extract_strided_slice %452 {offsets = [0, 8], sizes = [8, 8], strides = [1, 1]} : vector<8x32xf32> to vector<8x8xf32>
    %489 = arith.truncf %488 : vector<8x8xf32> to vector<8x8xbf16>
    %cst_188 = arith.constant dense<0.000000e+00> : vector<8x8xf32>
    %490 = tpu.matmul %487, %489, %cst_188 {dimension_numbers = #tpu.dot_dimension_numbers<[1], [0], [0], [1], [0, 0, 1, 1], [], []>} : vector<8x8xbf16>, vector<8x8xbf16>, vector<8x8xf32> -> vector<8x8xf32>
    %491 = vector.extract_strided_slice %443 {offsets = [0, 16], sizes = [8, 8], strides = [1, 1]} : vector<8x32xf32> to vector<8x8xf32>
    %492 = arith.truncf %491 : vector<8x8xf32> to vector<8x8xbf16>
    %493 = vector.extract_strided_slice %451 {offsets = [0, 16], sizes = [8, 8], strides = [1, 1]} : vector<8x32xf32> to vector<8x8xf32>
    %494 = arith.truncf %493 : vector<8x8xf32> to vector<8x8xbf16>
    %cst_189 = arith.constant dense<0.000000e+00> : vector<8x8xf32>
    %495 = tpu.matmul %492, %494, %cst_189 {dimension_numbers = #tpu.dot_dimension_numbers<[1], [1], [0], [0], [0, 0, 1, 0], [], []>} : vector<8x8xbf16>, vector<8x8xbf16>, vector<8x8xf32> -> vector<8x8xf32>
    %cst_190 = arith.constant dense<0xFF800000> : vector<8xf32>
    %496 = vector.multi_reduction <maximumf>, %495, %cst_190 [1] : vector<8x8xf32> to vector<8xf32>
    %497 = vector.shape_cast %496 : vector<8xf32> to vector<8x1xf32>
    %498 = vector.broadcast %497 : vector<8x1xf32> to vector<8x8xf32>
    %499 = arith.subf %495, %498 : vector<8x8xf32>
    %500 = math.exp %499 : vector<8x8xf32>
    %cst_191 = arith.constant dense<0.000000e+00> : vector<8xf32>
    %501 = vector.multi_reduction <add>, %500, %cst_191 [1] : vector<8x8xf32> to vector<8xf32>
    %502 = vector.shape_cast %501 : vector<8xf32> to vector<8x1xf32>
    %503 = tpu.reciprocal %502 {approx = true} : vector<8x1xf32> -> vector<8x1xf32>
    %504 = vector.broadcast %503 : vector<8x1xf32> to vector<8x8xf32>
    %505 = arith.mulf %500, %504 : vector<8x8xf32>
    %506 = arith.truncf %505 : vector<8x8xf32> to vector<8x8xbf16>
    %507 = vector.extract_strided_slice %452 {offsets = [0, 16], sizes = [8, 8], strides = [1, 1]} : vector<8x32xf32> to vector<8x8xf32>
    %508 = arith.truncf %507 : vector<8x8xf32> to vector<8x8xbf16>
    %cst_192 = arith.constant dense<0.000000e+00> : vector<8x8xf32>
    %509 = tpu.matmul %506, %508, %cst_192 {dimension_numbers = #tpu.dot_dimension_numbers<[1], [0], [0], [1], [0, 0, 1, 1], [], []>} : vector<8x8xbf16>, vector<8x8xbf16>, vector<8x8xf32> -> vector<8x8xf32>
    %510 = vector.extract_strided_slice %443 {offsets = [0, 24], sizes = [8, 8], strides = [1, 1]} : vector<8x32xf32> to vector<8x8xf32>
    %511 = arith.truncf %510 : vector<8x8xf32> to vector<8x8xbf16>
    %512 = vector.extract_strided_slice %451 {offsets = [0, 24], sizes = [8, 8], strides = [1, 1]} : vector<8x32xf32> to vector<8x8xf32>
    %513 = arith.truncf %512 : vector<8x8xf32> to vector<8x8xbf16>
    %cst_193 = arith.constant dense<0.000000e+00> : vector<8x8xf32>
    %514 = tpu.matmul %511, %513, %cst_193 {dimension_numbers = #tpu.dot_dimension_numbers<[1], [1], [0], [0], [0, 0, 1, 0], [], []>} : vector<8x8xbf16>, vector<8x8xbf16>, vector<8x8xf32> -> vector<8x8xf32>
    %cst_194 = arith.constant dense<0xFF800000> : vector<8xf32>
    %515 = vector.multi_reduction <maximumf>, %514, %cst_194 [1] : vector<8x8xf32> to vector<8xf32>
    %516 = vector.shape_cast %515 : vector<8xf32> to vector<8x1xf32>
    %517 = vector.broadcast %516 : vector<8x1xf32> to vector<8x8xf32>
    %518 = arith.subf %514, %517 : vector<8x8xf32>
    %519 = math.exp %518 : vector<8x8xf32>
    %cst_195 = arith.constant dense<0.000000e+00> : vector<8xf32>
    %520 = vector.multi_reduction <add>, %519, %cst_195 [1] : vector<8x8xf32> to vector<8xf32>
    %521 = vector.shape_cast %520 : vector<8xf32> to vector<8x1xf32>
    %522 = tpu.reciprocal %521 {approx = true} : vector<8x1xf32> -> vector<8x1xf32>
    %523 = vector.broadcast %522 : vector<8x1xf32> to vector<8x8xf32>
    %524 = arith.mulf %519, %523 : vector<8x8xf32>
    %525 = arith.truncf %524 : vector<8x8xf32> to vector<8x8xbf16>
    %526 = vector.extract_strided_slice %452 {offsets = [0, 24], sizes = [8, 8], strides = [1, 1]} : vector<8x32xf32> to vector<8x8xf32>
    %527 = arith.truncf %526 : vector<8x8xf32> to vector<8x8xbf16>
    %cst_196 = arith.constant dense<0.000000e+00> : vector<8x8xf32>
    %528 = tpu.matmul %525, %527, %cst_196 {dimension_numbers = #tpu.dot_dimension_numbers<[1], [0], [0], [1], [0, 0, 1, 1], [], []>} : vector<8x8xbf16>, vector<8x8xbf16>, vector<8x8xf32> -> vector<8x8xf32>
    %529 = tpu.concatenate %471, %490, %509, %528 in 1 : vector<8x8xf32>, vector<8x8xf32>, vector<8x8xf32>, vector<8x8xf32> -> vector<8x32xf32>
    %530 = arith.truncf %529 : vector<8x32xf32> to vector<8x32xbf16>
    %c1_197 = arith.constant 1 : index
    %c0_198 = arith.constant 0 : index
    %c0_199 = arith.constant 0 : index
    %531 = vector.load %arg13[%c1_197, %c0_198, %c0_199] : memref<2x32x32xbf16, #tpu.memory_space<vmem>>, vector<1x32x32xbf16>
    %532 = vector.shape_cast %531 : vector<1x32x32xbf16> to vector<32x32xbf16>
    %cst_200 = arith.constant dense<0.000000e+00> : vector<8x32xf32>
    %533 = tpu.matmul %530, %532, %cst_200 {dimension_numbers = #tpu.dot_dimension_numbers<[1], [0], [0], [1], [0, 0, 1, 1], [], []>} : vector<8x32xbf16>, vector<32x32xbf16>, vector<8x32xf32> -> vector<8x32xf32>
    %c1_201 = arith.constant 1 : index
    %c0_202 = arith.constant 0 : index
    %c0_203 = arith.constant 0 : index
    %534 = vector.load %arg14[%c1_201, %c0_202, %c0_203] : memref<2x1x32xf32, #tpu.memory_space<vmem>>, vector<1x1x32xf32>
    %535 = vector.shape_cast %534 : vector<1x1x32xf32> to vector<1x32xf32>
    %536 = vector.broadcast %535 : vector<1x32xf32> to vector<8x32xf32>
    %537 = arith.addf %533, %536 : vector<8x32xf32>
    %538 = arith.addf %435, %537 : vector<8x32xf32>
    %c1_204 = arith.constant 1 : index
    %c0_205 = arith.constant 0 : index
    %c0_206 = arith.constant 0 : index
    %539 = vector.load %arg15[%c1_204, %c0_205, %c0_206] : memref<2x1x32xf32, #tpu.memory_space<vmem>>, vector<1x1x32xf32>
    %540 = vector.shape_cast %539 : vector<1x1x32xf32> to vector<1x32xf32>
    %c1_207 = arith.constant 1 : index
    %c0_208 = arith.constant 0 : index
    %c0_209 = arith.constant 0 : index
    %541 = vector.load %arg16[%c1_207, %c0_208, %c0_209] : memref<2x1x32xf32, #tpu.memory_space<vmem>>, vector<1x1x32xf32>
    %542 = vector.shape_cast %541 : vector<1x1x32xf32> to vector<1x32xf32>
    %cst_210 = arith.constant dense<0.000000e+00> : vector<8xf32>
    %543 = vector.multi_reduction <add>, %538, %cst_210 [1] : vector<8x32xf32> to vector<8xf32>
    %544 = vector.shape_cast %543 : vector<8xf32> to vector<8x1xf32>
    %cst_211 = arith.constant 3.200000e+01 : f32
    %545 = vector.broadcast %cst_211 : f32 to vector<8x1xf32>
    %546 = arith.divf %544, %545 : vector<8x1xf32>
    %547 = vector.broadcast %546 : vector<8x1xf32> to vector<8x32xf32>
    %548 = arith.subf %538, %547 : vector<8x32xf32>
    %549 = arith.mulf %548, %548 : vector<8x32xf32>
    %cst_212 = arith.constant dense<0.000000e+00> : vector<8xf32>
    %550 = vector.multi_reduction <add>, %549, %cst_212 [1] : vector<8x32xf32> to vector<8xf32>
    %551 = vector.shape_cast %550 : vector<8xf32> to vector<8x1xf32>
    %cst_213 = arith.constant 3.200000e+01 : f32
    %552 = vector.broadcast %cst_213 : f32 to vector<8x1xf32>
    %553 = arith.divf %551, %552 : vector<8x1xf32>
    %cst_214 = arith.constant 9.99999974E-6 : f32
    %554 = vector.broadcast %cst_214 : f32 to vector<8x1xf32>
    %555 = arith.addf %553, %554 : vector<8x1xf32>
    %556 = math.rsqrt %555 : vector<8x1xf32>
    %557 = vector.broadcast %556 : vector<8x1xf32> to vector<8x32xf32>
    %558 = arith.mulf %548, %557 : vector<8x32xf32>
    %559 = vector.broadcast %540 : vector<1x32xf32> to vector<8x32xf32>
    %560 = arith.mulf %558, %559 : vector<8x32xf32>
    %561 = vector.broadcast %542 : vector<1x32xf32> to vector<8x32xf32>
    %562 = arith.addf %560, %561 : vector<8x32xf32>
    %563 = arith.truncf %562 : vector<8x32xf32> to vector<8x32xbf16>
    %c1_215 = arith.constant 1 : index
    %c0_216 = arith.constant 0 : index
    %c0_217 = arith.constant 0 : index
    %564 = vector.load %arg17[%c1_215, %c0_216, %c0_217] : memref<2x32x64xbf16, #tpu.memory_space<vmem>>, vector<1x32x64xbf16>
    %565 = vector.shape_cast %564 : vector<1x32x64xbf16> to vector<32x64xbf16>
    %cst_218 = arith.constant dense<0.000000e+00> : vector<8x64xf32>
    %566 = tpu.matmul %563, %565, %cst_218 {dimension_numbers = #tpu.dot_dimension_numbers<[1], [0], [0], [1], [0, 0, 1, 1], [], []>} : vector<8x32xbf16>, vector<32x64xbf16>, vector<8x64xf32> -> vector<8x64xf32>
    %c1_219 = arith.constant 1 : index
    %c0_220 = arith.constant 0 : index
    %c0_221 = arith.constant 0 : index
    %567 = vector.load %arg18[%c1_219, %c0_220, %c0_221] : memref<2x1x64xf32, #tpu.memory_space<vmem>>, vector<1x1x64xf32>
    %568 = vector.shape_cast %567 : vector<1x1x64xf32> to vector<1x64xf32>
    %569 = vector.broadcast %568 : vector<1x64xf32> to vector<8x64xf32>
    %570 = arith.addf %566, %569 : vector<8x64xf32>
    %cst_222 = arith.constant 0.000000e+00 : f32
    %571 = vector.broadcast %cst_222 : f32 to vector<8x64xf32>
    %572 = arith.maximumf %570, %571 : vector<8x64xf32>
    %573 = arith.truncf %572 : vector<8x64xf32> to vector<8x64xbf16>
    %c1_223 = arith.constant 1 : index
    %c0_224 = arith.constant 0 : index
    %c0_225 = arith.constant 0 : index
    %574 = vector.load %arg19[%c1_223, %c0_224, %c0_225] : memref<2x64x32xbf16, #tpu.memory_space<vmem>>, vector<1x64x32xbf16>
    %575 = vector.shape_cast %574 : vector<1x64x32xbf16> to vector<64x32xbf16>
    %cst_226 = arith.constant dense<0.000000e+00> : vector<8x32xf32>
    %576 = tpu.matmul %573, %575, %cst_226 {dimension_numbers = #tpu.dot_dimension_numbers<[1], [0], [0], [1], [0, 0, 1, 1], [], []>} : vector<8x64xbf16>, vector<64x32xbf16>, vector<8x32xf32> -> vector<8x32xf32>
    %c1_227 = arith.constant 1 : index
    %c0_228 = arith.constant 0 : index
    %c0_229 = arith.constant 0 : index
    %577 = vector.load %arg20[%c1_227, %c0_228, %c0_229] : memref<2x1x32xf32, #tpu.memory_space<vmem>>, vector<1x1x32xf32>
    %578 = vector.shape_cast %577 : vector<1x1x32xf32> to vector<1x32xf32>
    %579 = vector.broadcast %578 : vector<1x32xf32> to vector<8x32xf32>
    %580 = arith.addf %576, %579 : vector<8x32xf32>
    %581 = arith.addf %562, %580 : vector<8x32xf32>
    %c1_230 = arith.constant 1 : index
    %c0_231 = arith.constant 0 : index
    %c0_232 = arith.constant 0 : index
    %582 = vector.load %arg21[%c1_230, %c0_231, %c0_232] : memref<2x1x32xf32, #tpu.memory_space<vmem>>, vector<1x1x32xf32>
    %583 = vector.shape_cast %582 : vector<1x1x32xf32> to vector<1x32xf32>
    %c1_233 = arith.constant 1 : index
    %c0_234 = arith.constant 0 : index
    %c0_235 = arith.constant 0 : index
    %584 = vector.load %arg22[%c1_233, %c0_234, %c0_235] : memref<2x1x32xf32, #tpu.memory_space<vmem>>, vector<1x1x32xf32>
    %585 = vector.shape_cast %584 : vector<1x1x32xf32> to vector<1x32xf32>
    %cst_236 = arith.constant dense<0.000000e+00> : vector<8xf32>
    %586 = vector.multi_reduction <add>, %581, %cst_236 [1] : vector<8x32xf32> to vector<8xf32>
    %587 = vector.shape_cast %586 : vector<8xf32> to vector<8x1xf32>
    %cst_237 = arith.constant 3.200000e+01 : f32
    %588 = vector.broadcast %cst_237 : f32 to vector<8x1xf32>
    %589 = arith.divf %587, %588 : vector<8x1xf32>
    %590 = vector.broadcast %589 : vector<8x1xf32> to vector<8x32xf32>
    %591 = arith.subf %581, %590 : vector<8x32xf32>
    %592 = arith.mulf %591, %591 : vector<8x32xf32>
    %cst_238 = arith.constant dense<0.000000e+00> : vector<8xf32>
    %593 = vector.multi_reduction <add>, %592, %cst_238 [1] : vector<8x32xf32> to vector<8xf32>
    %594 = vector.shape_cast %593 : vector<8xf32> to vector<8x1xf32>
    %cst_239 = arith.constant 3.200000e+01 : f32
    %595 = vector.broadcast %cst_239 : f32 to vector<8x1xf32>
    %596 = arith.divf %594, %595 : vector<8x1xf32>
    %cst_240 = arith.constant 9.99999974E-6 : f32
    %597 = vector.broadcast %cst_240 : f32 to vector<8x1xf32>
    %598 = arith.addf %596, %597 : vector<8x1xf32>
    %599 = math.rsqrt %598 : vector<8x1xf32>
    %600 = vector.broadcast %599 : vector<8x1xf32> to vector<8x32xf32>
    %601 = arith.mulf %591, %600 : vector<8x32xf32>
    %602 = vector.broadcast %583 : vector<1x32xf32> to vector<8x32xf32>
    %603 = arith.mulf %601, %602 : vector<8x32xf32>
    %604 = vector.broadcast %585 : vector<1x32xf32> to vector<8x32xf32>
    %605 = arith.addf %603, %604 : vector<8x32xf32>
    %606 = arith.truncf %605 : vector<8x32xf32> to vector<8x32xbf16>
    %c0_241 = arith.constant 0 : index
    %c0_242 = arith.constant 0 : index
    %607 = vector.load %arg23[%c0_241, %c0_242] : memref<32x128xbf16, #tpu.memory_space<vmem>>, vector<32x128xbf16>
    %cst_243 = arith.constant dense<0.000000e+00> : vector<8x128xf32>
    %608 = tpu.matmul %606, %607, %cst_243 {dimension_numbers = #tpu.dot_dimension_numbers<[1], [0], [0], [1], [0, 0, 1, 1], [], []>} : vector<8x32xbf16>, vector<32x128xbf16>, vector<8x128xf32> -> vector<8x128xf32>
    %c0_244 = arith.constant 0 : index
    %c0_245 = arith.constant 0 : index
    %609 = vector.load %arg24[%c0_244, %c0_245] : memref<1x128xf32, #tpu.memory_space<vmem>>, vector<1x128xf32>
    %610 = vector.broadcast %609 : vector<1x128xf32> to vector<8x128xf32>
    %611 = arith.addf %608, %610 : vector<8x128xf32>
    %c0_246 = arith.constant 0 : index
    %c0_247 = arith.constant 0 : index
    %c0_248 = arith.constant 0 : index
    %612 = vector.load %arg25[%c0_246, %c0_247, %c0_248] : memref<1x8x128xf32, #tpu.memory_space<vmem>>, vector<1x8x128xf32>
    %613 = vector.shape_cast %612 : vector<1x8x128xf32> to vector<8x128xf32>
    %614 = vector.shape_cast %611 : vector<8x128xf32> to vector<1x8x128xf32>
    tpu.vector_store %arg25[%c0_246, %c0_247, %c0_248], %614 {strides = array<i32>} : memref<1x8x128xf32, #tpu.memory_space<vmem>>, vector<1x8x128xf32>,
    return
  }
  func.func @transform_0(%arg0: i32) -> (i32, i32, i32) {
    %c0_i32 = arith.constant 0 : i32
    %c0_i32_0 = arith.constant 0 : i32
    %c0_i32_1 = arith.constant 0 : i32
    return %arg0, %c0_i32, %c0_i32_0 : i32, i32, i32
  }
  func.func @transform_1(%arg0: i32) -> (i32, i32, i32) {
    %c0_i32 = arith.constant 0 : i32
    %c0_i32_0 = arith.constant 0 : i32
    %c0_i32_1 = arith.constant 0 : i32
    return %arg0, %c0_i32, %c0_i32_0 : i32, i32, i32
  }
  func.func @transform_2(%arg0: i32) -> (i32, i32, i32) {
    %c0_i32 = arith.constant 0 : i32
    %c0_i32_0 = arith.constant 0 : i32
    %c0_i32_1 = arith.constant 0 : i32
    %c0_i32_2 = arith.constant 0 : i32
    return %c0_i32, %c0_i32_0, %c0_i32_1 : i32, i32, i32
  }
  func.func @transform_3(%arg0: i32) -> (i32, i32, i32) {
    %c0_i32 = arith.constant 0 : i32
    %c0_i32_0 = arith.constant 0 : i32
    %c0_i32_1 = arith.constant 0 : i32
    %c0_i32_2 = arith.constant 0 : i32
    return %c0_i32, %c0_i32_0, %c0_i32_1 : i32, i32, i32
  }
  func.func @transform_4(%arg0: i32) -> (i32, i32, i32) {
    %c0_i32 = arith.constant 0 : i32
    %c0_i32_0 = arith.constant 0 : i32
    %c0_i32_1 = arith.constant 0 : i32
    %c0_i32_2 = arith.constant 0 : i32
    return %c0_i32, %c0_i32_0, %c0_i32_1 : i32, i32, i32
  }
  func.func @transform_5(%arg0: i32) -> (i32, i32, i32) {
    %c0_i32 = arith.constant 0 : i32
    %c0_i32_0 = arith.constant 0 : i32
    %c0_i32_1 = arith.constant 0 : i32
    %c0_i32_2 = arith.constant 0 : i32
    return %c0_i32, %c0_i32_0, %c0_i32_1 : i32, i32, i32
  }
  func.func @transform_6(%arg0: i32) -> (i32, i32, i32) {
    %c0_i32 = arith.constant 0 : i32
    %c0_i32_0 = arith.constant 0 : i32
    %c0_i32_1 = arith.constant 0 : i32
    %c0_i32_2 = arith.constant 0 : i32
    return %c0_i32, %c0_i32_0, %c0_i32_1 : i32, i32, i32
  }
  func.func @transform_7(%arg0: i32) -> (i32, i32, i32) {
    %c0_i32 = arith.constant 0 : i32
    %c0_i32_0 = arith.constant 0 : i32
    %c0_i32_1 = arith.constant 0 : i32
    %c0_i32_2 = arith.constant 0 : i32
    return %c0_i32, %c0_i32_0, %c0_i32_1 : i32, i32, i32
  }
  func.func @transform_8(%arg0: i32) -> (i32, i32, i32) {
    %c0_i32 = arith.constant 0 : i32
    %c0_i32_0 = arith.constant 0 : i32
    %c0_i32_1 = arith.constant 0 : i32
    %c0_i32_2 = arith.constant 0 : i32
    return %c0_i32, %c0_i32_0, %c0_i32_1 : i32, i32, i32
  }
  func.func @transform_9(%arg0: i32) -> (i32, i32, i32) {
    %c0_i32 = arith.constant 0 : i32
    %c0_i32_0 = arith.constant 0 : i32
    %c0_i32_1 = arith.constant 0 : i32
    %c0_i32_2 = arith.constant 0 : i32
    return %c0_i32, %c0_i32_0, %c0_i32_1 : i32, i32, i32
  }
  func.func @transform_10(%arg0: i32) -> (i32, i32, i32) {
    %c0_i32 = arith.constant 0 : i32
    %c0_i32_0 = arith.constant 0 : i32
    %c0_i32_1 = arith.constant 0 : i32
    %c0_i32_2 = arith.constant 0 : i32
    return %c0_i32, %c0_i32_0, %c0_i32_1 : i32, i32, i32
  }
  func.func @transform_11(%arg0: i32) -> (i32, i32, i32) {
    %c0_i32 = arith.constant 0 : i32
    %c0_i32_0 = arith.constant 0 : i32
    %c0_i32_1 = arith.constant 0 : i32
    %c0_i32_2 = arith.constant 0 : i32
    return %c0_i32, %c0_i32_0, %c0_i32_1 : i32, i32, i32
  }
  func.func @transform_12(%arg0: i32) -> (i32, i32, i32) {
    %c0_i32 = arith.constant 0 : i32
    %c0_i32_0 = arith.constant 0 : i32
    %c0_i32_1 = arith.constant 0 : i32
    %c0_i32_2 = arith.constant 0 : i32
    return %c0_i32, %c0_i32_0, %c0_i32_1 : i32, i32, i32
  }
  func.func @transform_13(%arg0: i32) -> (i32, i32, i32) {
    %c0_i32 = arith.constant 0 : i32
    %c0_i32_0 = arith.constant 0 : i32
    %c0_i32_1 = arith.constant 0 : i32
    %c0_i32_2 = arith.constant 0 : i32
    return %c0_i32, %c0_i32_0, %c0_i32_1 : i32, i32, i32
  }
  func.func @transform_14(%arg0: i32) -> (i32, i32, i32) {
    %c0_i32 = arith.constant 0 : i32
    %c0_i32_0 = arith.constant 0 : i32
    %c0_i32_1 = arith.constant 0 : i32
    %c0_i32_2 = arith.constant 0 : i32
    return %c0_i32, %c0_i32_0, %c0_i32_1 : i32, i32, i32
  }
  func.func @transform_15(%arg0: i32) -> (i32, i32, i32) {
    %c0_i32 = arith.constant 0 : i32
    %c0_i32_0 = arith.constant 0 : i32
    %c0_i32_1 = arith.constant 0 : i32
    %c0_i32_2 = arith.constant 0 : i32
    return %c0_i32, %c0_i32_0, %c0_i32_1 : i32, i32, i32
  }
  func.func @transform_16(%arg0: i32) -> (i32, i32, i32) {
    %c0_i32 = arith.constant 0 : i32
    %c0_i32_0 = arith.constant 0 : i32
    %c0_i32_1 = arith.constant 0 : i32
    %c0_i32_2 = arith.constant 0 : i32
    return %c0_i32, %c0_i32_0, %c0_i32_1 : i32, i32, i32
  }
  func.func @transform_17(%arg0: i32) -> (i32, i32, i32) {
    %c0_i32 = arith.constant 0 : i32
    %c0_i32_0 = arith.constant 0 : i32
    %c0_i32_1 = arith.constant 0 : i32
    %c0_i32_2 = arith.constant 0 : i32
    return %c0_i32, %c0_i32_0, %c0_i32_1 : i32, i32, i32
  }
  func.func @transform_18(%arg0: i32) -> (i32, i32, i32) {
    %c0_i32 = arith.constant 0 : i32
    %c0_i32_0 = arith.constant 0 : i32
    %c0_i32_1 = arith.constant 0 : i32
    %c0_i32_2 = arith.constant 0 : i32
    return %c0_i32, %c0_i32_0, %c0_i32_1 : i32, i32, i32
  }
  func.func @transform_19(%arg0: i32) -> (i32, i32, i32) {
    %c0_i32 = arith.constant 0 : i32
    %c0_i32_0 = arith.constant 0 : i32
    %c0_i32_1 = arith.constant 0 : i32
    %c0_i32_2 = arith.constant 0 : i32
    return %c0_i32, %c0_i32_0, %c0_i32_1 : i32, i32, i32
  }
  func.func @transform_20(%arg0: i32) -> (i32, i32, i32) {
    %c0_i32 = arith.constant 0 : i32
    %c0_i32_0 = arith.constant 0 : i32
    %c0_i32_1 = arith.constant 0 : i32
    %c0_i32_2 = arith.constant 0 : i32
    return %c0_i32, %c0_i32_0, %c0_i32_1 : i32, i32, i32
  }
  func.func @transform_21(%arg0: i32) -> (i32, i32, i32) {
    %c0_i32 = arith.constant 0 : i32
    %c0_i32_0 = arith.constant 0 : i32
    %c0_i32_1 = arith.constant 0 : i32
    %c0_i32_2 = arith.constant 0 : i32
    return %c0_i32, %c0_i32_0, %c0_i32_1 : i32, i32, i32
  }
  func.func @transform_22(%arg0: i32) -> (i32, i32) {
    %c0_i32 = arith.constant 0 : i32
    %c0_i32_0 = arith.constant 0 : i32
    %c0_i32_1 = arith.constant 0 : i32
    return %c0_i32, %c0_i32_0 : i32, i32
  }
  func.func @transform_23(%arg0: i32) -> (i32, i32) {
    %c0_i32 = arith.constant 0 : i32
    %c0_i32_0 = arith.constant 0 : i32
    %c0_i32_1 = arith.constant 0 : i32
    return %c0_i32, %c0_i32_0 : i32, i32
  }
  func.func @transform_24(%arg0: i32) -> (i32, i32, i32) {
    %c0_i32 = arith.constant 0 : i32
    %c0_i32_0 = arith.constant 0 : i32
    %c0_i32_1 = arith.constant 0 : i32
    return %arg0, %c0_i32, %c0_i32_0 : i32, i32, i32
  }
}

</mosaic_0001>

<bundles_post_ra>
// kernel: custom-call.35
= control target key start
LH: loop header
LB: loop body
LE: loop exit
PB: predicated region body
PF: predicated region fallthrough
CT: control target
= control target key end

     0   :  { %v395_v2 = vmov 0.0   ;;  %s418_s13 = smov 0   ;;  %s502_s0 = inlined_call_operand.vmem [shape: f32[16,4], index: 0, kind: input, shape index: {}]   ;;  %s503_s1 = inlined_call_operand.vmem [shape: f32[16,4], index: 1, kind: output, shape index: {0}]   ;;  %s504_s2 = inlined_call_operand.vmem [shape: f32[4], index: 2, kind: output, shape index: {1}]  }
   0x1   :  { %v33_v0 = vld [vmem:[%s502_s0] sm:$0xff]  ;;  %v35_v1 = vld [vmem:[%s502_s0 + $0x8] sm:$0xff]  ;;  %46 = vst [vmem:[#allocation2] sm:$0x1] %v395_v2 }
   0x2   :  { %41 = vst [vmem:[#allocation1] sm:$0xff] %v33_v0  ;;  %45 = vst [vmem:[#allocation1 + $0x8] sm:$0xff] %v35_v1 }
   0x3 LB: > { %v54_v3 = vlaneseq  ;;  %v427_v6 = vstv %s393_s13  ;;  %s91_s0 = scalar_lea.vmem [#allocation1], %s393_s13  ;;  %s127_s14 = smov [#allocation1]  ;;  %s393_s13 = sphi %s418_s13, %s52_s13  }
   0x4   : > { %s167_s15 = scalar_lea.vmem [#allocation4], %s393_s13  ;;  %s183_s16 = smov [#allocation1] }
   0x5   : > { %v424_v5 = vshrl.u32 %v54_v3, 7  ;;  %v453_v54 = vand.u32 127, %v54_v3  ;;  %s184_s17 = smov [#allocation4] }
   0x7   : > { %vm58_vm0 = vcmp.gt.s32.totalorder %v424_v5, %v427_v6  ;;  %v65_v8 = vadd.s32 8, %v424_v5  ;;  %v130_v5 = vmov %v424_v5  ;;  %vm457_vm12 = vcmp.eq.s32.totalorder %v453_v54, %v427_v6 }
   0x8   : > { %v149_v50 = vadd.s32 8, %v130_v5  ;;  %vm134_vm10 = vcmp.gt.s32.totalorder %v130_v5, %v427_v6  ;;  %v187_v5 = vmov %v424_v5 }
   0x9   : > { %v53_v4 = vld [vmem:[#allocation1] sm:$0xff]  ;;  %v62_v7 = vld [vmem:[#allocation1 + $0x8] sm:$0xff]  ;;  %vm67_vm1 = vcmp.gt.s32.totalorder %v65_v8, %v427_v6 }
   0xa   : > { %v59_v9 = vsel %vm58_vm0, %v53_v4, 0.0  ;;  %v70_v11 = vsel %vm67_vm1, %v62_v7, 0.0  ;;  %v92_v20 = vld [vmem:[%s91_s0] ss:$0 sm:$0xff]  ;;  %vm151_vm8 = vcmp.gt.s32.totalorder %v149_v50, %v427_v6  ;;  %vm152_vm9 = vcmp.lt.s32.totalorder %v149_v50, 16  ;;  %v361_v53 = vld [vmem:[%s127_s14 + $0x8] sm:$0xff] }
   0xb   : > { %v60_v10 = vmul.f32 %v59_v9, %v59_v9  ;;  %v71_v12 = vmul.f32 %v70_v11, %v70_v11  ;;  %v93_v21 = vand.u32 2147483647, %v92_v20  ;;  %vm118_vm7 = vcmp.lt.f32.partialorder %v92_v20, 0.0  ;;  %v131_v52 = vld [vmem:[%s127_s14] sm:$0xff]  ;;  %vm153_vm11 = vmand %vm151_vm8, %vm152_vm9  ;;  %v180_v7 = vld [vmem:[#allocation2] ss:$0 sm:$0xff] }
   0xc   : > { %v135_v56 = vsel %vm134_vm10, %v131_v52, 0.0  ;;  %v154_v57 = vsel %vm153_vm11, %v361_v53, 0.0  ;;  %vm220_vm0 = vcmp.gt.s32.totalorder %v453_v54, %v427_v6 }
   0xd   : > { %v72_v13 = vadd.f32 %v71_v12, %v60_v10  ;;  %v94_v26 = vmax.f32 %v93_v21, 0.0  ;;  %v396_v12 = vmov 1.0  }
   0xf   : > { %v73_v14 = vrot.slane %v72_v13, 4 }
  0x11   : > { %v74_v15 = vadd.f32 %v73_v14, %v72_v13  ;;  %v192_v13 = vadd.s32 8, %v187_v5  ;;  %v190_v14 = vld [vmem:[%s183_s16] sm:$0xff]  ;;  %v211_v5 = vmov %v424_v5 }
  0x12   : > { %vm228_vm14 = vcmp.ge.s32.totalorder %v211_v5, %v427_v6 }
  0x13   : > { %v75_v16 = vrot.slane %v74_v15, 2  ;;  %vm198_vm13 = vcmp.lt.s32.totalorder %v192_v13, 16  ;;  %vm229_vm1 = vmand %vm457_vm12, %vm228_vm14 }
  0x15   : > { %v76_v17 = vadd.f32 %v75_v16, %v74_v15  ;;  %v363_v15 = vld [vmem:[%s183_s16 + $0x8] sm:$0xff]  ;;  %s207_s16 = smov %s183_s16 }
  0x16   : > { %s253_s18 = scalar_lea.vmem %s207_s16, %s393_s13  ;;  %s52_s13 = sadd.s32 1, %s393_s13  }
  0x17   : > { %v77_v18 = vrot.slane %v76_v17, 1  ;;  %p49_p0 = scmp.ge.s32.totalorder %s52_s13, 4  }
  0x19   : > { %v433_v19 = vadd.f32 %v77_v18, %v76_v17 }
  0x1b   : > { %377 = vrsqrt.f32 %v433_v19  ;;  %vm81_vm2 = vcmp.eq.f32.partialorder %v433_v19, inf  ;;  %v84_v23 = vand.u32 2147483648, %v433_v19  ;;  %vm83_vm3 = vcmp.eq.f32.partialorder %v433_v19, 0.0 }
  0x25   : > { %v378_v22 = vpop.eup %377 }
  0x26   : > { %v80_v24 = vmul.f32 %v378_v22, %v433_v19 }
  0x28   : > { %v82_v25 = vsel %vm81_vm2, %v433_v19, %v80_v24 }
  0x29   : > { %v85_v27 = vsel %vm83_vm3, %v84_v23, %v82_v25 }
  0x2a   : > { %v95_v28 = vand.u32 2147483647, %v85_v27  ;;  %v232_v27 = vadd.s32 8, %v211_v5 }
  0x2c   : > { %v96_v29 = vmax.f32 %v94_v26, %v95_v28  ;;  %vm249_vm15 = vcmp.ge.s32.totalorder %v232_v27, %v427_v6 }
  0x2d   : > { %vm250_vm2 = vmand %vm457_vm12, %vm249_vm15 }
  0x2e   : > { %379 = vrcp.f32 %v96_v29  ;;  %vm108_vm6 = vcmp.eq.f32.partialorder %v96_v29, 0.0 }
  0x38   : > { %v380_v30 = vpop.eup %379 }
  0x39   : > { %v98_v31 = vmul.f32 %v380_v30, %v93_v21  ;;  %v101_v32 = vmul.f32 0.0, %v380_v30  ;;  %v105_v33 = vmul.f32 %v380_v30, %v95_v28 }
  0x3b   : > { %v99_v34 = vmul.f32 %v98_v31, %v98_v31  ;;  %v102_v35 = vmul.f32 %v101_v32, %v101_v32  ;;  %v106_v36 = vmul.f32 %v105_v33, %v105_v33  ;;  %v365_v33 = vld [vmem:[%s207_s16 + $0x8] sm:$0xff] }
  0x3d   : > { %v103_v37 = vadd.f32 %v102_v35, %v99_v34 }
  0x3f   : > { %v107_v38 = vadd.f32 %v106_v36, %v103_v37 }
  0x41   : > { %381 = vrsqrt.f32 %v107_v38  ;;  %vm111_vm4 = vcmp.eq.f32.partialorder %v107_v38, inf  ;;  %v114_v40 = vand.u32 2147483648, %v107_v38  ;;  %vm113_vm5 = vcmp.eq.f32.partialorder %v107_v38, 0.0 }
  0x4b   : > { %v382_v39 = vpop.eup %381 }
  0x4c   : > { %v110_v41 = vmul.f32 %v382_v39, %v107_v38 }
  0x4e   : > { %v112_v42 = vsel %vm111_vm4, %v107_v38, %v110_v41 }
  0x4f   : > { %v115_v43 = vsel %vm113_vm5, %v114_v40, %v112_v42 }
  0x50   : > { %v116_v44 = vmul.f32 %v115_v43, %v96_v29  ;;  %v218_v29 = vld [vmem:[%s207_s16] sm:$0xff] }
  0x52   : > { %v117_v45 = vsel %vm108_vm6, 0.0, %v116_v44 }
  0x53   : > { %v119_v46 = vxor.u32 2147483648, %v117_v45 }
  0x55   : > { %v120_v47 = vsel %vm118_vm7, %v117_v45, %v119_v46 }
  0x56   : > { %v447_v48 = vsel %vm83_vm3, %v92_v20, %v120_v47  ;;  %383 = vrcp.f32 %v120_v47  ;;  %v121_v51 = vsub.f32 %v120_v47, %v92_v20 }
  0x57   : > { %v126_v49 = vsub.f32 %v92_v20, %v447_v48 }
  0x59   : > { %385 = vrcp.f32 %v126_v49 }
  0x60   : > { %v384_v55 = vpop.eup %383 }
  0x61   : > { %v123_v58 = vmul.f32 %v384_v55, %v121_v51 }
  0x63   : > { %v386_v59 = vpop.eup %385  ;;  %v125_v61 = vsel %vm83_vm3, 0.0, %v123_v58 }
  0x64   : > { %v137_v62 = vmul.f32 %v386_v59, %v135_v56  ;;  %v156_v63 = vmul.f32 %v386_v59, %v154_v57  ;;  %v173_v0 = vsel %vm457_vm12, %v125_v61, 0.0 }
  0x65   : > { %174 = vadd.xlane.f32.xlu1 %v173_v0 }
  0x66   : > { %v138_v1 = vsel %vm83_vm3, 0.0, %v137_v62  ;;  %v157_v2 = vsel %vm83_vm3, 0.0, %v156_v63 }
  0x67   : > { %v143_v3 = vsel %vm457_vm12, %v138_v1, 0.0  ;;  %v162_v4 = vsel %vm457_vm12, %v157_v2, 0.0 }
  0x68   : > { %144 = vadd.xlane.f32.xlu0 %v143_v3 }
  0x6c   : > { %163 = vadd.xlane.f32.xlu0 %v162_v4 }
  0xf2   : > { %v175_v8 = vpop.xlane.xlu1 %174 }
  0xf3   : > { %v181_v9 = vsel %vm457_vm12, %v175_v8, %v180_v7 }
  0xf4   : > { %182 = vst [vmem:[#allocation2] sm:$0x1] %v181_v9 }
  0xf5   : > { %v145_v10 = vpop.xlane.xlu0 %144 }
  0xf6   : > { %146 = vst [vmem:[#allocation4] sm:$0xff] %v145_v10 }
  0xf9   : > { %v164_v11 = vpop.xlane.xlu0 %163 }
  0xfa   : > { %166 = vst [vmem:[#allocation4 + $0x8] sm:$0xff] %v164_v11 }
  0xfb   : > { %168 = vst [vmem:[%s167_s15] sm:$0x1] %v396_v12  ;;  %v264_v42 = vld [vmem:[#allocation2] sm:$0x1] (%p49_p0) }
  0xfc   :  { %266 = vst [vmem:[#allocation3] sm:$0x1] (%p49_p0), %v264_v42 }
 0x102   : > { %v189_v16 = vld [vmem:[%s184_s17] sm:$0xff]  ;;  %v362_v17 = vld [vmem:[%s184_s17 + $0x8] sm:$0xff]  ;;  %s208_s17 = smov %s184_s17 }
 0x103   : > { %v191_v18 = vmul.f32 %v190_v14, %v189_v16  ;;  %v197_v19 = vmul.f32 %v363_v15, %v362_v17  ;;  %v216_v31 = vld [vmem:[%s208_s17] sm:$0xff]  ;;  %v364_v32 = vld [vmem:[%s208_s17 + $0x8] sm:$0xff]  ;;  %v320_v45 = vld [vmem:[#allocation3] sm:$0x1] (%p49_p0) }
 0x104   :  { %321 = vst [vmem:[%s504_s2] sm:$0x1] (%p49_p0), %v320_v45 }
 0x105   : > { %v199_v20 = vsel %vm198_vm13, %v197_v19, 0.0 }
 0x106   : > { %v200_v21 = vadd.f32 %v199_v20, %v191_v18 }
 0x108   : > { %v201_v22 = vrot.slane %v200_v21, 4 }
 0x10a   : > { %v202_v23 = vadd.f32 %v201_v22, %v200_v21 }
 0x10c   : > { %v203_v24 = vrot.slane %v202_v23, 2 }
 0x10e   : > { %v204_v25 = vadd.f32 %v203_v24, %v202_v23 }
 0x110   : > { %v205_v26 = vrot.slane %v204_v25, 1 }
 0x112   : > { %v206_v28 = vadd.f32 %v205_v26, %v204_v25 }
 0x114   : > { %v212_v30 = vmul.f32 %v206_v28, %v175_v8 }
 0x116   : > { %v217_v34 = vmul.f32 %v216_v31, %v212_v30  ;;  %v237_v35 = vmul.f32 %v364_v32, %v212_v30 }
 0x118   : > { %v221_v36 = vsub.f32 %v218_v29, %v217_v34  ;;  %v242_v5 = vsub.f32 %v365_v33, %v237_v35 }
 0x11a   : > { %v222_v37 = vsel %vm220_vm0, %v221_v36, %v218_v29  ;;  %v243_v38 = vsel %vm220_vm0, %v242_v5, %v365_v33 }
 0x11b   : > { %v230_v39 = vsel %vm229_vm1, %v216_v31, %v222_v37  ;;  %v251_v40 = vsel %vm250_vm2, %v364_v32, %v243_v38 }
 0x11c   : > { %231 = vst [vmem:[%s207_s16] sm:$0xff] %v230_v39  ;;  %366 = vst [vmem:[%s207_s16 + $0x8] sm:$0xff] %v251_v40 }
 0x11f   :  { %51 = sbr.rel (!%p49_p0) target bundleno = 3 (0x3), region = 148 }
 0x123   : > { %v254_v41 = vld [vmem:[%s253_s18] ss:$0 sm:$0xff] }
 0x124   : > { %v259_v6 = vsel %vm457_vm12, %v447_v48, %v254_v41 }
 0x125   : > { %260 = vst [vmem:[%s253_s18] sm:$0x1] %v259_v6 }
 0x12c   :  { %v296_v43 = vld [vmem:[#allocation1] sm:$0xff]  ;;  %v298_v44 = vld [vmem:[#allocation1 + $0x8] sm:$0xff] }
 0x12d   :  { %297 = vst [vmem:[%s503_s1] sm:$0xff] %v296_v43  ;;  %299 = vst [vmem:[%s503_s1 + $0x8] sm:$0xff] %v298_v44 }

// kernel: custom-call.78
= control target key start
LH: loop header
LB: loop body
LE: loop exit
PB: predicated region body
PF: predicated region fallthrough
CT: control target
= control target key end

     0   :  { %v321_v1 = vmov 0.0   ;;  %s341_s11 = smov 0   ;;  %s394_s0 = inlined_call_operand.vmem [shape: f32[8,4], index: 0, kind: input, shape index: {}]   ;;  %s395_s1 = inlined_call_operand.vmem [shape: f32[8,4], index: 1, kind: output, shape index: {0}]   ;;  %s396_s2 = inlined_call_operand.vmem [shape: f32[4], index: 2, kind: output, shape index: {1}]  }
   0x1   :  { %v31_v0 = vld [vmem:[%s394_s0] sm:$0xff]  ;;  %38 = vst [vmem:[#allocation2] sm:$0x1] %v321_v1 }
   0x2   :  { %37 = vst [vmem:[#allocation1] sm:$0xff] %v31_v0 }
   0x3 LB: > { %v46_v2 = vlaneseq  ;;  %v349_v5 = vstv %s319_s11  ;;  %s73_s0 = scalar_lea.vmem [#allocation1], %s319_s11  ;;  %s109_s12 = smov [#allocation1]  ;;  %v322_v58 = vmov 1.0   ;;  %s319_s11 = sphi %s341_s11, %s44_s11  }
   0x4   : > { %s131_s13 = scalar_lea.vmem [#allocation4], %s319_s11  ;;  %s147_s14 = smov [#allocation1] }
   0x5   : > { %v346_v4 = vshrl.u32 %v46_v2, 7  ;;  %v125_v47 = vand.u32 127, %v46_v2  ;;  %s148_s15 = smov [#allocation4] }
   0x7   : > { %vm50_vm0 = vcmp.gt.s32.totalorder %v346_v4, %v349_v5  ;;  %v112_v4 = vmov %v346_v4  ;;  %vm362_vm10 = vcmp.eq.s32.totalorder %v125_v47, %v349_v5  ;;  %vm177_vm13 = vcmp.gt.s32.totalorder %v125_v47, %v349_v5 }
   0x8   : > { %vm116_vm7 = vcmp.gt.s32.totalorder %v112_v4, %v349_v5  ;;  %vm117_vm8 = vcmp.lt.s32.totalorder %v112_v4, 8  ;;  %v144_v59 = vld [vmem:[#allocation2] ss:$0 sm:$0xff]  ;;  %v151_v4 = vmov %v346_v4 }
   0x9   : > { %v45_v3 = vld [vmem:[#allocation1] sm:$0xff]  ;;  %vm118_vm9 = vmand %vm116_vm7, %vm117_vm8  ;;  %vm156_vm11 = vcmp.lt.s32.totalorder %v151_v4, 8  ;;  %v168_v4 = vmov %v346_v4 }
   0xa   : > { %v53_v6 = vsel %vm50_vm0, %v45_v3, 0.0  ;;  %v74_v14 = vld [vmem:[%s73_s0] ss:$0 sm:$0xff]  ;;  %vm185_vm12 = vcmp.ge.s32.totalorder %v168_v4, %v349_v5 }
   0xb   : > { %v54_v7 = vmul.f32 %v53_v6, %v53_v6  ;;  %v75_v15 = vand.u32 2147483647, %v74_v14  ;;  %vm100_vm6 = vcmp.lt.f32.partialorder %v74_v14, 0.0  ;;  %v113_v44 = vld [vmem:[%s109_s12] sm:$0xff]  ;;  %vm186_vm14 = vmand %vm362_vm10, %vm185_vm12 }
   0xc   : > { %v119_v48 = vsel %vm118_vm9, %v113_v44, 0.0  ;;  %v154_v62 = vld [vmem:[%s147_s14] sm:$0xff]  ;;  %s164_s14 = smov %s147_s14 }
   0xd   : > { %v55_v8 = vrot.slane %v54_v7, 4  ;;  %v76_v20 = vmax.f32 %v75_v15, 0.0  ;;  %s189_s16 = scalar_lea.vmem %s164_s14, %s319_s11  ;;  %s44_s11 = sadd.s32 1, %s319_s11  }
   0xe   : > { %p41_p0 = scmp.ge.s32.totalorder %s44_s11, 4  }
   0xf   : > { %v56_v9 = vadd.f32 %v55_v8, %v54_v7 }
  0x11   : > { %v57_v10 = vrot.slane %v56_v9, 2 }
  0x13   : > { %v58_v11 = vadd.f32 %v57_v10, %v56_v9 }
  0x15   : > { %v59_v12 = vrot.slane %v58_v11, 1 }
  0x17   : > { %v60_v13 = vadd.f32 %v59_v12, %v58_v11  ;;  %v175_v12 = vld [vmem:[%s164_s14] sm:$0xff] }
  0x19   : > { %303 = vrsqrt.f32 %v60_v13  ;;  %vm63_vm1 = vcmp.eq.f32.partialorder %v60_v13, inf  ;;  %v66_v17 = vand.u32 2147483648, %v60_v13  ;;  %vm65_vm2 = vcmp.eq.f32.partialorder %v60_v13, 0.0 }
  0x23   : > { %v304_v16 = vpop.eup %303 }
  0x24   : > { %v62_v18 = vmul.f32 %v304_v16, %v60_v13 }
  0x26   : > { %v64_v19 = vsel %vm63_vm1, %v60_v13, %v62_v18 }
  0x27   : > { %v67_v21 = vsel %vm65_vm2, %v66_v17, %v64_v19 }
  0x28   : > { %v77_v22 = vand.u32 2147483647, %v67_v21 }
  0x2a   : > { %v78_v23 = vmax.f32 %v76_v20, %v77_v22 }
  0x2c   : > { %305 = vrcp.f32 %v78_v23  ;;  %vm90_vm5 = vcmp.eq.f32.partialorder %v78_v23, 0.0 }
  0x36   : > { %v306_v24 = vpop.eup %305 }
  0x37   : > { %v80_v25 = vmul.f32 %v306_v24, %v75_v15  ;;  %v83_v26 = vmul.f32 0.0, %v306_v24  ;;  %v87_v27 = vmul.f32 %v306_v24, %v77_v22 }
  0x39   : > { %v81_v28 = vmul.f32 %v80_v25, %v80_v25  ;;  %v84_v29 = vmul.f32 %v83_v26, %v83_v26  ;;  %v88_v30 = vmul.f32 %v87_v27, %v87_v27 }
  0x3b   : > { %v85_v31 = vadd.f32 %v84_v29, %v81_v28 }
  0x3d   : > { %v89_v32 = vadd.f32 %v88_v30, %v85_v31 }
  0x3f   : > { %307 = vrsqrt.f32 %v89_v32  ;;  %vm93_vm3 = vcmp.eq.f32.partialorder %v89_v32, inf  ;;  %v96_v34 = vand.u32 2147483648, %v89_v32  ;;  %vm95_vm4 = vcmp.eq.f32.partialorder %v89_v32, 0.0 }
  0x49   : > { %v308_v33 = vpop.eup %307 }
  0x4a   : > { %v92_v35 = vmul.f32 %v308_v33, %v89_v32 }
  0x4c   : > { %v94_v36 = vsel %vm93_vm3, %v89_v32, %v92_v35 }
  0x4d   : > { %v97_v37 = vsel %vm95_vm4, %v96_v34, %v94_v36 }
  0x4e   : > { %v98_v38 = vmul.f32 %v97_v37, %v78_v23 }
  0x50   : > { %v99_v39 = vsel %vm90_vm5, 0.0, %v98_v38 }
  0x51   : > { %v101_v40 = vxor.u32 2147483648, %v99_v39 }
  0x53   : > { %v102_v41 = vsel %vm100_vm6, %v99_v39, %v101_v40 }
  0x54   : > { %v356_v42 = vsel %vm65_vm2, %v74_v14, %v102_v41  ;;  %309 = vrcp.f32 %v102_v41  ;;  %v103_v45 = vsub.f32 %v102_v41, %v74_v14 }
  0x55   : > { %v108_v43 = vsub.f32 %v74_v14, %v356_v42 }
  0x57   : > { %311 = vrcp.f32 %v108_v43 }
  0x5e   : > { %v310_v46 = vpop.eup %309 }
  0x5f   : > { %v105_v49 = vmul.f32 %v310_v46, %v103_v45 }
  0x61   : > { %v312_v50 = vpop.eup %311  ;;  %v107_v54 = vsel %vm65_vm2, 0.0, %v105_v49 }
  0x62   : > { %v121_v51 = vmul.f32 %v312_v50, %v119_v48  ;;  %v137_v56 = vsel %vm362_vm10, %v107_v54, 0.0 }
  0x64   : > { %v122_v53 = vsel %vm65_vm2, 0.0, %v121_v51 }
  0x65   : > { %v127_v55 = vsel %vm362_vm10, %v122_v53, 0.0 }
  0x66   : > { %128 = vadd.xlane.f32.xlu0 %v127_v55 }
  0x6a   : > { %138 = vadd.xlane.f32.xlu0 %v137_v56 }
  0xf3   : > { %v129_v57 = vpop.xlane.xlu0 %128 }
  0xf4   : > { %130 = vst [vmem:[#allocation4] sm:$0xff] %v129_v57 }
  0xf5   : > { %132 = vst [vmem:[%s131_s13] sm:$0x1] %v322_v58 }
  0xf7   : > { %v139_v60 = vpop.xlane.xlu0 %138 }
  0xf8   : > { %v145_v61 = vsel %vm362_vm10, %v139_v60, %v144_v59 }
  0xf9   : > { %146 = vst [vmem:[#allocation2] sm:$0x1] %v145_v61 }
  0xfc   : > { %v153_v63 = vld [vmem:[%s148_s15] sm:$0xff]  ;;  %s165_s15 = smov %s148_s15 }
  0xfd   : > { %v155_v0 = vmul.f32 %v154_v62, %v153_v63  ;;  %v173_v11 = vld [vmem:[%s165_s15] sm:$0xff] }
  0xff   : > { %v157_v1 = vsel %vm156_vm11, %v155_v0, 0.0 }
 0x100   : > { %v158_v2 = vrot.slane %v157_v1, 4  ;;  %v200_v4 = vld [vmem:[#allocation2] sm:$0x1] (%p41_p0) }
 0x101   :  { %202 = vst [vmem:[#allocation3] sm:$0x1] (%p41_p0), %v200_v4 }
 0x102   : > { %v159_v3 = vadd.f32 %v158_v2, %v157_v1 }
 0x104   : > { %v160_v6 = vrot.slane %v159_v3, 2 }
 0x106   : > { %v161_v7 = vadd.f32 %v160_v6, %v159_v3 }
 0x108   : > { %v162_v8 = vrot.slane %v161_v7, 1  ;;  %v252_v19 = vld [vmem:[#allocation3] sm:$0x1] (%p41_p0) }
 0x109   :  { %253 = vst [vmem:[%s396_s2] sm:$0x1] (%p41_p0), %v252_v19 }
 0x10a   : > { %v163_v9 = vadd.f32 %v162_v8, %v161_v7 }
 0x10c   : > { %v169_v10 = vmul.f32 %v163_v9, %v139_v60 }
 0x10e   : > { %v174_v13 = vmul.f32 %v173_v11, %v169_v10 }
 0x110   : > { %v178_v14 = vsub.f32 %v175_v12, %v174_v13 }
 0x112   : > { %v179_v15 = vsel %vm177_vm13, %v178_v14, %v175_v12 }
 0x113   : > { %v187_v16 = vsel %vm186_vm14, %v173_v11, %v179_v15 }
 0x114   : > { %188 = vst [vmem:[%s164_s14] sm:$0xff] %v187_v16 }
 0x117   :  { %43 = sbr.rel (!%p41_p0) target bundleno = 3 (0x3), region = 139 }
 0x11b   : > { %v190_v17 = vld [vmem:[%s189_s16] ss:$0 sm:$0xff] }
 0x11c   : > { %v195_v18 = vsel %vm362_vm10, %v356_v42, %v190_v17 }
 0x11d   : > { %196 = vst [vmem:[%s189_s16] sm:$0x1] %v195_v18 }
 0x124   :  { %v230_v5 = vld [vmem:[#allocation1] sm:$0xff] }
 0x125   :  { %231 = vst [vmem:[%s395_s1] sm:$0xff] %v230_v5 }

// kernel: custom-call.79
= control target key start
LH: loop header
LB: loop body
LE: loop exit
PB: predicated region body
PF: predicated region fallthrough
CT: control target
= control target key end

     0   :  { %v68_v1 = vlaneseq  ;;  %vm82_vm1 = vcmask 31744   ;;  %s252_s0 = inlined_call_operand.vmem [shape: f32[4,4], index: 0, kind: input, shape index: {}]   ;;  %s253_s1 = inlined_call_operand.vmem [shape: f32[4,4], index: 1, kind: output, shape index: {}]  }
   0x1   :  { %v62_v0 = vld [vmem:[%s252_s0] sm:$0xf] }
   0x2   :  { %63 = vst [vmem:[#allocation1] sm:$0xf] %v62_v0  ;;  %v69_v3 = vand.u32 127, %v68_v1  ;;  %v71_v4 = vshrl.u32 %v68_v1, 7 }
   0x4   :  { %vm77_vm0 = vcmp.eq.s32.totalorder %v69_v3, 0  ;;  %vm73_vm2 = vcmp.eq.s32.totalorder %v69_v3, %v71_v4  ;;  %vm86_vm3 = vcmp.eq.s32.totalorder %v69_v3, 1  ;;  %vm97_vm4 = vcmp.eq.s32.totalorder %v69_v3, 2 }
   0x5   :  { %vm108_vm5 = vcmp.eq.s32.totalorder %v69_v3, 3 }
   0x9   :  { %v66_v2 = vld [vmem:[#allocation1] sm:$0xf] }
   0xa   :  { %67 = vst [vmem:[#allocation0] sm:$0xf] %v66_v2 }
  0x11   :  { %v74_v5 = vld [vmem:[#allocation0] sm:$0xff] }
  0x12   :  { %v81_v6 = vld [vmem:[#allocation0 + $0x1] ss:$0 sm:$0xff]  ;;  %v78_v7 = vsel %vm77_vm0, %v74_v5, 1.0  ;;  %v92_v11 = vld [vmem:[#allocation0 + $0x2] ss:$0 sm:$0xff] }
  0x13   :  { %v83_v8 = vsel %vm82_vm1, %v81_v6, 0.0  ;;  %v79_v9 = vsel %vm73_vm2, %v78_v7, 0.0  ;;  %v94_v12 = vsel %vm82_vm1, %v92_v11, 0.0  ;;  %v103_v16 = vld [vmem:[#allocation0 + $0x3] ss:$0 sm:$0xff] }
  0x14   :  { %v87_v10 = vmul.f32 %v83_v8, %v79_v9  ;;  %v105_v17 = vsel %vm82_vm1, %v103_v16, 0.0 }
  0x16   :  { %88 = vadd.xlane.f32.xlu0 %v87_v10 }
  0xa3   :  { %v89_v13 = vpop.xlane.xlu0 %88 }
  0xa4   :  { %v90_v14 = vsel %vm86_vm3, %v89_v13, %v79_v9 }
  0xa5   :  { %v98_v15 = vmul.f32 %v94_v12, %v90_v14 }
  0xa7   :  { %99 = vadd.xlane.f32.xlu0 %v98_v15 }
 0x134   :  { %v100_v18 = vpop.xlane.xlu0 %99 }
 0x135   :  { %v101_v19 = vsel %vm97_vm4, %v100_v18, %v90_v14 }
 0x136   :  { %v109_v20 = vmul.f32 %v105_v17, %v101_v19 }
 0x138   :  { %110 = vadd.xlane.f32.xlu1 %v109_v20 }
 0x1c5   :  { %v111_v21 = vpop.xlane.xlu1 %110 }
 0x1c6   :  { %v112_v22 = vsel %vm108_vm5, %v111_v21, %v101_v19 }
 0x1c7   :  { %113 = vst [vmem:[#allocation2] sm:$0xff] %v112_v22 }
 0x1ce   :  { %v117_v23 = vld [vmem:[#allocation2] sm:$0xf] }
 0x1cf   :  { %119 = vst [vmem:[#allocation3] sm:$0xf] %v117_v23 }
 0x1d6   :  { %v180_v24 = vld [vmem:[#allocation3] sm:$0xf] }
 0x1d7   :  { %181 = vst [vmem:[%s253_s1] sm:$0xf] %v180_v24 }

// kernel: custom-call.76
= control target key start
LH: loop header
LB: loop body
LE: loop exit
PB: predicated region body
PF: predicated region fallthrough
CT: control target
= control target key end

     0   :  { %v176_v0 = vmov 0.0   ;;  %vm38_vm0 = vcmask 7168   ;;  %vm56_vm1 = vcmask 15368   ;;  %vm73_vm2 = vcmask 1047553   ;;  %s193_s0 = inlined_call_operand.vmem [shape: f32[4,4], index: 0, kind: input, shape index: {}]   ;;  %s194_s1 = inlined_call_operand.vmem [shape: f32[4,4], index: 1, kind: output, shape index: {}]  }
   0x1   :  { %37 = vst [vmem:[#allocation2] sm:$0xff] %v176_v0  ;;  %v17_v2 = vld [vmem:[%s193_s0] sm:$0xf]  ;;  %vm74_vm3 = vmand %vm56_vm1, %vm73_vm2  ;;  %vm78_vm4 = vcmask 23568   ;;  %vm95_vm5 = vcmask 1047554   ;;  %vm100_vm7 = vcmask 31768  }
   0x2   :  { %18 = vst [vmem:[#allocation1] sm:$0xf] %v17_v2  ;;  %vm96_vm6 = vmand %vm78_vm4, %vm95_vm5  ;;  %vm117_vm8 = vcmask 1047555  }
   0x3   :  { %vm118_vm9 = vmand %vm100_vm7, %vm117_vm8 }
   0x8   :  { %v39_v1 = vld [vmem:[#allocation2] ss:$0 sm:$0xff] }
   0x9   :  { %v41_v3 = vmul.f32 %v39_v1, %v39_v1  ;;  %v48_v4 = vmul.f32 0.0, %v39_v1  ;;  %v35_v5 = vld [vmem:[#allocation1] sm:$0xf] }
   0xa   :  { %36 = vst [vmem:[#allocation0] sm:$0xf] %v35_v5 }
   0xb   :  { %42 = vadd.xlane.f32.xlu0 %v41_v3 }
   0xf   :  { %49 = vadd.xlane.f32.xlu0 %v48_v4 }
  0x11   :  { %v40_v6 = vld [vmem:[#allocation0] ss:$0 sm:$0xff]  ;;  %v60_v18 = vld [vmem:[#allocation0 + $0x1] ss:$0 sm:$0xff]  ;;  %v82_v30 = vld [vmem:[#allocation0 + $0x2] ss:$0 sm:$0xff] }
  0x12   :  { %v46_v10 = vld [vmem:[#allocation0] sm:$0xff] }
  0x13   :  { %v104_v42 = vld [vmem:[#allocation0 + $0x3] ss:$0 sm:$0xff] }
  0x98   :  { %v43_v7 = vpop.xlane.xlu0 %42 }
  0x99   :  { %v44_v8 = vsub.f32 %v40_v6, %v43_v7 }
  0x9b   :  { %168 = vrsqrt.f32 %v44_v8 }
  0x9c   :  { %v50_v9 = vpop.xlane.xlu0 %49 }
  0x9d   :  { %v51_v11 = vsub.f32 %v46_v10, %v50_v9 }
  0xa5   :  { %v169_v12 = vpop.eup %168 }
  0xa6   :  { %v52_v13 = vmul.f32 %v169_v12, %v51_v11 }
  0xa8   :  { %v53_v14 = vsel %vm38_vm0, %v52_v13, 0.0 }
  0xa9   :  { %55 = vst [vmem:[#allocation2] sm:$0xff] %v53_v14 }
  0xb0   :  { %v58_v15 = vld [vmem:[#allocation2 + $0x1] ss:$0 sm:$0xff] }
  0xb1   :  { %v61_v16 = vmul.f32 %v58_v15, %v58_v15  ;;  %v68_v17 = vmul.f32 %v58_v15, %v53_v14 }
  0xb3   :  { %62 = vadd.xlane.f32.xlu1 %v61_v16 }
  0xb7   :  { %69 = vadd.xlane.f32.xlu1 %v68_v17 }
 0x140   :  { %v63_v19 = vpop.xlane.xlu1 %62 }
 0x141   :  { %v64_v20 = vsub.f32 %v60_v18, %v63_v19 }
 0x143   :  { %170 = vrsqrt.f32 %v64_v20 }
 0x144   :  { %v70_v21 = vpop.xlane.xlu1 %69 }
 0x145   :  { %v71_v22 = vsub.f32 %v46_v10, %v70_v21 }
 0x14d   :  { %v171_v23 = vpop.eup %170 }
 0x14e   :  { %v72_v24 = vmul.f32 %v171_v23, %v71_v22 }
 0x150   :  { %v75_v25 = vsel %vm74_vm3, %v72_v24, 0.0 }
 0x151   :  { %v76_v26 = vadd.f32 %v75_v25, %v53_v14 }
 0x153   :  { %77 = vst [vmem:[#allocation2] sm:$0xff] %v76_v26 }
 0x15a   :  { %v80_v27 = vld [vmem:[#allocation2 + $0x2] ss:$0 sm:$0xff] }
 0x15b   :  { %v90_v28 = vmul.f32 %v80_v27, %v76_v26  ;;  %v83_v29 = vmul.f32 %v80_v27, %v80_v27 }
 0x15d   :  { %91 = vadd.xlane.f32.xlu1 %v90_v28  ;;  %84 = vadd.xlane.f32.xlu0 %v83_v29 }
 0x1ea   :  { %v85_v31 = vpop.xlane.xlu0 %84  ;;  %v92_v33 = vpop.xlane.xlu1 %91 }
 0x1eb   :  { %v86_v32 = vsub.f32 %v82_v30, %v85_v31  ;;  %v93_v34 = vsub.f32 %v46_v10, %v92_v33 }
 0x1ed   :  { %172 = vrsqrt.f32 %v86_v32 }
 0x1f7   :  { %v173_v35 = vpop.eup %172 }
 0x1f8   :  { %v94_v36 = vmul.f32 %v173_v35, %v93_v34 }
 0x1fa   :  { %v97_v37 = vsel %vm96_vm6, %v94_v36, 0.0 }
 0x1fb   :  { %v98_v38 = vadd.f32 %v97_v37, %v76_v26 }
 0x1fd   :  { %99 = vst [vmem:[#allocation2] sm:$0xff] %v98_v38 }
 0x204   :  { %v102_v39 = vld [vmem:[#allocation2 + $0x3] ss:$0 sm:$0xff] }
 0x205   :  { %v112_v40 = vmul.f32 %v102_v39, %v98_v38  ;;  %v105_v41 = vmul.f32 %v102_v39, %v102_v39 }
 0x207   :  { %113 = vadd.xlane.f32.xlu1 %v112_v40  ;;  %106 = vadd.xlane.f32.xlu0 %v105_v41 }
 0x294   :  { %v107_v43 = vpop.xlane.xlu0 %106  ;;  %v114_v45 = vpop.xlane.xlu1 %113 }
 0x295   :  { %v108_v44 = vsub.f32 %v104_v42, %v107_v43  ;;  %v115_v46 = vsub.f32 %v46_v10, %v114_v45 }
 0x297   :  { %174 = vrsqrt.f32 %v108_v44 }
 0x2a1   :  { %v175_v47 = vpop.eup %174 }
 0x2a2   :  { %v116_v48 = vmul.f32 %v175_v47, %v115_v46 }
 0x2a4   :  { %v119_v49 = vsel %vm118_vm9, %v116_v48, 0.0 }
 0x2a5   :  { %v120_v50 = vadd.f32 %v119_v49, %v98_v38 }
 0x2a7   :  { %121 = vst [vmem:[#allocation2] sm:$0xff] %v120_v50 }
 0x2ae   :  { %v125_v51 = vld [vmem:[#allocation2] sm:$0xf] }
 0x2af   :  { %127 = vst [vmem:[#allocation3] sm:$0xf] %v125_v51 }
 0x2b6   :  { %v143_v52 = vld [vmem:[#allocation3] sm:$0xf] }
 0x2b7   :  { %144 = vst [vmem:[%s194_s1] sm:$0xf] %v143_v52 }

// kernel: custom-call.77
= control target key start
LH: loop header
LB: loop body
LE: loop exit
PB: predicated region body
PF: predicated region fallthrough
CT: control target
= control target key end

     0   :  { %v37_v1 = vlaneseq  ;;  %v148_v11 = vmov -1.0   ;;  %s165_s0 = inlined_call_operand.vmem [shape: f32[1,4,4], index: 0, kind: input, shape index: {}]   ;;  %s166_s1 = inlined_call_operand.vmem [shape: f32[1,4,4], index: 1, kind: output, shape index: {}]  }
   0x1   :  { %v17_v0 = vld [vmem:[%s165_s0] sm:$0xf] }
   0x2   :  { %18 = vst [vmem:[#allocation1] sm:$0xf] %v17_v0  ;;  %v38_v3 = vand.u32 127, %v37_v1  ;;  %v41_v4 = vshrl.u32 %v37_v1, 7 }
   0x4   :  { %vm39_vm0 = vcmp.lt.s32.totalorder %v38_v3, 4  ;;  %vm48_vm1 = vcmp.ge.s32.totalorder %v41_v4, %v38_v3  ;;  %vm43_vm2 = vcmp.eq.s32.totalorder %v41_v4, %v38_v3  ;;  %vm62_vm4 = vcmp.eq.s32.totalorder %v38_v3, 0 }
   0x5   :  { %vm49_vm3 = vmand %vm48_vm1, %vm39_vm0  ;;  %vm59_vm5 = vcmp.eq.s32.totalorder %v38_v3, %v41_v4  ;;  %v63_v12 = vsel %vm62_vm4, 1.0, %v148_v11  ;;  %vm70_vm6 = vcmp.eq.s32.totalorder %v38_v3, 1  ;;  %vm80_vm7 = vcmp.eq.s32.totalorder %v38_v3, 2 }
   0x6   :  { %v64_v13 = vsel %vm59_vm5, %v63_v12, 0.0  ;;  %vm90_vm8 = vcmp.eq.s32.totalorder %v38_v3, 3 }
   0x9   :  { %v35_v2 = vld [vmem:[#allocation1] sm:$0xf] }
   0xa   :  { %36 = vst [vmem:[#allocation0] sm:$0xf] %v35_v2 }
  0x11   :  { %v44_v5 = vld [vmem:[#allocation0] sm:$0xff] }
  0x12   :  { %v45_v6 = vsel %vm43_vm2, %v44_v5, 0.0  ;;  %v50_v7 = vsel %vm49_vm3, %v44_v5, 0.0 }
  0x13   :  { %46 = vadd.xlane.f32.xlu0 %v45_v6 }
  0xa0   :  { %v47_v8 = vpop.xlane.xlu0 %46 }
  0xa1   :  { %146 = vrcp.f32 %v47_v8  ;;  %vm97_vm9 = vweird.f32 %v47_v8 }
  0xab   :  { %v147_v9 = vpop.eup %146 }
  0xac   :  { %v52_v10 = vmul.f32 %v147_v9, %v50_v7 }
  0xae   :  { %53 = vst [vmem:[#allocation4] sm:$0xff] %v52_v10 }
  0xb5   :  { %v66_v14 = vld [vmem:[#allocation4 + $0x1] ss:$0 sm:$0xff]  ;;  %v76_v17 = vld [vmem:[#allocation4 + $0x2] ss:$0 sm:$0xff]  ;;  %v86_v22 = vld [vmem:[#allocation4 + $0x3] ss:$0 sm:$0xff] }
  0xb6   :  { %v67_v15 = vxor.u32 2147483648, %v66_v14  ;;  %v77_v19 = vxor.u32 2147483648, %v76_v17  ;;  %v87_v24 = vxor.u32 2147483648, %v86_v22 }
  0xb8   :  { %v71_v16 = vmul.f32 %v67_v15, %v64_v13 }
  0xba   :  { %72 = vadd.xlane.f32.xlu0 %v71_v16 }
 0x147   :  { %v73_v18 = vpop.xlane.xlu0 %72 }
 0x148   :  { %v74_v20 = vsel %vm70_vm6, %v73_v18, %v64_v13 }
 0x149   :  { %v81_v21 = vmul.f32 %v77_v19, %v74_v20 }
 0x14b   :  { %82 = vadd.xlane.f32.xlu1 %v81_v21 }
 0x1d8   :  { %v83_v23 = vpop.xlane.xlu1 %82 }
 0x1d9   :  { %v84_v25 = vsel %vm80_vm7, %v83_v23, %v74_v20 }
 0x1da   :  { %v91_v26 = vmul.f32 %v87_v24, %v84_v25 }
 0x1dc   :  { %92 = vadd.xlane.f32.xlu1 %v91_v26 }
 0x269   :  { %v93_v27 = vpop.xlane.xlu1 %92 }
 0x26a   :  { %v94_v28 = vsel %vm90_vm8, %v93_v27, %v84_v25 }
 0x26b   :  { %v96_v29 = vmul.f32 %v147_v9, %v94_v28 }
 0x26d   :  { %v98_v30 = vsel %vm97_vm9, %v94_v28, %v96_v29 }
 0x26e   :  { %99 = vst [vmem:[#allocation2] sm:$0xff] %v98_v30 }
 0x275   :  { %v103_v31 = vld [vmem:[#allocation2] sm:$0xf] }
 0x276   :  { %105 = vst [vmem:[#allocation3] sm:$0xf] %v103_v31 }
 0x27d   :  { %v121_v32 = vld [vmem:[#allocation3] sm:$0xf] }
 0x27e   :  { %122 = vst [vmem:[%s166_s1] sm:$0xf] %v121_v32 }

// kernel: custom-call.38
= control target key start
LH: loop header
LB: loop body
LE: loop exit
PB: predicated region body
PF: predicated region fallthrough
CT: control target
= control target key end

     0   :  { %v292_v3 = vlaneseq  ;;  %v1743_v5 = vmov 0.0   ;;  %s281_s17 = smov [#allocation22]  ;;  %s284_s18 = smov [#allocation23]  ;;  %s2025_s0 = inlined_call_operand.vmem [shape: f32[2,2], index: 0, kind: input, shape index: {}]   ;;  %s2026_s1 = inlined_call_operand.vmem [shape: f32[2,2], index: 1, kind: input, shape index: {}]   ;;  %s2027_s2 = inlined_call_operand.vmem [shape: f32[2,2], index: 2, kind: input, shape index: {}]   ;;  %s2028_s3 = inlined_call_operand.vmem [shape: f32[2,2], index: 3, kind: input, shape index: {}]   ;;  %s2029_s4 = inlined_call_operand.vmem [shape: f32[2], index: 4, kind: output, shape index: {0}]   ;;  %s2030_s5 = inlined_call_operand.vmem [shape: f32[2], index: 5, kind: output, shape index: {1}]   ;;  %s2031_s6 = inlined_call_operand.vmem [shape: f32[2,2], index: 6, kind: output, shape index: {2}]   ;;  %s2032_s7 = inlined_call_operand.vmem [shape: f32[2,2], index: 7, kind: output, shape index: {3}]   ;;  %s2033_s8 = inlined_call_operand.vmem [shape: f32[2,2], index: 8, kind: output, shape index: {4}]   ;;  %s2034_s9 = inlined_call_operand.vmem [shape: f32[2,2], index: 9, kind: output, shape index: {5}]  }
   0x1   :  { %v71_v0 = vld [vmem:[%s2025_s0] sm:$0x3]  ;;  %287 = vst [vmem:[#allocation12] sm:$0xff] %v1743_v5  ;;  %288 = vst [vmem:[#allocation14] sm:$0xff] %v1743_v5  ;;  %s291_s0 = smov [#allocation12]  ;;  %s1441_s19 = smov [#allocation20] }
   0x2   :  { %v133_v1 = vld [vmem:[%s2026_s1] sm:$0x3]  ;;  %72 = vst [vmem:[#allocation1] sm:$0x3] %v71_v0  ;;  %289 = vst [vmem:[#allocation16] sm:$0xff] %v1743_v5  ;;  %v1808_v6 = vand.u32 127, %v292_v3 }
   0x3   :  { %v195_v2 = vld [vmem:[%s2027_s2] sm:$0x3]  ;;  %134 = vst [vmem:[#allocation3] sm:$0x3] %v133_v1  ;;  %290 = vst [vmem:[#allocation18] sm:$0xff] %v1743_v5  ;;  %v1810_v7 = vshrl.u32 %v292_v3, 7 }
   0x4   :  { %196 = vst [vmem:[#allocation5] sm:$0x3] %v195_v2  ;;  %v257_v4 = vld [vmem:[%s2028_s3] sm:$0x3]  ;;  %v294_v6 = vmov %v1808_v6  ;;  %s304_s1 = smov [#allocation18]  ;;  %s275_s2 = smov [#allocation20] }
   0x5   :  { %258 = vst [vmem:[#allocation7] sm:$0x3] %v257_v4  ;;  %v297_v7 = vmov %v1810_v7  ;;  %v307_v6 = vmov %v1808_v6  ;;  %s278_s3 = smov [#allocation21]  ;;  %vm1445_vm2 = vcmp.lt.s32.totalorder %v1808_v6, 2  ;;  %s1458_s20 = smov [#allocation21] }
   0x6   :  { %v310_v7 = vmov %v1810_v7  ;;  %vm301_vm0 = vcmp.eq.s32.totalorder %v297_v7, %v294_v6  ;;  %s1475_s21 = smov [#allocation22]  ;;  %s1492_s22 = smov [#allocation23] }
   0x7   :  { %vm314_vm1 = vcmp.eq.s32.totalorder %v310_v7, %v307_v6  ;;  %v1437_v6 = vmov %v1808_v6  ;;  %v1440_v7 = vmov %v1810_v7 }
   0x8   :  { %v298_v12 = vld [vmem:[%s291_s0] sm:$0x3]  ;;  %vm1450_vm3 = vcmp.eq.s32.totalorder %v1440_v7, %v1437_v6  ;;  %v1488_v6 = vmov %v1808_v6  ;;  %v1457_v7 = vmov %v1810_v7 }
   0x9   :  { %v261_v8 = vld [vmem:[#allocation1] sm:$0x3]  ;;  %v302_v14 = vsel %vm301_vm0, 1.0, %v298_v12  ;;  %v1454_v6 = vmov %v1808_v6  ;;  %v1491_v7 = vmov %v1810_v7 }
   0xa   :  { %v265_v9 = vld [vmem:[#allocation3] sm:$0x3]  ;;  %262 = vst [vmem:[#allocation0] sm:$0x3] %v261_v8  ;;  %v311_v13 = vld [vmem:[%s304_s1] sm:$0x3]  ;;  %v1471_v6 = vmov %v1808_v6  ;;  %v1474_v7 = vmov %v1810_v7  ;;  %vm1501_vm4 = vcmp.eq.s32.totalorder %v1491_v7, %v1488_v6 }
   0xb   :  { %v269_v10 = vld [vmem:[#allocation5] sm:$0x3]  ;;  %266 = vst [vmem:[#allocation2] sm:$0x3] %v265_v9  ;;  %v315_v15 = vsel %vm314_vm1, 1.0, %v311_v13  ;;  %303 = vst [vmem:[%s291_s0] sm:$0x3] %v302_v14 }
   0xc   :  { %270 = vst [vmem:[#allocation4] sm:$0x3] %v269_v10  ;;  %v273_v11 = vld [vmem:[#allocation7] sm:$0x3]  ;;  %316 = vst [vmem:[%s304_s1] sm:$0x3] %v315_v15 }
   0xd   :  { %274 = vst [vmem:[#allocation6] sm:$0x3] %v273_v11 }
  0x11   :  { %v276_v16 = vld [vmem:[#allocation0] sm:$0xff] }
  0x12   :  { %v279_v17 = vld [vmem:[#allocation2] sm:$0xff]  ;;  %277 = vst [vmem:[%s275_s2] sm:$0xff] %v276_v16 }
  0x13   :  { %v282_v18 = vld [vmem:[#allocation4] sm:$0xff]  ;;  %280 = vst [vmem:[%s278_s3] sm:$0xff] %v279_v17 }
  0x14   :  { %283 = vst [vmem:[%s281_s17] sm:$0xff] %v282_v18  ;;  %v285_v19 = vld [vmem:[#allocation6] sm:$0xff] }
  0x15   :  { %286 = vst [vmem:[%s284_s18] sm:$0xff] %v285_v19 }
  0x19   :  { %v1447_v20 = vld [vmem:[%s1441_s19] sm:$0x3] }
  0x1a   :  { %v1464_v21 = vld [vmem:[%s1458_s20] sm:$0x3]  ;;  %v1448_v22 = vsel %vm1445_vm2, %v1447_v20, 0.0 }
  0x1b   :  { %v1465_v23 = vsel %vm1445_vm2, %v1464_v21, 0.0  ;;  %v1481_v24 = vld [vmem:[%s1475_s21] sm:$0x3]  ;;  %v1449_v26 = vmul.f32 %v1448_v22, %v1448_v22 }
  0x1c   :  { %v1498_v25 = vld [vmem:[%s1492_s22] sm:$0x3]  ;;  %v1466_v27 = vmul.f32 %v1465_v23, %v1465_v23  ;;  %v1482_v28 = vsel %vm1445_vm2, %v1481_v24, 0.0 }
  0x1d   :  { %v1499_v29 = vsel %vm1445_vm2, %v1498_v25, 0.0  ;;  %v1483_v30 = vmul.f32 %v1482_v28, %v1482_v28  ;;  %v1451_v33 = vsel %vm1450_vm3, 0.0, %v1449_v26 }
  0x1e   :  { %v1468_v31 = vadd.f32 %v1466_v27, %v1449_v26  ;;  %v1500_v32 = vmul.f32 %v1499_v29, %v1499_v29  ;;  %v1467_v34 = vadd.f32 %v1466_v27, %v1451_v33 }
  0x20   :  { %v1485_v35 = vadd.f32 %v1483_v30, %v1468_v31  ;;  %v1484_v36 = vadd.f32 %v1483_v30, %v1467_v34  ;;  %v1502_v37 = vsel %vm1501_vm4, 0.0, %v1500_v32 }
  0x22   :  { %v1504_v38 = vadd.f32 %v1500_v32, %v1485_v35  ;;  %v1503_v39 = vadd.f32 %v1502_v37, %v1484_v36 }
  0x24   :  { %1505 = vadd.xlane.f32.xlu0 %v1504_v38 }
  0x28   :  { %1513 = vadd.xlane.f32.xlu0 %v1503_v39 }
  0xb1   :  { %v1506_v40 = vpop.xlane.xlu0 %1505 }
  0xb2   :  { %v1507_v41 = vrot.slane %v1506_v40, 4 }
  0xb4   :  { %v1508_v42 = vadd.f32 %v1507_v41, %v1506_v40 }
  0xb5   :  { %v1514_v43 = vpop.xlane.xlu0 %1513 }
  0xb6   :  { %v1509_v44 = vrot.slane %v1508_v42, 2  ;;  %v1515_v45 = vrot.slane %v1514_v43, 4 }
  0xb8   :  { %v1516_v46 = vadd.f32 %v1515_v45, %v1514_v43  ;;  %v1510_v47 = vadd.f32 %v1509_v44, %v1508_v42 }
  0xba   :  { %v1517_v48 = vrot.slane %v1516_v46, 2  ;;  %v1511_v50 = vrot.slane %v1510_v47, 1 }
  0xbc   :  { %v1518_v49 = vadd.f32 %v1517_v48, %v1516_v46  ;;  %v1512_v53 = vadd.f32 %v1511_v50, %v1510_v47 }
  0xbe   :  { %v1519_v51 = vrot.slane %v1518_v49, 1 }
  0xc0   :  { %v1520_v52 = vadd.f32 %v1519_v51, %v1518_v49 }
  0xc2   :  { %1692 = vpush %v1520_v52 }
  0xc3   :  { %1694 = vpush %v1512_v53 }
  0xf3   :  { %s1693_s23 = spop %1692 }
  0xf4   :  { %s1695_s24 = spop %1694 }
  0xf5   :  { %s1523_s25 = smul.f32 1e-10, %s1695_s24 }
  0xf7   :  { %p1524_p0 = scmp.le.f32.partialorder %s1693_s23, %s1523_s25 }
  0xf8   :  { %s1834_s26 = smov (!%p1524_p0), 0  }
  0xf9   :  { %1527 = sbr.rel (%p1524_p0) target bundleno = 931 (0x3a3), region = 440 }
 0x100 LB: > { %s1839_s27 = smov 0   ;;  %s1737_s26 = sphi %s1834_s26, %s2035_s26  }
 0x101 LB: >> { %s421_s28 = smov [#allocation20]  ;;  %v425_v6 = vmov %v1808_v6  ;;  %v428_v7 = vmov %v1810_v7  ;;  %s441_s29 = smov [#allocation21]  ;;  %vm744_vm14 = vcmp.eq.s32.totalorder %v1810_v7, 0  ;;  %vm756_vm15 = vcmp.eq.s32.totalorder %v1810_v7, 1  ;;  %s1741_s27 = sphi %s1839_s27, %s420_s27  }
 0x102   : >> { %v445_v6 = vmov %v1808_v6  ;;  %v448_v7 = vmov %v1810_v7  ;;  %v429_v54 = vld [vmem:[%s421_s28] sm:$0x3]  ;;  %vm432_vm5 = vcmp.eq.s32.totalorder %v428_v7, %v425_v6  ;;  %s461_s30 = smov [#allocation23]  ;;  %s422_s10 = smov [#allocation24] }
 0x103   : >> { %vm452_vm6 = vcmp.eq.s32.totalorder %v448_v7, %v445_v6  ;;  %v465_v6 = vmov %v1808_v6  ;;  %v468_v7 = vmov %v1810_v7  ;;  %v433_v55 = vsel %vm432_vm5, %v429_v54, 0.0  ;;  %v449_v56 = vld [vmem:[%s441_s29] sm:$0x3]  ;;  %s442_s11 = smov [#allocation25]  ;;  %s462_s12 = smov [#allocation26] }
 0x104   : >> { %vm472_vm7 = vcmp.eq.s32.totalorder %v468_v7, %v465_v6  ;;  %v434_v57 = vrot.slane %v433_v55, 4  ;;  %v453_v58 = vsel %vm452_vm6, %v449_v56, 0.0  ;;  %v469_v59 = vld [vmem:[%s461_s30] sm:$0x3]  ;;  %s485_s13 = smov [#allocation25]  ;;  %s483_s14 = smov [#allocation24]  ;;  %v534_v6 = vmov %v1808_v6 }
 0x105   : >> { %v454_v60 = vrot.slane %v453_v58, 4  ;;  %v473_v61 = vsel %vm472_vm7, %v469_v59, 0.0  ;;  %s487_s15 = smov [#allocation26]  ;;  %s522_s16 = smov [#allocation27]  ;;  %v537_v7 = vmov %v1810_v7  ;;  %v549_v6 = vmov %v1808_v6 }
 0x106   : >> { %v435_v62 = vadd.f32 %v434_v57, %v433_v55  ;;  %v474_v63 = vrot.slane %v473_v61, 4  ;;  %s524_s0 = smov [#allocation28]  ;;  %s481_s1 = smov [#allocation29]  ;;  %v552_v7 = vmov %v1810_v7  ;;  %vm539_vm12 = vcmp.eq.s32.totalorder %v537_v7, %v534_v6 }
 0x107   : >> { %v455_v0 = vadd.f32 %v454_v60, %v453_v58  ;;  %s482_s2 = smov [#allocation30]  ;;  %s526_s1 = smov %s481_s1  ;;  %vm554_vm13 = vcmp.eq.s32.totalorder %v552_v7, %v549_v6  ;;  %v647_v6 = vmov %v1808_v6  ;;  %v650_v7 = vmov %v1810_v7 }
 0x108   : >> { %v436_v1 = vrot.slane %v435_v62, 2  ;;  %v475_v2 = vadd.f32 %v474_v63, %v473_v61  ;;  %s528_s2 = smov %s482_s2  ;;  %s530_s3 = smov [#allocation29]  ;;  %v661_v6 = vmov %v1808_v6  ;;  %v664_v7 = vmov %v1810_v7 }
 0x109   : >> { %v456_v3 = vrot.slane %v455_v0, 2  ;;  %s545_s17 = smov [#allocation30]  ;;  %s543_s18 = smov [#allocation31]  ;;  %vm654_vm0 = vcmp.eq.s32.totalorder %v650_v7, %v647_v6  ;;  %v620_v6 = vmov %v1808_v6  ;;  %v623_v7 = vmov %v1810_v7 }
 0x10a   : >> { %v437_v4 = vadd.f32 %v436_v1, %v435_v62  ;;  %v476_v5 = vrot.slane %v475_v2, 2  ;;  %s560_s19 = smov [#allocation31]  ;;  %s1854_s20 = smov [#allocation20]  ;;  %v634_v6 = vmov %v1808_v6  ;;  %v637_v7 = vmov %v1810_v7 }
 0x10b   : >> { %v457_v8 = vadd.f32 %v456_v3, %v455_v0  ;;  %s558_s21 = smov [#allocation32]  ;;  %s1856_s22 = smov [#allocation21]  ;;  %v568_v53 = vld [vmem:[%s1854_s20] sm:$0x3]  ;;  %vm669_vm1 = vcmp.eq.s32.totalorder %v664_v7, %v661_v6  ;;  %vm628_vm3 = vcmp.eq.s32.totalorder %v623_v7, %v620_v6  ;;  %vm641_vm4 = vcmp.eq.s32.totalorder %v637_v7, %v634_v6 }
 0x10c   : >> { %v438_v9 = vrot.slane %v437_v4, 1  ;;  %v477_v10 = vadd.f32 %v476_v5, %v475_v2  ;;  %s1858_s23 = smov [#allocation22]  ;;  %s1860_s24 = smov [#allocation23]  ;;  %v569_v54 = vld [vmem:[%s1856_s22] sm:$0x3]  ;;  %vm683_vm5 = vcmp.eq.s32.totalorder %v1808_v6, 0 }
 0x10d   : >> { %v458_v11 = vrot.slane %v457_v8, 1  ;;  %s1862_s25 = smov [#allocation12]  ;;  %s1864_s28 = smov [#allocation14]  ;;  %v570_v55 = vld [vmem:[%s1858_s23] sm:$0x3]  ;;  %vm687_vm6 = vcmp.eq.s32.totalorder %v1808_v6, 1 }
 0x10e   : >> { %v439_v12 = vadd.f32 %v438_v9, %v437_v4  ;;  %v478_v13 = vrot.slane %v477_v10, 1  ;;  %s1866_s29 = smov [#allocation16]  ;;  %s784_s30 = smov [#allocation31]  ;;  %v571_v56 = vld [vmem:[%s1860_s24] sm:$0x3] }
 0x10f   : >> { %v459_v14 = vadd.f32 %v458_v11, %v457_v8  ;;  %v792_v57 = vld [vmem:[%s1862_s25] sm:$0x3]  ;;  %s420_s27 = sadd.s32 1, %s1741_s27  }
 0x110   : >> { %440 = vst [vmem:[%s422_s10] sm:$0x1] %v439_v12  ;;  %v479_v15 = vadd.f32 %v478_v13, %v477_v10  ;;  %s1870_s10 = smov [#allocation18]  ;;  %v793_v58 = vld [vmem:[%s1864_s28] sm:$0x3]  ;;  %p417_p1 = scmp.ge.s32.totalorder %s420_s27, 3  }
 0x111   : >> { %460 = vst [vmem:[%s442_s11] sm:$0x1] %v459_v14  ;;  %v794_v59 = vld [vmem:[%s1866_s29] sm:$0x3]  ;;  %s562_s11 = smov [#allocation32]  ;;  %v321_v6 = vmov (%p417_p1), %v1808_v6  ;;  %v324_v7 = vmov (%p417_p1), %v1810_v7 }
 0x112   : >> { %480 = vst [vmem:[%s462_s12] sm:$0x1] %v479_v15  ;;  %v795_v61 = vld [vmem:[%s1870_s10] sm:$0x3]  ;;  %s786_s12 = smov [#allocation32]  ;;  %v374_v6 = vmov (%p417_p1), %v1808_v6  ;;  %vm336_vm7 = vcmp.eq.s32.totalorder (%p417_p1), %v324_v7, %v321_v6  ;;  %v377_v7 = vmov (%p417_p1), %v1810_v7 }
 0x113   : > { %v340_v6 = vmov (%p417_p1), %v1808_v6  ;;  %v343_v7 = vmov (%p417_p1), %v1810_v7 }
 0x114   : > { %v357_v6 = vmov (%p417_p1), %v1808_v6  ;;  %v360_v7 = vmov (%p417_p1), %v1810_v7 }
 0x117   : >> { %v484_v18 = vld [vmem:[%s483_s14] sm:$0xff]  ;;  %s590_s14 = smov [#allocation30] }
 0x118   : >> { %v486_v16 = vld [vmem:[%s485_s13] sm:$0xff]  ;;  %v507_v31 = vand.u32 2147483647, %v484_v18  ;;  %s588_s13 = smov [#allocation29] }
 0x119   : >> { %v490_v17 = vmul.f32 2.0, %v486_v16  ;;  %v488_v19 = vld [vmem:[%s487_s15] sm:$0xff]  ;;  %v508_v36 = vand.u32 2147483647, %v486_v16  ;;  %s1886_s15 = smov [#allocation12] }
 0x11a   : >> { %v489_v20 = vsub.f32 %v488_v19, %v484_v18  ;;  %v509_v32 = vand.u32 2147483647, %v488_v19 }
 0x11b   : >> { %1719 = vrcp.f32 %v490_v17 }
 0x11c   : >> { %v510_v35 = vmin.f32 %v507_v31, %v509_v32 }
 0x11e   : >> { %v511_v37 = vmul.f32 1.1920929e-08, %v510_v35 }
 0x120   : >> { %vm512_vm11 = vcmp.le.f32.partialorder %v508_v36, %v511_v37 }
 0x125   : >> { %v1720_v21 = vpop.eup %1719 }
 0x126   : >> { %v492_v22 = vmul.f32 %v1720_v21, %v489_v20 }
 0x128   : >> { %v494_v23 = vmul.f32 %v492_v22, %v492_v22  ;;  %vm493_vm10 = vcmp.ge.f32.partialorder %v492_v22, 0.0 }
 0x12a   : >> { %v495_v24 = vadd.f32 1.0, %v494_v23 }
 0x12c   : >> { %1721 = vrsqrt.f32 %v495_v24  ;;  %vm498_vm8 = vcmp.eq.f32.partialorder %v495_v24, inf  ;;  %v501_v26 = vand.u32 2147483648, %v495_v24  ;;  %vm500_vm9 = vcmp.eq.f32.partialorder %v495_v24, 0.0 }
 0x136   : >> { %v1722_v25 = vpop.eup %1721 }
 0x137   : >> { %v497_v27 = vmul.f32 %v1722_v25, %v495_v24 }
 0x139   : >> { %v499_v28 = vsel %vm498_vm8, %v495_v24, %v497_v27  ;;  %vm389_vm8 = vcmp.eq.s32.totalorder (%p417_p1), %v377_v7, %v374_v6 }
 0x13a   : >> { %v502_v29 = vsel %vm500_vm9, %v501_v26, %v499_v28 }
 0x13b   : >> { %v503_v30 = vxor.u32 2147483648, %v502_v29 }
 0x13d   : >> { %v504_v33 = vsel %vm493_vm10, %v502_v29, %v503_v30 }
 0x13e   : >> { %v505_v34 = vadd.f32 %v504_v33, %v492_v22 }
 0x140   : >> { %1723 = vrcp.f32 %v505_v34 }
 0x14a   : >> { %v1724_v38 = vpop.eup %1723 }
 0x14b   : >> { %v513_v39 = vsel %vm512_vm11, 0.0, %v1724_v38 }
 0x14c   : >> { %v514_v40 = vmul.f32 %v513_v39, %v513_v39  ;;  %v518_v41 = vmul.f32 %v513_v39, %v486_v16 }
 0x14e   : >> { %v515_v42 = vadd.f32 1.0, %v514_v40  ;;  %v519_v43 = vsub.f32 %v484_v18, %v518_v41  ;;  %v521_v44 = vadd.f32 %v518_v41, %v488_v19 }
 0x150   : >> { %1725 = vrsqrt.f32 %v515_v42  ;;  %523 = vst [vmem:[%s522_s16] sm:$0xff] %v519_v43  ;;  %525 = vst [vmem:[%s524_s0] sm:$0xff] %v521_v44  ;;  %s1888_s16 = smov [#allocation22]  ;;  %s1890_s0 = smov [#allocation23] }
 0x15a   : >> { %v1726_v45 = vpop.eup %1725 }
 0x15b   : >> { %527 = vst [vmem:[%s526_s1] sm:$0xff] %v1726_v45  ;;  %v517_v46 = vmul.f32 %v1726_v45, %v513_v39  ;;  %s1892_s1 = smov [#allocation20] }
 0x15d   : >> { %529 = vst [vmem:[%s528_s2] sm:$0xff] %v517_v46  ;;  %s1894_s2 = smov [#allocation16] }
 0x162   : >> { %v531_v47 = vld [vmem:[%s530_s3] ss:$0 sm:$0xff]  ;;  %s1896_s3 = smov [#allocation14] }
 0x163   : >> { %v540_v48 = vsel %vm539_vm12, %v531_v47, 0.0  ;;  %v589_v27 = vld [vmem:[%s588_s13] ss:$0 sm:$0xff]  ;;  %s760_s13 = smov [#allocation21] }
 0x164   : >> { %541 = vadd.xlane.f32.xlu0 %v540_v48  ;;  %v546_v49 = vld [vmem:[%s545_s17] ss:$0 sm:$0xff]  ;;  %s1900_s17 = smov [#allocation18] }
 0x165   : >> { %v555_v50 = vsel %vm554_vm13, %v546_v49, 0.0  ;;  %v591_v28 = vld [vmem:[%s590_s14] ss:$0 sm:$0xff]  ;;  %s737_s14 = smov [#allocation22] }
 0x168   : >> { %556 = vadd.xlane.f32.xlu0 %v555_v50 }
 0x1f1   : >> { %v542_v51 = vpop.xlane.xlu0 %541 }
 0x1f2   : >> { %544 = vst [vmem:[%s543_s18] sm:$0xff] %v542_v51  ;;  %s1902_s18 = smov [#allocation21] }
 0x1f5   : >> { %v557_v52 = vpop.xlane.xlu0 %556 }
 0x1f6   : >> { %559 = vst [vmem:[%s558_s21] sm:$0xff] %v557_v52  ;;  %s657_s21 = smov [#allocation23] }
 0x1f9   : >> { %v561_v60 = vld [vmem:[%s560_s19] sm:$0xff]  ;;  %s658_s19 = smov [#allocation28] }
 0x1fa   : >> { %v785_v62 = vld [vmem:[%s784_s30] sm:$0xff]  ;;  %v572_v63 = vmul.f32 %v568_v53, %v561_v60  ;;  %v575_v0 = vmul.f32 %v569_v54, %v561_v60  ;;  %v579_v1 = vmul.f32 %v570_v55, %v561_v60  ;;  %v582_v2 = vmul.f32 %v571_v56, %v561_v60  ;;  %s673_s30 = smov [#allocation21] }
 0x1fb   : >> { %v796_v3 = vmul.f32 %v792_v57, %v785_v62  ;;  %v799_v4 = vmul.f32 %v793_v58, %v785_v62  ;;  %v803_v5 = vmul.f32 %v794_v59, %v785_v62  ;;  %v806_v8 = vmul.f32 %v795_v61, %v785_v62 }
 0x1fd   : >> { %v563_v9 = vld [vmem:[%s562_s11] sm:$0xff]  ;;  %s1947_s11 = smov [#allocation23] }
 0x1fe   : >> { %v787_v10 = vld [vmem:[%s786_s12] sm:$0xff]  ;;  %v573_v11 = vmul.f32 %v570_v55, %v563_v9  ;;  %v576_v12 = vmul.f32 %v571_v56, %v563_v9  ;;  %v578_v13 = vmul.f32 %v568_v53, %v563_v9  ;;  %v581_v14 = vmul.f32 %v569_v54, %v563_v9  ;;  %s736_s12 = smov [#allocation20] }
 0x1ff   : >> { %v797_v15 = vmul.f32 %v794_v59, %v787_v10  ;;  %v800_v16 = vmul.f32 %v795_v61, %v787_v10  ;;  %v802_v17 = vmul.f32 %v792_v57, %v787_v10  ;;  %v805_v18 = vmul.f32 %v793_v58, %v787_v10  ;;  %v665_v59 = vld [vmem:[%s658_s19] ss:$0 sm:$0xff] }
 0x200   : >> { %v574_v19 = vsub.f32 %v572_v63, %v573_v11  ;;  %v577_v20 = vsub.f32 %v575_v0, %v576_v12  ;;  %v580_v21 = vadd.f32 %v579_v1, %v578_v13  ;;  %v583_v22 = vadd.f32 %v582_v2, %v581_v14 }
 0x201   : >> { %v798_v23 = vsub.f32 %v796_v3, %v797_v15  ;;  %v801_v24 = vsub.f32 %v799_v4, %v800_v16  ;;  %v804_v25 = vadd.f32 %v803_v5, %v802_v17  ;;  %v807_v26 = vadd.f32 %v806_v8, %v805_v18 }
 0x202   : >> { %585 = vst [vmem:[%s1856_s22] sm:$0x3] %v577_v20  ;;  %587 = vst [vmem:[%s1860_s24] sm:$0x3] %v583_v22  ;;  %s617_s22 = smov [#allocation27]  ;;  %s631_s24 = smov [#allocation21] }
 0x203   : >> { %584 = vst [vmem:[%s1854_s20] sm:$0x3] %v574_v19  ;;  %586 = vst [vmem:[%s1858_s23] sm:$0x3] %v580_v21  ;;  %s644_s20 = smov [#allocation22]  ;;  %s616_s23 = smov [#allocation20]  ;;  %v624_v63 = vld [vmem:[%s617_s22] ss:$0 sm:$0xff] }
 0x204   : >> { %808 = vst [vmem:[%s1862_s25] sm:$0x3] %v798_v23  ;;  %809 = vst [vmem:[%s1864_s28] sm:$0x3] %v801_v24  ;;  %s1944_s25 = smov [#allocation22]  ;;  %s1744_s28 = smov 1  }
 0x205   : >> { %810 = vst [vmem:[%s1866_s29] sm:$0x3] %v804_v25  ;;  %811 = vst [vmem:[%s1870_s10] sm:$0x3] %v807_v26  ;;  %s672_s29 = smov [#allocation20]  ;;  %s1745_s10 = smov 127  }
 0x209   : >> { %v599_v30 = vld [vmem:[%s1890_s0] sm:$0x3] }
 0x20a   : >> { %v598_v29 = vld [vmem:[%s1888_s16] sm:$0x3]  ;;  %v607_v36 = vmul.f32 %v599_v30, %v591_v28  ;;  %v610_v42 = vmul.f32 %v599_v30, %v589_v27 }
 0x20b   : >> { %v596_v31 = vld [vmem:[%s1892_s1] sm:$0x3]  ;;  %v606_v35 = vmul.f32 %v598_v29, %v589_v27  ;;  %v609_v37 = vmul.f32 %v598_v29, %v591_v28 }
 0x20c   : >> { %v814_v32 = vld [vmem:[%s1886_s15] ss:$0 sm:$0xff]  ;;  %v1667_v34 = vld [vmem:[%s1886_s15 + $0x1] ss:$0 sm:$0xff]  ;;  %v600_v48 = vmul.f32 %v596_v31, %v589_v27  ;;  %v603_v49 = vmul.f32 %v596_v31, %v591_v28 }
 0x20d   : >> { %v1666_v33 = vld [vmem:[%s1886_s15 - $0x1] sm:$0x2]  ;;  %v1669_v40 = vld [vmem:[%s1894_s2 + $0x1] sm:$0x1]  ;;  %v608_v47 = vsub.f32 %v606_v35, %v607_v36  ;;  %v611_v53 = vadd.f32 %v610_v42, %v609_v37 }
 0x20e   : >> { %v821_v38 = vsel %vm744_vm14, %v814_v32, %v1666_v33  ;;  %v825_v39 = vld [vmem:[%s1894_s2] ss:$0 sm:$0xff]  ;;  %v833_v43 = vsel %vm756_vm15, %v1667_v34, %v1669_v40  ;;  %v1671_v45 = vld [vmem:[%s1896_s3 + $0x1] ss:$0 sm:$0xff] }
 0x20f   : >> { %v838_v41 = vld [vmem:[%s1896_s3] ss:$0 sm:$0xff]  ;;  %824 = vst [vmem:[%s1886_s15] sm:$0x3] %v821_v38  ;;  %835 = vst [vmem:[%s1894_s2] sm:$0x3] %v833_v43  ;;  %v1673_v51 = vld [vmem:[%s1900_s17 + $0x1] sm:$0x1] }
 0x210   : >> { %v1670_v44 = vld [vmem:[%s1896_s3 - $0x1] sm:$0x2]  ;;  %1668 = vst [vmem:[%s1886_s15 + $0x1] sm:$0x1] %v825_v39  ;;  %v857_v54 = vsel %vm756_vm15, %v1671_v45, %v1673_v51  ;;  %614 = vst [vmem:[%s1888_s16] sm:$0x3] %v608_v47  ;;  %s761_s15 = smov [#allocation23] }
 0x211   : >> { %v849_v46 = vld [vmem:[%s1900_s17] ss:$0 sm:$0xff]  ;;  %v845_v50 = vsel %vm744_vm14, %v838_v41, %v1670_v44  ;;  %615 = vst [vmem:[%s1890_s0] sm:$0x3] %v611_v53  ;;  %s860_s16 = sadd.s32 (%p417_p1), 1, %s1737_s26   ;;  %s325_s0 = smov (%p417_p1), [#allocation20] }
 0x212   : >> { %v597_v52 = vld [vmem:[%s1902_s18] sm:$0x3]  ;;  %848 = vst [vmem:[%s1896_s3] sm:$0x3] %v845_v50  ;;  %859 = vst [vmem:[%s1900_s17] sm:$0x3] %v857_v54  ;;  %s361_s2 = smov (%p417_p1), [#allocation22]  ;;  %p413_p2 = scmp.ge.s32.totalorder (%p417_p1), %s860_s16, 15 }
 0x213   : >> { %v601_v55 = vmul.f32 %v597_v52, %v591_v28  ;;  %v604_v56 = vmul.f32 %v597_v52, %v589_v27  ;;  %1672 = vst [vmem:[%s1896_s3 + $0x1] sm:$0x1] %v849_v46  ;;  %s378_s3 = smov (%p417_p1), [#allocation23]  ;;  %s2035_s26 = smov (%p417_p1), %s860_s16 }
 0x215   : >> { %v602_v57 = vsub.f32 %v600_v48, %v601_v55  ;;  %v605_v58 = vadd.f32 %v604_v56, %v603_v49 }
 0x217   : >> { %612 = vst [vmem:[%s1892_s1] sm:$0x3] %v602_v57  ;;  %613 = vst [vmem:[%s1902_s18] sm:$0x3] %v605_v58  ;;  %v651_v60 = vld [vmem:[%s644_s20] sm:$0x3]  ;;  %s344_s1 = smov (%p417_p1), [#allocation21] }
 0x218   : >> { %v655_v61 = vsel %vm654_vm0, 0.0, %v651_v60  ;;  %v666_v62 = vld [vmem:[%s657_s21] sm:$0x3] }
 0x219   : >> { %656 = vst [vmem:[%s644_s20] sm:$0x3] %v655_v61  ;;  %v670_v0 = vsel %vm669_vm1, %v665_v59, %v666_v62 }
 0x21a   : >> { %671 = vst [vmem:[%s657_s21] sm:$0x3] %v670_v0 }
 0x21e   : >> { %v625_v1 = vld [vmem:[%s616_s23] sm:$0x3] }
 0x21f   : >> { %v638_v2 = vld [vmem:[%s631_s24] sm:$0x3]  ;;  %v629_v3 = vsel %vm628_vm3, %v624_v63, %v625_v1 }
 0x220   : >> { %v642_v4 = vsel %vm641_vm4, 0.0, %v638_v2  ;;  %630 = vst [vmem:[%s616_s23] sm:$0x3] %v629_v3  ;;  %v710_v5 = vld [vmem:[%s1944_s25] sm:$0x3] }
 0x221   : >> { %643 = vst [vmem:[%s631_s24] sm:$0x3] %v642_v4  ;;  %711 = vrot.lane.b32.xlu0 %v710_v5, %s1744_s28  ;;  %v706_v11 = vld [vmem:[%s1947_s11] sm:$0x3] }
 0x222   : >> { %v727_v12 = vld [vmem:[%s1947_s11] sm:$0x3] }
 0x223   : >> { %v709_v30 = vld [vmem:[%s1944_s25] sm:$0x3] }
 0x227   : >> { %v678_v8 = vld [vmem:[%s672_s29] sm:$0x3] }
 0x228   : >> { %679 = vrot.lane.b32.xlu1 %v678_v8, %s1744_s28  ;;  %v674_v9 = vld [vmem:[%s673_s30] sm:$0x3] }
 0x229   : >> { %v695_v10 = vld [vmem:[%s673_s30] sm:$0x3] }
 0x22a   : >> { %v677_v18 = vld [vmem:[%s672_s29] sm:$0x3] }
 0x22c   : >> { %675 = vrot.lane.b32.xlu1 %v674_v9, %s1744_s28 }
 0x230   : >> { %696 = vrot.lane.b32.xlu1 %v695_v10, %s1745_s10 }
 0x234   : >> { %707 = vrot.lane.b32.xlu1 %v706_v11, %s1744_s28 }
 0x238   : >> { %728 = vrot.lane.b32.xlu1 %v727_v12, %s1745_s10 }
 0x293   : >> { %v712_v20 = vpop.permute.xlu0 %711 }
 0x294   : >> { %v716_v22 = vsel %vm683_vm5, %v710_v5, %v712_v20 }
 0x29a   : >> { %v680_v13 = vpop.permute.xlu1 %679 }
 0x29b   : >> { %v684_v14 = vsel %vm683_vm5, %v678_v8, %v680_v13 }
 0x29e   : >> { %v676_v15 = vpop.permute.xlu1 %675 }
 0x29f   : >> { %v688_v16 = vsel %vm687_vm6, %v676_v15, %v684_v14 }
 0x2a0   : >> { %v694_v17 = vsel %vm1445_vm2, %v688_v16, 0.0 }
 0x2a1   : >> { %702 = vst [vmem:[%s672_s29] sm:$0x3] %v694_v17 }
 0x2a2   : >> { %v697_v19 = vpop.permute.xlu1 %696 }
 0x2a3   : >> { %v701_v21 = vsel %vm687_vm6, %v677_v18, %v697_v19 }
 0x2a4   : >> { %703 = vst [vmem:[%s673_s30] sm:$0x3] %v701_v21 }
 0x2a6   : >> { %v708_v23 = vpop.permute.xlu1 %707 }
 0x2a7   : >> { %v720_v24 = vsel %vm687_vm6, %v708_v23, %v716_v22 }
 0x2a8   : >> { %v738_v25 = vld [vmem:[%s736_s12] ss:$0 sm:$0xff]  ;;  %v1659_v27 = vld [vmem:[%s736_s12 + $0x1] ss:$0 sm:$0xff]  ;;  %v726_v29 = vsel %vm1445_vm2, %v720_v24, 0.0 }
 0x2a9   : >> { %v1658_v26 = vld [vmem:[%s736_s12 - $0x1] sm:$0x2]  ;;  %734 = vst [vmem:[%s1944_s25] sm:$0x3] %v726_v29 }
 0x2aa   : >> { %v745_v28 = vsel %vm744_vm14, %v738_v25, %v1658_v26  ;;  %v729_v31 = vpop.permute.xlu1 %728 }
 0x2ab   : >> { %748 = vst [vmem:[%s736_s12] sm:$0x3] %v745_v28  ;;  %v762_v32 = vld [vmem:[%s760_s13] ss:$0 sm:$0xff]  ;;  %v1663_v34 = vld [vmem:[%s760_s13 + $0x1] ss:$0 sm:$0xff]  ;;  %v733_v35 = vsel %vm687_vm6, %v709_v30, %v729_v31 }
 0x2ac   : >> { %v1662_v33 = vld [vmem:[%s760_s13 - $0x1] sm:$0x2]  ;;  %735 = vst [vmem:[%s1947_s11] sm:$0x3] %v733_v35 }
 0x2ad   : >> { %v769_v36 = vsel %vm744_vm14, %v762_v32, %v1662_v33 }
 0x2ae   : >> { %772 = vst [vmem:[%s760_s13] sm:$0x3] %v769_v36 }
 0x2b0   : >> { %v749_v37 = vld [vmem:[%s737_s14] ss:$0 sm:$0xff]  ;;  %v1661_v38 = vld [vmem:[%s737_s14 + $0x1] sm:$0x1] }
 0x2b1   : >> { %1660 = vst [vmem:[%s736_s12 + $0x1] sm:$0x1] %v749_v37  ;;  %v757_v39 = vsel %vm756_vm15, %v1659_v27, %v1661_v38  ;;  %419 = sbr.rel (!%p417_p1) target bundleno = 257 (0x101), region = 435 }
 0x2b2   : >> { %759 = vst [vmem:[%s737_s14] sm:$0x3] %v757_v39 }
 0x2b3   : >> { %v773_v40 = vld [vmem:[%s761_s15] ss:$0 sm:$0xff]  ;;  %v1665_v41 = vld [vmem:[%s761_s15 + $0x1] sm:$0x1] }
 0x2b4   : >> { %1664 = vst [vmem:[%s760_s13 + $0x1] sm:$0x1] %v773_v40  ;;  %v781_v42 = vsel %vm756_vm15, %v1663_v34, %v1665_v41 }
 0x2b5   : >> { %783 = vst [vmem:[%s761_s15] sm:$0x3] %v781_v42 }
 0x2b8   : > { %v331_v43 = vld [vmem:[%s325_s0] sm:$0x3] }
 0x2b9   : > { %v332_v45 = vsel %vm1445_vm2, %v331_v43, 0.0  ;;  %v367_v47 = vld [vmem:[%s361_s2] sm:$0x3] }
 0x2ba   : > { %v333_v49 = vmul.f32 %v332_v45, %v332_v45  ;;  %v368_v51 = vsel %vm1445_vm2, %v367_v47, 0.0 }
 0x2bb   : > { %v350_v44 = vld [vmem:[%s344_s1] sm:$0x3]  ;;  %v369_v53 = vmul.f32 %v368_v51, %v368_v51 }
 0x2bc   : > { %v351_v46 = vsel %vm1445_vm2, %v350_v44, 0.0  ;;  %v384_v48 = vld [vmem:[%s378_s3] sm:$0x3]  ;;  %v337_v56 = vsel %vm336_vm7, 0.0, %v333_v49 }
 0x2bd   : > { %v352_v50 = vmul.f32 %v351_v46, %v351_v46  ;;  %v385_v52 = vsel %vm1445_vm2, %v384_v48, 0.0 }
 0x2be   : > { %v386_v55 = vmul.f32 %v385_v52, %v385_v52 }
 0x2bf   : > { %v354_v54 = vadd.f32 %v352_v50, %v333_v49  ;;  %v353_v57 = vadd.f32 %v352_v50, %v337_v56 }
 0x2c0   : > { %v390_v60 = vsel %vm389_vm8, 0.0, %v386_v55 }
 0x2c1   : > { %v371_v58 = vadd.f32 %v369_v53, %v354_v54  ;;  %v370_v59 = vadd.f32 %v369_v53, %v353_v57 }
 0x2c3   : > { %v392_v61 = vadd.f32 %v386_v55, %v371_v58  ;;  %v391_v62 = vadd.f32 %v390_v60, %v370_v59 }
 0x2c5   : > { %393 = vadd.xlane.f32.xlu0 %v392_v61 }
 0x2c9   : > { %401 = vadd.xlane.f32.xlu0 %v391_v62 }
 0x352   : > { %v394_v63 = vpop.xlane.xlu0 %393 }
 0x353   : > { %v395_v0 = vrot.slane %v394_v63, 4 }
 0x355   : > { %v396_v1 = vadd.f32 %v395_v0, %v394_v63 }
 0x356   : > { %v402_v2 = vpop.xlane.xlu0 %401 }
 0x357   : > { %v397_v3 = vrot.slane %v396_v1, 2  ;;  %v403_v4 = vrot.slane %v402_v2, 4 }
 0x359   : > { %v404_v5 = vadd.f32 %v403_v4, %v402_v2  ;;  %v398_v8 = vadd.f32 %v397_v3, %v396_v1 }
 0x35b   : > { %v405_v9 = vrot.slane %v404_v5, 2  ;;  %v399_v11 = vrot.slane %v398_v8, 1 }
 0x35d   : > { %v406_v10 = vadd.f32 %v405_v9, %v404_v5  ;;  %v400_v14 = vadd.f32 %v399_v11, %v398_v8 }
 0x35f   : > { %v407_v12 = vrot.slane %v406_v10, 1 }
 0x361   : > { %v408_v13 = vadd.f32 %v407_v12, %v406_v10 }
 0x363   : > { %1696 = vpush %v408_v13 }
 0x364   : > { %1698 = vpush %v400_v14 }
 0x394   : > { %s1697_s27 = spop %1696 }
 0x395   : > { %s1699_s17 = spop %1698 }
 0x396   : > { %s411_s18 = smul.f32 1e-10, %s1699_s17 }
 0x398   : > { %p412_p3 = scmp.le.f32.partialorder %s1697_s27, %s411_s18 }
 0x39a   : > { %p414_p4 = por %p413_p2, %p412_p3 }
 0x39c   :  { %862 = sbr.rel (!%p414_p4) target bundleno = 256 (0x100), region = 446 }
 0x3a3 PF:  { %s863_s19 = smov [#allocation20]  ;;  %v867_v6 = vmov %v1808_v6  ;;  %v870_v7 = vmov %v1810_v7  ;;  %v918_v15 = vld [vmem:[#allocation12] sm:$0x3]  ;;  %v924_v16 = vld [vmem:[#allocation14] sm:$0x3]  ;;  %s883_s20 = smov [#allocation23] }
 0x3a4   :  { %v887_v6 = vmov %v1808_v6  ;;  %v890_v7 = vmov %v1810_v7  ;;  %v871_v17 = vld [vmem:[%s863_s19] sm:$0x3]  ;;  %vm874_vm9 = vcmp.eq.s32.totalorder %v870_v7, %v867_v6  ;;  %920 = vst [vmem:[#allocation13] sm:$0x3] %v918_v15  ;;  %926 = vst [vmem:[#allocation15] sm:$0x3] %v924_v16 }
 0x3a5   :  { %vm894_vm10 = vcmp.eq.s32.totalorder %v890_v7, %v887_v6  ;;  %v930_v18 = vld [vmem:[#allocation16] sm:$0x3]  ;;  %v875_v19 = vsel %vm874_vm9, %v871_v17, 0.0  ;;  %v891_v20 = vld [vmem:[%s883_s20] sm:$0x3]  ;;  %s864_s30 = smov [#allocation8] }
 0x3a6   :  { %932 = vst [vmem:[#allocation17] sm:$0x3] %v930_v18  ;;  %v936_v21 = vld [vmem:[#allocation18] sm:$0x3]  ;;  %v876_v22 = vrot.slane %v875_v19, 4  ;;  %v895_v23 = vsel %vm894_vm10, %v891_v20, 0.0 }
 0x3a7   :  { %938 = vst [vmem:[#allocation19] sm:$0x3] %v936_v21  ;;  %v896_v24 = vrot.slane %v895_v23, 4 }
 0x3a8   :  { %v877_v25 = vadd.f32 %v876_v22, %v875_v19 }
 0x3a9   :  { %v897_v26 = vadd.f32 %v896_v24, %v895_v23 }
 0x3aa   :  { %v878_v27 = vrot.slane %v877_v25, 2 }
 0x3ab   :  { %v898_v28 = vrot.slane %v897_v26, 2  ;;  %v1127_v29 = vld [vmem:[#allocation13] sm:$0x3]  ;;  %v1189_v30 = vld [vmem:[#allocation15] sm:$0x3] }
 0x3ac   :  { %v879_v31 = vadd.f32 %v878_v27, %v877_v25  ;;  %1128 = vst [vmem:[%s2031_s6] sm:$0x3] %v1127_v29  ;;  %1190 = vst [vmem:[%s2032_s7] sm:$0x3] %v1189_v30  ;;  %s884_s6 = smov [#allocation10] }
 0x3ad   :  { %v1251_v6 = vld [vmem:[#allocation17] sm:$0x3]  ;;  %v899_v7 = vadd.f32 %v898_v28, %v897_v26 }
 0x3ae   :  { %1252 = vst [vmem:[%s2033_s8] sm:$0x3] %v1251_v6  ;;  %v1313_v32 = vld [vmem:[#allocation19] sm:$0x3]  ;;  %v880_v33 = vrot.slane %v879_v31, 1 }
 0x3af   :  { %1314 = vst [vmem:[%s2034_s9] sm:$0x3] %v1313_v32  ;;  %v900_v34 = vrot.slane %v899_v7, 1 }
 0x3b0   :  { %v881_v35 = vadd.f32 %v880_v33, %v879_v31 }
 0x3b1   :  { %v901_v36 = vadd.f32 %v900_v34, %v899_v7 }
 0x3b2   :  { %882 = vst [vmem:[%s864_s30] sm:$0x1] %v881_v35 }
 0x3b3   :  { %902 = vst [vmem:[%s884_s6] sm:$0x1] %v901_v36 }
 0x3b9   :  { %v906_v37 = vld [vmem:[#allocation8] sm:$0x1] }
 0x3ba   :  { %908 = vst [vmem:[#allocation9] sm:$0x1] %v906_v37  ;;  %v912_v38 = vld [vmem:[#allocation10] sm:$0x1] }
 0x3bb   :  { %914 = vst [vmem:[#allocation11] sm:$0x1] %v912_v38 }
 0x3c1   :  { %v1001_v39 = vld [vmem:[#allocation9] sm:$0x1] }
 0x3c2   :  { %1002 = vst [vmem:[%s2029_s4] sm:$0x1] %v1001_v39  ;;  %v1065_v40 = vld [vmem:[#allocation11] sm:$0x1] }
 0x3c3   :  { %1066 = vst [vmem:[%s2030_s5] sm:$0x1] %v1065_v40 }

// kernel: reverse
= control target key start
LH: loop header
LB: loop body
LE: loop exit
PB: predicated region body
PF: predicated region fallthrough
CT: control target
= control target key end

     0   :  { %v2_v0 = vlaneseq  ;;  %s123_s0 = inlined_call_operand.vmem [shape: f32[4], index: 0, kind: input, shape index: {}]   ;;  %s124_s1 = inlined_call_operand.vmem [shape: f32[4], index: 1, kind: output, shape index: {}]  }
   0x2   :  { %v3_v1 = vsub.s32 3, %v2_v0 }
   0x4   :  { %4 = vset.pattern.permute.xlu0 %v3_v1 }
   0x5   :  { %v43_v2 = vld [vmem:[#allocation1] sm:$0x1]  ;;  %v21_v3 = vld [vmem:[%s123_s0] sm:$0x1]  ;;  %v58_v10 = vshrl.u32 %v2_v0, 7 }
   0x6   :  { %44 = vst [vmem:[#allocation0] sm:$0x1] %v43_v2  ;;  %22 = vst [vmem:[#allocation1 + $0x1] sm:$0x1] %v21_v3 }
   0x7   :  { %vm59_vm0 = vcmp.lt.s32.totalorder %v58_v10, 1 }
   0xd   :  { %v46_v4 = vld [vmem:[#allocation0 + $0x7] ss:$-1 sm:$0xff]  ;;  %v40_v5 = vld [vmem:[#allocation1 + $0x1] sm:$0x1] }
   0xe   :  { %v47_v6 = vrot.slane %v46_v4, 7  ;;  %42 = vst [vmem:[#allocation0 + $0x8] sm:$0x1] %v40_v5 }
  0x10   :  { %48 = vperm.xlu0 %4, %v47_v6  }
  0x15   :  { %v53_v7 = vld [vmem:[#allocation0 + $0xf] ss:$-1 sm:$0xff] }
  0x16   :  { %v54_v8 = vrot.slane %v53_v7, 7 }
  0x18   :  { %55 = vperm.xlu0 %4, %v54_v8  }
  0x8f   :  { %v49_v9 = vpop.permute.xlu0 %48 }
  0x90   :  { %50 = vst [vmem:[#allocation2] sm:$0xff] %v49_v9 }
  0x97   :  { %v56_v11 = vpop.permute.xlu0 %55 }
  0x98   :  { %60 = vst.msk [vmem:[#allocation2] sm:$0xff] %vm59_vm0, %v56_v11 }
  0x9f   :  { %v64_v12 = vld [vmem:[#allocation2] sm:$0x1] }
  0xa0   :  { %66 = vst [vmem:[#allocation3] sm:$0x1] %v64_v12 }
  0xa7   :  { %v82_v13 = vld [vmem:[#allocation3] sm:$0x1] }
  0xa8   :  { %83 = vst [vmem:[%s124_s1] sm:$0x1] %v82_v13 }

// kernel: custom-call.19
= control target key start
LH: loop header
LB: loop body
LE: loop exit
PB: predicated region body
PF: predicated region fallthrough
CT: control target
= control target key end

     0   :  { %v329_v1 = vmov 0.0   ;;  %s349_s11 = smov 0   ;;  %s405_s0 = inlined_call_operand.vmem [shape: f32[4,4], index: 0, kind: input, shape index: {}]   ;;  %s406_s1 = inlined_call_operand.vmem [shape: f32[4,4], index: 1, kind: output, shape index: {0}]   ;;  %s407_s2 = inlined_call_operand.vmem [shape: f32[4], index: 2, kind: output, shape index: {1}]  }
   0x1   :  { %v19_v0 = vld [vmem:[%s405_s0] sm:$0xf]  ;;  %41 = vst [vmem:[#allocation4] sm:$0x1] %v329_v1 }
   0x2   :  { %20 = vst [vmem:[#allocation1] sm:$0xf] %v19_v0 }
   0x9   :  { %v37_v2 = vld [vmem:[#allocation1] sm:$0xf] }
   0xa   :  { %38 = vst [vmem:[#allocation0] sm:$0xf] %v37_v2 }
  0x11   :  { %v39_v3 = vld [vmem:[#allocation0] sm:$0xff] }
  0x12   :  { %40 = vst [vmem:[#allocation2] sm:$0xff] %v39_v3 }
  0x13 LB: > { %v49_v4 = vlaneseq  ;;  %v358_v6 = vstv %s327_s11  ;;  %s76_s0 = scalar_lea.vmem [#allocation2], %s327_s11  ;;  %s112_s12 = smov [#allocation2]  ;;  %v330_v60 = vmov 1.0   ;;  %v147_v61 = vld [vmem:[#allocation4] ss:$0 sm:$0xff]  ;;  %s327_s11 = sphi %s349_s11, %s47_s11  }
  0x14   : > { %s134_s13 = scalar_lea.vmem [#allocation6], %s327_s11  ;;  %s150_s14 = smov [#allocation2] }
  0x15   : > { %v355_v5 = vshrl.u32 %v49_v4, 7  ;;  %v128_v49 = vand.u32 127, %v49_v4  ;;  %s151_s15 = smov [#allocation6] }
  0x17   : > { %vm53_vm0 = vcmp.gt.s32.totalorder %v355_v5, %v358_v6  ;;  %vm54_vm1 = vcmp.lt.s32.totalorder %v355_v5, 4  ;;  %v115_v5 = vmov %v355_v5  ;;  %vm373_vm12 = vcmp.eq.s32.totalorder %v128_v49, %v358_v6 }
  0x18   : > { %vm55_vm2 = vmand %vm53_vm0, %vm54_vm1  ;;  %vm119_vm9 = vcmp.gt.s32.totalorder %v115_v5, %v358_v6  ;;  %vm120_vm10 = vcmp.lt.s32.totalorder %v115_v5, 4  ;;  %v154_v5 = vmov %v355_v5  ;;  %vm180_vm15 = vcmp.gt.s32.totalorder %v128_v49, %v358_v6 }
  0x19   : > { %v48_v7 = vld [vmem:[#allocation2] sm:$0xff]  ;;  %v77_v16 = vld [vmem:[%s76_s0] ss:$0 sm:$0xff]  ;;  %vm121_vm11 = vmand %vm119_vm9, %vm120_vm10  ;;  %vm159_vm13 = vcmp.lt.s32.totalorder %v154_v5, 4  ;;  %v171_v5 = vmov %v355_v5 }
  0x1a   : > { %v56_v8 = vsel %vm55_vm2, %v48_v7, 0.0  ;;  %v78_v17 = vand.u32 2147483647, %v77_v16  ;;  %vm103_vm8 = vcmp.lt.f32.partialorder %v77_v16, 0.0  ;;  %v116_v46 = vld [vmem:[%s112_s12] sm:$0xff]  ;;  %vm188_vm14 = vcmp.ge.s32.totalorder %v171_v5, %v358_v6 }
  0x1b   : > { %v57_v9 = vmul.f32 %v56_v8, %v56_v8  ;;  %v122_v50 = vsel %vm121_vm11, %v116_v46, 0.0  ;;  %v157_v0 = vld [vmem:[%s150_s14] sm:$0xff]  ;;  %s167_s14 = smov %s150_s14  ;;  %vm189_vm0 = vmand %vm373_vm12, %vm188_vm14 }
  0x1c   : > { %v79_v22 = vmax.f32 %v78_v17, 0.0  ;;  %s192_s16 = scalar_lea.vmem %s167_s14, %s327_s11  ;;  %s47_s11 = sadd.s32 1, %s327_s11  }
  0x1d   : > { %v58_v10 = vrot.slane %v57_v9, 4  ;;  %p44_p0 = scmp.ge.s32.totalorder %s47_s11, 4  }
  0x1f   : > { %v59_v11 = vadd.f32 %v58_v10, %v57_v9 }
  0x21   : > { %v60_v12 = vrot.slane %v59_v11, 2 }
  0x23   : > { %v61_v13 = vadd.f32 %v60_v12, %v59_v11 }
  0x25   : > { %v62_v14 = vrot.slane %v61_v13, 1 }
  0x27   : > { %v63_v15 = vadd.f32 %v62_v14, %v61_v13  ;;  %v178_v14 = vld [vmem:[%s167_s14] sm:$0xff] }
  0x29   : > { %311 = vrsqrt.f32 %v63_v15  ;;  %vm66_vm3 = vcmp.eq.f32.partialorder %v63_v15, inf  ;;  %v69_v19 = vand.u32 2147483648, %v63_v15  ;;  %vm68_vm4 = vcmp.eq.f32.partialorder %v63_v15, 0.0 }
  0x33   : > { %v312_v18 = vpop.eup %311 }
  0x34   : > { %v65_v20 = vmul.f32 %v312_v18, %v63_v15 }
  0x36   : > { %v67_v21 = vsel %vm66_vm3, %v63_v15, %v65_v20 }
  0x37   : > { %v70_v23 = vsel %vm68_vm4, %v69_v19, %v67_v21 }
  0x38   : > { %v80_v24 = vand.u32 2147483647, %v70_v23 }
  0x3a   : > { %v81_v25 = vmax.f32 %v79_v22, %v80_v24 }
  0x3c   : > { %313 = vrcp.f32 %v81_v25  ;;  %vm93_vm7 = vcmp.eq.f32.partialorder %v81_v25, 0.0 }
  0x46   : > { %v314_v26 = vpop.eup %313 }
  0x47   : > { %v83_v27 = vmul.f32 %v314_v26, %v78_v17  ;;  %v86_v28 = vmul.f32 0.0, %v314_v26  ;;  %v90_v29 = vmul.f32 %v314_v26, %v80_v24 }
  0x49   : > { %v84_v30 = vmul.f32 %v83_v27, %v83_v27  ;;  %v87_v31 = vmul.f32 %v86_v28, %v86_v28  ;;  %v91_v32 = vmul.f32 %v90_v29, %v90_v29 }
  0x4b   : > { %v88_v33 = vadd.f32 %v87_v31, %v84_v30 }
  0x4d   : > { %v92_v34 = vadd.f32 %v91_v32, %v88_v33 }
  0x4f   : > { %315 = vrsqrt.f32 %v92_v34  ;;  %vm96_vm5 = vcmp.eq.f32.partialorder %v92_v34, inf  ;;  %v99_v36 = vand.u32 2147483648, %v92_v34  ;;  %vm98_vm6 = vcmp.eq.f32.partialorder %v92_v34, 0.0 }
  0x59   : > { %v316_v35 = vpop.eup %315 }
  0x5a   : > { %v95_v37 = vmul.f32 %v316_v35, %v92_v34 }
  0x5c   : > { %v97_v38 = vsel %vm96_vm5, %v92_v34, %v95_v37 }
  0x5d   : > { %v100_v39 = vsel %vm98_vm6, %v99_v36, %v97_v38 }
  0x5e   : > { %v101_v40 = vmul.f32 %v100_v39, %v81_v25 }
  0x60   : > { %v102_v41 = vsel %vm93_vm7, 0.0, %v101_v40 }
  0x61   : > { %v104_v42 = vxor.u32 2147483648, %v102_v41 }
  0x63   : > { %v105_v43 = vsel %vm103_vm8, %v102_v41, %v104_v42 }
  0x64   : > { %v366_v44 = vsel %vm68_vm4, %v77_v16, %v105_v43  ;;  %317 = vrcp.f32 %v105_v43  ;;  %v106_v47 = vsub.f32 %v105_v43, %v77_v16 }
  0x65   : > { %v111_v45 = vsub.f32 %v77_v16, %v366_v44 }
  0x67   : > { %319 = vrcp.f32 %v111_v45 }
  0x6e   : > { %v318_v48 = vpop.eup %317 }
  0x6f   : > { %v108_v51 = vmul.f32 %v318_v48, %v106_v47 }
  0x71   : > { %v320_v52 = vpop.eup %319  ;;  %v110_v56 = vsel %vm68_vm4, 0.0, %v108_v51 }
  0x72   : > { %v124_v53 = vmul.f32 %v320_v52, %v122_v50  ;;  %v140_v58 = vsel %vm373_vm12, %v110_v56, 0.0 }
  0x74   : > { %v125_v55 = vsel %vm68_vm4, 0.0, %v124_v53 }
  0x75   : > { %v130_v57 = vsel %vm373_vm12, %v125_v55, 0.0 }
  0x76   : > { %131 = vadd.xlane.f32.xlu0 %v130_v57 }
  0x7a   : > { %141 = vadd.xlane.f32.xlu0 %v140_v58 }
 0x103   : > { %v132_v59 = vpop.xlane.xlu0 %131 }
 0x104   : > { %133 = vst [vmem:[#allocation6] sm:$0xff] %v132_v59 }
 0x105   : > { %135 = vst [vmem:[%s134_s13] sm:$0x1] %v330_v60 }
 0x107   : > { %v142_v62 = vpop.xlane.xlu0 %141 }
 0x108   : > { %v148_v63 = vsel %vm373_vm12, %v142_v62, %v147_v61 }
 0x109   : > { %149 = vst [vmem:[#allocation4] sm:$0x1] %v148_v63 }
 0x10c   : > { %v156_v1 = vld [vmem:[%s151_s15] sm:$0xff]  ;;  %s168_s15 = smov %s151_s15 }
 0x10d   : > { %v158_v2 = vmul.f32 %v157_v0, %v156_v1  ;;  %v176_v13 = vld [vmem:[%s168_s15] sm:$0xff] }
 0x10f   : > { %v160_v3 = vsel %vm159_vm13, %v158_v2, 0.0 }
 0x110   : > { %v161_v4 = vrot.slane %v160_v3, 4  ;;  %v209_v6 = vld [vmem:[#allocation4] sm:$0x1] (%p44_p0) }
 0x111   :  { %211 = vst [vmem:[#allocation5] sm:$0x1] (%p44_p0), %v209_v6 }
 0x112   : > { %v162_v7 = vadd.f32 %v161_v4, %v160_v3 }
 0x114   : > { %v163_v8 = vrot.slane %v162_v7, 2 }
 0x116   : > { %v164_v9 = vadd.f32 %v163_v8, %v162_v7 }
 0x118   : > { %v165_v10 = vrot.slane %v164_v9, 1  ;;  %v260_v22 = vld [vmem:[#allocation5] sm:$0x1] (%p44_p0) }
 0x119   :  { %261 = vst [vmem:[%s407_s2] sm:$0x1] (%p44_p0), %v260_v22 }
 0x11a   : > { %v166_v11 = vadd.f32 %v165_v10, %v164_v9 }
 0x11c   : > { %v172_v12 = vmul.f32 %v166_v11, %v142_v62 }
 0x11e   : > { %v177_v15 = vmul.f32 %v176_v13, %v172_v12 }
 0x120   : > { %v181_v16 = vsub.f32 %v178_v14, %v177_v15 }
 0x122   : > { %v182_v17 = vsel %vm180_vm15, %v181_v16, %v178_v14 }
 0x123   : > { %v190_v18 = vsel %vm189_vm0, %v176_v13, %v182_v17 }
 0x124   : > { %191 = vst [vmem:[%s167_s14] sm:$0xff] %v190_v18 }
 0x127   :  { %46 = sbr.rel (!%p44_p0) target bundleno = 19 (0x13), region = 131 }
 0x12b   : > { %v193_v19 = vld [vmem:[%s192_s16] ss:$0 sm:$0xff] }
 0x12c   : > { %v198_v20 = vsel %vm373_vm12, %v366_v44, %v193_v19 }
 0x12d   : > { %199 = vst [vmem:[%s192_s16] sm:$0x1] %v198_v20 }
 0x134   :  { %v203_v5 = vld [vmem:[#allocation2] sm:$0xf] }
 0x135   :  { %205 = vst [vmem:[#allocation3] sm:$0xf] %v203_v5 }
 0x13c   :  { %v227_v21 = vld [vmem:[#allocation3] sm:$0xf] }
 0x13d   :  { %228 = vst [vmem:[%s406_s1] sm:$0xf] %v227_v21 }

// kernel: _lambda_.2
= control target key start
LH: loop header
LB: loop body
LE: loop exit
PB: predicated region body
PF: predicated region fallthrough
CT: control target
= control target key end

     0   :  { %s2785_s21 = smov 0   ;;  %s3147_s0 = inlined_call_operand.vmem [shape: f32[2,8,16], index: 0, kind: input, shape index: {}]   ;;  %s3148_s1 = inlined_call_operand.vmem [shape: bf16[16,32], index: 1, kind: input, shape index: {}]   ;;  %s3149_s2 = inlined_call_operand.vmem [shape: f32[1,32], index: 2, kind: input, shape index: {}]   ;;  %s3150_s3 = inlined_call_operand.vmem [shape: f32[8,32], index: 3, kind: input, shape index: {}]   ;;  %s3151_s4 = inlined_call_operand.vmem [shape: bf16[2,32,96], index: 4, kind: input, shape index: {}]   ;;  %s3152_s5 = inlined_call_operand.vmem [shape: f32[2,1,96], index: 5, kind: input, shape index: {}]   ;;  %s3153_s6 = inlined_call_operand.vmem [shape: bf16[2,32,32], index: 6, kind: input, shape index: {}]   ;;  %s3154_s7 = inlined_call_operand.vmem [shape: f32[2,1,32], index: 7, kind: input, shape index: {}]   ;;  %s3155_s8 = inlined_call_operand.vmem [shape: f32[2,1,32], index: 8, kind: input, shape index: {}]   ;;  %s3156_s9 = inlined_call_operand.vmem [shape: f32[2,1,32], index: 9, kind: input, shape index: {}]   ;;  %s3157_s10 = inlined_call_operand.vmem [shape: bf16[2,32,64], index: 10, kind: input, shape index: {}]   ;;  %s3158_s11 = inlined_call_operand.vmem [shape: f32[2,1,64], index: 11, kind: input, shape index: {}]   ;;  %s3159_s12 = inlined_call_operand.vmem [shape: bf16[2,64,32], index: 12, kind: input, shape index: {}]   ;;  %s3160_s13 = inlined_call_operand.vmem [shape: f32[2,1,32], index: 13, kind: input, shape index: {}]   ;;  %s3161_s14 = inlined_call_operand.vmem [shape: f32[2,1,32], index: 14, kind: input, shape index: {}]   ;;  %s3162_s15 = inlined_call_operand.vmem [shape: f32[2,1,32], index: 15, kind: input, shape index: {}]   ;;  %s3163_s16 = inlined_call_operand.vmem [shape: bf16[2,8,32], index: 16, kind: output, shape index: {}]  }
   0x1   :  { %3173 = sst [smem:[#allocation2_spill]] %s3147_s0 }
   0x2 LB: > { %s2255_s22 = sadd.s32 4294967295, %s2682_s21   ;;  %p2259_p0 = scmp.ge.s32.totalorder %s2682_s21, 1  ;;  %s2682_s21 = sphi %s2785_s21, %s26_s21  }
   0x3   : > { %p461_p1 = scmp.lt.s32.totalorder %s2682_s21, 3 }
   0x5   : > { %p462_p2 = pnand %p2259_p0, %p461_p1 }
   0x6   : > { %v2615_v0 = vld [vmem:[%s3148_s1] sm:$0xff] (!%p462_p2)   ;;  %v2684_v1 = vmov (!%p462_p2), 0.0   ;;  %p509_p3 = scmp.lt.s32.totalorder (!%p462_p2), %s2255_s22, 1  ;;  %vm2685_vm0 = vmmov (!%p462_p2), 0   ;;  %s3174_s28 = sld [smem:[#allocation2_spill]] (!%p462_p2)  ;;  %vm535_vm1 = vcmask (!%p462_p2), 130048  }
   0x7   : > { %465 = sbr.rel (%p462_p2) target bundleno = 5317 (0x14c5), region = 84  ;;  %2417 = vmatprep.subr.bf16.mxu0 (!%p462_p2), %v2684_v1  ;;  %2437 = vmatprep.subr.bf16.mxu1 (!%p462_p2), %v2684_v1  ;;  %v2616_v4 = vld [vmem:[%s3151_s4] sm:$0xff] (!%p462_p2)   ;;  %v2617_v5 = vld [vmem:[%s3151_s4 + $0x8] sm:$0xff] (!%p462_p2)   ;;  %vm605_vm2 = vcmask (!%p462_p2), 261120   ;;  %s2686_s27 = smov (!%p462_p2), 120   ;;  %vm653_vm3 = vcmask (!%p462_p2), 64512  }
   0x8   : > { %2418 = vmatpush3.bf16.msra.mxu0 (!%p462_p2), %v2615_v0  ;;  %2419 = vmatprep.mubr.msk.bf16.mxu0 (!%p462_p2), %vm2685_vm0, %v2684_v1  ;;  %v2262_v6 = vld [vmem:[%s3149_s2] ss:$0 sm:$0xff] (!%p462_p2)  ;;  %s2689_s30 = smov (!%p462_p2), 88   ;;  %s3171_s0 = smov (!%p462_p2), 72   ;;  %vm717_vm4 = vcmask (!%p462_p2), 1043456   ;;  %vm1105_vm5 = vcmask (!%p462_p2), 195584  }
   0x9   : > { %2423 = vmatprep.subr.bf16.mxu0 (!%p462_p2), %v2684_v1  ;;  %2439 = vmatprep.mubr.msk.bf16.mxu1 (!%p462_p2), %vm2685_vm0, %v2684_v1  ;;  %v579_v8 = vld [vmem:[%s3150_s3] sm:$0xff] (!%p462_p2)  ;;  %s2691_s17 = smov (!%p462_p2), 112   ;;  %s2692_s18 = smov (!%p462_p2), 104   ;;  %vm1313_vm6 = vcmask (!%p462_p2), 523264   ;;  %vm2200_vm7 = vcmask (!%p462_p2), 257024  }
   0xa   : > { %v2265_v15 = vld [vmem:[%s3152_s5] ss:$0 sm:$0xff] (!%p462_p2)  ;;  %s3167_s19 = smov (!%p462_p2), 56   ;;  %s3166_s20 = smov (!%p462_p2), 64  }
   0xb   : > { %s3165_s23 = smov (!%p462_p2), 40   ;;  %s3164_s24 = smov (!%p462_p2), 48  }
   0xe   : > { %s3185_s22 = smov (!%p509_p3, %s2255_s22), 1 }
   0xf   : > { %s2260_s25 = sshll.u32 %s3185_s22, 3 }
  0x10   : > { %s512_s29 = scalar_lea.vmem %s3174_s28, %s2260_s25  ;;  %s2687_s28 = smov 96  }
  0x11   : > { %v518_v2 = vld [vmem:[%s512_s29] sm:$0xff]  ;;  %s3172_s29 = smov 80   ;;  %s3170_s25 = smov 8  }
  0x12   : > { %v519_v3 = vpack.c.bf16 %v518_v2, %v518_v2 }
  0x14   : > { %2420 = vmatmul.mubr.msk.bf16.vlgmr.msra.gmra.mrb[0].mxu0 %vm535_vm1, %v519_v3 }
  0x15   : > { %2427 = vmatprep.mubr.msk.bf16.mxu0 %vm2685_vm0, %v2684_v1  ;;  %2424 = vmatpush3.bf16.msra.mxu0 %v2616_v4 }
  0x16   : > { %2425 = vmatprep.subr.bf16.mxu0 %v2684_v1 }
  0x19   : > { %2426 = vmatpush3.bf16.msra.mxu0 %v2617_v5 }
  0x1a   : > { %2431 = vmatprep.subr.bf16.mxu0 %v2684_v1 }
  0xe7   : > { %v573_v7 = vpop.f32.mrb[0].mxu0 }
  0xe8   : > { %v574_v9 = vadd.f32 %v2262_v6, %v573_v7  ;;  %v2421_v10 = vpop.f32.mrb[1].mxu0 }
  0xe9   : > { %v576_v11 = vpop.f32.mrb[2].mxu0 }
  0xea   : > { %v2826_v12 = vadd.f32 %v579_v8, %v574_v9  ;;  %v2422_v13 = vpop.f32.mrb[3].mxu0 }
  0xec   : > { %v581_v14 = vpack.c.bf16 %v2826_v12, %v2826_v12 }
  0xee   : > { %2428 = vmatmul.mubr.msk.bf16.vlgmr.msra.gmra.mrb[4].mxu0 %vm605_vm2, %v581_v14 }
  0xef   : > { %2433 = vmatprep.mubr.msk.bf16.mxu0 %vm2685_vm0, %v2684_v1 }
 0x1c1   : > { %v643_v16 = vpop.f32.mrb[4].mxu0 }
 0x1c2   : > { %v644_v17 = vadd.f32 %v2265_v15, %v643_v16  ;;  %v2429_v18 = vpop.f32.mrb[5].mxu0 }
 0x1c3   : > { %v646_v19 = vpop.f32.mrb[6].mxu0 }
 0x1c4   : > { %v2836_v20 = vpack.c.bf16 %v644_v17, %v644_v17  ;;  %v2430_v21 = vpop.f32.mrb[7].mxu0 }
 0x1c6   : > { %761 = vrot.lane.b32.xlu1 %v2836_v20, %s2686_s27  ;;  %651 = vrot.lane.b32.xlu0 %v2836_v20, %s2687_s28 }
 0x1ca   : > { %873 = vrot.lane.b32.xlu1 %v2836_v20, %s3172_s29  ;;  %763 = vrot.lane.b32.xlu0 %v2836_v20, %s2689_s30  ;;  %s3182_s29 = smov 16  }
 0x1ce   : > { %983 = vrot.lane.b32.xlu1 %v2836_v20, %s3171_s0  ;;  %871 = vrot.lane.b32.xlu0 %v2836_v20, %s2691_s17  ;;  %s3183_s0 = smov 24  }
 0x1d2   : > { %981 = vrot.lane.b32.xlu0 %v2836_v20, %s2692_s18 }
 0x238   : > { %v652_v22 = vpop.permute.xlu0 %651  ;;  %v762_v25 = vpop.permute.xlu1 %761 }
 0x239   : > { %v658_v23 = vsel %vm653_vm3, %v652_v22, 0 }
 0x23a   : > { %2432 = vmatpush3.bf16.xpose.msra.mxu0 %v658_v23 }
 0x23b   : > { %2443 = vmatprep.subr.bf16.mxu0 %v2684_v1 }
 0x23c   : > { %v764_v24 = vpop.permute.xlu0 %763  ;;  %v874_v27 = vpop.permute.xlu1 %873 }
 0x23d   : > { %v769_v26 = vsel %vm653_vm3, %v764_v24, 0  ;;  %v879_v28 = vsel %vm653_vm3, %v874_v27, 0 }
 0x240   : > { %v984_v29 = vpop.permute.xlu1 %983  ;;  %v872_v30 = vpop.permute.xlu0 %871 }
 0x241   : > { %2434 = vmatmul.mubr.msk.bf16.vlgmr.msra.gmra.mrb[8].mxu0 %vm653_vm3, %v2836_v20  ;;  %v989_v31 = vsel %vm653_vm3, %v984_v29, 0 }
 0x242   : > { %2444 = vmatpush3.bf16.xpose.msra.mxu0 %v769_v26  ;;  %2445 = vmatprep.mubr.msk.bf16.mxu0 %vm2685_vm0, %v2684_v1 }
 0x243   : > { %2455 = vmatprep.subr.bf16.mxu0 %v2684_v1 }
 0x244   : > { %v982_v32 = vpop.permute.xlu0 %981 }
 0x249   : > { %2446 = vmatmul.mubr.msk.bf16.vlgmr.msra.gmra.mrb[12].mxu0 %vm653_vm3, %v762_v25 }
 0x24a   : > { %2456 = vmatpush3.bf16.xpose.msra.mxu0 %v879_v28  ;;  %2457 = vmatprep.mubr.msk.bf16.mxu0 %vm2685_vm0, %v2684_v1 }
 0x24b   : > { %2467 = vmatprep.subr.bf16.mxu0 %v2684_v1 }
 0x251   : > { %2458 = vmatmul.mubr.msk.bf16.vlgmr.msra.gmra.mrb[16].mxu0 %vm653_vm3, %v872_v30 }
 0x252   : > { %2468 = vmatpush3.bf16.xpose.msra.mxu0 %v989_v31  ;;  %2469 = vmatprep.mubr.msk.bf16.mxu0 %vm2685_vm0, %v2684_v1 }
 0x253   : > { %2479 = vmatprep.subr.bf16.mxu0 %v2684_v1 }
 0x259   : > { %2470 = vmatmul.mubr.msk.bf16.vlgmr.msra.gmra.mrb[20].mxu0 %vm653_vm3, %v982_v32 }
 0x25a   : > { %2483 = vmatprep.mubr.msk.bf16.mxu0 %vm2685_vm0, %v2684_v1 }
 0x314   : > { %v694_v33 = vpop.f32.mrb[8].mxu0 }
 0x315   : > { %v2435_v34 = vpop.f32.mrb[9].mxu0  ;;  %v700_v35 = vsel %vm653_vm3, %v694_v33, -inf }
 0x316   : > { %701 = vmax.xlane.f32.xlu1 %v700_v35  ;;  %v697_v36 = vpop.f32.mrb[10].mxu0 }
 0x317   : > { %v2436_v37 = vpop.f32.mrb[11].mxu0 }
 0x31c   : > { %v805_v38 = vpop.f32.mrb[12].mxu0 }
 0x31d   : > { %v2447_v39 = vpop.f32.mrb[13].mxu0  ;;  %v811_v40 = vsel %vm653_vm3, %v805_v38, -inf }
 0x31e   : > { %812 = vmax.xlane.f32.xlu0 %v811_v40  ;;  %v808_v41 = vpop.f32.mrb[14].mxu0 }
 0x31f   : > { %v2448_v42 = vpop.f32.mrb[15].mxu0 }
 0x324   : > { %v915_v43 = vpop.f32.mrb[16].mxu0 }
 0x325   : > { %v2459_v44 = vpop.f32.mrb[17].mxu0  ;;  %v921_v45 = vsel %vm653_vm3, %v915_v43, -inf }
 0x326   : > { %922 = vmax.xlane.f32.xlu0 %v921_v45  ;;  %v918_v46 = vpop.f32.mrb[18].mxu0  ;;  %v2619_v44 = vld [vmem:[%s3153_s6 + $0x8] sm:$0xff]  }
 0x327   : > { %v2460_v47 = vpop.f32.mrb[19].mxu0 }
 0x32c   : > { %v1025_v48 = vpop.f32.mrb[20].mxu0 }
 0x32d   : > { %v2471_v49 = vpop.f32.mrb[21].mxu0  ;;  %v1031_v50 = vsel %vm653_vm3, %v1025_v48, -inf }
 0x32e   : > { %1032 = vmax.xlane.f32.xlu1 %v1031_v50  ;;  %v1028_v51 = vpop.f32.mrb[22].mxu0 }
 0x32f   : > { %v2472_v52 = vpop.f32.mrb[23].mxu0 }
 0x3a3   : > { %v702_v53 = vpop.xlane.xlu1 %701 }
 0x3a4   : > { %v703_v54 = vsub.f32 %v694_v33, %v702_v53 }
 0x3a6   : > { %v704_v55 = vmul.f32 1.442695, %v703_v54 }
 0x3a8   : > { %2636 = vpow2.f32 %v704_v55 }
 0x3ab   : > { %v813_v56 = vpop.xlane.xlu0 %812 }
 0x3ac   : > { %v814_v57 = vsub.f32 %v805_v38, %v813_v56 }
 0x3ae   : > { %v815_v58 = vmul.f32 1.442695, %v814_v57 }
 0x3b0   : > { %2638 = vpow2.f32 %v815_v58 }
 0x3b2   : > { %v2637_v59 = vpop.eup %2636 }
 0x3b3   : > { %v923_v60 = vpop.xlane.xlu0 %922  ;;  %v706_v61 = vsel %vm653_vm3, %v2637_v59, 0.0 }
 0x3b4   : > { %v924_v62 = vsub.f32 %v915_v43, %v923_v60  ;;  %707 = vadd.xlane.f32.xlu0 %v706_v61  ;;  %v2618_v43 = vld [vmem:[%s3153_s6] sm:$0xff]  }
 0x3b5   : > { %2480 = vmatpush3.bf16.msra.mxu0 %v2618_v43  ;;  %v2277_v60 = vld [vmem:[%s3154_s7] ss:$0 sm:$0xff] }
 0x3b6   : > { %v925_v63 = vmul.f32 1.442695, %v924_v62  ;;  %2481 = vmatprep.subr.bf16.mxu0 %v2684_v1 }
 0x3b8   : > { %2640 = vpow2.f32 %v925_v63 }
 0x3b9   : > { %2482 = vmatpush3.bf16.msra.mxu0 %v2619_v44 }
 0x3ba   : > { %v2639_v0 = vpop.eup %2638  ;;  %2495 = vmatprep.subr.bf16.mxu0 %v2684_v1 }
 0x3bb   : > { %v817_v2 = vsel %vm653_vm3, %v2639_v0, 0.0  ;;  %v1033_v5 = vpop.xlane.xlu1 %1032 }
 0x3bc   : > { %818 = vadd.xlane.f32.xlu1 %v817_v2  ;;  %v1034_v6 = vsub.f32 %v1025_v48, %v1033_v5 }
 0x3be   : > { %v1035_v7 = vmul.f32 1.442695, %v1034_v6 }
 0x3c0   : > { %2642 = vpow2.f32 %v1035_v7 }
 0x3c2   : > { %v2641_v3 = vpop.eup %2640 }
 0x3c3   : > { %v927_v4 = vsel %vm653_vm3, %v2641_v3, 0.0 }
 0x3c4   : > { %928 = vadd.xlane.f32.xlu0 %v927_v4 }
 0x3ca   : > { %v2643_v8 = vpop.eup %2642 }
 0x3cb   : > { %v1037_v9 = vsel %vm653_vm3, %v2643_v8, 0.0 }
 0x3cd   : > { %823 = vrot.lane.b32.xlu1 %v2836_v20, %s3167_s19  ;;  %s3169_s19 = smov 16  }
 0x3da   : > { %712 = vrot.lane.b32.xlu0 %v2836_v20, %s3166_s20  ;;  %s3175_s20 = smov 80  }
 0x3de   : > { %1043 = vrot.lane.b32.xlu0 %v2836_v20, %s3165_s23  ;;  %s3176_s23 = smov 72  }
 0x3f1   : > { %1038 = vadd.xlane.f32.xlu1 %v1037_v9 }
 0x402   : > { %933 = vrot.lane.b32.xlu1 %v2836_v20, %s3164_s24  ;;  %s3168_s24 = smov 24  }
 0x441   : > { %v708_v10 = vpop.xlane.xlu0 %707 }
 0x442   : > { %2644 = vrcp.f32 %v708_v10  ;;  %v2620_v10 = vld [vmem:[%s3157_s10] sm:$0xff]  }
 0x449   : > { %v819_v11 = vpop.xlane.xlu1 %818 }
 0x44a   : > { %2646 = vrcp.f32 %v819_v11  ;;  %v2622_v11 = vld [vmem:[%s3159_s12] sm:$0xff]  }
 0x44c   : > { %v2645_v13 = vpop.eup %2644 }
 0x44d   : > { %v710_v15 = vmul.f32 %v2645_v13, %v2637_v59  ;;  %v824_v18 = vpop.permute.xlu1 %823  ;;  %v2623_v13 = vld [vmem:[%s3159_s12 + $0x8] sm:$0xff]  }
 0x44e   : > { %v829_v22 = vsel %vm717_vm4, %v824_v18, 0  ;;  %v2281_v18 = vld [vmem:[%s3155_s8] ss:$0 sm:$0xff] }
 0x44f   : > { %v711_v19 = vpack.c.bf16 %v710_v15, %v710_v15 }
 0x451   : > { %v929_v14 = vpop.xlane.xlu0 %928 }
 0x452   : > { %2648 = vrcp.f32 %v929_v14 }
 0x454   : > { %v2647_v21 = vpop.eup %2646 }
 0x455   : > { %v713_v16 = vpop.permute.xlu0 %712  ;;  %v821_v20 = vmul.f32 %v2647_v21, %v2639_v0  ;;  %v2282_v21 = vld [vmem:[%s3156_s9] ss:$0 sm:$0xff] }
 0x456   : > { %v719_v17 = vsel %vm717_vm4, %v713_v16, 0 }
 0x457   : > { %2438 = vmatpush3.bf16.msra.mxu1 %v719_v17  ;;  %v822_v23 = vpack.c.bf16 %v821_v20, %v821_v20 }
 0x458   : > { %2449 = vmatprep.subr.bf16.mxu1 %v2684_v1 }
 0x459   : > { %v1044_v29 = vpop.permute.xlu0 %1043 }
 0x45a   : > { %2440 = vmatmul.mubr.msk.bf16.vlgmr.msra.gmra.mrb[0].mxu1 %vm653_vm3, %v711_v19  ;;  %v1049_v31 = vsel %vm717_vm4, %v1044_v29, 0 }
 0x45b   : > { %2450 = vmatpush3.bf16.msra.mxu1 %v829_v22  ;;  %2451 = vmatprep.mubr.msk.bf16.mxu1 %vm2685_vm0, %v2684_v1 }
 0x45c   : > { %2461 = vmatprep.subr.bf16.mxu1 %v2684_v1  ;;  %v2649_v24 = vpop.eup %2648 }
 0x45d   : > { %v931_v26 = vmul.f32 %v2649_v24, %v2641_v3  ;;  %v2624_v24 = vld [vmem:[%s3159_s12 + $0x10] sm:$0xff]  }
 0x45f   : > { %v932_v30 = vpack.c.bf16 %v931_v26, %v931_v26  ;;  %v2283_v26 = vld [vmem:[%s3158_s11] ss:$0 sm:$0xff] }
 0x462   : > { %2452 = vmatmul.mubr.msk.bf16.vlgmr.msra.gmra.mrb[4].mxu1 %vm653_vm3, %v822_v23 }
 0x463   : > { %2463 = vmatprep.mubr.msk.bf16.mxu1 %vm2685_vm0, %v2684_v1 }
 0x47e   : > { %v1039_v25 = vpop.xlane.xlu1 %1038 }
 0x47f   : > { %2650 = vrcp.f32 %v1039_v25  ;;  %v2625_v25 = vld [vmem:[%s3159_s12 + $0x18] sm:$0xff]  }
 0x482   : > { %v934_v27 = vpop.permute.xlu1 %933 }
 0x483   : > { %v939_v28 = vsel %vm717_vm4, %v934_v27, 0 }
 0x484   : > { %2462 = vmatpush3.bf16.msra.mxu1 %v939_v28 }
 0x485   : > { %2473 = vmatprep.subr.bf16.mxu1 %v2684_v1 }
 0x487   : > { %2464 = vmatmul.mubr.msk.bf16.vlgmr.msra.gmra.mrb[8].mxu1 %vm653_vm3, %v932_v30 }
 0x488   : > { %2474 = vmatpush3.bf16.msra.mxu1 %v1049_v31  ;;  %2475 = vmatprep.mubr.msk.bf16.mxu1 %vm2685_vm0, %v2684_v1 }
 0x489   : > { %v2651_v32 = vpop.eup %2650  ;;  %2487 = vmatprep.subr.bf16.mxu1 %v2684_v1 }
 0x48a   : > { %v1041_v33 = vmul.f32 %v2651_v32, %v2643_v8 }
 0x48c   : > { %v1042_v34 = vpack.c.bf16 %v1041_v33, %v1041_v33 }
 0x48f   : > { %2476 = vmatmul.mubr.msk.bf16.vlgmr.msra.gmra.mrb[12].mxu1 %vm653_vm3, %v1042_v34  ;;  %v2287_v34 = vld [vmem:[%s3160_s13] ss:$0 sm:$0xff] }
 0x490   : > { %2491 = vmatprep.mubr.msk.bf16.mxu1 %vm2685_vm0, %v2684_v1  ;;  %2488 = vmatpush3.bf16.msra.mxu1 %v2620_v10 }
 0x491   : > { %2489 = vmatprep.subr.bf16.mxu1 %v2684_v1 }
 0x52d   : > { %v755_v35 = vpop.f32.mrb[0].mxu1 }
 0x52e   : > { %v2441_v36 = vpop.f32.mrb[1].mxu1 }
 0x52f   : > { %v758_v37 = vpop.f32.mrb[2].mxu1 }
 0x530   : > { %v2442_v38 = vpop.f32.mrb[3].mxu1 }
 0x535   : > { %v865_v39 = vpop.f32.mrb[4].mxu1 }
 0x536   : > { %1092 = vrot.lane.b32.xlu1 %v865_v39, %s3170_s25  ;;  %v2453_v40 = vpop.f32.mrb[5].mxu1 }
 0x537   : > { %v868_v41 = vpop.f32.mrb[6].mxu1 }
 0x538   : > { %v2454_v42 = vpop.f32.mrb[7].mxu1 }
 0x55a   : > { %v975_v45 = vpop.f32.mrb[8].mxu1 }
 0x55b   : > { %1096 = vrot.lane.b32.xlu0 %v975_v45, %s3169_s19  ;;  %v2465_v46 = vpop.f32.mrb[9].mxu1 }
 0x55c   : > { %v978_v47 = vpop.f32.mrb[10].mxu1 }
 0x55d   : > { %v2466_v48 = vpop.f32.mrb[11].mxu1  ;;  %v2626_v47 = vld [vmem:[%s3151_s4 + $0x10] sm:$0xff]  }
 0x55e   : > { %v2627_v48 = vld [vmem:[%s3151_s4 + $0x18] sm:$0xff]  }
 0x562   : > { %v1085_v49 = vpop.f32.mrb[12].mxu1 }
 0x563   : > { %1100 = vrot.lane.b32.xlu1 %v1085_v49, %s3168_s24  ;;  %v2477_v50 = vpop.f32.mrb[13].mxu1 }
 0x564   : > { %v1088_v51 = vpop.f32.mrb[14].mxu1 }
 0x565   : > { %v2478_v52 = vpop.f32.mrb[15].mxu1 }
 0x5a8   : > { %v1093_v53 = vpop.permute.xlu1 %1092 }
 0x5a9   : > { %v1103_v55 = vsel %vm653_vm3, %v755_v35, %v1093_v53  ;;  %v2293_v53 = vld [vmem:[%s3161_s14] ss:$0 sm:$0xff] }
 0x5cd   : > { %v1097_v54 = vpop.permute.xlu0 %1096 }
 0x5ce   : > { %v1104_v56 = vsel %vm535_vm1, %v1103_v55, %v1097_v54  ;;  %v2294_v55 = vld [vmem:[%s3162_s15] ss:$0 sm:$0xff] }
 0x5d5   : > { %v1101_v57 = vpop.permute.xlu1 %1100 }
 0x5d6   : > { %v1106_v58 = vsel %vm1105_vm5, %v1104_v56, %v1101_v57 }
 0x5d7   : > { %v1107_v59 = vpack.c.bf16 %v1106_v58, %v1106_v58 }
 0x5d9   : > { %2484 = vmatmul.mubr.msk.bf16.vlgmr.msra.gmra.mrb[24].mxu0 %vm605_vm2, %v1107_v59  ;;  %v2300_v59 = vld [vmem:[%s3152_s5 + $0x1] ss:$0 sm:$0xff] }
 0x5da   : > { %2503 = vmatprep.mubr.msk.bf16.mxu0 %vm2685_vm0, %v2684_v1  ;;  %2496 = vmatpush3.bf16.msra.mxu0 %v2622_v11 }
 0x5db   : > { %2497 = vmatprep.subr.bf16.mxu0 %v2684_v1 }
 0x5de   : > { %2498 = vmatpush3.bf16.msra.mxu0 %v2623_v13 }
 0x5df   : > { %2499 = vmatprep.subr.bf16.mxu0 %v2684_v1 }
 0x5e2   : > { %2500 = vmatpush3.bf16.msra.mxu0 %v2624_v24 }
 0x5e3   : > { %2501 = vmatprep.subr.bf16.mxu0 %v2684_v1 }
 0x5e6   : > { %2502 = vmatpush3.bf16.msra.mxu0 %v2625_v25 }
 0x5e7   : > { %2521 = vmatprep.subr.bf16.mxu0 %v2684_v1 }
 0x6ac   : > { %v1168_v61 = vpop.f32.mrb[24].mxu0 }
 0x6ad   : > { %v1169_v62 = vadd.f32 %v2277_v60, %v1168_v61  ;;  %v2485_v63 = vpop.f32.mrb[25].mxu0 }
 0x6ae   : > { %v1171_v0 = vpop.f32.mrb[26].mxu0 }
 0x6af   : > { %v2486_v2 = vpop.f32.mrb[27].mxu0  ;;  %v1174_v3 = vadd.f32 %v1169_v62, %v2826_v12  ;;  %v2621_v12 = vld [vmem:[%s3157_s10 + $0x8] sm:$0xff]  }
 0x6b0   : > { %2490 = vmatpush3.bf16.msra.mxu1 %v2621_v12 }
 0x6b1   : > { %v1177_v4 = vsel %vm605_vm2, %v1174_v3, 0.0  ;;  %2507 = vmatprep.subr.bf16.mxu1 %v2684_v1 }
 0x6b2   : > { %1178 = vadd.xlane.f32.xlu0 %v1177_v4 }
 0x73f   : > { %v1179_v5 = vpop.xlane.xlu0 %1178 }
 0x740   : > { %v1181_v6 = vmul.f32 0.03125, %v1179_v5 }
 0x742   : > { %v1182_v7 = vsub.f32 %v1174_v3, %v1181_v6 }
 0x744   : > { %v1183_v8 = vmul.f32 %v1182_v7, %v1182_v7 }
 0x746   : > { %v1184_v9 = vsel %vm605_vm2, %v1183_v8, 0.0 }
 0x747   : > { %1185 = vadd.xlane.f32.xlu1 %v1184_v9 }
 0x7d4   : > { %v1186_v14 = vpop.xlane.xlu1 %1185 }
 0x7d5   : > { %v1187_v15 = vmul.f32 0.03125, %v1186_v14 }
 0x7d7   : > { %v1188_v16 = vadd.f32 1e-05, %v1187_v15 }
 0x7d9   : > { %2652 = vrsqrt.f32 %v1188_v16 }
 0x7e3   : > { %v2653_v17 = vpop.eup %2652 }
 0x7e4   : > { %v1190_v19 = vmul.f32 %v2653_v17, %v1182_v7 }
 0x7e6   : > { %v1197_v22 = vmul.f32 %v2281_v18, %v1190_v19 }
 0x7e8   : > { %v1204_v20 = vadd.f32 %v2282_v21, %v1197_v22 }
 0x7ea   : > { %v1205_v23 = vpack.c.bf16 %v1204_v20, %v1204_v20 }
 0x7ec   : > { %2492 = vmatmul.mubr.msk.bf16.vlgmr.msra.gmra.mrb[16].mxu1 %vm605_vm2, %v1205_v23 }
 0x7ed   : > { %2511 = vmatprep.mubr.msk.bf16.mxu1 %vm2685_vm0, %v2684_v1  ;;  %2508 = vmatpush3.bf16.msra.mxu1 %v2626_v47 }
 0x7ee   : > { %2509 = vmatprep.subr.bf16.mxu1 %v2684_v1 }
 0x7f1   : > { %2510 = vmatpush3.bf16.msra.mxu1 %v2627_v48 }
 0x7f2   : > { %2515 = vmatprep.subr.bf16.mxu1 %v2684_v1 }
 0x8bf   : > { %v1266_v27 = vpop.f32.mrb[16].mxu1 }
 0x8c0   : > { %v1267_v28 = vadd.f32 %v2283_v26, %v1266_v27  ;;  %v2493_v29 = vpop.f32.mrb[17].mxu1 }
 0x8c1   : > { %v1269_v30 = vpop.f32.mrb[18].mxu1 }
 0x8c2   : > { %v1272_v31 = vmax.f32 %v1267_v28, 0.0  ;;  %v2494_v32 = vpop.f32.mrb[19].mxu1 }
 0x8c4   : > { %v1273_v33 = vpack.c.bf16 %v1272_v31, %v1272_v31 }
 0x8c6   : > { %2504 = vmatmul.mubr.msk.bf16.vlgmr.msra.gmra.mrb[28].mxu0 %vm1313_vm6, %v1273_v33 }
 0x8c7   : > { %2523 = vmatprep.mubr.msk.bf16.mxu0 %vm2685_vm0, %v2684_v1 }
 0x999   : > { %v1351_v35 = vpop.f32.mrb[28].mxu0 }
 0x99a   : > { %v1352_v36 = vadd.f32 %v2287_v34, %v1351_v35  ;;  %v2505_v37 = vpop.f32.mrb[29].mxu0 }
 0x99b   : > { %v1354_v38 = vpop.f32.mrb[30].mxu0 }
 0x99c   : > { %v2506_v39 = vpop.f32.mrb[31].mxu0  ;;  %v1357_v40 = vadd.f32 %v1352_v36, %v1204_v20 }
 0x99e   : > { %v1360_v41 = vsel %vm605_vm2, %v1357_v40, 0.0 }
 0x99f   : > { %1361 = vadd.xlane.f32.xlu0 %v1360_v41 }
 0xa2c   : > { %v1362_v42 = vpop.xlane.xlu0 %1361 }
 0xa2d   : > { %v1363_v43 = vmul.f32 0.03125, %v1362_v42 }
 0xa2f   : > { %v1364_v44 = vsub.f32 %v1357_v40, %v1363_v43 }
 0xa31   : > { %v1365_v45 = vmul.f32 %v1364_v44, %v1364_v44 }
 0xa33   : > { %v1366_v46 = vsel %vm605_vm2, %v1365_v45, 0.0 }
 0xa34   : > { %1367 = vadd.xlane.f32.xlu0 %v1366_v46 }
 0xac1   : > { %v1368_v49 = vpop.xlane.xlu0 %1367 }
 0xac2   : > { %v1369_v50 = vmul.f32 0.03125, %v1368_v49 }
 0xac4   : > { %v1370_v51 = vadd.f32 1e-05, %v1369_v50 }
 0xac6   : > { %2654 = vrsqrt.f32 %v1370_v51 }
 0xad0   : > { %v2655_v52 = vpop.eup %2654 }
 0xad1   : > { %v1372_v54 = vmul.f32 %v2655_v52, %v1364_v44 }
 0xad3   : > { %v1379_v56 = vmul.f32 %v2293_v53, %v1372_v54 }
 0xad5   : > { %v2990_v57 = vadd.f32 %v2294_v55, %v1379_v56 }
 0xad7   : > { %v1387_v58 = vpack.c.bf16 %v2990_v57, %v2990_v57 }
 0xad9   : > { %2512 = vmatmul.mubr.msk.bf16.vlgmr.msra.gmra.mrb[20].mxu1 %vm605_vm2, %v1387_v58 }
 0xada   : > { %2517 = vmatprep.mubr.msk.bf16.mxu1 %vm2685_vm0, %v2684_v1 }
 0xbac   : > { %v1450_v60 = vpop.f32.mrb[20].mxu1 }
 0xbad   : > { %v1451_v61 = vadd.f32 %v2300_v59, %v1450_v60  ;;  %v2513_v62 = vpop.f32.mrb[21].mxu1 }
 0xbae   : > { %v1453_v63 = vpop.f32.mrb[22].mxu1 }
 0xbaf   : > { %v3000_v0 = vpack.c.bf16 %v1451_v61, %v1451_v61  ;;  %v2514_v2 = vpop.f32.mrb[23].mxu1 }
 0xbb1   : > { %1568 = vrot.lane.b32.xlu0 %v3000_v0, %s2689_s30  ;;  %1458 = vrot.lane.b32.xlu1 %v3000_v0, %s2687_s28  ;;  %s3178_s28 = smov 64   ;;  %s3179_s30 = smov 40  }
 0xbb5   : > { %1676 = vrot.lane.b32.xlu0 %v3000_v0, %s2691_s17  ;;  %1566 = vrot.lane.b32.xlu1 %v3000_v0, %s2686_s27  ;;  %s3177_s27 = smov 56   ;;  %s3180_s17 = smov 48  }
 0xbb9   : > { %1786 = vrot.lane.b32.xlu0 %v3000_v0, %s2692_s18  ;;  %1678 = vrot.lane.b32.xlu1 %v3000_v0, %s3175_s20  ;;  %s3181_s18 = smov 8   ;;  %s2261_s20 = sshll.u32 %s3185_s22, 2 }
 0xbbd   : > { %1788 = vrot.lane.b32.xlu1 %v3000_v0, %s3176_s23 }
 0xc23   : > { %v1459_v3 = vpop.permute.xlu1 %1458  ;;  %v1569_v5 = vpop.permute.xlu0 %1568 }
 0xc24   : > { %v1464_v4 = vsel %vm653_vm3, %v1459_v3, 0  ;;  %v1574_v7 = vsel %vm653_vm3, %v1569_v5, 0 }
 0xc25   : > { %2516 = vmatpush3.bf16.xpose.msra.mxu1 %v1464_v4 }
 0xc26   : > { %2527 = vmatprep.subr.bf16.mxu1 %v2684_v1 }
 0xc27   : > { %v1567_v6 = vpop.permute.xlu1 %1566  ;;  %v1677_v12 = vpop.permute.xlu0 %1676 }
 0xc2b   : > { %v1679_v8 = vpop.permute.xlu1 %1678  ;;  %v1787_v13 = vpop.permute.xlu0 %1786 }
 0xc2c   : > { %2518 = vmatmul.mubr.msk.bf16.vlgmr.msra.gmra.mrb[24].mxu1 %vm653_vm3, %v3000_v0  ;;  %v1684_v9 = vsel %vm653_vm3, %v1679_v8, 0 }
 0xc2d   : > { %2528 = vmatpush3.bf16.xpose.msra.mxu1 %v1574_v7  ;;  %2529 = vmatprep.mubr.msk.bf16.mxu1 %vm2685_vm0, %v2684_v1 }
 0xc2e   : > { %2539 = vmatprep.subr.bf16.mxu1 %v2684_v1 }
 0xc2f   : > { %v1789_v10 = vpop.permute.xlu1 %1788 }
 0xc30   : > { %v1794_v11 = vsel %vm653_vm3, %v1789_v10, 0 }
 0xc34   : > { %2530 = vmatmul.mubr.msk.bf16.vlgmr.msra.gmra.mrb[28].mxu1 %vm653_vm3, %v1567_v6 }
 0xc35   : > { %2540 = vmatpush3.bf16.xpose.msra.mxu1 %v1684_v9  ;;  %2541 = vmatprep.mubr.msk.bf16.mxu1 %vm2685_vm0, %v2684_v1 }
 0xc36   : > { %2551 = vmatprep.subr.bf16.mxu1 %v2684_v1 }
 0xc3c   : > { %2542 = vmatmul.mubr.msk.bf16.vlgmr.msra.gmra.mrb[32].mxu1 %vm653_vm3, %v1677_v12 }
 0xc3d   : > { %2552 = vmatpush3.bf16.xpose.msra.mxu1 %v1794_v11  ;;  %2553 = vmatprep.mubr.msk.bf16.mxu1 %vm2685_vm0, %v2684_v1 }
 0xc3e   : > { %2563 = vmatprep.subr.bf16.mxu1 %v2684_v1 }
 0xc44   : > { %2554 = vmatmul.mubr.msk.bf16.vlgmr.msra.gmra.mrb[36].mxu1 %vm653_vm3, %v1787_v13 }
 0xc45   : > { %2567 = vmatprep.mubr.msk.bf16.mxu1 %vm2685_vm0, %v2684_v1 }
 0xcff   : > { %v1500_v14 = vpop.f32.mrb[24].mxu1 }
 0xd00   : > { %v2519_v15 = vpop.f32.mrb[25].mxu1  ;;  %v1506_v16 = vsel %vm653_vm3, %v1500_v14, -inf }
 0xd01   : > { %1507 = vmax.xlane.f32.xlu1 %v1506_v16  ;;  %v1503_v17 = vpop.f32.mrb[26].mxu1 }
 0xd02   : > { %v2520_v18 = vpop.f32.mrb[27].mxu1 }
 0xd07   : > { %v1610_v19 = vpop.f32.mrb[28].mxu1 }
 0xd08   : > { %v2531_v21 = vpop.f32.mrb[29].mxu1  ;;  %v1616_v22 = vsel %vm653_vm3, %v1610_v19, -inf }
 0xd09   : > { %1617 = vmax.xlane.f32.xlu0 %v1616_v22  ;;  %v1613_v20 = vpop.f32.mrb[30].mxu1 }
 0xd0a   : > { %v2532_v23 = vpop.f32.mrb[31].mxu1 }
 0xd0f   : > { %v1720_v24 = vpop.f32.mrb[32].mxu1 }
 0xd10   : > { %v2543_v25 = vpop.f32.mrb[33].mxu1  ;;  %v1726_v26 = vsel %vm653_vm3, %v1720_v24, -inf }
 0xd11   : > { %1727 = vmax.xlane.f32.xlu0 %v1726_v26  ;;  %v1723_v27 = vpop.f32.mrb[34].mxu1  ;;  %v2629_v25 = vld [vmem:[%s3153_s6 + $0x18] sm:$0xff]  }
 0xd12   : > { %v2544_v28 = vpop.f32.mrb[35].mxu1 }
 0xd17   : > { %v1830_v29 = vpop.f32.mrb[36].mxu1 }
 0xd18   : > { %v2555_v30 = vpop.f32.mrb[37].mxu1  ;;  %v1836_v31 = vsel %vm653_vm3, %v1830_v29, -inf }
 0xd19   : > { %1837 = vmax.xlane.f32.xlu1 %v1836_v31  ;;  %v1833_v32 = vpop.f32.mrb[38].mxu1 }
 0xd1a   : > { %v2556_v33 = vpop.f32.mrb[39].mxu1 }
 0xd8e   : > { %v1508_v34 = vpop.xlane.xlu1 %1507 }
 0xd8f   : > { %v1509_v35 = vsub.f32 %v1500_v14, %v1508_v34 }
 0xd91   : > { %v1510_v36 = vmul.f32 1.442695, %v1509_v35 }
 0xd93   : > { %2656 = vpow2.f32 %v1510_v36 }
 0xd96   : > { %v1618_v37 = vpop.xlane.xlu0 %1617 }
 0xd97   : > { %v1619_v38 = vsub.f32 %v1610_v19, %v1618_v37 }
 0xd99   : > { %v1620_v39 = vmul.f32 1.442695, %v1619_v38 }
 0xd9b   : > { %2658 = vpow2.f32 %v1620_v39 }
 0xd9d   : > { %v2657_v40 = vpop.eup %2656 }
 0xd9e   : > { %v1728_v41 = vpop.xlane.xlu0 %1727  ;;  %v1512_v42 = vsel %vm653_vm3, %v2657_v40, 0.0 }
 0xd9f   : > { %v1729_v43 = vsub.f32 %v1720_v24, %v1728_v41  ;;  %1513 = vadd.xlane.f32.xlu0 %v1512_v42  ;;  %v2628_v24 = vld [vmem:[%s3153_s6 + $0x10] sm:$0xff]   ;;  %v2317_v41 = vld [vmem:[%s3154_s7 + $0x1] ss:$0 sm:$0xff] }
 0xda0   : > { %2564 = vmatpush3.bf16.msra.mxu1 %v2628_v24 }
 0xda1   : > { %v1730_v44 = vmul.f32 1.442695, %v1729_v43  ;;  %2565 = vmatprep.subr.bf16.mxu1 %v2684_v1 }
 0xda3   : > { %2660 = vpow2.f32 %v1730_v44 }
 0xda4   : > { %2566 = vmatpush3.bf16.msra.mxu1 %v2629_v25 }
 0xda5   : > { %v2659_v45 = vpop.eup %2658  ;;  %2579 = vmatprep.subr.bf16.mxu1 %v2684_v1 }
 0xda6   : > { %v1622_v46 = vsel %vm653_vm3, %v2659_v45, 0.0  ;;  %v1838_v49 = vpop.xlane.xlu1 %1837 }
 0xda7   : > { %1623 = vadd.xlane.f32.xlu1 %v1622_v46  ;;  %v1839_v50 = vsub.f32 %v1830_v29, %v1838_v49 }
 0xda9   : > { %v1840_v51 = vmul.f32 1.442695, %v1839_v50 }
 0xdab   : > { %2662 = vpow2.f32 %v1840_v51 }
 0xdad   : > { %v2661_v47 = vpop.eup %2660 }
 0xdae   : > { %v1732_v48 = vsel %vm653_vm3, %v2661_v47, 0.0 }
 0xdaf   : > { %1733 = vadd.xlane.f32.xlu0 %v1732_v48 }
 0xdb5   : > { %v2663_v52 = vpop.eup %2662 }
 0xdb6   : > { %v1842_v53 = vsel %vm653_vm3, %v2663_v52, 0.0 }
 0xdb8   : > { %1628 = vrot.lane.b32.xlu1 %v3000_v0, %s3177_s27 }
 0xdc5   : > { %1518 = vrot.lane.b32.xlu0 %v3000_v0, %s3178_s28  ;;  %s516_s28 = scalar_lea.vmem %s3163_s16, %s2261_s20 }
 0xdc9   : > { %1848 = vrot.lane.b32.xlu0 %v3000_v0, %s3179_s30 }
 0xddc   : > { %1843 = vadd.xlane.f32.xlu1 %v1842_v53 }
 0xded   : > { %1738 = vrot.lane.b32.xlu1 %v3000_v0, %s3180_s17 }
 0xe2c   : > { %v1514_v54 = vpop.xlane.xlu0 %1513 }
 0xe2d   : > { %2664 = vrcp.f32 %v1514_v54  ;;  %v2630_v54 = vld [vmem:[%s3157_s10 + $0x10] sm:$0xff]  }
 0xe34   : > { %v1624_v55 = vpop.xlane.xlu1 %1623 }
 0xe35   : > { %2666 = vrcp.f32 %v1624_v55  ;;  %v2632_v55 = vld [vmem:[%s3159_s12 + $0x20] sm:$0xff]  }
 0xe37   : > { %v2665_v56 = vpop.eup %2664 }
 0xe38   : > { %v1516_v59 = vmul.f32 %v2665_v56, %v2657_v40  ;;  %v1629_v62 = vpop.permute.xlu1 %1628  ;;  %v2633_v56 = vld [vmem:[%s3159_s12 + $0x28] sm:$0xff]  }
 0xe39   : > { %v1634_v3 = vsel %vm717_vm4, %v1629_v62, 0  ;;  %v2323_v62 = vld [vmem:[%s3155_s8 + $0x1] ss:$0 sm:$0xff] }
 0xe3a   : > { %v1517_v63 = vpack.c.bf16 %v1516_v59, %v1516_v59 }
 0xe3c   : > { %v1734_v58 = vpop.xlane.xlu0 %1733 }
 0xe3d   : > { %2668 = vrcp.f32 %v1734_v58 }
 0xe3f   : > { %v2667_v2 = vpop.eup %2666 }
 0xe40   : > { %v1519_v60 = vpop.permute.xlu0 %1518  ;;  %v1626_v0 = vmul.f32 %v2667_v2, %v2659_v45  ;;  %v2324_v2 = vld [vmem:[%s3156_s9 + $0x1] ss:$0 sm:$0xff] }
 0xe41   : > { %v1524_v61 = vsel %vm717_vm4, %v1519_v60, 0 }
 0xe42   : > { %2522 = vmatpush3.bf16.msra.mxu0 %v1524_v61  ;;  %v1627_v4 = vpack.c.bf16 %v1626_v0, %v1626_v0 }
 0xe43   : > { %2533 = vmatprep.subr.bf16.mxu0 %v2684_v1 }
 0xe44   : > { %v1849_v10 = vpop.permute.xlu0 %1848 }
 0xe45   : > { %2524 = vmatmul.mubr.msk.bf16.vlgmr.msra.gmra.mrb[32].mxu0 %vm653_vm3, %v1517_v63  ;;  %v1854_v11 = vsel %vm717_vm4, %v1849_v10, 0 }
 0xe46   : > { %2534 = vmatpush3.bf16.msra.mxu0 %v1634_v3  ;;  %2535 = vmatprep.mubr.msk.bf16.mxu0 %vm2685_vm0, %v2684_v1 }
 0xe47   : > { %2545 = vmatprep.subr.bf16.mxu0 %v2684_v1  ;;  %v2669_v5 = vpop.eup %2668 }
 0xe48   : > { %v1736_v7 = vmul.f32 %v2669_v5, %v2661_v47  ;;  %v2634_v5 = vld [vmem:[%s3159_s12 + $0x30] sm:$0xff]  }
 0xe4a   : > { %v1737_v12 = vpack.c.bf16 %v1736_v7, %v1736_v7  ;;  %v2330_v7 = vld [vmem:[%s3158_s11 + $0x1] ss:$0 sm:$0xff] }
 0xe4d   : > { %2536 = vmatmul.mubr.msk.bf16.vlgmr.msra.gmra.mrb[36].mxu0 %vm653_vm3, %v1627_v4 }
 0xe4e   : > { %2547 = vmatprep.mubr.msk.bf16.mxu0 %vm2685_vm0, %v2684_v1 }
 0xe69   : > { %v1844_v6 = vpop.xlane.xlu1 %1843 }
 0xe6a   : > { %2670 = vrcp.f32 %v1844_v6  ;;  %v2635_v6 = vld [vmem:[%s3159_s12 + $0x38] sm:$0xff]  }
 0xe6d   : > { %v1739_v8 = vpop.permute.xlu1 %1738 }
 0xe6e   : > { %v1744_v9 = vsel %vm717_vm4, %v1739_v8, 0 }
 0xe6f   : > { %2546 = vmatpush3.bf16.msra.mxu0 %v1744_v9 }
 0xe70   : > { %2557 = vmatprep.subr.bf16.mxu0 %v2684_v1 }
 0xe72   : > { %2548 = vmatmul.mubr.msk.bf16.vlgmr.msra.gmra.mrb[40].mxu0 %vm653_vm3, %v1737_v12 }
 0xe73   : > { %2558 = vmatpush3.bf16.msra.mxu0 %v1854_v11  ;;  %2559 = vmatprep.mubr.msk.bf16.mxu0 %vm2685_vm0, %v2684_v1 }
 0xe74   : > { %v2671_v13 = vpop.eup %2670  ;;  %2571 = vmatprep.subr.bf16.mxu0 %v2684_v1 }
 0xe75   : > { %v1846_v14 = vmul.f32 %v2671_v13, %v2663_v52 }
 0xe77   : > { %v1847_v15 = vpack.c.bf16 %v1846_v14, %v1846_v14 }
 0xe7a   : > { %2560 = vmatmul.mubr.msk.bf16.vlgmr.msra.gmra.mrb[44].mxu0 %vm653_vm3, %v1847_v15 }
 0xe7b   : > { %2575 = vmatprep.mubr.msk.bf16.mxu0 %vm2685_vm0, %v2684_v1  ;;  %2572 = vmatpush3.bf16.msra.mxu0 %v2630_v54 }
 0xe7c   : > { %2573 = vmatprep.subr.bf16.mxu0 %v2684_v1 }
 0xf18   : > { %v1560_v16 = vpop.f32.mrb[32].mxu0 }
 0xf19   : > { %v2525_v17 = vpop.f32.mrb[33].mxu0 }
 0xf1a   : > { %v1563_v18 = vpop.f32.mrb[34].mxu0 }
 0xf1b   : > { %v2526_v19 = vpop.f32.mrb[35].mxu0 }
 0xf20   : > { %v1670_v21 = vpop.f32.mrb[36].mxu0 }
 0xf21   : > { %1897 = vrot.lane.b32.xlu1 %v1670_v21, %s3181_s18  ;;  %v2537_v22 = vpop.f32.mrb[37].mxu0 }
 0xf22   : > { %v1673_v20 = vpop.f32.mrb[38].mxu0 }
 0xf23   : > { %v2538_v23 = vpop.f32.mrb[39].mxu0 }
 0xf45   : > { %v1780_v26 = vpop.f32.mrb[40].mxu0 }
 0xf46   : > { %1901 = vrot.lane.b32.xlu0 %v1780_v26, %s3182_s29  ;;  %v2549_v27 = vpop.f32.mrb[41].mxu0 }
 0xf47   : > { %v1783_v28 = vpop.f32.mrb[42].mxu0 }
 0xf48   : > { %v2550_v29 = vpop.f32.mrb[43].mxu0 }
 0xf4d   : > { %v1890_v30 = vpop.f32.mrb[44].mxu0 }
 0xf4e   : > { %1905 = vrot.lane.b32.xlu1 %v1890_v30, %s3183_s0  ;;  %v2561_v31 = vpop.f32.mrb[45].mxu0 }
 0xf4f   : > { %v1893_v32 = vpop.f32.mrb[46].mxu0  ;;  %v2351_v31 = vld [vmem:[%s3161_s14 + $0x1] ss:$0 sm:$0xff] }
 0xf50   : > { %v2562_v33 = vpop.f32.mrb[47].mxu0 }
 0xf51   : > { %v2352_v33 = vld [vmem:[%s3162_s15 + $0x1] ss:$0 sm:$0xff] }
 0xf93   : > { %v1898_v34 = vpop.permute.xlu1 %1897 }
 0xf94   : > { %v1908_v36 = vsel %vm653_vm3, %v1560_v16, %v1898_v34 }
 0xfb8   : > { %v1902_v35 = vpop.permute.xlu0 %1901 }
 0xfb9   : > { %v1909_v37 = vsel %vm535_vm1, %v1908_v36, %v1902_v35 }
 0xfc0   : > { %v1906_v38 = vpop.permute.xlu1 %1905 }
 0xfc1   : > { %v1910_v39 = vsel %vm1105_vm5, %v1909_v37, %v1906_v38 }
 0xfc2   : > { %v1911_v40 = vpack.c.bf16 %v1910_v39, %v1910_v39 }
 0xfc4   : > { %2568 = vmatmul.mubr.msk.bf16.vlgmr.msra.gmra.mrb[40].mxu1 %vm605_vm2, %v1911_v40 }
 0xfc5   : > { %2587 = vmatprep.mubr.msk.bf16.mxu1 %vm2685_vm0, %v2684_v1  ;;  %2580 = vmatpush3.bf16.msra.mxu1 %v2632_v55 }
 0xfc6   : > { %2581 = vmatprep.subr.bf16.mxu1 %v2684_v1 }
 0xfc9   : > { %2582 = vmatpush3.bf16.msra.mxu1 %v2633_v56 }
 0xfca   : > { %2583 = vmatprep.subr.bf16.mxu1 %v2684_v1 }
 0xfcd   : > { %2584 = vmatpush3.bf16.msra.mxu1 %v2634_v5 }
 0xfce   : > { %2585 = vmatprep.subr.bf16.mxu1 %v2684_v1  ;;  %v2343_v1 = vld [vmem:[%s3160_s13 + $0x1] ss:$0 sm:$0xff] }
 0xfd1   : > { %2586 = vmatpush3.bf16.msra.mxu1 %v2635_v6 }
0x1097   : > { %v1974_v42 = vpop.f32.mrb[40].mxu1 }
0x1098   : > { %v1975_v43 = vadd.f32 %v2317_v41, %v1974_v42  ;;  %v2569_v44 = vpop.f32.mrb[41].mxu1 }
0x1099   : > { %v1977_v45 = vpop.f32.mrb[42].mxu1 }
0x109a   : > { %v2570_v46 = vpop.f32.mrb[43].mxu1  ;;  %v1980_v47 = vadd.f32 %v1975_v43, %v2990_v57  ;;  %v2631_v57 = vld [vmem:[%s3157_s10 + $0x18] sm:$0xff]  }
0x109b   : > { %2574 = vmatpush3.bf16.msra.mxu0 %v2631_v57 }
0x109c   : > { %v1985_v48 = vsel %vm605_vm2, %v1980_v47, 0.0 }
0x109d   : > { %1986 = vadd.xlane.f32.xlu0 %v1985_v48 }
0x112a   : > { %v1987_v49 = vpop.xlane.xlu0 %1986 }
0x112b   : > { %v1988_v50 = vmul.f32 0.03125, %v1987_v49 }
0x112d   : > { %v1989_v51 = vsub.f32 %v1980_v47, %v1988_v50 }
0x112f   : > { %v1990_v52 = vmul.f32 %v1989_v51, %v1989_v51 }
0x1131   : > { %v1991_v53 = vsel %vm605_vm2, %v1990_v52, 0.0 }
0x1132   : > { %1992 = vadd.xlane.f32.xlu1 %v1991_v53 }
0x11bf   : > { %v1993_v58 = vpop.xlane.xlu1 %1992 }
0x11c0   : > { %v1994_v59 = vmul.f32 0.03125, %v1993_v58 }
0x11c2   : > { %v1995_v60 = vadd.f32 1e-05, %v1994_v59 }
0x11c4   : > { %2672 = vrsqrt.f32 %v1995_v60 }
0x11ce   : > { %v2673_v61 = vpop.eup %2672 }
0x11cf   : > { %v1997_v63 = vmul.f32 %v2673_v61, %v1989_v51 }
0x11d1   : > { %v2004_v3 = vmul.f32 %v2323_v62, %v1997_v63 }
0x11d3   : > { %v2011_v0 = vadd.f32 %v2324_v2, %v2004_v3 }
0x11d5   : > { %v2012_v4 = vpack.c.bf16 %v2011_v0, %v2011_v0 }
0x11d7   : > { %2576 = vmatmul.mubr.msk.bf16.vlgmr.msra.gmra.mrb[48].mxu0 %vm605_vm2, %v2012_v4 }
0x12aa   : > { %v2075_v8 = vpop.f32.mrb[48].mxu0 }
0x12ab   : > { %v2076_v9 = vadd.f32 %v2330_v7, %v2075_v8  ;;  %v2577_v10 = vpop.f32.mrb[49].mxu0 }
0x12ac   : > { %v2078_v12 = vpop.f32.mrb[50].mxu0 }
0x12ad   : > { %v2081_v11 = vmax.f32 %v2076_v9, 0.0  ;;  %v2578_v13 = vpop.f32.mrb[51].mxu0 }
0x12af   : > { %v2082_v14 = vpack.c.bf16 %v2081_v11, %v2081_v11 }
0x12b1   : > { %2588 = vmatmul.mubr.msk.bf16.vlgmr.msra.gmra.mrb[44].mxu1 %vm1313_vm6, %v2082_v14 }
0x1384   : > { %v2161_v15 = vpop.f32.mrb[44].mxu1 }
0x1385   : > { %v2162_v16 = vadd.f32 %v2343_v1, %v2161_v15  ;;  %v2589_v17 = vpop.f32.mrb[45].mxu1 }
0x1386   : > { %v2164_v18 = vpop.f32.mrb[46].mxu1 }
0x1387   : > { %v2590_v19 = vpop.f32.mrb[47].mxu1  ;;  %v2167_v21 = vadd.f32 %v2162_v16, %v2011_v0 }
0x1389   : > { %v2172_v22 = vsel %vm605_vm2, %v2167_v21, 0.0 }
0x138a   : > { %2173 = vadd.xlane.f32.xlu0 %v2172_v22 }
0x1417   : > { %v2174_v20 = vpop.xlane.xlu0 %2173 }
0x1418   : > { %v2175_v23 = vmul.f32 0.03125, %v2174_v20 }
0x141a   : > { %v2176_v24 = vsub.f32 %v2167_v21, %v2175_v23 }
0x141c   : > { %v2177_v25 = vmul.f32 %v2176_v24, %v2176_v24 }
0x141e   : > { %v2178_v26 = vsel %vm605_vm2, %v2177_v25, 0.0 }
0x141f   : > { %2179 = vadd.xlane.f32.xlu0 %v2178_v26 }
0x14ac   : > { %v2180_v27 = vpop.xlane.xlu0 %2179 }
0x14ad   : > { %v2181_v28 = vmul.f32 0.03125, %v2180_v27 }
0x14af   : > { %v2182_v29 = vadd.f32 1e-05, %v2181_v28 }
0x14b1   : > { %2674 = vrsqrt.f32 %v2182_v29 }
0x14bb   : > { %v2675_v30 = vpop.eup %2674 }
0x14bc   : > { %v2184_v32 = vmul.f32 %v2675_v30, %v2176_v24 }
0x14be   : > { %v2191_v34 = vmul.f32 %v2351_v31, %v2184_v32 }
0x14c0   : > { %v2198_v35 = vadd.f32 %v2352_v33, %v2191_v34 }
0x14c2   : > { %v2199_v36 = vpack.c.bf16 %v2198_v35, %v2198_v35 }
0x14c4   : > { %2201 = vst.msk [vmem:[%s516_s28] sm:$0xf] %vm2200_vm7, %v2199_v36 }
0x14c5 PF: > { %s26_s21 = sadd.s32 1, %s2682_s21  }
0x14c6   : > { %p23_p4 = scmp.ge.s32.totalorder %s26_s21, 4  }
0x14c8   :  { %25 = sbr.rel (!%p23_p4) target bundleno = 2 (0x2), region = 126 }

// kernel: _lambda_.3
= control target key start
LH: loop header
LB: loop body
LE: loop exit
PB: predicated region body
PF: predicated region fallthrough
CT: control target
= control target key end

     0   :  { %s5614_s0 = inlined_call_operand.vmem [shape: bf16[2,8,32], index: 0, kind: input, shape index: {}]   ;;  %s5615_s1 = inlined_call_operand.vmem [shape: bf16[2,8,32], index: 1, kind: input, shape index: {}]   ;;  %s5616_s2 = inlined_call_operand.vmem [shape: bf16[2,32,96], index: 2, kind: input, shape index: {}]   ;;  %s5617_s3 = inlined_call_operand.vmem [shape: f32[2,1,96], index: 3, kind: input, shape index: {}]   ;;  %s5618_s4 = inlined_call_operand.vmem [shape: bf16[2,32,32], index: 4, kind: input, shape index: {}]   ;;  %s5619_s5 = inlined_call_operand.vmem [shape: f32[2,1,32], index: 5, kind: input, shape index: {}]   ;;  %s5620_s6 = inlined_call_operand.vmem [shape: f32[2,1,32], index: 6, kind: input, shape index: {}]   ;;  %s5621_s7 = inlined_call_operand.vmem [shape: f32[2,1,32], index: 7, kind: input, shape index: {}]   ;;  %s5622_s8 = inlined_call_operand.vmem [shape: bf16[2,32,32], index: 8, kind: input, shape index: {}]   ;;  %s5623_s9 = inlined_call_operand.vmem [shape: f32[2,1,32], index: 9, kind: input, shape index: {}]   ;;  %s5624_s10 = inlined_call_operand.vmem [shape: bf16[2,32,64], index: 10, kind: input, shape index: {}]   ;;  %s5625_s11 = inlined_call_operand.vmem [shape: f32[2,1,64], index: 11, kind: input, shape index: {}]   ;;  %s5626_s12 = inlined_call_operand.vmem [shape: bf16[2,32,32], index: 12, kind: input, shape index: {}]   ;;  %s5627_s13 = inlined_call_operand.vmem [shape: f32[2,1,32], index: 13, kind: input, shape index: {}]   ;;  %s5628_s14 = inlined_call_operand.vmem [shape: f32[2,1,32], index: 14, kind: input, shape index: {}]   ;;  %s5629_s15 = inlined_call_operand.vmem [shape: f32[2,1,32], index: 15, kind: input, shape index: {}]   ;;  %s5630_s16 = inlined_call_operand.vmem [shape: bf16[2,32,64], index: 16, kind: input, shape index: {}]   ;;  %s5631_s17 = inlined_call_operand.vmem [shape: f32[2,1,64], index: 17, kind: input, shape index: {}]   ;;  %s5632_s18 = inlined_call_operand.vmem [shape: bf16[2,64,32], index: 18, kind: input, shape index: {}]   ;;  %s5633_s19 = inlined_call_operand.vmem [shape: f32[2,1,32], index: 19, kind: input, shape index: {}]   ;;  %s5634_s20 = inlined_call_operand.vmem [shape: f32[2,1,32], index: 20, kind: input, shape index: {}]   ;;  %s5635_s21 = inlined_call_operand.vmem [shape: f32[2,1,32], index: 21, kind: input, shape index: {}]   ;;  %s5636_s22 = inlined_call_operand.vmem [shape: bf16[32,128], index: 22, kind: input, shape index: {}]   ;;  %s5637_s23 = inlined_call_operand.vmem [shape: f32[1,128], index: 23, kind: input, shape index: {}]   ;;  %s5638_s24 = inlined_call_operand.hbm [shape: f32[2,8,128], index: 24, kind: output, shape index: {}]  }
   0x1   :  { %5686 = sst [smem:[#allocation14_spill]] %s5614_s0 }
   0x2   :  { %5687 = sst [smem:[#allocation15_spill]] %s5615_s1 }
   0x3   :  { %5688 = sst [smem:[#allocation16_spill]] %s5616_s2 }
   0x4   :  { %5689 = sst [smem:[#allocation17_spill]] %s5617_s3 }
   0x5   :  { %5690 = sst [smem:[#allocation18_spill]] %s5618_s4 }
   0x6   :  { %5691 = sst [smem:[#allocation19_spill]] %s5619_s5 }
   0x7   :  { %5692 = sst [smem:[#allocation20_spill]] %s5620_s6 }
   0x8   :  { %5693 = sst [smem:[#allocation21_spill]] %s5621_s7 }
   0x9   :  { %5694 = sst [smem:[#allocation22_spill]] %s5622_s8 }
   0xa   :  { %5695 = sst [smem:[#allocation23_spill]] %s5623_s9 }
   0xb   :  { %5696 = sst [smem:[#allocation24_spill]] %s5625_s11 }
   0xc   :  { %5697 = sst [smem:[#allocation25_spill]] %s5626_s12 }
   0xd   :  { %5698 = sst [smem:[#allocation26_spill]] %s5627_s13 }
   0xe   :  { %5699 = sst [smem:[#allocation27_spill]] %s5636_s22 }
   0xf   :  { %5700 = sst [smem:[#allocation28_spill]] %s5637_s23 }
  0x10   :  { %5701 = sst [smem:[#allocation29_spill]] %s5638_s24 }
  0x11   :  { %29 = vsyncpa [#allocation3], 0 }
  0x12   :  { %31 = vsyncpa [#allocation3 + $0x1], 0  ;;  %s4881_s5 = smov 0   ;;  %s4883_s26 = smov 0  }
  0x13   :  { %s4885_s27 = smov 0   ;;  %s4887_s28 = smov 0  }
  0x14 LB: > { %5702 = sst [smem:[#allocation5_spill]] %s4725_s5  ;;  %s4902_s6 = sadd.s32 4294967295, %s4737_s28   ;;  %s4737_s28 = sphi %s4887_s28, %s5759_s28   ;;  %s4733_s27 = sphi %s4885_s27, %s5762_s27   ;;  %s4729_s26 = sphi %s4883_s26, %s5761_s26   ;;  %s4725_s5 = sphi %s4881_s5, %s5760_s5  }
  0x15   : > { %5703 = sst [smem:[#allocation6_spill]] %s4729_s26  ;;  %s3913_s2 = sadd.s32 4294967294, %s4737_s28  }
  0x16   : > { %5704 = sst [smem:[#allocation7_spill]] %s4733_s27  ;;  %s4906_s29 = sadd.s32 1, %s4737_s28  }
  0x17   : > { %5705 = sst [smem:[#allocation8_spill]] %s4737_s28  ;;  %s558_s0 = sadd.s32 1, %s4733_s27 }
  0x18   : > { %5706 = sst [smem:[#allocation9_spill]] %s4902_s6  ;;  %s555_s7 = ssub.s32 %s4737_s28, %s4906_s29 }
  0x19   : > { %5707 = sst [smem:[#allocation10_spill]] %s4906_s29  ;;  %p568_p0 = scmp.ne.s32.totalorder %s4733_s27, %s4729_s26 }
  0x1a   : > { %p556_p1 = scmp.eq.s32.totalorder %s555_s7, 0  ;;  %p569_p2 = scmp.eq.s32.totalorder %s4902_s6, 1 }
  0x1b   : > { %p574_p3 = scmp.ne.s32.totalorder %s4729_s26, %s4725_s5  ;;  %p575_p4 = scmp.eq.s32.totalorder %s3913_s2, 1 }
  0x1c   : > { %s4917_s30 = scalar_select %p556_p1, %s4733_s27, %s558_s0  }
  0x1d   : > { %p4919_p5 = por %p569_p2, %p568_p0  ;;  %p4923_p6 = por %p575_p4, %p574_p3 }
  0x1e   : > { %5708 = sst [smem:[#allocation11_spill]] %s4917_s30  ;;  %p3916_p7 = scmp.ge.s32.totalorder %s4737_s28, 1 }
  0x1f   : > { %s5709_s3 = scalar_select %p4919_p5, 1, 0 }
  0x20   : > { %s5711_s25 = scalar_select %p4923_p6, 1, 0 }
  0x21   : > { %5710 = sst [smem:[#allocation12_spill]] %s5709_s3  ;;  %p673_p8 = scmp.lt.s32.totalorder %s4737_s28, 3 }
  0x22   : > { %5712 = sst [smem:[#allocation13_spill]] %s5711_s25 }
  0x23   : > { %p674_p9 = pnand %p3916_p7, %p673_p8 }
  0x24   : > { %s5713_s1 = sld [smem:[#allocation16_spill]] (!%p674_p9)  ;;  %v4739_v1 = vmov (!%p674_p9), 0.0   ;;  %vm4740_vm0 = vmmov (!%p674_p9), 0   ;;  %p742_p10 = scmp.lt.s32.totalorder (!%p674_p9), %s4902_s6, 1  ;;  %vm782_vm1 = vcmask (!%p674_p9), 261120   ;;  %vm830_vm2 = vcmask (!%p674_p9), 64512  }
  0x25   : > { %677 = sbr.rel (%p674_p9) target bundleno = 8876 (0x22ac), region = 116  ;;  %4190 = vmatprep.subr.bf16.mxu0 (!%p674_p9), %v4739_v1  ;;  %4198 = vmatprep.subr.bf16.mxu1 (!%p674_p9), %v4739_v1  ;;  %s5714_s0 = sld [smem:[#allocation14_spill]] (!%p674_p9)  ;;  %v754_v22 = vlaneseq (!%p674_p9)  ;;  %vm895_vm4 = vcmask (!%p674_p9), 1043456   ;;  %vm1285_vm5 = vcmask (!%p674_p9), 130048   ;;  %vm1287_vm6 = vcmask (!%p674_p9), 195584  }
  0x26   : > { %4194 = vmatprep.mubr.msk.bf16.mxu0 (!%p674_p9), %vm4740_vm0, %v4739_v1  ;;  %4200 = vmatprep.mubr.msk.bf16.mxu1 (!%p674_p9), %vm4740_vm0, %v4739_v1  ;;  %s5715_s25 = sld [smem:[#allocation17_spill]] (!%p674_p9)  ;;  %s5650_s4 = smov (!%p674_p9), 120   ;;  %vm2180_vm7 = vcmask (!%p674_p9), 523264  }
  0x27   : > { %s5656_s2 = smov (!%p674_p9), 80   ;;  %s5652_s27 = smov (!%p674_p9), 88   ;;  %v755_v23 = vshrl.u32 (!%p674_p9), %v754_v22, 7  ;;  %v757_v24 = vand.u32 (!%p674_p9), 127, %v754_v22 }
  0x28   : > { %s5654_s29 = smov (!%p674_p9), 72   ;;  %s5721_s24 = sld [smem:[#allocation15_spill]] (!%p674_p9) }
  0x29   : > { %vm4999_vm3 = vcmp.le.s32.totalorder (!%p674_p9), %v757_v24, %v755_v23  ;;  %s5725_s11 = sld [smem:[#allocation24_spill]] (!%p674_p9)  ;;  %s5727_s28 = smov (!%p674_p9), 112  }
  0x2a   : > { %v4565_v0 = vld [vmem:[%s5713_s1] sm:$0xff] (!%p674_p9)   ;;  %v4566_v2 = vld [vmem:[%s5713_s1 + $0x8] sm:$0xff] (!%p674_p9)   ;;  %s5729_s9 = sld [smem:[#allocation23_spill]] (!%p674_p9)  ;;  %s5731_s5 = smov (!%p674_p9), 80  }
  0x2b   : > { %4191 = vmatpush3.bf16.msra.mxu0 (!%p674_p9), %v4565_v0  ;;  %s5734_s12 = sld [smem:[#allocation25_spill]] (!%p674_p9)  ;;  %s5735_s26 = smov (!%p674_p9), 8  }
  0x2c   : > { %4192 = vmatprep.subr.bf16.mxu0 %v4739_v1  ;;  %s4944_s7 = scalar_select %p742_p10, %s4902_s6, 1  ;;  %v3920_v4 = vld [vmem:[%s5715_s25] ss:$0 sm:$0xff] }
  0x2d   : > { %s5737_s23 = smov 24   ;;  %s5738_s13 = sld [smem:[#allocation26_spill]] }
  0x2e   : > { %s5668_s8 = sshll.u32 %s4944_s7, 2  ;;  %s5740_s22 = smov 56  }
  0x2f   : > { %4193 = vmatpush3.bf16.msra.mxu0 %v4566_v2  ;;  %s745_s30 = scalar_lea.vmem %s5714_s0, %s5668_s8  ;;  %s5666_s0 = smov 112  }
  0x30   : > { %4204 = vmatprep.subr.bf16.mxu0 %v4739_v1  ;;  %v4953_v3 = vld [vmem:[%s745_s30] sm:$0xf]  ;;  %s5658_s30 = smov 96   ;;  %s5671_s8 = smov 16  }
  0x31   : > { %s5742_s6 = smov 40  }
  0x32   : > { %4195 = vmatmul.mubr.msk.bf16.vlgmr.msra.gmra.mrb[0].mxu0 %vm782_vm1, %v4953_v3 }
  0x33   : > { %4206 = vmatprep.mubr.msk.bf16.mxu0 %vm4740_vm0, %v4739_v1 }
 0x105   : > { %v820_v5 = vpop.f32.mrb[0].mxu0 }
 0x106   : > { %v821_v6 = vadd.f32 %v3920_v4, %v820_v5  ;;  %v4196_v7 = vpop.f32.mrb[1].mxu0 }
 0x107   : > { %v823_v8 = vpop.f32.mrb[2].mxu0 }
 0x108   : > { %v4962_v9 = vpack.c.bf16 %v821_v6, %v821_v6  ;;  %v4197_v10 = vpop.f32.mrb[3].mxu0 }
 0x10a   : > { %939 = vrot.lane.b32.xlu1 %v4962_v9, %s5650_s4  ;;  %828 = vrot.lane.b32.xlu0 %v4962_v9, %s5658_s30  ;;  %s5664_s4 = smov 104   ;;  %s5661_s30 = smov 48  }
 0x10e   : > { %1052 = vrot.lane.b32.xlu1 %v4962_v9, %s5656_s2  ;;  %941 = vrot.lane.b32.xlu0 %v4962_v9, %s5652_s27  ;;  %s5662_s27 = smov 56   ;;  %s5660_s2 = smov 40  }
 0x112   : > { %1163 = vrot.lane.b32.xlu1 %v4962_v9, %s5654_s29  ;;  %1050 = vrot.lane.b32.xlu0 %v4962_v9, %s5666_s0  ;;  %s5663_s29 = smov 64   ;;  %s5719_s0 = sld [smem:[#allocation19_spill]] }
 0x116   : > { %1161 = vrot.lane.b32.xlu0 %v4962_v9, %s5664_s4  ;;  %s5724_s4 = sld [smem:[#allocation21_spill]] }
 0x17c   : > { %v829_v11 = vpop.permute.xlu0 %828  ;;  %v940_v14 = vpop.permute.xlu1 %939 }
 0x17d   : > { %v835_v12 = vsel %vm830_vm2, %v829_v11, 0 }
 0x17e   : > { %4199 = vmatpush3.bf16.xpose.msra.mxu1 %v835_v12 }
 0x17f   : > { %4210 = vmatprep.subr.bf16.mxu1 %v4739_v1 }
 0x180   : > { %v942_v13 = vpop.permute.xlu0 %941  ;;  %v1053_v16 = vpop.permute.xlu1 %1052 }
 0x181   : > { %v947_v15 = vsel %vm830_vm2, %v942_v13, 0  ;;  %v1058_v17 = vsel %vm830_vm2, %v1053_v16, 0 }
 0x184   : > { %v1164_v18 = vpop.permute.xlu1 %1163  ;;  %v1051_v19 = vpop.permute.xlu0 %1050 }
 0x185   : > { %4201 = vmatmul.mubr.msk.bf16.vlgmr.msra.gmra.mrb[0].mxu1 %vm830_vm2, %v4962_v9  ;;  %v1169_v20 = vsel %vm830_vm2, %v1164_v18, 0 }
 0x186   : > { %4211 = vmatpush3.bf16.xpose.msra.mxu1 %v947_v15  ;;  %4212 = vmatprep.mubr.msk.bf16.mxu1 %vm4740_vm0, %v4739_v1 }
 0x187   : > { %4222 = vmatprep.subr.bf16.mxu1 %v4739_v1 }
 0x188   : > { %v1162_v21 = vpop.permute.xlu0 %1161 }
 0x18d   : > { %4213 = vmatmul.mubr.msk.bf16.vlgmr.msra.gmra.mrb[4].mxu1 %vm830_vm2, %v940_v14 }
 0x18e   : > { %4223 = vmatpush3.bf16.xpose.msra.mxu1 %v1058_v17  ;;  %4224 = vmatprep.mubr.msk.bf16.mxu1 %vm4740_vm0, %v4739_v1 }
 0x18f   : > { %4234 = vmatprep.subr.bf16.mxu1 %v4739_v1 }
 0x195   : > { %4225 = vmatmul.mubr.msk.bf16.vlgmr.msra.gmra.mrb[8].mxu1 %vm830_vm2, %v1051_v19 }
 0x196   : > { %4235 = vmatpush3.bf16.xpose.msra.mxu1 %v1169_v20  ;;  %4236 = vmatprep.mubr.msk.bf16.mxu1 %vm4740_vm0, %v4739_v1 }
 0x197   : > { %4246 = vmatprep.subr.bf16.mxu1 %v4739_v1 }
 0x19d   : > { %4237 = vmatmul.mubr.msk.bf16.vlgmr.msra.gmra.mrb[12].mxu1 %vm830_vm2, %v1162_v21 }
 0x19e   : > { %4250 = vmatprep.mubr.msk.bf16.mxu1 %vm4740_vm0, %v4739_v1 }
 0x258   : > { %v871_v26 = vpop.f32.mrb[0].mxu1 }
 0x259   : > { %v877_v27 = vsel %vm4999_vm3, %v871_v26, -1e+09  ;;  %v4202_v28 = vpop.f32.mrb[1].mxu1 }
 0x25a   : > { %v874_v29 = vpop.f32.mrb[2].mxu1  ;;  %v878_v30 = vsel %vm830_vm2, %v877_v27, -inf }
 0x25b   : > { %879 = vmax.xlane.f32.xlu1 %v878_v30  ;;  %v4203_v31 = vpop.f32.mrb[3].mxu1 }
 0x260   : > { %v983_v32 = vpop.f32.mrb[4].mxu1 }
 0x261   : > { %v989_v33 = vsel %vm4999_vm3, %v983_v32, -1e+09  ;;  %v4214_v34 = vpop.f32.mrb[5].mxu1 }
 0x262   : > { %v986_v35 = vpop.f32.mrb[6].mxu1  ;;  %v990_v36 = vsel %vm830_vm2, %v989_v33, -inf }
 0x263   : > { %991 = vmax.xlane.f32.xlu0 %v990_v36  ;;  %v4215_v37 = vpop.f32.mrb[7].mxu1 }
 0x268   : > { %v1094_v38 = vpop.f32.mrb[8].mxu1 }
 0x269   : > { %v1100_v39 = vsel %vm4999_vm3, %v1094_v38, -1e+09  ;;  %v4226_v40 = vpop.f32.mrb[9].mxu1 }
 0x26a   : > { %v1097_v41 = vpop.f32.mrb[10].mxu1  ;;  %v1101_v42 = vsel %vm830_vm2, %v1100_v39, -inf }
 0x26b   : > { %1102 = vmax.xlane.f32.xlu0 %v1101_v42  ;;  %v4227_v43 = vpop.f32.mrb[11].mxu1 }
 0x270   : > { %v1205_v44 = vpop.f32.mrb[12].mxu1 }
 0x271   : > { %v1211_v45 = vsel %vm4999_vm3, %v1205_v44, -1e+09  ;;  %v4238_v46 = vpop.f32.mrb[13].mxu1 }
 0x272   : > { %v1208_v47 = vpop.f32.mrb[14].mxu1  ;;  %v1212_v48 = vsel %vm830_vm2, %v1211_v45, -inf }
 0x273   : > { %1213 = vmax.xlane.f32.xlu1 %v1212_v48  ;;  %v4239_v49 = vpop.f32.mrb[15].mxu1 }
 0x2e8   : > { %v880_v50 = vpop.xlane.xlu1 %879 }
 0x2e9   : > { %v881_v51 = vsub.f32 %v877_v27, %v880_v50 }
 0x2eb   : > { %v882_v52 = vmul.f32 1.442695, %v881_v51 }
 0x2ed   : > { %4599 = vpow2.f32 %v882_v52 }
 0x2f0   : > { %v992_v53 = vpop.xlane.xlu0 %991 }
 0x2f1   : > { %v993_v54 = vsub.f32 %v989_v33, %v992_v53 }
 0x2f3   : > { %v994_v55 = vmul.f32 1.442695, %v993_v54 }
 0x2f5   : > { %4601 = vpow2.f32 %v994_v55 }
 0x2f7   : > { %v4600_v56 = vpop.eup %4599 }
 0x2f8   : > { %v1103_v57 = vpop.xlane.xlu0 %1102  ;;  %v884_v58 = vsel %vm830_vm2, %v4600_v56, 0.0 }
 0x2f9   : > { %v1104_v59 = vsub.f32 %v1100_v39, %v1103_v57  ;;  %885 = vadd.xlane.f32.xlu0 %v884_v58  ;;  %v3932_v58 = vld [vmem:[%s5719_s0] ss:$0 sm:$0xff] }
 0x2fb   : > { %v1105_v60 = vmul.f32 1.442695, %v1104_v59  ;;  %v752_v59 = vunpack.c.l.bf16 %v4953_v3  ;;  %v4569_v3 = vld [vmem:[%s5624_s10] sm:$0xff]  }
 0x2fd   : > { %4603 = vpow2.f32 %v1105_v60 }
 0x2ff   : > { %v4602_v61 = vpop.eup %4601 }
 0x300   : > { %v996_v62 = vsel %vm830_vm2, %v4602_v61, 0.0  ;;  %v1214_v2 = vpop.xlane.xlu1 %1213 }
 0x301   : > { %997 = vadd.xlane.f32.xlu1 %v996_v62  ;;  %v1215_v4 = vsub.f32 %v1211_v45, %v1214_v2 }
 0x303   : > { %v1216_v5 = vmul.f32 1.442695, %v1215_v4 }
 0x305   : > { %4605 = vpow2.f32 %v1216_v5 }
 0x307   : > { %v4604_v63 = vpop.eup %4603 }
 0x308   : > { %v1107_v0 = vsel %vm830_vm2, %v4604_v63, 0.0 }
 0x309   : > { %1108 = vadd.xlane.f32.xlu0 %v1107_v0 }
 0x30f   : > { %v4606_v6 = vpop.eup %4605 }
 0x310   : > { %v1218_v7 = vsel %vm830_vm2, %v4606_v6, 0.0 }
 0x312   : > { %1002 = vrot.lane.b32.xlu1 %v4962_v9, %s5662_s27  ;;  %s5730_s27 = smov 96  }
 0x31f   : > { %890 = vrot.lane.b32.xlu0 %v4962_v9, %s5663_s29  ;;  %s5718_s29 = sld [smem:[#allocation18_spill]] }
 0x323   : > { %1224 = vrot.lane.b32.xlu0 %v4962_v9, %s5660_s2  ;;  %s5673_s2 = smov 8  }
 0x325   : > { %v4567_v41 = vld [vmem:[%s5718_s29] sm:$0xff]   ;;  %v4568_v42 = vld [vmem:[%s5718_s29 + $0x8] sm:$0xff]  }
 0x326   : > { %4247 = vmatpush3.bf16.msra.mxu1 %v4567_v41 }
 0x327   : > { %4248 = vmatprep.subr.bf16.mxu1 %v4739_v1 }
 0x32a   : > { %4249 = vmatpush3.bf16.msra.mxu1 %v4568_v42 }
 0x32b   : > { %4262 = vmatprep.subr.bf16.mxu1 %v4739_v1 }
 0x336   : > { %1219 = vadd.xlane.f32.xlu1 %v1218_v7 }
 0x347   : > { %1113 = vrot.lane.b32.xlu1 %v4962_v9, %s5661_s30  ;;  %s5669_s30 = smov 24  }
 0x386   : > { %v886_v8 = vpop.xlane.xlu0 %885 }
 0x387   : > { %4607 = vrcp.f32 %v886_v8 }
 0x38e   : > { %v998_v10 = vpop.xlane.xlu1 %997 }
 0x38f   : > { %4609 = vrcp.f32 %v998_v10 }
 0x391   : > { %v4608_v11 = vpop.eup %4607 }
 0x392   : > { %v888_v13 = vmul.f32 %v4608_v11, %v4600_v56  ;;  %v1003_v16 = vpop.permute.xlu1 %1002  ;;  %v4570_v11 = vld [vmem:[%s5624_s10 + $0x8] sm:$0xff]  }
 0x393   : > { %v1008_v19 = vsel %vm895_vm4, %v1003_v16, 0 }
 0x394   : > { %v889_v17 = vpack.c.bf16 %v888_v13, %v888_v13 }
 0x396   : > { %v1109_v12 = vpop.xlane.xlu0 %1108 }
 0x397   : > { %4611 = vrcp.f32 %v1109_v12 }
 0x399   : > { %v4610_v18 = vpop.eup %4609 }
 0x39a   : > { %v891_v14 = vpop.permute.xlu0 %890  ;;  %v1000_v9 = vmul.f32 %v4610_v18, %v4602_v61 }
 0x39b   : > { %v897_v15 = vsel %vm895_vm4, %v891_v14, 0 }
 0x39c   : > { %4205 = vmatpush3.bf16.msra.mxu0 %v897_v15  ;;  %v1001_v20 = vpack.c.bf16 %v1000_v9, %v1000_v9 }
 0x39d   : > { %4216 = vmatprep.subr.bf16.mxu0 %v4739_v1 }
 0x39e   : > { %v1225_v27 = vpop.permute.xlu0 %1224 }
 0x39f   : > { %4207 = vmatmul.mubr.msk.bf16.vlgmr.msra.gmra.mrb[4].mxu0 %vm830_vm2, %v889_v17  ;;  %v1230_v29 = vsel %vm895_vm4, %v1225_v27, 0 }
 0x3a0   : > { %4217 = vmatpush3.bf16.msra.mxu0 %v1008_v19  ;;  %4218 = vmatprep.mubr.msk.bf16.mxu0 %vm4740_vm0, %v4739_v1 }
 0x3a1   : > { %4228 = vmatprep.subr.bf16.mxu0 %v4739_v1  ;;  %v4612_v21 = vpop.eup %4611 }
 0x3a2   : > { %v1111_v23 = vmul.f32 %v4612_v21, %v4604_v63 }
 0x3a4   : > { %v1112_v28 = vpack.c.bf16 %v1111_v23, %v1111_v23 }
 0x3a7   : > { %4219 = vmatmul.mubr.msk.bf16.vlgmr.msra.gmra.mrb[8].mxu0 %vm830_vm2, %v1001_v20  ;;  %v3937_v20 = vld [vmem:[%s5724_s4] ss:$0 sm:$0xff]  ;;  %s5744_s4 = sld [smem:[#allocation20_spill]] }
 0x3a8   : > { %4230 = vmatprep.mubr.msk.bf16.mxu0 %vm4740_vm0, %v4739_v1 }
 0x3c3   : > { %v1220_v22 = vpop.xlane.xlu1 %1219 }
 0x3c4   : > { %4613 = vrcp.f32 %v1220_v22 }
 0x3c7   : > { %v1114_v24 = vpop.permute.xlu1 %1113 }
 0x3c8   : > { %v1119_v26 = vsel %vm895_vm4, %v1114_v24, 0  ;;  %v3942_v24 = vld [vmem:[%s5725_s11] ss:$0 sm:$0xff]  ;;  %s5736_s11 = smov 16  }
 0x3c9   : > { %4229 = vmatpush3.bf16.msra.mxu0 %v1119_v26 }
 0x3ca   : > { %4240 = vmatprep.subr.bf16.mxu0 %v4739_v1 }
 0x3cc   : > { %4231 = vmatmul.mubr.msk.bf16.vlgmr.msra.gmra.mrb[12].mxu0 %vm830_vm2, %v1112_v28 }
 0x3cd   : > { %4241 = vmatpush3.bf16.msra.mxu0 %v1230_v29  ;;  %4242 = vmatprep.mubr.msk.bf16.mxu0 %vm4740_vm0, %v4739_v1 }
 0x3ce   : > { %v4614_v30 = vpop.eup %4613  ;;  %4254 = vmatprep.subr.bf16.mxu0 %v4739_v1 }
 0x3cf   : > { %v1222_v31 = vmul.f32 %v4614_v30, %v4606_v6 }
 0x3d1   : > { %v1223_v32 = vpack.c.bf16 %v1222_v31, %v1222_v31 }
 0x3d4   : > { %4243 = vmatmul.mubr.msk.bf16.vlgmr.msra.gmra.mrb[16].mxu0 %vm830_vm2, %v1223_v32 }
 0x3d5   : > { %4258 = vmatprep.mubr.msk.bf16.mxu0 %vm4740_vm0, %v4739_v1 }
 0x472   : > { %v933_v33 = vpop.f32.mrb[4].mxu0 }
 0x473   : > { %v4208_v34 = vpop.f32.mrb[5].mxu0 }
 0x474   : > { %v936_v35 = vpop.f32.mrb[6].mxu0 }
 0x475   : > { %v4209_v36 = vpop.f32.mrb[7].mxu0 }
 0x47a   : > { %v1044_v37 = vpop.f32.mrb[8].mxu0 }
 0x47b   : > { %1273 = vrot.lane.b32.xlu1 %v1044_v37, %s5673_s2  ;;  %v4220_v38 = vpop.f32.mrb[9].mxu0  ;;  %s5720_s2 = sshll.u32 %s4944_s7, 2  ;;  %s5723_s7 = sld [smem:[#allocation20_spill]] }
 0x47c   : > { %v1047_v39 = vpop.f32.mrb[10].mxu0  ;;  %s749_s3 = scalar_lea.vmem %s5721_s24, %s5720_s2  ;;  %s5726_s24 = smov 120  }
 0x47d   : > { %v4221_v40 = vpop.f32.mrb[11].mxu0  ;;  %v5083_v12 = vld [vmem:[%s749_s3] sm:$0xf]  ;;  %s5728_s3 = smov 104   ;;  %s5732_s2 = smov 72  }
 0x481   : > { %v3936_v19 = vld [vmem:[%s5723_s7] ss:$0 sm:$0xff] }
 0x49f   : > { %v1155_v43 = vpop.f32.mrb[12].mxu0 }
 0x4a0   : > { %1277 = vrot.lane.b32.xlu0 %v1155_v43, %s5671_s8  ;;  %v4232_v44 = vpop.f32.mrb[13].mxu0  ;;  %s5722_s8 = sld [smem:[#allocation22_spill]] }
 0x4a1   : > { %v1158_v45 = vpop.f32.mrb[14].mxu0 }
 0x4a2   : > { %v4233_v46 = vpop.f32.mrb[15].mxu0 }
 0x4a6   : > { %v4571_v13 = vld [vmem:[%s5722_s8] sm:$0xff]   ;;  %v4572_v14 = vld [vmem:[%s5722_s8 + $0x8] sm:$0xff]  }
 0x4a7   : > { %v1266_v47 = vpop.f32.mrb[16].mxu0  ;;  %4255 = vmatpush3.bf16.msra.mxu0 %v4571_v13 }
 0x4a8   : > { %1281 = vrot.lane.b32.xlu1 %v1266_v47, %s5669_s30  ;;  %v4244_v48 = vpop.f32.mrb[17].mxu0  ;;  %4256 = vmatprep.subr.bf16.mxu0 %v4739_v1  ;;  %s5733_s30 = smov 88  }
 0x4a9   : > { %v1269_v49 = vpop.f32.mrb[18].mxu0 }
 0x4aa   : > { %v4245_v50 = vpop.f32.mrb[19].mxu0 }
 0x4ab   : > { %4257 = vmatpush3.bf16.msra.mxu0 %v4572_v14 }
 0x4ac   : > { %4270 = vmatprep.subr.bf16.mxu0 %v4739_v1 }
 0x4ed   : > { %v1274_v51 = vpop.permute.xlu1 %1273 }
 0x4ee   : > { %v1284_v53 = vsel %vm830_vm2, %v933_v33, %v1274_v51  ;;  %v3938_v33 = vld [vmem:[%s5729_s9] ss:$0 sm:$0xff]  ;;  %s5739_s9 = smov 64  }
 0x512   : > { %v1278_v52 = vpop.permute.xlu0 %1277 }
 0x513   : > { %v1286_v54 = vsel %vm1285_vm5, %v1284_v53, %v1278_v52 }
 0x51a   : > { %v1282_v55 = vpop.permute.xlu1 %1281 }
 0x51b   : > { %v1288_v56 = vsel %vm1287_vm6, %v1286_v54, %v1282_v55 }
 0x51c   : > { %v1289_v57 = vpack.c.bf16 %v1288_v56, %v1288_v56 }
 0x51e   : > { %4251 = vmatmul.mubr.msk.bf16.vlgmr.msra.gmra.mrb[16].mxu1 %vm782_vm1, %v1289_v57 }
 0x51f   : > { %4266 = vmatprep.mubr.msk.bf16.mxu1 %vm4740_vm0, %v4739_v1  ;;  %4263 = vmatpush3.bf16.msra.mxu1 %v4569_v3 }
 0x520   : > { %4264 = vmatprep.subr.bf16.mxu1 %v4739_v1 }
 0x523   : > { %4265 = vmatpush3.bf16.msra.mxu1 %v4570_v11 }
 0x524   : > { %4276 = vmatprep.subr.bf16.mxu1 %v4739_v1 }
 0x526   : > { %4267 = vmatmul.mubr.msk.bf16.vlgmr.msra.gmra.mrb[20].mxu1 %vm782_vm1, %v5083_v12 }
 0x527   : > { %4278 = vmatprep.mubr.msk.bf16.mxu1 %vm4740_vm0, %v4739_v1 }
 0x5f1   : > { %v1350_v60 = vpop.f32.mrb[16].mxu1 }
 0x5f2   : > { %v1351_v61 = vadd.f32 %v3932_v58, %v1350_v60  ;;  %v4252_v62 = vpop.f32.mrb[17].mxu1 }
 0x5f3   : > { %v1353_v63 = vpop.f32.mrb[18].mxu1 }
 0x5f4   : > { %v4253_v0 = vpop.f32.mrb[19].mxu1  ;;  %v1356_v2 = vadd.f32 %v1351_v61, %v752_v59 }
 0x5f6   : > { %v1359_v4 = vsel %vm782_vm1, %v1356_v2, 0.0 }
 0x5f7   : > { %1360 = vadd.xlane.f32.xlu0 %v1359_v4 }
 0x5f9   : > { %v1514_v26 = vpop.f32.mrb[20].mxu1 }
 0x5fa   : > { %v1515_v27 = vadd.f32 %v3942_v24, %v1514_v26  ;;  %v4268_v28 = vpop.f32.mrb[21].mxu1 }
 0x5fb   : > { %v1517_v29 = vpop.f32.mrb[22].mxu1 }
 0x5fc   : > { %v5113_v30 = vpack.c.bf16 %v1515_v27, %v1515_v27  ;;  %v4269_v31 = vpop.f32.mrb[23].mxu1 }
 0x5fe   : > { %v1526_v32 = vsel %vm830_vm2, %v5113_v30, 0 }
 0x60d   : > { %1632 = vrot.lane.b32.xlu0 %v5113_v30, %s5726_s24 }
 0x611   : > { %1742 = vrot.lane.b32.xlu0 %v5113_v30, %s5727_s28 }
 0x615   : > { %1852 = vrot.lane.b32.xlu0 %v5113_v30, %s5728_s3 }
 0x684   : > { %v1361_v5 = vpop.xlane.xlu0 %1360 }
 0x685   : > { %v1363_v6 = vmul.f32 0.03125, %v1361_v5 }
 0x687   : > { %v1364_v7 = vsub.f32 %v1356_v2, %v1363_v6 }
 0x688   : > { %v1633_v38 = vpop.permute.xlu0 %1632 }
 0x689   : > { %v1365_v8 = vmul.f32 %v1364_v7, %v1364_v7  ;;  %v1638_v41 = vsel %vm830_vm2, %v1633_v38, 0 }
 0x68b   : > { %v1366_v10 = vsel %vm782_vm1, %v1365_v8, 0.0 }
 0x68c   : > { %1367 = vadd.xlane.f32.xlu1 %v1366_v10  ;;  %v1743_v42 = vpop.permute.xlu0 %1742 }
 0x68d   : > { %v1748_v44 = vsel %vm830_vm2, %v1743_v42, 0 }
 0x690   : > { %v1853_v45 = vpop.permute.xlu0 %1852 }
 0x691   : > { %v1858_v47 = vsel %vm830_vm2, %v1853_v45, 0 }
 0x719   : > { %v1368_v15 = vpop.xlane.xlu1 %1367 }
 0x71a   : > { %v1369_v16 = vmul.f32 0.03125, %v1368_v15 }
 0x71c   : > { %v1370_v17 = vadd.f32 1e-05, %v1369_v16 }
 0x71e   : > { %4615 = vrsqrt.f32 %v1370_v17 }
 0x728   : > { %v4616_v18 = vpop.eup %4615 }
 0x729   : > { %v1372_v9 = vmul.f32 %v4616_v18, %v1364_v7 }
 0x72b   : > { %v1379_v21 = vmul.f32 %v3936_v19, %v1372_v9 }
 0x72d   : > { %v5103_v22 = vadd.f32 %v3937_v20, %v1379_v21 }
 0x72f   : > { %v1387_v23 = vpack.c.bf16 %v5103_v22, %v5103_v22 }
 0x731   : > { %4259 = vmatmul.mubr.msk.bf16.vlgmr.msra.gmra.mrb[20].mxu0 %vm782_vm1, %v1387_v23 }
 0x732   : > { %4272 = vmatprep.mubr.msk.bf16.mxu0 %vm4740_vm0, %v4739_v1  ;;  %4271 = vmatpush3.bf16.xpose.msra.mxu0 %v1526_v32 }
 0x733   : > { %4282 = vmatprep.subr.bf16.mxu0 %v4739_v1 }
 0x804   : > { %v1448_v34 = vpop.f32.mrb[20].mxu0 }
 0x805   : > { %v1449_v35 = vadd.f32 %v3938_v33, %v1448_v34  ;;  %v4260_v36 = vpop.f32.mrb[21].mxu0 }
 0x806   : > { %v1451_v37 = vpop.f32.mrb[22].mxu0 }
 0x807   : > { %v1520_v39 = vpack.c.bf16 %v1449_v35, %v1449_v35  ;;  %v4261_v40 = vpop.f32.mrb[23].mxu0 }
 0x809   : > { %1630 = vrot.lane.b32.xlu1 %v1520_v39, %s5726_s24  ;;  %4273 = vmatmul.mubr.msk.bf16.vlgmr.msra.gmra.mrb[24].mxu0 %vm830_vm2, %v1520_v39 }
 0x80a   : > { %4283 = vmatpush3.bf16.xpose.msra.mxu0 %v1638_v41  ;;  %4284 = vmatprep.mubr.msk.bf16.mxu0 %vm4740_vm0, %v4739_v1 }
 0x80b   : > { %4294 = vmatprep.subr.bf16.mxu0 %v4739_v1 }
 0x80d   : > { %1740 = vrot.lane.b32.xlu1 %v1520_v39, %s5727_s28 }
 0x811   : > { %1850 = vrot.lane.b32.xlu1 %v1520_v39, %s5728_s3 }
 0x87b   : > { %v1631_v43 = vpop.permute.xlu1 %1630 }
 0x87c   : > { %4285 = vmatmul.mubr.msk.bf16.vlgmr.msra.gmra.mrb[28].mxu0 %vm830_vm2, %v1631_v43 }
 0x87d   : > { %4295 = vmatpush3.bf16.xpose.msra.mxu0 %v1748_v44  ;;  %4296 = vmatprep.mubr.msk.bf16.mxu0 %vm4740_vm0, %v4739_v1 }
 0x87e   : > { %4306 = vmatprep.subr.bf16.mxu0 %v4739_v1 }
 0x87f   : > { %v1741_v46 = vpop.permute.xlu1 %1740 }
 0x883   : > { %v1851_v48 = vpop.permute.xlu1 %1850 }
 0x884   : > { %4297 = vmatmul.mubr.msk.bf16.vlgmr.msra.gmra.mrb[32].mxu0 %vm830_vm2, %v1741_v46 }
 0x885   : > { %4307 = vmatpush3.bf16.xpose.msra.mxu0 %v1858_v47  ;;  %4308 = vmatprep.mubr.msk.bf16.mxu0 %vm4740_vm0, %v4739_v1 }
 0x886   : > { %4318 = vmatprep.subr.bf16.mxu0 %v4739_v1 }
 0x88c   : > { %4309 = vmatmul.mubr.msk.bf16.vlgmr.msra.gmra.mrb[36].mxu0 %vm830_vm2, %v1851_v48 }
 0x88d   : > { %4322 = vmatprep.mubr.msk.bf16.mxu0 %vm4740_vm0, %v4739_v1 }
 0x8dc   : > { %v1562_v49 = vpop.f32.mrb[24].mxu0 }
 0x8dd   : > { %v4274_v50 = vpop.f32.mrb[25].mxu0  ;;  %v1568_v51 = vsel %vm830_vm2, %v1562_v49, -inf }
 0x8de   : > { %1569 = vmax.xlane.f32.xlu0 %v1568_v51  ;;  %v1565_v52 = vpop.f32.mrb[26].mxu0 }
 0x8df   : > { %v4275_v53 = vpop.f32.mrb[27].mxu0 }
 0x94f   : > { %v1674_v54 = vpop.f32.mrb[28].mxu0 }
 0x950   : > { %v4286_v55 = vpop.f32.mrb[29].mxu0  ;;  %v1680_v56 = vsel %vm830_vm2, %v1674_v54, -inf }
 0x951   : > { %1681 = vmax.xlane.f32.xlu1 %v1680_v56  ;;  %v1677_v57 = vpop.f32.mrb[30].mxu0 }
 0x952   : > { %v4287_v58 = vpop.f32.mrb[31].mxu0  ;;  %v4573_v57 = vld [vmem:[%s5734_s12] sm:$0xff]  }
 0x953   : > { %4319 = vmatpush3.bf16.msra.mxu0 %v4573_v57 }
 0x954   : > { %4320 = vmatprep.subr.bf16.mxu0 %v4739_v1 }
 0x957   : > { %v1784_v59 = vpop.f32.mrb[32].mxu0 }
 0x958   : > { %v4298_v60 = vpop.f32.mrb[33].mxu0  ;;  %v1790_v61 = vsel %vm830_vm2, %v1784_v59, -inf }
 0x959   : > { %1791 = vmax.xlane.f32.xlu0 %v1790_v61  ;;  %v1787_v62 = vpop.f32.mrb[34].mxu0 }
 0x95a   : > { %v4299_v63 = vpop.f32.mrb[35].mxu0  ;;  %v4574_v62 = vld [vmem:[%s5734_s12 + $0x8] sm:$0xff]   ;;  %s5752_s12 = sld [smem:[#allocation9_spill]] }
 0x95b   : > { %4321 = vmatpush3.bf16.msra.mxu0 %v4574_v62 }
 0x95c   : > { %4334 = vmatprep.subr.bf16.mxu0 %v4739_v1 }
 0x95f   : > { %v1894_v0 = vpop.f32.mrb[36].mxu0 }
 0x960   : > { %v4310_v2 = vpop.f32.mrb[37].mxu0  ;;  %v1900_v4 = vsel %vm830_vm2, %v1894_v0, -inf }
 0x961   : > { %1901 = vmax.xlane.f32.xlu0 %v1900_v4  ;;  %v1897_v5 = vpop.f32.mrb[38].mxu0 }
 0x962   : > { %v4311_v6 = vpop.f32.mrb[39].mxu0 }
 0x96b   : > { %v1570_v7 = vpop.xlane.xlu0 %1569 }
 0x96c   : > { %v1571_v8 = vsub.f32 %v1562_v49, %v1570_v7 }
 0x96e   : > { %v1572_v10 = vmul.f32 1.442695, %v1571_v8 }
 0x970   : > { %4617 = vpow2.f32 %v1572_v10 }
 0x97a   : > { %v4618_v3 = vpop.eup %4617 }
 0x97b   : > { %v1574_v11 = vsel %vm830_vm2, %v4618_v3, 0.0 }
 0x97c   : > { %1575 = vadd.xlane.f32.xlu1 %v1574_v11 }
 0x98d   : > { %1581 = vrot.lane.b32.xlu1 %v5113_v30, %s5730_s27 }
 0x9de   : > { %v1682_v13 = vpop.xlane.xlu1 %1681 }
 0x9df   : > { %v1683_v14 = vsub.f32 %v1674_v54, %v1682_v13 }
 0x9e1   : > { %v1684_v15 = vmul.f32 1.442695, %v1683_v14 }
 0x9e3   : > { %4619 = vpow2.f32 %v1684_v15 }
 0x9e6   : > { %v1792_v16 = vpop.xlane.xlu0 %1791 }
 0x9e7   : > { %v1793_v17 = vsub.f32 %v1784_v59, %v1792_v16 }
 0x9e9   : > { %v1794_v18 = vmul.f32 1.442695, %v1793_v17  ;;  %v3954_v17 = vld [vmem:[%s5738_s13] ss:$0 sm:$0xff]  ;;  %s5741_s13 = smov 48  }
 0x9eb   : > { %4621 = vpow2.f32 %v1794_v18 }
 0x9ed   : > { %v4620_v19 = vpop.eup %4619 }
 0x9ee   : > { %v1902_v9 = vpop.xlane.xlu0 %1901  ;;  %v1686_v20 = vsel %vm830_vm2, %v4620_v19, 0.0 }
 0x9ef   : > { %v1903_v21 = vsub.f32 %v1894_v0, %v1902_v9  ;;  %1687 = vadd.xlane.f32.xlu0 %v1686_v20 }
 0x9f1   : > { %v1904_v23 = vmul.f32 1.442695, %v1903_v21 }
 0x9f3   : > { %4623 = vpow2.f32 %v1904_v23 }
 0x9f5   : > { %v4622_v24 = vpop.eup %4621 }
 0x9f6   : > { %v1796_v26 = vsel %vm830_vm2, %v4622_v24, 0.0 }
 0x9f7   : > { %1797 = vadd.xlane.f32.xlu1 %v1796_v26 }
 0x9fd   : > { %v4624_v27 = vpop.eup %4623 }
 0x9fe   : > { %v1906_v28 = vsel %vm830_vm2, %v4624_v27, 0.0 }
 0x9ff   : > { %1907 = vadd.xlane.f32.xlu0 %v1906_v28 }
 0xa08   : > { %1802 = vrot.lane.b32.xlu1 %v5113_v30, %s5731_s5 }
 0xa09   : > { %v1576_v29 = vpop.xlane.xlu1 %1575 }
 0xa0a   : > { %4625 = vrcp.f32 %v1576_v29 }
 0xa0c   : > { %1912 = vrot.lane.b32.xlu1 %v5113_v30, %s5732_s2 }
 0xa0d   : > { %v1582_v31 = vpop.permute.xlu1 %1581 }
 0xa0e   : > { %v1587_v32 = vsel %vm895_vm4, %v1582_v31, 0 }
 0xa0f   : > { %4277 = vmatpush3.bf16.msra.mxu1 %v1587_v32  ;;  %v4575_v32 = vld [vmem:[%s5630_s16] sm:$0xff]  }
 0xa10   : > { %4288 = vmatprep.subr.bf16.mxu1 %v4739_v1 }
 0xa14   : > { %v4626_v33 = vpop.eup %4625 }
 0xa15   : > { %v1578_v34 = vmul.f32 %v4626_v33, %v4618_v3  ;;  %1692 = vrot.lane.b32.xlu0 %v5113_v30, %s5733_s30  ;;  %v4576_v33 = vld [vmem:[%s5630_s16 + $0x8] sm:$0xff]  }
 0xa17   : > { %v1579_v35 = vpack.c.bf16 %v1578_v34, %v1578_v34  ;;  %v4578_v34 = vld [vmem:[%s5632_s18 + $0x8] sm:$0xff]  }
 0xa19   : > { %4279 = vmatmul.mubr.msk.bf16.vlgmr.msra.gmra.mrb[24].mxu1 %vm830_vm2, %v1579_v35 }
 0xa1a   : > { %4290 = vmatprep.mubr.msk.bf16.mxu1 %vm4740_vm0, %v4739_v1 }
 0xa7c   : > { %v1688_v36 = vpop.xlane.xlu0 %1687 }
 0xa7d   : > { %4627 = vrcp.f32 %v1688_v36 }
 0xa84   : > { %v1798_v37 = vpop.xlane.xlu1 %1797 }
 0xa85   : > { %4629 = vrcp.f32 %v1798_v37 }
 0xa87   : > { %v4628_v38 = vpop.eup %4627 }
 0xa88   : > { %v1690_v40 = vmul.f32 %v4628_v38, %v4620_v19  ;;  %v1803_v43 = vpop.permute.xlu1 %1802 }
 0xa89   : > { %v1808_v45 = vsel %vm895_vm4, %v1803_v43, 0 }
 0xa8a   : > { %v1691_v30 = vpack.c.bf16 %v1690_v40, %v1690_v40 }
 0xa8c   : > { %v1908_v39 = vpop.xlane.xlu0 %1907  ;;  %v1913_v47 = vpop.permute.xlu1 %1912 }
 0xa8d   : > { %4631 = vrcp.f32 %v1908_v39  ;;  %v1918_v50 = vsel %vm895_vm4, %v1913_v47, 0  ;;  %v3958_v39 = vld [vmem:[%s5628_s14] ss:$0 sm:$0xff] }
 0xa8f   : > { %v4630_v44 = vpop.eup %4629 }
 0xa90   : > { %v1693_v41 = vpop.permute.xlu0 %1692  ;;  %v1800_v46 = vmul.f32 %v4630_v44, %v4622_v24  ;;  %v4579_v44 = vld [vmem:[%s5632_s18 + $0x10] sm:$0xff]  }
 0xa91   : > { %v1698_v42 = vsel %vm895_vm4, %v1693_v41, 0  ;;  %v3959_v41 = vld [vmem:[%s5629_s15] ss:$0 sm:$0xff] }
 0xa92   : > { %4289 = vmatpush3.bf16.msra.mxu1 %v1698_v42  ;;  %v1801_v48 = vpack.c.bf16 %v1800_v46, %v1800_v46  ;;  %v3960_v46 = vld [vmem:[%s5631_s17] ss:$0 sm:$0xff] }
 0xa93   : > { %4300 = vmatprep.subr.bf16.mxu1 %v4739_v1 }
 0xa95   : > { %4291 = vmatmul.mubr.msk.bf16.vlgmr.msra.gmra.mrb[28].mxu1 %vm830_vm2, %v1691_v30 }
 0xa96   : > { %4301 = vmatpush3.bf16.msra.mxu1 %v1808_v45  ;;  %4302 = vmatprep.mubr.msk.bf16.mxu1 %vm4740_vm0, %v4739_v1  ;;  %v4580_v45 = vld [vmem:[%s5632_s18 + $0x18] sm:$0xff]  }
 0xa97   : > { %4312 = vmatprep.subr.bf16.mxu1 %v4739_v1  ;;  %v4632_v49 = vpop.eup %4631 }
 0xa98   : > { %v1910_v51 = vmul.f32 %v4632_v49, %v4624_v27 }
 0xa9a   : > { %v1911_v52 = vpack.c.bf16 %v1910_v51, %v1910_v51 }
 0xa9d   : > { %4303 = vmatmul.mubr.msk.bf16.vlgmr.msra.gmra.mrb[32].mxu1 %vm830_vm2, %v1801_v48 }
 0xa9e   : > { %4313 = vmatpush3.bf16.msra.mxu1 %v1918_v50  ;;  %4314 = vmatprep.mubr.msk.bf16.mxu1 %vm4740_vm0, %v4739_v1 }
 0xa9f   : > { %4326 = vmatprep.subr.bf16.mxu1 %v4739_v1 }
 0xaa5   : > { %4315 = vmatmul.mubr.msk.bf16.vlgmr.msra.gmra.mrb[36].mxu1 %vm830_vm2, %v1911_v52 }
 0xaa6   : > { %4330 = vmatprep.mubr.msk.bf16.mxu1 %vm4740_vm0, %v4739_v1  ;;  %4327 = vmatpush3.bf16.msra.mxu1 %v4575_v32 }
 0xaa7   : > { %4328 = vmatprep.subr.bf16.mxu1 %v4739_v1 }
 0xaaa   : > { %4329 = vmatpush3.bf16.msra.mxu1 %v4576_v33 }
 0xaab   : > { %4346 = vmatprep.subr.bf16.mxu1 %v4739_v1 }
 0xaec   : > { %v1623_v53 = vpop.f32.mrb[24].mxu1 }
 0xaed   : > { %v4280_v54 = vpop.f32.mrb[25].mxu1 }
 0xaee   : > { %v1626_v55 = vpop.f32.mrb[26].mxu1  ;;  %v3964_v54 = vld [vmem:[%s5633_s19] ss:$0 sm:$0xff] }
 0xaef   : > { %v4281_v56 = vpop.f32.mrb[27].mxu1 }
 0xb68   : > { %v1734_v58 = vpop.f32.mrb[28].mxu1 }
 0xb69   : > { %1961 = vrot.lane.b32.xlu0 %v1734_v58, %s5735_s26  ;;  %v4292_v59 = vpop.f32.mrb[29].mxu1 }
 0xb6a   : > { %v1737_v60 = vpop.f32.mrb[30].mxu1 }
 0xb6b   : > { %v4293_v61 = vpop.f32.mrb[31].mxu1 }
 0xb70   : > { %v1844_v63 = vpop.f32.mrb[32].mxu1 }
 0xb71   : > { %1965 = vrot.lane.b32.xlu1 %v1844_v63, %s5736_s11  ;;  %v4304_v0 = vpop.f32.mrb[33].mxu1 }
 0xb72   : > { %v1847_v2 = vpop.f32.mrb[34].mxu1 }
 0xb73   : > { %v4305_v4 = vpop.f32.mrb[35].mxu1 }
 0xb78   : > { %v1954_v5 = vpop.f32.mrb[36].mxu1 }
 0xb79   : > { %1969 = vrot.lane.b32.xlu0 %v1954_v5, %s5737_s23  ;;  %v4316_v6 = vpop.f32.mrb[37].mxu1  ;;  %v4581_v5 = vld [vmem:[%s5713_s1 + $0x10] sm:$0xff]  }
 0xb7a   : > { %v1957_v7 = vpop.f32.mrb[38].mxu1  ;;  %v4582_v6 = vld [vmem:[%s5713_s1 + $0x18] sm:$0xff]  }
 0xb7b   : > { %v4317_v8 = vpop.f32.mrb[39].mxu1 }
 0xbdb   : > { %v1962_v10 = vpop.permute.xlu0 %1961 }
 0xbdc   : > { %v1972_v11 = vsel %vm830_vm2, %v1623_v53, %v1962_v10 }
 0xbe3   : > { %v1966_v3 = vpop.permute.xlu1 %1965 }
 0xbe4   : > { %v1973_v13 = vsel %vm1285_vm5, %v1972_v11, %v1966_v3  ;;  %v3970_v11 = vld [vmem:[%s5634_s20] ss:$0 sm:$0xff] }
 0xbeb   : > { %v1970_v14 = vpop.permute.xlu0 %1969 }
 0xbec   : > { %v1974_v15 = vsel %vm1287_vm6, %v1973_v13, %v1970_v14  ;;  %v3971_v14 = vld [vmem:[%s5635_s21] ss:$0 sm:$0xff] }
 0xbed   : > { %v1975_v16 = vpack.c.bf16 %v1974_v15, %v1974_v15 }
 0xbef   : > { %4323 = vmatmul.mubr.msk.bf16.vlgmr.msra.gmra.mrb[40].mxu0 %vm782_vm1, %v1975_v16 }
 0xbf0   : > { %4342 = vmatprep.mubr.msk.bf16.mxu0 %vm4740_vm0, %v4739_v1 }
 0xcc2   : > { %v2036_v18 = vpop.f32.mrb[40].mxu0 }
 0xcc3   : > { %v2037_v19 = vadd.f32 %v3954_v17, %v2036_v18  ;;  %v4324_v9 = vpop.f32.mrb[41].mxu0  ;;  %v3977_v18 = vld [vmem:[%s5715_s25 + $0x1] ss:$0 sm:$0xff] }
 0xcc4   : > { %v2039_v20 = vpop.f32.mrb[42].mxu0 }
 0xcc5   : > { %v4325_v21 = vpop.f32.mrb[43].mxu0  ;;  %v2042_v23 = vadd.f32 %v2037_v19, %v5103_v22  ;;  %v4577_v22 = vld [vmem:[%s5632_s18] sm:$0xff]  }
 0xcc6   : > { %4335 = vmatpush3.bf16.msra.mxu0 %v4577_v22 }
 0xcc7   : > { %v2045_v24 = vsel %vm782_vm1, %v2042_v23, 0.0  ;;  %4336 = vmatprep.subr.bf16.mxu0 %v4739_v1 }
 0xcc8   : > { %2046 = vadd.xlane.f32.xlu1 %v2045_v24 }
 0xcca   : > { %4337 = vmatpush3.bf16.msra.mxu0 %v4578_v34 }
 0xccb   : > { %4338 = vmatprep.subr.bf16.mxu0 %v4739_v1 }
 0xcce   : > { %4339 = vmatpush3.bf16.msra.mxu0 %v4579_v44 }
 0xccf   : > { %4340 = vmatprep.subr.bf16.mxu0 %v4739_v1 }
 0xcd2   : > { %4341 = vmatpush3.bf16.msra.mxu0 %v4580_v45 }
 0xcd3   : > { %4360 = vmatprep.subr.bf16.mxu0 %v4739_v1 }
 0xd55   : > { %v2047_v26 = vpop.xlane.xlu1 %2046 }
 0xd56   : > { %v2048_v27 = vmul.f32 0.03125, %v2047_v26 }
 0xd58   : > { %v2049_v28 = vsub.f32 %v2042_v23, %v2048_v27 }
 0xd5a   : > { %v2050_v29 = vmul.f32 %v2049_v28, %v2049_v28 }
 0xd5c   : > { %v2051_v31 = vsel %vm782_vm1, %v2050_v29, 0.0 }
 0xd5d   : > { %2052 = vadd.xlane.f32.xlu0 %v2051_v31 }
 0xdea   : > { %v2053_v35 = vpop.xlane.xlu0 %2052 }
 0xdeb   : > { %v2054_v36 = vmul.f32 0.03125, %v2053_v35 }
 0xded   : > { %v2055_v37 = vadd.f32 1e-05, %v2054_v36 }
 0xdef   : > { %4633 = vrsqrt.f32 %v2055_v37 }
 0xdf9   : > { %v4634_v38 = vpop.eup %4633 }
 0xdfa   : > { %v2057_v40 = vmul.f32 %v4634_v38, %v2049_v28 }
 0xdfc   : > { %v2064_v42 = vmul.f32 %v3958_v39, %v2057_v40 }
 0xdfe   : > { %v2071_v43 = vadd.f32 %v3959_v41, %v2064_v42 }
 0xe00   : > { %v2072_v30 = vpack.c.bf16 %v2071_v43, %v2071_v43 }
 0xe02   : > { %4331 = vmatmul.mubr.msk.bf16.vlgmr.msra.gmra.mrb[40].mxu1 %vm782_vm1, %v2072_v30 }
 0xe03   : > { %4350 = vmatprep.mubr.msk.bf16.mxu1 %vm4740_vm0, %v4739_v1  ;;  %4347 = vmatpush3.bf16.msra.mxu1 %v4581_v5 }
 0xe04   : > { %4348 = vmatprep.subr.bf16.mxu1 %v4739_v1 }
 0xe07   : > { %4349 = vmatpush3.bf16.msra.mxu1 %v4582_v6 }
 0xe08   : > { %4354 = vmatprep.subr.bf16.mxu1 %v4739_v1 }
 0xed5   : > { %v2133_v47 = vpop.f32.mrb[40].mxu1 }
 0xed6   : > { %v2134_v48 = vadd.f32 %v3960_v46, %v2133_v47  ;;  %v4332_v49 = vpop.f32.mrb[41].mxu1 }
 0xed7   : > { %v2136_v50 = vpop.f32.mrb[42].mxu1 }
 0xed8   : > { %v2139_v51 = vmax.f32 %v2134_v48, 0.0  ;;  %v4333_v52 = vpop.f32.mrb[43].mxu1 }
 0xeda   : > { %v2140_v53 = vpack.c.bf16 %v2139_v51, %v2139_v51 }
 0xedc   : > { %4343 = vmatmul.mubr.msk.bf16.vlgmr.msra.gmra.mrb[44].mxu0 %vm2180_vm7, %v2140_v53 }
 0xedd   : > { %4362 = vmatprep.mubr.msk.bf16.mxu0 %vm4740_vm0, %v4739_v1 }
 0xfaf   : > { %v2218_v55 = vpop.f32.mrb[44].mxu0 }
 0xfb0   : > { %v2219_v56 = vadd.f32 %v3964_v54, %v2218_v55  ;;  %v4344_v57 = vpop.f32.mrb[45].mxu0 }
 0xfb1   : > { %v2221_v58 = vpop.f32.mrb[46].mxu0 }
 0xfb2   : > { %v4345_v59 = vpop.f32.mrb[47].mxu0  ;;  %v2224_v60 = vadd.f32 %v2219_v56, %v2071_v43 }
 0xfb4   : > { %v2227_v61 = vsel %vm782_vm1, %v2224_v60, 0.0 }
 0xfb5   : > { %2228 = vadd.xlane.f32.xlu0 %v2227_v61 }
0x1042   : > { %v2229_v62 = vpop.xlane.xlu0 %2228 }
0x1043   : > { %v2230_v63 = vmul.f32 0.03125, %v2229_v62 }
0x1045   : > { %v2231_v0 = vsub.f32 %v2224_v60, %v2230_v63 }
0x1047   : > { %v2232_v2 = vmul.f32 %v2231_v0, %v2231_v0 }
0x1049   : > { %v2233_v4 = vsel %vm782_vm1, %v2232_v2, 0.0 }
0x104a   : > { %2234 = vadd.xlane.f32.xlu1 %v2233_v4 }
0x10d7   : > { %v2235_v7 = vpop.xlane.xlu1 %2234 }
0x10d8   : > { %v2236_v8 = vmul.f32 0.03125, %v2235_v7 }
0x10da   : > { %v2237_v10 = vadd.f32 1e-05, %v2236_v8 }
0x10dc   : > { %4635 = vrsqrt.f32 %v2237_v10 }
0x10e6   : > { %v4636_v3 = vpop.eup %4635 }
0x10e7   : > { %v2239_v13 = vmul.f32 %v4636_v3, %v2231_v0 }
0x10e9   : > { %v2246_v15 = vmul.f32 %v3970_v11, %v2239_v13 }
0x10eb   : > { %v5265_v16 = vadd.f32 %v3971_v14, %v2246_v15 }
0x10ed   : > { %v2254_v17 = vpack.c.bf16 %v5265_v16, %v5265_v16 }
0x10ef   : > { %4351 = vmatmul.mubr.msk.bf16.vlgmr.msra.gmra.mrb[44].mxu1 %vm782_vm1, %v2254_v17 }
0x10f0   : > { %4356 = vmatprep.mubr.msk.bf16.mxu1 %vm4740_vm0, %v4739_v1 }
0x11c2   : > { %v2317_v19 = vpop.f32.mrb[44].mxu1 }
0x11c3   : > { %v2318_v9 = vadd.f32 %v3977_v18, %v2317_v19  ;;  %v4352_v20 = vpop.f32.mrb[45].mxu1 }
0x11c4   : > { %v2320_v21 = vpop.f32.mrb[46].mxu1 }
0x11c5   : > { %v5275_v23 = vpack.c.bf16 %v2318_v9, %v2318_v9  ;;  %v4353_v24 = vpop.f32.mrb[47].mxu1 }
0x11c7   : > { %2436 = vrot.lane.b32.xlu1 %v5275_v23, %s5733_s30  ;;  %2325 = vrot.lane.b32.xlu0 %v5275_v23, %s5730_s27 }
0x11cb   : > { %2434 = vrot.lane.b32.xlu1 %v5275_v23, %s5726_s24  ;;  %2547 = vrot.lane.b32.xlu0 %v5275_v23, %s5731_s5 }
0x11cf   : > { %2545 = vrot.lane.b32.xlu1 %v5275_v23, %s5727_s28  ;;  %2658 = vrot.lane.b32.xlu0 %v5275_v23, %s5732_s2 }
0x11d3   : > { %2656 = vrot.lane.b32.xlu1 %v5275_v23, %s5728_s3 }
0x1239   : > { %v2326_v26 = vpop.permute.xlu0 %2325  ;;  %v2437_v28 = vpop.permute.xlu1 %2436 }
0x123a   : > { %v2331_v27 = vsel %vm830_vm2, %v2326_v26, 0  ;;  %v2442_v29 = vsel %vm830_vm2, %v2437_v28, 0 }
0x123b   : > { %4355 = vmatpush3.bf16.xpose.msra.mxu1 %v2331_v27 }
0x123c   : > { %4366 = vmatprep.subr.bf16.mxu1 %v4739_v1 }
0x123d   : > { %v2548_v31 = vpop.permute.xlu0 %2547  ;;  %v2435_v32 = vpop.permute.xlu1 %2434 }
0x123e   : > { %v2553_v33 = vsel %vm830_vm2, %v2548_v31, 0 }
0x1241   : > { %v2659_v22 = vpop.permute.xlu0 %2658  ;;  %v2546_v34 = vpop.permute.xlu1 %2545 }
0x1242   : > { %4357 = vmatmul.mubr.msk.bf16.vlgmr.msra.gmra.mrb[48].mxu1 %vm830_vm2, %v5275_v23  ;;  %v2664_v35 = vsel %vm830_vm2, %v2659_v22, 0 }
0x1243   : > { %4367 = vmatpush3.bf16.xpose.msra.mxu1 %v2442_v29  ;;  %4368 = vmatprep.mubr.msk.bf16.mxu1 %vm4740_vm0, %v4739_v1 }
0x1244   : > { %4378 = vmatprep.subr.bf16.mxu1 %v4739_v1 }
0x1245   : > { %v2657_v36 = vpop.permute.xlu1 %2656 }
0x124a   : > { %4369 = vmatmul.mubr.msk.bf16.vlgmr.msra.gmra.mrb[52].mxu1 %vm830_vm2, %v2435_v32 }
0x124b   : > { %4379 = vmatpush3.bf16.xpose.msra.mxu1 %v2553_v33  ;;  %4380 = vmatprep.mubr.msk.bf16.mxu1 %vm4740_vm0, %v4739_v1 }
0x124c   : > { %4390 = vmatprep.subr.bf16.mxu1 %v4739_v1 }
0x1252   : > { %4381 = vmatmul.mubr.msk.bf16.vlgmr.msra.gmra.mrb[56].mxu1 %vm830_vm2, %v2546_v34 }
0x1253   : > { %4391 = vmatpush3.bf16.xpose.msra.mxu1 %v2664_v35  ;;  %4392 = vmatprep.mubr.msk.bf16.mxu1 %vm4740_vm0, %v4739_v1 }
0x1254   : > { %4402 = vmatprep.subr.bf16.mxu1 %v4739_v1 }
0x125a   : > { %4393 = vmatmul.mubr.msk.bf16.vlgmr.msra.gmra.mrb[60].mxu1 %vm830_vm2, %v2657_v36 }
0x125b   : > { %4406 = vmatprep.mubr.msk.bf16.mxu1 %vm4740_vm0, %v4739_v1 }
0x1315   : > { %v2367_v37 = vpop.f32.mrb[48].mxu1 }
0x1316   : > { %v2373_v38 = vsel %vm4999_vm3, %v2367_v37, -1e+09  ;;  %v4358_v39 = vpop.f32.mrb[49].mxu1 }
0x1317   : > { %v2370_v40 = vpop.f32.mrb[50].mxu1  ;;  %v2374_v41 = vsel %vm830_vm2, %v2373_v38, -inf }
0x1318   : > { %2375 = vmax.xlane.f32.xlu0 %v2374_v41  ;;  %v4359_v42 = vpop.f32.mrb[51].mxu1 }
0x131d   : > { %v2478_v43 = vpop.f32.mrb[52].mxu1 }
0x131e   : > { %v2484_v30 = vsel %vm4999_vm3, %v2478_v43, -1e+09  ;;  %v4370_v44 = vpop.f32.mrb[53].mxu1 }
0x131f   : > { %v2481_v45 = vpop.f32.mrb[54].mxu1  ;;  %v2485_v46 = vsel %vm830_vm2, %v2484_v30, -inf }
0x1320   : > { %2486 = vmax.xlane.f32.xlu1 %v2485_v46  ;;  %v4371_v47 = vpop.f32.mrb[55].mxu1 }
0x1325   : > { %v2589_v48 = vpop.f32.mrb[56].mxu1 }
0x1326   : > { %v2595_v49 = vsel %vm4999_vm3, %v2589_v48, -1e+09  ;;  %v4382_v50 = vpop.f32.mrb[57].mxu1 }
0x1327   : > { %v2592_v51 = vpop.f32.mrb[58].mxu1  ;;  %v2596_v52 = vsel %vm830_vm2, %v2595_v49, -inf }
0x1328   : > { %2597 = vmax.xlane.f32.xlu0 %v2596_v52  ;;  %v4383_v53 = vpop.f32.mrb[59].mxu1  ;;  %v4583_v51 = vld [vmem:[%s5718_s29 + $0x10] sm:$0xff]   ;;  %v4584_v52 = vld [vmem:[%s5718_s29 + $0x18] sm:$0xff]  }
0x1329   : > { %4403 = vmatpush3.bf16.msra.mxu1 %v4583_v51 }
0x132a   : > { %4404 = vmatprep.subr.bf16.mxu1 %v4739_v1 }
0x132d   : > { %v2700_v54 = vpop.f32.mrb[60].mxu1  ;;  %4405 = vmatpush3.bf16.msra.mxu1 %v4584_v52 }
0x132e   : > { %v2706_v55 = vsel %vm4999_vm3, %v2700_v54, -1e+09  ;;  %v4394_v56 = vpop.f32.mrb[61].mxu1  ;;  %4418 = vmatprep.subr.bf16.mxu1 %v4739_v1 }
0x132f   : > { %v2703_v57 = vpop.f32.mrb[62].mxu1  ;;  %v2707_v58 = vsel %vm830_vm2, %v2706_v55, -inf }
0x1330   : > { %2708 = vmax.xlane.f32.xlu0 %v2707_v58  ;;  %v4395_v59 = vpop.f32.mrb[63].mxu1 }
0x13a5   : > { %v2376_v60 = vpop.xlane.xlu0 %2375 }
0x13a6   : > { %v2377_v61 = vsub.f32 %v2373_v38, %v2376_v60 }
0x13a8   : > { %v2378_v62 = vmul.f32 1.442695, %v2377_v61 }
0x13aa   : > { %4637 = vpow2.f32 %v2378_v62 }
0x13ad   : > { %v2487_v63 = vpop.xlane.xlu1 %2486 }
0x13ae   : > { %v2488_v0 = vsub.f32 %v2484_v30, %v2487_v63 }
0x13b0   : > { %v2489_v2 = vmul.f32 1.442695, %v2488_v0 }
0x13b2   : > { %4639 = vpow2.f32 %v2489_v2 }
0x13b4   : > { %v4638_v4 = vpop.eup %4637 }
0x13b5   : > { %v2380_v5 = vsel %vm830_vm2, %v4638_v4, 0.0  ;;  %v2598_v25 = vpop.xlane.xlu0 %2597 }
0x13b6   : > { %2381 = vadd.xlane.f32.xlu1 %v2380_v5  ;;  %v2599_v14 = vsub.f32 %v2595_v49, %v2598_v25  ;;  %v3994_v25 = vld [vmem:[%s5719_s0 + $0x1] ss:$0 sm:$0xff]  ;;  %s5745_s0 = sld [smem:[#allocation21_spill]] }
0x13b8   : > { %v2600_v15 = vmul.f32 1.442695, %v2599_v14 }
0x13bc   : > { %v4640_v6 = vpop.eup %4639 }
0x13bd   : > { %v2709_v7 = vpop.xlane.xlu0 %2708  ;;  %v2491_v8 = vsel %vm830_vm2, %v4640_v6, 0.0 }
0x13be   : > { %v2710_v10 = vsub.f32 %v2706_v55, %v2709_v7  ;;  %2492 = vadd.xlane.f32.xlu0 %v2491_v8 }
0x13c0   : > { %v2711_v3 = vmul.f32 1.442695, %v2710_v10 }
0x13c2   : > { %4641 = vpow2.f32 %v2711_v3 }
0x13c3   : > { %4643 = vpow2.f32 %v2600_v15 }
0x13c7   : > { %2386 = vrot.lane.b32.xlu1 %v5275_v23, %s5739_s9  ;;  %s5743_s9 = sld [smem:[#allocation22_spill]] }
0x13cc   : > { %v4642_v11 = vpop.eup %4641 }
0x13cd   : > { %v2713_v13 = vsel %vm830_vm2, %v4642_v11, 0.0  ;;  %v4644_v17 = vpop.eup %4643 }
0x13ce   : > { %2714 = vadd.xlane.f32.xlu0 %v2713_v13  ;;  %v2602_v18 = vsel %vm830_vm2, %v4644_v17, 0.0 }
0x13e4   : > { %2497 = vrot.lane.b32.xlu0 %v5275_v23, %s5740_s22  ;;  %s5750_s22 = sld [smem:[#allocation27_spill]] }
0x13eb   : > { %2603 = vadd.xlane.f32.xlu1 %v2602_v18 }
0x13fc   : > { %2608 = vrot.lane.b32.xlu1 %v5275_v23, %s5741_s13 }
0x1400   : > { %2719 = vrot.lane.b32.xlu1 %v5275_v23, %s5742_s6  ;;  %s5746_s6 = sld [smem:[#allocation24_spill]] }
0x1443   : > { %v2382_v19 = vpop.xlane.xlu1 %2381 }
0x1444   : > { %4645 = vrcp.f32 %v2382_v19 }
0x1447   : > { %v2387_v9 = vpop.permute.xlu1 %2386 }
0x1448   : > { %v2392_v20 = vsel %vm895_vm4, %v2387_v9, 0  ;;  %v4585_v9 = vld [vmem:[%s5624_s10 + $0x10] sm:$0xff]  }
0x1449   : > { %4361 = vmatpush3.bf16.msra.mxu0 %v2392_v20  ;;  %v4587_v20 = vld [vmem:[%s5743_s9 + $0x10] sm:$0xff]  }
0x144a   : > { %4372 = vmatprep.subr.bf16.mxu0 %v4739_v1 }
0x144b   : > { %v2493_v24 = vpop.xlane.xlu0 %2492 }
0x144c   : > { %4647 = vrcp.f32 %v2493_v24 }
0x144e   : > { %v4646_v21 = vpop.eup %4645 }
0x144f   : > { %v2384_v26 = vmul.f32 %v4646_v21, %v4638_v4  ;;  %v4588_v21 = vld [vmem:[%s5743_s9 + $0x18] sm:$0xff]  }
0x1451   : > { %v2385_v27 = vpack.c.bf16 %v2384_v26, %v2384_v26 }
0x1453   : > { %4363 = vmatmul.mubr.msk.bf16.vlgmr.msra.gmra.mrb[48].mxu0 %vm830_vm2, %v2385_v27 }
0x1454   : > { %4374 = vmatprep.mubr.msk.bf16.mxu0 %vm4740_vm0, %v4739_v1 }
0x1456   : > { %v4648_v28 = vpop.eup %4647 }
0x1457   : > { %v2495_v29 = vmul.f32 %v4648_v28, %v4640_v6  ;;  %v4000_v28 = vld [vmem:[%s5744_s4 + $0x1] ss:$0 sm:$0xff]  ;;  %s5747_s4 = sld [smem:[#allocation23_spill]] }
0x1459   : > { %v2496_v33 = vpack.c.bf16 %v2495_v29, %v2495_v29  ;;  %v4001_v29 = vld [vmem:[%s5745_s0 + $0x1] ss:$0 sm:$0xff]  ;;  %s5751_s0 = sld [smem:[#allocation6_spill]] }
0x145b   : > { %v2715_v23 = vpop.xlane.xlu0 %2714 }
0x145f   : > { %v2498_v31 = vpop.permute.xlu0 %2497 }
0x1460   : > { %v2503_v32 = vsel %vm895_vm4, %v2498_v31, 0 }
0x1461   : > { %4373 = vmatpush3.bf16.msra.mxu0 %v2503_v32 }
0x1462   : > { %4384 = vmatprep.subr.bf16.mxu0 %v4739_v1 }
0x1464   : > { %4375 = vmatmul.mubr.msk.bf16.vlgmr.msra.gmra.mrb[52].mxu0 %vm830_vm2, %v2496_v33 }
0x1465   : > { %4386 = vmatprep.mubr.msk.bf16.mxu0 %vm4740_vm0, %v4739_v1 }
0x1478   : > { %v2604_v22 = vpop.xlane.xlu1 %2603 }
0x1479   : > { %4649 = vrcp.f32 %v2604_v22  ;;  %v4016_v22 = vld [vmem:[%s5746_s6 + $0x1] ss:$0 sm:$0xff] }
0x147a   : > { %4651 = vrcp.f32 %v2715_v23 }
0x147c   : > { %v2609_v34 = vpop.permute.xlu1 %2608 }
0x147d   : > { %v2614_v35 = vsel %vm895_vm4, %v2609_v34, 0 }
0x147e   : > { %4385 = vmatpush3.bf16.msra.mxu0 %v2614_v35 }
0x147f   : > { %4396 = vmatprep.subr.bf16.mxu0 %v4739_v1 }
0x1480   : > { %v2720_v38 = vpop.permute.xlu1 %2719 }
0x1481   : > { %v2725_v41 = vsel %vm895_vm4, %v2720_v38, 0 }
0x1483   : > { %v4650_v36 = vpop.eup %4649 }
0x1484   : > { %v2606_v37 = vmul.f32 %v4650_v36, %v4644_v17  ;;  %v4652_v40 = vpop.eup %4651 }
0x1485   : > { %v2717_v42 = vmul.f32 %v4652_v40, %v4642_v11 }
0x1486   : > { %v2607_v39 = vpack.c.bf16 %v2606_v37, %v2606_v37 }
0x1487   : > { %v2718_v43 = vpack.c.bf16 %v2717_v42, %v2717_v42 }
0x1488   : > { %4387 = vmatmul.mubr.msk.bf16.vlgmr.msra.gmra.mrb[56].mxu0 %vm830_vm2, %v2607_v39 }
0x1489   : > { %4397 = vmatpush3.bf16.msra.mxu0 %v2725_v41  ;;  %4398 = vmatprep.mubr.msk.bf16.mxu0 %vm4740_vm0, %v4739_v1  ;;  %v4007_v41 = vld [vmem:[%s5747_s4 + $0x1] ss:$0 sm:$0xff]  ;;  %s5755_s4 = sld [smem:[#allocation29_spill]] }
0x148a   : > { %4410 = vmatprep.subr.bf16.mxu0 %v4739_v1 }
0x1490   : > { %4399 = vmatmul.mubr.msk.bf16.vlgmr.msra.gmra.mrb[60].mxu0 %vm830_vm2, %v2718_v43 }
0x1491   : > { %4414 = vmatprep.mubr.msk.bf16.mxu0 %vm4740_vm0, %v4739_v1  ;;  %4411 = vmatpush3.bf16.msra.mxu0 %v4587_v20 }
0x1492   : > { %4412 = vmatprep.subr.bf16.mxu0 %v4739_v1 }
0x1495   : > { %4413 = vmatpush3.bf16.msra.mxu0 %v4588_v21 }
0x1496   : > { %4426 = vmatprep.subr.bf16.mxu0 %v4739_v1 }
0x1526   : > { %v2428_v30 = vpop.f32.mrb[48].mxu0 }
0x1527   : > { %v4364_v44 = vpop.f32.mrb[49].mxu0 }
0x1528   : > { %v2431_v45 = vpop.f32.mrb[50].mxu0 }
0x1529   : > { %v4365_v46 = vpop.f32.mrb[51].mxu0 }
0x1537   : > { %v2539_v47 = vpop.f32.mrb[52].mxu0 }
0x1538   : > { %2768 = vrot.lane.b32.xlu0 %v2539_v47, %s5735_s26  ;;  %v4376_v48 = vpop.f32.mrb[53].mxu0 }
0x1539   : > { %v2542_v49 = vpop.f32.mrb[54].mxu0 }
0x153a   : > { %v4377_v50 = vpop.f32.mrb[55].mxu0 }
0x155b   : > { %v2650_v53 = vpop.f32.mrb[56].mxu0 }
0x155c   : > { %2772 = vrot.lane.b32.xlu1 %v2650_v53, %s5736_s11  ;;  %v4388_v54 = vpop.f32.mrb[57].mxu0 }
0x155d   : > { %v2653_v55 = vpop.f32.mrb[58].mxu0 }
0x155e   : > { %v4389_v56 = vpop.f32.mrb[59].mxu0 }
0x1563   : > { %v2761_v57 = vpop.f32.mrb[60].mxu0 }
0x1564   : > { %2776 = vrot.lane.b32.xlu0 %v2761_v57, %s5737_s23  ;;  %v4400_v58 = vpop.f32.mrb[61].mxu0 }
0x1565   : > { %v2764_v59 = vpop.f32.mrb[62].mxu0 }
0x1566   : > { %v4401_v60 = vpop.f32.mrb[63].mxu0 }
0x15aa   : > { %v2769_v61 = vpop.permute.xlu0 %2768 }
0x15ab   : > { %v2779_v63 = vsel %vm830_vm2, %v2428_v30, %v2769_v61 }
0x15ce   : > { %v2773_v62 = vpop.permute.xlu1 %2772 }
0x15cf   : > { %v2780_v0 = vsel %vm1285_vm5, %v2779_v63, %v2773_v62 }
0x15d6   : > { %v2777_v2 = vpop.permute.xlu0 %2776 }
0x15d7   : > { %v2781_v4 = vsel %vm1287_vm6, %v2780_v0, %v2777_v2 }
0x15d8   : > { %v2782_v5 = vpack.c.bf16 %v2781_v4, %v2781_v4 }
0x15da   : > { %4407 = vmatmul.mubr.msk.bf16.vlgmr.msra.gmra.mrb[64].mxu1 %vm782_vm1, %v2782_v5 }
0x15db   : > { %4422 = vmatprep.mubr.msk.bf16.mxu1 %vm4740_vm0, %v4739_v1  ;;  %4419 = vmatpush3.bf16.msra.mxu1 %v4585_v9 }
0x15dc   : > { %4420 = vmatprep.subr.bf16.mxu1 %v4739_v1 }
0x16ad   : > { %v2845_v6 = vpop.f32.mrb[64].mxu1 }
0x16ae   : > { %v2846_v7 = vadd.f32 %v3994_v25, %v2845_v6  ;;  %v4408_v8 = vpop.f32.mrb[65].mxu1 }
0x16af   : > { %v2848_v10 = vpop.f32.mrb[66].mxu1 }
0x16b0   : > { %v4409_v3 = vpop.f32.mrb[67].mxu1  ;;  %v2851_v11 = vadd.f32 %v2846_v7, %v5265_v16  ;;  %v4586_v16 = vld [vmem:[%s5624_s10 + $0x18] sm:$0xff]  }
0x16b1   : > { %4421 = vmatpush3.bf16.msra.mxu1 %v4586_v16 }
0x16b2   : > { %v2856_v13 = vsel %vm782_vm1, %v2851_v11, 0.0  ;;  %4432 = vmatprep.subr.bf16.mxu1 %v4739_v1 }
0x16b3   : > { %2857 = vadd.xlane.f32.xlu1 %v2856_v13 }
0x16b4   : > { %4423 = vmatmul.mubr.msk.bf16.vlgmr.msra.gmra.mrb[68].mxu1 %vm782_vm1, %v5083_v12 }
0x16b5   : > { %4434 = vmatprep.mubr.msk.bf16.mxu1 %vm4740_vm0, %v4739_v1 }
0x1740   : > { %v2858_v14 = vpop.xlane.xlu1 %2857 }
0x1741   : > { %v2859_v15 = vmul.f32 0.03125, %v2858_v14 }
0x1743   : > { %v2860_v17 = vsub.f32 %v2851_v11, %v2859_v15 }
0x1745   : > { %v2861_v18 = vmul.f32 %v2860_v17, %v2860_v17 }
0x1747   : > { %v2862_v19 = vsel %vm782_vm1, %v2861_v18, 0.0 }
0x1748   : > { %2863 = vadd.xlane.f32.xlu0 %v2862_v19 }
0x1787   : > { %v3011_v34 = vpop.f32.mrb[68].mxu1 }
0x1788   : > { %v3012_v35 = vadd.f32 %v4016_v22, %v3011_v34  ;;  %v4424_v36 = vpop.f32.mrb[69].mxu1 }
0x1789   : > { %v3014_v37 = vpop.f32.mrb[70].mxu1 }
0x178a   : > { %v5415_v38 = vpack.c.bf16 %v3012_v35, %v3012_v35  ;;  %v4425_v39 = vpop.f32.mrb[71].mxu1 }
0x178c   : > { %3129 = vrot.lane.b32.xlu0 %v5415_v38, %s5726_s24  ;;  %v3023_v40 = vsel %vm830_vm2, %v5415_v38, 0 }
0x17d5   : > { %v2864_v24 = vpop.xlane.xlu0 %2863 }
0x17d6   : > { %v2865_v26 = vmul.f32 0.03125, %v2864_v24 }
0x17d8   : > { %v2866_v12 = vadd.f32 1e-05, %v2865_v26 }
0x17da   : > { %4653 = vrsqrt.f32 %v2866_v12 }
0x17e4   : > { %v4654_v27 = vpop.eup %4653 }
0x17e5   : > { %v2868_v23 = vmul.f32 %v4654_v27, %v2860_v17 }
0x17e7   : > { %v2875_v31 = vmul.f32 %v4000_v28, %v2868_v23 }
0x17e9   : > { %v5405_v32 = vadd.f32 %v4001_v29, %v2875_v31 }
0x17eb   : > { %v2883_v33 = vpack.c.bf16 %v5405_v32, %v5405_v32 }
0x17ed   : > { %4415 = vmatmul.mubr.msk.bf16.vlgmr.msra.gmra.mrb[64].mxu0 %vm782_vm1, %v2883_v33 }
0x17ee   : > { %4428 = vmatprep.mubr.msk.bf16.mxu0 %vm4740_vm0, %v4739_v1  ;;  %4427 = vmatpush3.bf16.xpose.msra.mxu0 %v3023_v40 }
0x17ef   : > { %4438 = vmatprep.subr.bf16.mxu0 %v4739_v1 }
0x17fe   : > { %v3130_v44 = vpop.permute.xlu0 %3129 }
0x17ff   : > { %v3135_v48 = vsel %vm830_vm2, %v3130_v44, 0 }
0x18c0   : > { %v2946_v42 = vpop.f32.mrb[64].mxu0 }
0x18c1   : > { %v2947_v43 = vadd.f32 %v4007_v41, %v2946_v42  ;;  %v4416_v30 = vpop.f32.mrb[65].mxu0 }
0x18c2   : > { %v2949_v45 = vpop.f32.mrb[66].mxu0 }
0x18c3   : > { %v3017_v46 = vpack.c.bf16 %v2947_v43, %v2947_v43  ;;  %v4417_v47 = vpop.f32.mrb[67].mxu0 }
0x18c5   : > { %3127 = vrot.lane.b32.xlu1 %v3017_v46, %s5726_s24  ;;  %3237 = vrot.lane.b32.xlu0 %v3017_v46, %s5727_s28 }
0x18c6   : > { %4429 = vmatmul.mubr.msk.bf16.vlgmr.msra.gmra.mrb[68].mxu0 %vm830_vm2, %v3017_v46 }
0x18c7   : > { %4439 = vmatpush3.bf16.xpose.msra.mxu0 %v3135_v48  ;;  %4440 = vmatprep.mubr.msk.bf16.mxu0 %vm4740_vm0, %v4739_v1 }
0x18c8   : > { %4450 = vmatprep.subr.bf16.mxu0 %v4739_v1 }
0x18c9   : > { %3239 = vrot.lane.b32.xlu1 %v5415_v38, %s5727_s28  ;;  %3347 = vrot.lane.b32.xlu0 %v3017_v46, %s5728_s3  ;;  %s4755_s28 = smov [#allocation2]  }
0x18cd   : > { %3349 = vrot.lane.b32.xlu1 %v5415_v38, %s5728_s3  ;;  %s5748_s3 = sld [smem:[#allocation25_spill]] }
0x1937   : > { %v3128_v49 = vpop.permute.xlu1 %3127  ;;  %v3238_v53 = vpop.permute.xlu0 %3237 }
0x1938   : > { %4441 = vmatmul.mubr.msk.bf16.vlgmr.msra.gmra.mrb[72].mxu0 %vm830_vm2, %v3128_v49 }
0x1939   : > { %4452 = vmatprep.mubr.msk.bf16.mxu0 %vm4740_vm0, %v4739_v1 }
0x193b   : > { %v3240_v50 = vpop.permute.xlu1 %3239  ;;  %v3348_v55 = vpop.permute.xlu0 %3347 }
0x193c   : > { %v3245_v51 = vsel %vm830_vm2, %v3240_v50, 0 }
0x193d   : > { %4451 = vmatpush3.bf16.xpose.msra.mxu0 %v3245_v51 }
0x193e   : > { %4462 = vmatprep.subr.bf16.mxu0 %v4739_v1 }
0x193f   : > { %v3350_v52 = vpop.permute.xlu1 %3349 }
0x1940   : > { %v3355_v54 = vsel %vm830_vm2, %v3350_v52, 0 }
0x1944   : > { %4453 = vmatmul.mubr.msk.bf16.vlgmr.msra.gmra.mrb[76].mxu0 %vm830_vm2, %v3238_v53 }
0x1945   : > { %4463 = vmatpush3.bf16.xpose.msra.mxu0 %v3355_v54  ;;  %4464 = vmatprep.mubr.msk.bf16.mxu0 %vm4740_vm0, %v4739_v1 }
0x1946   : > { %4474 = vmatprep.subr.bf16.mxu0 %v4739_v1 }
0x194c   : > { %4465 = vmatmul.mubr.msk.bf16.vlgmr.msra.gmra.mrb[80].mxu0 %vm830_vm2, %v3348_v55 }
0x194d   : > { %4478 = vmatprep.mubr.msk.bf16.mxu0 %vm4740_vm0, %v4739_v1 }
0x1999   : > { %v3059_v56 = vpop.f32.mrb[68].mxu0 }
0x199a   : > { %v4430_v57 = vpop.f32.mrb[69].mxu0  ;;  %v3065_v58 = vsel %vm830_vm2, %v3059_v56, -inf }
0x199b   : > { %3066 = vmax.xlane.f32.xlu1 %v3065_v58  ;;  %v3062_v59 = vpop.f32.mrb[70].mxu0 }
0x199c   : > { %v4431_v60 = vpop.f32.mrb[71].mxu0 }
0x1a0b   : > { %v3171_v61 = vpop.f32.mrb[72].mxu0 }
0x1a0c   : > { %v4442_v62 = vpop.f32.mrb[73].mxu0  ;;  %v3177_v63 = vsel %vm830_vm2, %v3171_v61, -inf }
0x1a0d   : > { %3178 = vmax.xlane.f32.xlu0 %v3177_v63  ;;  %v3174_v0 = vpop.f32.mrb[74].mxu0 }
0x1a0e   : > { %v4443_v2 = vpop.f32.mrb[75].mxu0 }
0x1a17   : > { %v3281_v4 = vpop.f32.mrb[76].mxu0 }
0x1a18   : > { %v4454_v5 = vpop.f32.mrb[77].mxu0  ;;  %v3287_v25 = vsel %vm830_vm2, %v3281_v4, -inf }
0x1a19   : > { %3288 = vmax.xlane.f32.xlu0 %v3287_v25  ;;  %v3284_v6 = vpop.f32.mrb[78].mxu0  ;;  %v4590_v5 = vld [vmem:[%s5748_s3 + $0x18] sm:$0xff]  }
0x1a1a   : > { %v4455_v7 = vpop.f32.mrb[79].mxu0 }
0x1a1f   : > { %v3391_v8 = vpop.f32.mrb[80].mxu0 }
0x1a20   : > { %v4466_v10 = vpop.f32.mrb[81].mxu0  ;;  %v3397_v3 = vsel %vm830_vm2, %v3391_v8, -inf }
0x1a21   : > { %3398 = vmax.xlane.f32.xlu1 %v3397_v3  ;;  %v3394_v11 = vpop.f32.mrb[82].mxu0 }
0x1a22   : > { %v4467_v13 = vpop.f32.mrb[83].mxu0 }
0x1a28   : > { %v3067_v14 = vpop.xlane.xlu1 %3066 }
0x1a29   : > { %v3068_v15 = vsub.f32 %v3059_v56, %v3067_v14 }
0x1a2b   : > { %v3069_v17 = vmul.f32 1.442695, %v3068_v15 }
0x1a2d   : > { %4655 = vpow2.f32 %v3069_v17 }
0x1a37   : > { %v4656_v18 = vpop.eup %4655 }
0x1a38   : > { %v3071_v19 = vsel %vm830_vm2, %v4656_v18, 0.0 }
0x1a39   : > { %3072 = vadd.xlane.f32.xlu0 %v3071_v19 }
0x1a9a   : > { %v3179_v9 = vpop.xlane.xlu0 %3178 }
0x1a9b   : > { %v3180_v16 = vsub.f32 %v3171_v61, %v3179_v9 }
0x1a9d   : > { %v3181_v20 = vmul.f32 1.442695, %v3180_v16 }
0x1a9f   : > { %4657 = vpow2.f32 %v3181_v20 }
0x1aa6   : > { %v3289_v21 = vpop.xlane.xlu0 %3288 }
0x1aa7   : > { %v3290_v24 = vsub.f32 %v3281_v4, %v3289_v21  ;;  %v4589_v4 = vld [vmem:[%s5748_s3 + $0x10] sm:$0xff]   ;;  %s4679_s3 = sshll.u32 %s4755_s28, 4  ;;  %s4680_s3 = int_to_ptr.vmem [resolvable:$false] %s4679_s3 }
0x1aa8   : > { %4475 = vmatpush3.bf16.msra.mxu0 %v4589_v4 }
0x1aa9   : > { %v4658_v26 = vpop.eup %4657  ;;  %v3291_v12 = vmul.f32 1.442695, %v3290_v24  ;;  %4476 = vmatprep.subr.bf16.mxu0 %v4739_v1 }
0x1aaa   : > { %v3183_v27 = vsel %vm830_vm2, %v4658_v26, 0.0 }
0x1aab   : > { %4659 = vpow2.f32 %v3291_v12  ;;  %3184 = vadd.xlane.f32.xlu1 %v3183_v27 }
0x1aac   : > { %4477 = vmatpush3.bf16.msra.mxu0 %v4590_v5 }
0x1aad   : > { %4490 = vmatprep.subr.bf16.mxu0 %v4739_v1 }
0x1aae   : > { %v3399_v29 = vpop.xlane.xlu1 %3398 }
0x1aaf   : > { %v3400_v31 = vsub.f32 %v3391_v8, %v3399_v29 }
0x1ab1   : > { %v3401_v33 = vmul.f32 1.442695, %v3400_v31 }
0x1ab3   : > { %4661 = vpow2.f32 %v3401_v33 }
0x1ab5   : > { %v4660_v28 = vpop.eup %4659 }
0x1ab6   : > { %v3293_v23 = vsel %vm830_vm2, %v4660_v28, 0.0 }
0x1ab7   : > { %3294 = vadd.xlane.f32.xlu0 %v3293_v23 }
0x1abc   : > { %3189 = vrot.lane.b32.xlu1 %v5415_v38, %s5733_s30 }
0x1abd   : > { %v4662_v22 = vpop.eup %4661 }
0x1abe   : > { %v3403_v34 = vsel %vm830_vm2, %v4662_v22, 0.0 }
0x1ac6   : > { %v3073_v35 = vpop.xlane.xlu0 %3072 }
0x1ac7   : > { %4663 = vrcp.f32 %v3073_v35  ;;  %v4591_v35 = vld [vmem:[%s5630_s16 + $0x10] sm:$0xff]  }
0x1acd   : > { %3078 = vrot.lane.b32.xlu0 %v5415_v38, %s5730_s27  ;;  %s739_s27 = sand.u32 1, %s5751_s0  }
0x1ace   : > { %s3829_s0 = scalar_lea.sflag [#allocation3], %s739_s27 }
0x1ad1   : > { %3409 = vrot.lane.b32.xlu0 %v5415_v38, %s5732_s2  ;;  %v4664_v37 = vpop.eup %4663  ;;  %s5749_s2 = sld [smem:[#allocation26_spill]] }
0x1ad2   : > { %v3075_v40 = vmul.f32 %v4664_v37, %v4656_v18  ;;  %v4594_v37 = vld [vmem:[%s5632_s18 + $0x28] sm:$0xff]  }
0x1ad4   : > { %v3076_v30 = vpack.c.bf16 %v3075_v40, %v3075_v40 }
0x1ad7   : > { %v4033_v20 = vld [vmem:[%s5749_s2 + $0x1] ss:$0 sm:$0xff]  ;;  %s5753_s2 = sld [smem:[#allocation28_spill]] }
0x1ae0   : > { %3404 = vadd.xlane.f32.xlu1 %v3403_v34 }
0x1af1   : > { %3299 = vrot.lane.b32.xlu1 %v5415_v38, %s5731_s5  ;;  %s3917_s5 = sshll.u32 %s739_s27, 3 }
0x1af2   : > { %s741_s8 = scalar_lea.vmem [#allocation2], %s3917_s5  ;;  %s4681_s5 = scalar_lea.vmem %s4680_s3, 256 }
0x1af3   : > { %s3842_s7 = sshll.u32 %s741_s8, 4  ;;  %s5574_s7 = int_to_ptr.vmem [resolvable:$true] %s3842_s7 }
0x1af4   : > { %p4682_p0 = scmp.lt.s32.totalorder %s5574_s7, %s4680_s3 }
0x1b38   : > { %v3185_v36 = vpop.xlane.xlu1 %3184 }
0x1b39   : > { %4665 = vrcp.f32 %v3185_v36  ;;  %v4592_v36 = vld [vmem:[%s5630_s16 + $0x18] sm:$0xff]  }
0x1b3c   : > { %v3190_v43 = vpop.permute.xlu1 %3189 }
0x1b3d   : > { %v3195_v45 = vsel %vm895_vm4, %v3190_v43, 0  ;;  %v4039_v43 = vld [vmem:[%s5628_s14 + $0x1] ss:$0 sm:$0xff] }
0x1b43   : > { %v4666_v44 = vpop.eup %4665 }
0x1b44   : > { %v3295_v39 = vpop.xlane.xlu0 %3294  ;;  %v3187_v38 = vmul.f32 %v4666_v44, %v4658_v26  ;;  %v4040_v44 = vld [vmem:[%s5629_s15 + $0x1] ss:$0 sm:$0xff] }
0x1b45   : > { %4667 = vrcp.f32 %v3295_v39 }
0x1b46   : > { %v3188_v46 = vpack.c.bf16 %v3187_v38, %v3187_v38 }
0x1b48   : > { %v3079_v41 = vpop.permute.xlu0 %3078 }
0x1b49   : > { %v3084_v42 = vsel %vm895_vm4, %v3079_v41, 0 }
0x1b4a   : > { %4433 = vmatpush3.bf16.msra.mxu1 %v3084_v42 }
0x1b4b   : > { %4444 = vmatprep.subr.bf16.mxu1 %v4739_v1 }
0x1b4c   : > { %v3410_v52 = vpop.permute.xlu0 %3409 }
0x1b4d   : > { %4435 = vmatmul.mubr.msk.bf16.vlgmr.msra.gmra.mrb[72].mxu1 %vm830_vm2, %v3076_v30  ;;  %v3415_v54 = vsel %vm895_vm4, %v3410_v52, 0 }
0x1b4e   : > { %4445 = vmatpush3.bf16.msra.mxu1 %v3195_v45  ;;  %4446 = vmatprep.mubr.msk.bf16.mxu1 %vm4740_vm0, %v4739_v1 }
0x1b4f   : > { %4456 = vmatprep.subr.bf16.mxu1 %v4739_v1  ;;  %v4668_v47 = vpop.eup %4667 }
0x1b50   : > { %v3297_v49 = vmul.f32 %v4668_v47, %v4660_v28  ;;  %v4595_v47 = vld [vmem:[%s5632_s18 + $0x30] sm:$0xff]  }
0x1b52   : > { %v3298_v53 = vpack.c.bf16 %v3297_v49, %v3297_v49  ;;  %v4046_v49 = vld [vmem:[%s5631_s17 + $0x1] ss:$0 sm:$0xff] }
0x1b55   : > { %4447 = vmatmul.mubr.msk.bf16.vlgmr.msra.gmra.mrb[76].mxu1 %vm830_vm2, %v3188_v46 }
0x1b56   : > { %4458 = vmatprep.mubr.msk.bf16.mxu1 %vm4740_vm0, %v4739_v1 }
0x1b6d   : > { %v3405_v48 = vpop.xlane.xlu1 %3404 }
0x1b6e   : > { %4669 = vrcp.f32 %v3405_v48  ;;  %v4596_v48 = vld [vmem:[%s5632_s18 + $0x38] sm:$0xff]  }
0x1b71   : > { %v3300_v50 = vpop.permute.xlu1 %3299 }
0x1b72   : > { %v3305_v51 = vsel %vm895_vm4, %v3300_v50, 0 }
0x1b73   : > { %4457 = vmatpush3.bf16.msra.mxu1 %v3305_v51 }
0x1b74   : > { %4468 = vmatprep.subr.bf16.mxu1 %v4739_v1 }
0x1b76   : > { %4459 = vmatmul.mubr.msk.bf16.vlgmr.msra.gmra.mrb[80].mxu1 %vm830_vm2, %v3298_v53 }
0x1b77   : > { %4469 = vmatpush3.bf16.msra.mxu1 %v3415_v54  ;;  %4470 = vmatprep.mubr.msk.bf16.mxu1 %vm4740_vm0, %v4739_v1 }
0x1b78   : > { %v4670_v55 = vpop.eup %4669  ;;  %4482 = vmatprep.subr.bf16.mxu1 %v4739_v1 }
0x1b79   : > { %v3407_v56 = vmul.f32 %v4670_v55, %v4662_v22 }
0x1b7b   : > { %v3408_v57 = vpack.c.bf16 %v3407_v56, %v3407_v56 }
0x1b7e   : > { %4471 = vmatmul.mubr.msk.bf16.vlgmr.msra.gmra.mrb[84].mxu1 %vm830_vm2, %v3408_v57  ;;  %v4059_v57 = vld [vmem:[%s5633_s19 + $0x1] ss:$0 sm:$0xff] }
0x1b7f   : > { %4486 = vmatprep.mubr.msk.bf16.mxu1 %vm4740_vm0, %v4739_v1  ;;  %4483 = vmatpush3.bf16.msra.mxu1 %v4591_v35 }
0x1b80   : > { %4484 = vmatprep.subr.bf16.mxu1 %v4739_v1 }
0x1b83   : > { %4485 = vmatpush3.bf16.msra.mxu1 %v4592_v36 }
0x1b84   : > { %4502 = vmatprep.subr.bf16.mxu1 %v4739_v1 }
0x1c20   : > { %v3120_v58 = vpop.f32.mrb[72].mxu1 }
0x1c21   : > { %v4436_v59 = vpop.f32.mrb[73].mxu1 }
0x1c22   : > { %v3123_v60 = vpop.f32.mrb[74].mxu1 }
0x1c23   : > { %v4437_v61 = vpop.f32.mrb[75].mxu1 }
0x1c28   : > { %v3231_v62 = vpop.f32.mrb[76].mxu1 }
0x1c29   : > { %3458 = vrot.lane.b32.xlu1 %v3231_v62, %s5735_s26  ;;  %v4448_v63 = vpop.f32.mrb[77].mxu1 }
0x1c2a   : > { %v3234_v0 = vpop.f32.mrb[78].mxu1 }
0x1c2b   : > { %v4449_v2 = vpop.f32.mrb[79].mxu1 }
0x1c49   : > { %v3341_v25 = vpop.f32.mrb[80].mxu1 }
0x1c4a   : > { %3462 = vrot.lane.b32.xlu0 %v3341_v25, %s5736_s11  ;;  %v4460_v6 = vpop.f32.mrb[81].mxu1 }
0x1c4b   : > { %v3344_v7 = vpop.f32.mrb[82].mxu1 }
0x1c4c   : > { %v4461_v8 = vpop.f32.mrb[83].mxu1  ;;  %v4597_v7 = vld [vmem:[%s5750_s22] sm:$0xff]  }
0x1c4d   : > { %v4598_v8 = vld [vmem:[%s5750_s22 + $0x8] sm:$0xff]  }
0x1c51   : > { %v3451_v10 = vpop.f32.mrb[84].mxu1 }
0x1c52   : > { %3466 = vrot.lane.b32.xlu1 %v3451_v10, %s5737_s23  ;;  %v4472_v3 = vpop.f32.mrb[85].mxu1  ;;  %s4074_s23 = sshll.u32 %s5752_s12, 7  ;;  %s4675_s12 = scalar_lea.vmem %s5574_s7, 128 }
0x1c53   : > { %v3454_v11 = vpop.f32.mrb[86].mxu1  ;;  %s5572_s24 = scalar_lea.hbm %s5755_s4, %s4074_s23  ;;  %p4676_p11 = scmp.ne.s32.totalorder %s5574_s7, %s4675_s12 }
0x1c54   : > { %v4473_v13 = vpop.f32.mrb[87].mxu1  ;;  %p4683_p1 = scmp.lt.s32.totalorder %s4681_s5, %s4675_s12 }
0x1c55   : > { %p4677_p12 = pnand %p4676_p11, %p4919_p5 }
0x1c56   : > { %p4684_p2 = por %p4683_p1, %p4682_p0 }
0x1c57   : > { %p4678_p13 = pneg %p4677_p12 }
0x1c59   : > { %p4685_p3 = pnand %p4684_p2, %p4678_p13 }
0x1c9b   : > { %v3459_v14 = vpop.permute.xlu1 %3458 }
0x1c9c   : > { %v3469_v17 = vsel %vm830_vm2, %v3120_v58, %v3459_v14  ;;  %v4067_v14 = vld [vmem:[%s5634_s20 + $0x1] ss:$0 sm:$0xff] }
0x1cbc   : > { %v3463_v15 = vpop.permute.xlu0 %3462 }
0x1cbd   : > { %v3470_v18 = vsel %vm1285_vm5, %v3469_v17, %v3463_v15  ;;  %v4068_v17 = vld [vmem:[%s5635_s21 + $0x1] ss:$0 sm:$0xff] }
0x1cc4   : > { %v3467_v19 = vpop.permute.xlu1 %3466 }
0x1cc5   : > { %v3471_v9 = vsel %vm1287_vm6, %v3470_v18, %v3467_v19 }
0x1cc6   : > { %v3472_v16 = vpack.c.bf16 %v3471_v9, %v3471_v9 }
0x1cc8   : > { %4479 = vmatmul.mubr.msk.bf16.vlgmr.msra.gmra.mrb[84].mxu0 %vm782_vm1, %v3472_v16 }
0x1cc9   : > { %4498 = vmatprep.mubr.msk.bf16.mxu0 %vm4740_vm0, %v4739_v1 }
0x1d9b   : > { %v3535_v21 = vpop.f32.mrb[84].mxu0 }
0x1d9c   : > { %v3536_v24 = vadd.f32 %v4033_v20, %v3535_v21  ;;  %v4480_v26 = vpop.f32.mrb[85].mxu0 }
0x1d9d   : > { %v3538_v12 = vpop.f32.mrb[86].mxu0 }
0x1d9e   : > { %v4481_v27 = vpop.f32.mrb[87].mxu0  ;;  %v3541_v28 = vadd.f32 %v3536_v24, %v5405_v32  ;;  %v4593_v32 = vld [vmem:[%s5632_s18 + $0x20] sm:$0xff]  }
0x1d9f   : > { %4491 = vmatpush3.bf16.msra.mxu0 %v4593_v32 }
0x1da0   : > { %v3546_v23 = vsel %vm782_vm1, %v3541_v28, 0.0  ;;  %4492 = vmatprep.subr.bf16.mxu0 %v4739_v1 }
0x1da1   : > { %3547 = vadd.xlane.f32.xlu0 %v3546_v23 }
0x1da3   : > { %4493 = vmatpush3.bf16.msra.mxu0 %v4594_v37 }
0x1da4   : > { %4494 = vmatprep.subr.bf16.mxu0 %v4739_v1 }
0x1da7   : > { %4495 = vmatpush3.bf16.msra.mxu0 %v4595_v47 }
0x1da8   : > { %4496 = vmatprep.subr.bf16.mxu0 %v4739_v1 }
0x1dab   : > { %4497 = vmatpush3.bf16.msra.mxu0 %v4596_v48 }
0x1e2e   : > { %v3548_v29 = vpop.xlane.xlu0 %3547 }
0x1e2f   : > { %v3549_v31 = vmul.f32 0.03125, %v3548_v29 }
0x1e31   : > { %v3550_v33 = vsub.f32 %v3541_v28, %v3549_v31 }
0x1e33   : > { %v3551_v22 = vmul.f32 %v3550_v33, %v3550_v33 }
0x1e35   : > { %v3552_v34 = vsel %vm782_vm1, %v3551_v22, 0.0 }
0x1e36   : > { %3553 = vadd.xlane.f32.xlu1 %v3552_v34 }
0x1ec3   : > { %v3554_v39 = vpop.xlane.xlu1 %3553 }
0x1ec4   : > { %v3555_v40 = vmul.f32 0.03125, %v3554_v39 }
0x1ec6   : > { %v3556_v41 = vadd.f32 1e-05, %v3555_v40 }
0x1ec8   : > { %4671 = vrsqrt.f32 %v3556_v41 }
0x1ed2   : > { %v4672_v42 = vpop.eup %4671 }
0x1ed3   : > { %v3558_v30 = vmul.f32 %v4672_v42, %v3550_v33 }
0x1ed5   : > { %v3565_v45 = vmul.f32 %v4039_v43, %v3558_v30 }
0x1ed7   : > { %v3572_v38 = vadd.f32 %v4040_v44, %v3565_v45 }
0x1ed9   : > { %v3573_v46 = vpack.c.bf16 %v3572_v38, %v3572_v38 }
0x1edb   : > { %4487 = vmatmul.mubr.msk.bf16.vlgmr.msra.gmra.mrb[88].mxu1 %vm782_vm1, %v3573_v46 }
0x1edc   : > { %4506 = vmatprep.mubr.msk.bf16.mxu1 %vm4740_vm0, %v4739_v1  ;;  %4503 = vmatpush3.bf16.msra.mxu1 %v4597_v7 }
0x1edd   : > { %4504 = vmatprep.subr.bf16.mxu1 %v4739_v1  ;;  %v4069_v1 = vld [vmem:[%s5753_s2] ss:$0 sm:$0xff] }
0x1ee0   : > { %4505 = vmatpush3.bf16.msra.mxu1 %v4598_v8 }
0x1fae   : > { %v3636_v50 = vpop.f32.mrb[88].mxu1 }
0x1faf   : > { %v3637_v51 = vadd.f32 %v4046_v49, %v3636_v50  ;;  %v4488_v52 = vpop.f32.mrb[89].mxu1 }
0x1fb0   : > { %v3639_v53 = vpop.f32.mrb[90].mxu1 }
0x1fb1   : > { %v3642_v54 = vmax.f32 %v3637_v51, 0.0  ;;  %v4489_v55 = vpop.f32.mrb[91].mxu1 }
0x1fb3   : > { %v3643_v56 = vpack.c.bf16 %v3642_v54, %v3642_v54 }
0x1fb5   : > { %4499 = vmatmul.mubr.msk.bf16.vlgmr.msra.gmra.mrb[88].mxu0 %vm2180_vm7, %v3643_v56 }
0x2088   : > { %v3722_v58 = vpop.f32.mrb[88].mxu0 }
0x2089   : > { %v3723_v59 = vadd.f32 %v4059_v57, %v3722_v58  ;;  %v4500_v60 = vpop.f32.mrb[89].mxu0 }
0x208a   : > { %v3725_v61 = vpop.f32.mrb[90].mxu0 }
0x208b   : > { %v4501_v62 = vpop.f32.mrb[91].mxu0  ;;  %v3728_v63 = vadd.f32 %v3723_v59, %v3572_v38 }
0x208d   : > { %v3733_v0 = vsel %vm782_vm1, %v3728_v63, 0.0 }
0x208e   : > { %3734 = vadd.xlane.f32.xlu0 %v3733_v0 }
0x211b   : > { %v3735_v2 = vpop.xlane.xlu0 %3734 }
0x211c   : > { %v3736_v4 = vmul.f32 0.03125, %v3735_v2 }
0x211e   : > { %v3737_v5 = vsub.f32 %v3728_v63, %v3736_v4 }
0x2120   : > { %v3738_v25 = vmul.f32 %v3737_v5, %v3737_v5 }
0x2122   : > { %v3739_v6 = vsel %vm782_vm1, %v3738_v25, 0.0 }
0x2123   : > { %3740 = vadd.xlane.f32.xlu0 %v3739_v6 }
0x21b0   : > { %v3741_v10 = vpop.xlane.xlu0 %3740 }
0x21b1   : > { %v3742_v3 = vmul.f32 0.03125, %v3741_v10 }
0x21b3   : > { %v3743_v11 = vadd.f32 1e-05, %v3742_v3 }
0x21b5   : > { %4673 = vrsqrt.f32 %v3743_v11 }
0x21bf   : > { %v4674_v13 = vpop.eup %4673 }
0x21c0   : > { %v3745_v15 = vmul.f32 %v4674_v13, %v3737_v5 }
0x21c2   : > { %v3752_v18 = vmul.f32 %v4067_v14, %v3745_v15 }
0x21c4   : > { %v3759_v19 = vadd.f32 %v4068_v17, %v3752_v18 }
0x21c6   : > { %v3760_v9 = vpack.c.bf16 %v3759_v19, %v3759_v19 }
0x21c8   : > { %4507 = vmatmul.mubr.msk.bf16.vlgmr.msra.gmra.mrb[92].mxu1 %vm782_vm1, %v3760_v9 }
0x229b   : > { %v3821_v16 = vpop.f32.mrb[92].mxu1 }
0x229c   : > { %v3822_v20 = vadd.f32 %v4069_v1, %v3821_v16  ;;  %v4508_v21 = vpop.f32.mrb[93].mxu1 }
0x229d   : > { %v3824_v24 = vpop.f32.mrb[94].mxu1 }
0x229e   : > { %3827 = vst [vmem:[%s741_s8] sm:$0xff] %v3822_v20  ;;  %v4509_v26 = vpop.f32.mrb[95].mxu1 }
0x229f   : > { %4688 = shalt.err (!%p4685_p3)
}
0x22a0   : > { %s4689_s27 = scalar_lea.hbm %s5572_s24, 128  ;;  %s4693_s2 = scalar_lea.hbm %s5755_s4, 256 }
0x22a1   : > { %p4690_p4 = scmp.ne.s32.totalorder %s5572_s24, %s4689_s27  ;;  %p4694_p9 = scmp.lt.u32.totalorder %s5572_s24, %s5755_s4 }
0x22a2   : > { %p4695_p10 = scmp.lt.u32.totalorder %s4693_s2, %s4689_s27  ;;  %p4697_p12 = scmp.lt.u32.totalorder %s4689_s27, %s5572_s24 }
0x22a3   : > { %p4691_p7 = pnand %p4690_p4, %p4919_p5 }
0x22a4   : > { %p4696_p11 = por %p4695_p10, %p4694_p9 }
0x22a5   : > { %p4692_p8 = pneg %p4691_p7 }
0x22a6   : > { %p4698_p13 = por %p4697_p12, %p4696_p11 }
0x22a8   : > { %p4699_p0 = pnand %p4698_p13, %p4692_p8 }
0x22aa   : > { %4702 = shalt.err (!%p4699_p0)
}
0x22ab   : > { %4510 = dma.vmem_to_hbm [thread:$0]  (%p4919_p5), %s5574_s7, 128, %s5572_s24, %s3829_s0  }
0x22ac PF: > { %s5756_s13 = sld [smem:[#allocation8_spill]]  ;;  %s5757_s6 = sld [smem:[#allocation5_spill]] }
0x22b2   : > { %p4516_p1 = scmp.ge.s32.totalorder %s5756_s13, 2  ;;  %s3854_s28 = sand.u32 1, %s5757_s6  }
0x22b3   : > { %s3855_s3 = scalar_lea.sflag [#allocation3], %s3854_s28 }
0x22b4   : > { %p4513_p2 = pnand %p4516_p1, %p4923_p6 }
0x22b6   : > { %4720 = dma.done.wait (!%p4513_p2), %s3855_s3, 128  }
0x22b7   : > { %4722 = vsyncadd (!%p4513_p2), %s3855_s3, 4294967168  ;;  %s5759_s28 = sld [smem:[#allocation10_spill]]  ;;  %s5760_s5 = sld [smem:[#allocation6_spill]] }
0x22b8   : > { %s5761_s26 = sld [smem:[#allocation7_spill]]  ;;  %s5762_s27 = sld [smem:[#allocation11_spill]] }
0x22bd   : > { %p34_p3 = scmp.ge.s32.totalorder %s5759_s28, 4  }
0x22bf   :  { %36 = sbr.rel (!%p34_p3) target bundleno = 20 (0x14), region = 174 }
0x22c6   :  { %3860 = vsyncpa [#allocation3], 1 }
0x22c7   :  { %3862 = vsyncpa [#allocation3 + $0x1], 1 }

</bundles_post_ra>
